<compile_context>
chip_gen: v7x
topology: tpu7x:2x2x1
jax: 0.10.0
libtpu: 0.0.40
codegen_flags: <defaults>
</compile_context>

<pallas_src>
import functools
import math

import jax
import jax.numpy as jnp
import numpy as np
from jax import lax
from jax.experimental import pallas as pl
from jax.experimental.pallas import tpu as pltpu


def _round_up(x, m):
    return ((x + m - 1) // m) * m


def _bki_update_kernel(idx_ref, payload_ref, mean_ref, var_ref, conf_ref,
                       mean_out_ref, var_out_ref, conf_out_ref, acc_ref,
                       *, tile_v, tile_n, latent, lp, w_vals, matmul_dtype,
                       precision):
    """Grid = (V tiles ["parallel"], point tiles ["arbitrary", reduction last])."""
    p_step = pl.program_id(1)

    @pl.when(p_step == 0)
    def _init():
        acc_ref[...] = jnp.zeros_like(acc_ref)

    v0 = pl.program_id(0) * tile_v
    local = idx_ref[...] - v0                       # (F3, tile_n); invalid pairs stay < 0
    in_tile = (local >= 0) & (local < tile_v)
    hit = jnp.sum(in_tile.astype(jnp.int32)) > 0    # cheap empty-tile skip

    @pl.when(hit)
    def _scatter():
        # Per-point payload base [feat | feat^2 | 1 | 0pad]   (tile_n, Kp).
        payload = payload_ref[...]
        # Weighted scatter matrix S[v, n] = sum_f w[f] * [idx[n, f] == v0 + v].
        # One MXU matmul then yields sum(w*f), sum(w*f^2) and k_bar in one shot.
        rows = lax.broadcasted_iota(jnp.int32, (tile_v, tile_n), 0)
        scat = jnp.zeros((tile_v, tile_n), jnp.float32)
        for f, w_f in enumerate(w_vals):            # static unroll over 27 offsets
            if w_f == 0.0:                          # offsets beyond ell contribute nothing
                continue
            scat = scat + jnp.where(rows == local[f:f + 1, :], w_f, 0.0)
        # Cast only right before the matmul (keeps compare/select in int32/f32 on v5e).
        acc_ref[...] += lax.dot_general(
            scat.astype(matmul_dtype), payload,
            (((1,), (0,)), ((), ())),
            preferred_element_type=jnp.float32, precision=precision)

    @pl.when(p_step == pl.num_programs(1) - 1)
    def _finalize():
        L = latent
        acc = acc_ref[...]                          # (tile_v, Kp) f32
        swf = acc[:, :L]                            # sum_m w * feat
        swf2 = acc[:, L:2 * L]                      # sum_m w * feat^2
        k_bar = acc[:, 2 * L:2 * L + 1]             # sum_m w
        mean = mean_ref[:, :L]
        var = var_ref[:, :L]
        conf = conf_ref[...]                        # (tile_v, 1)

        # Exact divides: finalize runs once per V-tile, not on the hot path.
        inv_k = 1.0 / (k_bar + 1e-6)
        y_bar = swf * inv_k
        # s_bar = sum_m w (feat - y_bar)^2 expanded (no gather matmul); clamp the
        # cancellation residue so variance never decreases spuriously.
        s_bar = jnp.maximum(swf2 - y_bar * (2.0 * swf - k_bar * y_bar), 0.0)

        inv_ck = 1.0 / (conf + k_bar + 1e-6)
        scaling = conf * k_bar * inv_ck
        dm = y_bar - mean

        var_out_ref[:, :L] = var + s_bar + scaling * (dm * dm)
        mean_out_ref[:, :L] = (conf * mean + k_bar * y_bar) * inv_ck
        conf_out_ref[...] = conf + k_bar
        if lp > L:                                  # deterministic pad lanes (sliced away)
            pad = jnp.zeros((tile_v, lp - L), jnp.float32)
            mean_out_ref[:, L:] = pad
            var_out_ref[:, L:] = pad


def latent_bki_forward(current_map, point_cloud, grid_size, min_bound, max_bound,
                       filter_size=3, max_dist=0.5, sigma=1.0,
                       tile_v=1024, tile_n=512,
                       matmul_dtype=jnp.bfloat16, precision=None):
    """Equivalent of LatentBKI.forward(current_map, point_cloud)
    (non-iterative, pseudo_discrete=True, kernel='sparse').

    NOTE: grid_size / min_bound / max_bound / filter_size are module config and
    must be concrete (the 27 sparse-kernel weights are baked into the kernel as
    constants); point_cloud and the maps may be traced.
    """
    mean_map, var_map, conf_map = current_map
    gx, gy, gz = int(grid_size[0]), int(grid_size[1]), int(grid_size[2])
    V = gx * gy * gz
    L = mean_map.shape[-1]
    Lp = _round_up(L, 128)                          # lane-dense latent width
    Kp = _round_up(2 * L + 1, 128)                  # packed payload width [f | f^2 | 1]

    # ---- static (config-derived) quantities: offsets + sparse-kernel weights ----
    min_b = np.asarray(min_bound, np.float32).reshape(3)
    max_b = np.asarray(max_bound, np.float32).reshape(3)
    gsz_np = np.asarray([gx, gy, gz], np.float32)
    voxel_np = (max_b - min_b) / gsz_np

    half = (filter_size - 1) // 2
    r = np.arange(-half, half + 1, dtype=np.float32)
    offsets_np = np.stack(np.meshgrid(r, r, r, indexing="ij"), -1).reshape(-1, 3)
    F3 = int(offsets_np.shape[0])

    ell = float(max_dist)
    d_off = np.sqrt(np.sum((offsets_np * voxel_np) ** 2, axis=-1))
    t = 2.0 * np.pi * d_off / ell
    w_off = sigma * ((1.0 / 3.0) * (2.0 + np.cos(t)) * (1.0 - d_off / ell)
                     + (1.0 / (2.0 * np.pi)) * np.sin(t))
    w_off = np.clip(np.where(d_off >= ell, 0.0, w_off), 0.0, 1.0).astype(np.float32)
    w_vals = tuple(float(w) for w in w_off)         # compile-time constants

    # ---- per-point preprocessing (traced) ----
    min_bound_j = jnp.asarray(min_b)
    gsz_f = jnp.asarray(gsz_np)
    voxel_sizes = jnp.asarray(voxel_np)
    offsets = jnp.asarray(offsets_np)

    xyz = point_cloud[:, :3].astype(jnp.float32)
    feat = point_cloud[:, 3:].astype(jnp.float32)
    N = xyz.shape[0]

    grid_inds = jnp.floor((xyz - min_bound_j) / voxel_sizes)              # (N, 3)
    nbr = grid_inds[:, None, :] + offsets[None, :, :]                     # (N, F3, 3)
    valid = jnp.all((nbr < gsz_f) & (nbr >= 0.0), axis=-1)                # (N, F3)
    nbr_i = nbr.astype(jnp.int32)
    flat_idx = nbr_i[..., 0] * (gy * gz) + nbr_i[..., 1] * gz + nbr_i[..., 2]
    flat_idx = jnp.where(valid, flat_idx, -1).astype(jnp.int32)           # (N, F3)
    idx_t = flat_idx.T                                                    # (F3, N), lane-dense

    # Per-POINT payload base [feat | feat^2 | 1 | 0pad]: no 27x replication in HBM.
    payload = jnp.concatenate(
        [feat, feat * feat, jnp.ones((N, 1), jnp.float32),
         jnp.zeros((N, Kp - 2 * L - 1), jnp.float32)], axis=1).astype(matmul_dtype)

    # ---- tile selection (multiples of 128; keep >= 2 V-tiles for v7x megacore) ----
    tile_v = _round_up(max(128, int(tile_v)), 128)
    tile_v = min(tile_v, _round_up(V, 128))
    if _round_up(V, 128) >= 256 and _round_up(V, tile_v) == tile_v:
        tile_v = _round_up(-(-V // 2), 128)
    tile_n = _round_up(max(128, int(tile_n)), 128)
    tile_n = min(tile_n, _round_up(N, 128))

    NP = _round_up(N, tile_n)
    Vp = _round_up(V, tile_v)
    idx_t = jnp.pad(idx_t, ((0, 0), (0, NP - N)), constant_values=-1)
    payload = jnp.pad(payload, ((0, NP - N), (0, 0)))

    mean_flat = jnp.pad(mean_map.reshape(V, L).astype(jnp.float32),
                        ((0, Vp - V), (0, Lp - L)))
    var_flat = jnp.pad(var_map.reshape(V, L).astype(jnp.float32),
                       ((0, Vp - V), (0, Lp - L)))
    conf_flat = jnp.pad(conf_map.reshape(V, 1).astype(jnp.float32),
                        ((0, Vp - V), (0, 0)))

    # ---- VMEM budget: v5e/v6e have 128 MiB, v7x only 64 MiB ----
    try:
        vmem_cap = int(pltpu.get_tpu_info().vmem_capacity_bytes)
    except Exception:
        vmem_cap = 64 * 1024 * 1024
    vmem_limit = min((vmem_cap * 3) // 4, 96 * 1024 * 1024)

    kern = functools.partial(_bki_update_kernel, tile_v=tile_v, tile_n=tile_n,
                             latent=L, lp=Lp, w_vals=w_vals,
                             matmul_dtype=matmul_dtype, precision=precision)
    grid = (Vp // tile_v, NP // tile_n)

    mean_out, var_out, conf_out = pl.pallas_call(
        kern,
        grid_spec=pltpu.PrefetchScalarGridSpec(
            num_scalar_prefetch=0,
            grid=grid,
            in_specs=[
                pl.BlockSpec((F3, tile_n), lambda i, p: (0, p)),      # neighbour voxel ids
                pl.BlockSpec((tile_n, Kp), lambda i, p: (p, 0)),      # per-point payload
                pl.BlockSpec((tile_v, Lp), lambda i, p: (i, 0)),      # mean
                pl.BlockSpec((tile_v, Lp), lambda i, p: (i, 0)),      # var
                pl.BlockSpec((tile_v, 1), lambda i, p: (i, 0)),       # conf (V, 1)
            ],
            out_specs=[
                pl.BlockSpec((tile_v, Lp), lambda i, p: (i, 0)),      # mean_out
                pl.BlockSpec((tile_v, Lp), lambda i, p: (i, 0)),      # var_out
                pl.BlockSpec((tile_v, 1), lambda i, p: (i, 0)),       # conf_out (V, 1)
            ],
            scratch_shapes=[pltpu.VMEM((tile_v, Kp), jnp.float32)],
        ),
        out_shape=(
            jax.ShapeDtypeStruct((Vp, Lp), jnp.float32),
            jax.ShapeDtypeStruct((Vp, Lp), jnp.float32),
            jax.ShapeDtypeStruct((Vp, 1), jnp.float32),
        ),
        compiler_params=pltpu.CompilerParams(
            dimension_semantics=("parallel", "arbitrary"),
            vmem_limit_bytes=vmem_limit,
        ),
    )(idx_t, payload, mean_flat, var_flat, conf_flat)

    return (mean_out[:V, :L].reshape(gx, gy, gz, L),
            var_out[:V, :L].reshape(gx, gy, gz, L),
            conf_out[:V, :1].reshape(gx, gy, gz, 1))


def _reference(current_map, point_cloud, grid_size, min_bound, max_bound,
               filter_size=3, max_dist=0.5, sigma=1.0):
    """Pure-JAX replica of LatentBKI.latent_map_update for validation."""
    mean_map, var_map, conf_map = current_map
    gx, gy, gz = int(grid_size[0]), int(grid_size[1]), int(grid_size[2])
    V = gx * gy * gz
    L = mean_map.shape[-1]
    min_bound = jnp.asarray(min_bound, jnp.float32).reshape(3)
    max_bound = jnp.asarray(max_bound, jnp.float32).reshape(3)
    voxel = (max_bound - min_bound) / jnp.asarray([gx, gy, gz], jnp.float32)

    xyz, feat = point_cloud[:, :3], point_cloud[:, 3:]
    N = xyz.shape[0]
    gi = jnp.floor((xyz - min_bound) / voxel)
    half = (filter_size - 1) // 2
    r = jnp.arange(-half, half + 1, dtype=jnp.float32)
    off = jnp.stack(jnp.meshgrid(r, r, r, indexing='ij'), -1).reshape(-1, 3)
    F3 = off.shape[0]
    M = N * F3
    nbr = gi[:, None, :] + off[None, :, :]
    valid = jnp.all((nbr < jnp.asarray([gx, gy, gz], jnp.float32)) & (nbr >= 0), -1)

    pi = math.pi
    d = jnp.linalg.norm(off * voxel, axis=-1)
    w = sigma * ((1 / 3) * (2 + jnp.cos(2 * pi * d / max_dist)) * (1 - d / max_dist)
                 + 1 / (2 * pi) * jnp.sin(2 * pi * d / max_dist))
    w = jnp.clip(jnp.where(d >= max_dist, 0.0, w), 0.0, 1.0)
    wcol = jnp.broadcast_to(w[None, :, None], (N, F3, 1)).reshape(M, 1)
    featrep = jnp.broadcast_to(feat[:, None, :], (N, F3, L)).reshape(M, L)

    idx = nbr.astype(jnp.int32).reshape(M, 3)
    flat = idx[:, 0] * (gy * gz) + idx[:, 1] * gz + idx[:, 2]
    flat = jnp.where(valid.reshape(M), flat, V)          # dump bin V for invalid

    seg = lambda vals: jax.ops.segment_sum(vals, flat, num_segments=V + 1)[:V]
    k_bar = seg(wcol)
    y_bar = seg(wcol * featrep) / (k_bar + 1e-6)
    y_pp = jnp.where(valid.reshape(M, 1), y_bar[jnp.clip(flat, 0, V - 1)], 0.0)
    delta = featrep - y_pp
    s_bar = seg(wcol * delta * delta)

    mean_f = mean_map.reshape(V, L)
    var_f = var_map.reshape(V, L)
    conf_f = conf_map.reshape(V, 1)
    e_bar = (y_bar - mean_f) ** 2
    scaling = conf_f * k_bar / (conf_f + k_bar + 1e-6)
    var_new = var_f + s_bar + scaling * e_bar
    mean_new = (conf_f * mean_f + k_bar * y_bar) / (conf_f + k_bar + 1e-6)
    conf_new = conf_f + k_bar
    # NOTE: "global form" update (matches PyTorch for all touched voxels; untouched
    # voxels with conf > 0 drift by O(1e-6) vs the masked PyTorch write).
    return (mean_new.reshape(gx, gy, gz, L),
            var_new.reshape(gx, gy, gz, L),
            conf_new.reshape(gx, gy, gz, 1))


if __name__ == "__main__":
    key = jax.random.PRNGKey(0)
    grid_size = (8, 8, 8)
    min_bound = jnp.array([-1.0, -1.0, -1.0], jnp.float32)
    max_bound = jnp.array([1.0, 1.0, 1.0], jnp.float32)
    latent_dim = 32
    filter_size = 3
    max_dist = 0.5
    N = 200

    k1, k2, k3, k4 = jax.random.split(key, 4)
    xyz = jax.random.uniform(k1, (N, 3), minval=-0.95, maxval=0.95, dtype=jnp.float32)
    feat = jax.random.normal(k2, (N, latent_dim), dtype=jnp.float32)
    point_cloud = jnp.concatenate([xyz, feat], axis=1)            # (N, 3 + latent_dim)

    # initialize_grid()
    gx, gy, gz = grid_size
    mean_map = jnp.zeros((gx, gy, gz, latent_dim), jnp.float32)
    var_map = jnp.ones((gx, gy, gz, latent_dim), jnp.float32)
    conf_map = jnp.zeros((gx, gy, gz, 1), jnp.float32)
    current_map = (mean_map, var_map, conf_map)

    ref = _reference(current_map, point_cloud, grid_size, min_bound, max_bound,
                     filter_size=filter_size, max_dist=max_dist)

    # Default path: bf16 MXU operands (f32 accumulation).  Small tiles so the toy
    # problem exercises a real 2x2 (parallel V-tile) x (arbitrary point-tile) grid
    # with the VMEM accumulator, the empty-tile skip and the finalize epilogue.
    out_bf16 = latent_bki_forward(current_map, point_cloud, grid_size, min_bound,
                                  max_bound, filter_size=filter_size,
                                  max_dist=max_dist, tile_v=256, tile_n=128)
    jax.block_until_ready(out_bf16)
    for got, want in zip(out_bf16, ref):
        np.testing.assert_allclose(np.asarray(got), np.asarray(want),
                                   rtol=1e-1, atol=1e-1)

    # f32 accuracy-fallback path.
    out_f32 = latent_bki_forward(current_map, point_cloud, grid_size, min_bound,
                                 max_bound, filter_size=filter_size,
                                 max_dist=max_dist, tile_v=256, tile_n=128,
                                 matmul_dtype=jnp.float32)
    jax.block_until_ready(out_f32)
    for got, want in zip(out_f32, ref):
        np.testing.assert_allclose(np.asarray(got), np.asarray(want),
                                   rtol=3e-2, atol=5e-2)

    # Chained second update (conf > 0 path / scaling factor exercised).
    N2 = 150
    xyz2 = jax.random.uniform(k3, (N2, 3), minval=-0.95, maxval=0.95, dtype=jnp.float32)
    feat2 = jax.random.normal(k4, (N2, latent_dim), dtype=jnp.float32)
    pc2 = jnp.concatenate([xyz2, feat2], axis=1)
    ref2 = _reference(ref, pc2, grid_size, min_bound, max_bound,
                      filter_size=filter_size, max_dist=max_dist)
    out2 = latent_bki_forward(out_f32, pc2, grid_size, min_bound, max_bound,
                              filter_size=filter_size, max_dist=max_dist,
                              tile_v=256, tile_n=128, matmul_dtype=jnp.float32)
    jax.block_until_ready(out2)
    for got, want in zip(out2, ref2):
        np.testing.assert_allclose(np.asarray(got), np.asarray(want),
                                   rtol=1e-1, atol=2e-1)

    print("KERNEL_OK")
</pallas_src>

<mosaic_0001>
module attributes {stable_mosaic.version = 11 : i64} {
  func.func @_bki_update_kernel(%arg0: i32, %arg1: i32, %arg2: memref<27x128xi32, #tpu.memory_space<vmem>>, %arg3: memref<128x128xbf16, #tpu.memory_space<vmem>>, %arg4: memref<256x128xf32, #tpu.memory_space<vmem>>, %arg5: memref<256x128xf32, #tpu.memory_space<vmem>>, %arg6: memref<256x1xf32, #tpu.memory_space<vmem>>, %arg7: memref<256x128xf32, #tpu.memory_space<vmem>>, %arg8: memref<256x128xf32, #tpu.memory_space<vmem>>, %arg9: memref<256x1xf32, #tpu.memory_space<vmem>>, %arg10: memref<256x128xf32, #tpu.memory_space<vmem>>) attributes {dimension_semantics = [#tpu.dimension_semantics<parallel>, #tpu.dimension_semantics<arbitrary>], iteration_bounds = array<i64: 2, 2>, scalar_prefetch = 0 : i64, scratch_operands = 1 : i64, tpu.core_type = #tpu.core_type<tc>, window_params = [{transform_indices = @transform_0, window_bounds = array<i64: 27, 128>}, {transform_indices = @transform_1, window_bounds = array<i64: 128, 128>}, {transform_indices = @transform_2, window_bounds = array<i64: 256, 128>}, {transform_indices = @transform_3, window_bounds = array<i64: 256, 128>}, {transform_indices = @transform_4, window_bounds = array<i64: 256, 1>}, {transform_indices = @transform_5, window_bounds = array<i64: 256, 128>}, {transform_indices = @transform_6, window_bounds = array<i64: 256, 128>}, {transform_indices = @transform_7, window_bounds = array<i64: 256, 1>}]} {
    %c0_i32 = arith.constant 0 : i32
    %0 = arith.cmpi eq, %arg1, %c0_i32 : i32
    %1 = arith.extui %0 : i1 to i32
    %c0_i32_0 = arith.constant 0 : i32
    %2 = arith.cmpi ne, %1, %c0_i32_0 : i32
    scf.if %2 {
      %cst_7 = arith.constant 0.000000e+00 : f32
      %23 = vector.broadcast %cst_7 : f32 to vector<256x128xf32>
      %c0_8 = arith.constant 0 : index
      %c0_9 = arith.constant 0 : index
      %24 = vector.load %arg10[%c0_8, %c0_9] : memref<256x128xf32, #tpu.memory_space<vmem>>, vector<256x128xf32>
      tpu.vector_store %arg10[%c0_8, %c0_9], %23 {strides = array<i32>} : memref<256x128xf32, #tpu.memory_space<vmem>>, vector<256x128xf32>,
    } else {
    }
    %c256_i32 = arith.constant 256 : i32
    %3 = arith.muli %arg0, %c256_i32 : i32
    %c0 = arith.constant 0 : index
    %c0_1 = arith.constant 0 : index
    %4 = vector.load %arg2[%c0, %c0_1] : memref<27x128xi32, #tpu.memory_space<vmem>>, vector<27x128xi32>
    %5 = vector.broadcast %3 : i32 to vector<27x128xi32>
    %6 = arith.subi %4, %5 : vector<27x128xi32>
    %c0_i32_2 = arith.constant 0 : i32
    %7 = vector.broadcast %c0_i32_2 : i32 to vector<27x128xi32>
    %8 = arith.cmpi sge, %6, %7 : vector<27x128xi32>
    %c256_i32_3 = arith.constant 256 : i32
    %9 = vector.broadcast %c256_i32_3 : i32 to vector<27x128xi32>
    %10 = arith.cmpi slt, %6, %9 : vector<27x128xi32>
    %11 = arith.andi %8, %10 : vector<27x128xi1>
    %12 = arith.extui %11 : vector<27x128xi1> to vector<27x128xi32>
    %13 = vector.shape_cast %12 : vector<27x128xi32> to vector<1x27x128xi32>
    %cst = arith.constant dense<0> : vector<1xi32>
    %14 = vector.multi_reduction <add>, %13, %cst [1, 2] : vector<1x27x128xi32> to vector<1xi32>
    %15 = vector.shape_cast %14 : vector<1xi32> to vector<1x1x1xi32>
    %16 = vector.extract %15[0, 0, 0] : i32 from vector<1x1x1xi32>
    %c0_i32_4 = arith.constant 0 : i32
    %17 = arith.cmpi sgt, %16, %c0_i32_4 : i32
    %18 = arith.extui %17 : i1 to i32
    %c0_i32_5 = arith.constant 0 : i32
    %19 = arith.cmpi ne, %18, %c0_i32_5 : i32
    scf.if %19 {
      %c0_7 = arith.constant 0 : index
      %c0_8 = arith.constant 0 : index
      %23 = vector.load %arg3[%c0_7, %c0_8] : memref<128x128xbf16, #tpu.memory_space<vmem>>, vector<128x128xbf16>
      %24 = tpu.iota {dimensions = array<i32: 0>} : vector<256x128xi32>
      %cst_9 = arith.constant 0.000000e+00 : f32
      %25 = vector.broadcast %cst_9 : f32 to vector<256x128xf32>
      %26 = vector.extract_strided_slice %6 {offsets = [0, 0], sizes = [1, 128], strides = [1, 1]} : vector<27x128xi32> to vector<1x128xi32>
      %27 = vector.broadcast %26 : vector<1x128xi32> to vector<256x128xi32>
      %28 = arith.cmpi eq, %24, %27 : vector<256x128xi32>
      %cst_10 = arith.constant 3.61330807E-4 : f32
      %cst_11 = arith.constant 0.000000e+00 : f32
      %29 = vector.broadcast %cst_10 : f32 to vector<256x128xf32>
      %30 = vector.broadcast %cst_11 : f32 to vector<256x128xf32>
      %31 = arith.select %28, %29, %30 : vector<256x128xi1>, vector<256x128xf32>
      %32 = arith.addf %25, %31 : vector<256x128xf32>
      %33 = vector.extract_strided_slice %6 {offsets = [1, 0], sizes = [1, 128], strides = [1, 1]} : vector<27x128xi32> to vector<1x128xi32>
      %34 = vector.broadcast %33 : vector<1x128xi32> to vector<256x128xi32>
      %35 = arith.cmpi eq, %24, %34 : vector<256x128xi32>
      %cst_12 = arith.constant 0.0158575177 : f32
      %cst_13 = arith.constant 0.000000e+00 : f32
      %36 = vector.broadcast %cst_12 : f32 to vector<256x128xf32>
      %37 = vector.broadcast %cst_13 : f32 to vector<256x128xf32>
      %38 = arith.select %35, %36, %37 : vector<256x128xi1>, vector<256x128xf32>
      %39 = arith.addf %32, %38 : vector<256x128xf32>
      %40 = vector.extract_strided_slice %6 {offsets = [2, 0], sizes = [1, 128], strides = [1, 1]} : vector<27x128xi32> to vector<1x128xi32>
      %41 = vector.broadcast %40 : vector<1x128xi32> to vector<256x128xi32>
      %42 = arith.cmpi eq, %24, %41 : vector<256x128xi32>
      %cst_14 = arith.constant 3.61330807E-4 : f32
      %cst_15 = arith.constant 0.000000e+00 : f32
      %43 = vector.broadcast %cst_14 : f32 to vector<256x128xf32>
      %44 = vector.broadcast %cst_15 : f32 to vector<256x128xf32>
      %45 = arith.select %42, %43, %44 : vector<256x128xi1>, vector<256x128xf32>
      %46 = arith.addf %39, %45 : vector<256x128xf32>
      %47 = vector.extract_strided_slice %6 {offsets = [3, 0], sizes = [1, 128], strides = [1, 1]} : vector<27x128xi32> to vector<1x128xi32>
      %48 = vector.broadcast %47 : vector<1x128xi32> to vector<256x128xi32>
      %49 = arith.cmpi eq, %24, %48 : vector<256x128xi32>
      %cst_16 = arith.constant 0.0158575177 : f32
      %cst_17 = arith.constant 0.000000e+00 : f32
      %50 = vector.broadcast %cst_16 : f32 to vector<256x128xf32>
      %51 = vector.broadcast %cst_17 : f32 to vector<256x128xf32>
      %52 = arith.select %49, %50, %51 : vector<256x128xi1>, vector<256x128xf32>
      %53 = arith.addf %46, %52 : vector<256x128xf32>
      %54 = vector.extract_strided_slice %6 {offsets = [4, 0], sizes = [1, 128], strides = [1, 1]} : vector<27x128xi32> to vector<1x128xi32>
      %55 = vector.broadcast %54 : vector<1x128xi32> to vector<256x128xi32>
      %56 = arith.cmpi eq, %24, %55 : vector<256x128xi32>
      %cst_18 = arith.constant 0.166666657 : f32
      %cst_19 = arith.constant 0.000000e+00 : f32
      %57 = vector.broadcast %cst_18 : f32 to vector<256x128xf32>
      %58 = vector.broadcast %cst_19 : f32 to vector<256x128xf32>
      %59 = arith.select %56, %57, %58 : vector<256x128xi1>, vector<256x128xf32>
      %60 = arith.addf %53, %59 : vector<256x128xf32>
      %61 = vector.extract_strided_slice %6 {offsets = [5, 0], sizes = [1, 128], strides = [1, 1]} : vector<27x128xi32> to vector<1x128xi32>
      %62 = vector.broadcast %61 : vector<1x128xi32> to vector<256x128xi32>
      %63 = arith.cmpi eq, %24, %62 : vector<256x128xi32>
      %cst_20 = arith.constant 0.0158575177 : f32
      %cst_21 = arith.constant 0.000000e+00 : f32
      %64 = vector.broadcast %cst_20 : f32 to vector<256x128xf32>
      %65 = vector.broadcast %cst_21 : f32 to vector<256x128xf32>
      %66 = arith.select %63, %64, %65 : vector<256x128xi1>, vector<256x128xf32>
      %67 = arith.addf %60, %66 : vector<256x128xf32>
      %68 = vector.extract_strided_slice %6 {offsets = [6, 0], sizes = [1, 128], strides = [1, 1]} : vector<27x128xi32> to vector<1x128xi32>
      %69 = vector.broadcast %68 : vector<1x128xi32> to vector<256x128xi32>
      %70 = arith.cmpi eq, %24, %69 : vector<256x128xi32>
      %cst_22 = arith.constant 3.61330807E-4 : f32
      %cst_23 = arith.constant 0.000000e+00 : f32
      %71 = vector.broadcast %cst_22 : f32 to vector<256x128xf32>
      %72 = vector.broadcast %cst_23 : f32 to vector<256x128xf32>
      %73 = arith.select %70, %71, %72 : vector<256x128xi1>, vector<256x128xf32>
      %74 = arith.addf %67, %73 : vector<256x128xf32>
      %75 = vector.extract_strided_slice %6 {offsets = [7, 0], sizes = [1, 128], strides = [1, 1]} : vector<27x128xi32> to vector<1x128xi32>
      %76 = vector.broadcast %75 : vector<1x128xi32> to vector<256x128xi32>
      %77 = arith.cmpi eq, %24, %76 : vector<256x128xi32>
      %cst_24 = arith.constant 0.0158575177 : f32
      %cst_25 = arith.constant 0.000000e+00 : f32
      %78 = vector.broadcast %cst_24 : f32 to vector<256x128xf32>
      %79 = vector.broadcast %cst_25 : f32 to vector<256x128xf32>
      %80 = arith.select %77, %78, %79 : vector<256x128xi1>, vector<256x128xf32>
      %81 = arith.addf %74, %80 : vector<256x128xf32>
      %82 = vector.extract_strided_slice %6 {offsets = [8, 0], sizes = [1, 128], strides = [1, 1]} : vector<27x128xi32> to vector<1x128xi32>
      %83 = vector.broadcast %82 : vector<1x128xi32> to vector<256x128xi32>
      %84 = arith.cmpi eq, %24, %83 : vector<256x128xi32>
      %cst_26 = arith.constant 3.61330807E-4 : f32
      %cst_27 = arith.constant 0.000000e+00 : f32
      %85 = vector.broadcast %cst_26 : f32 to vector<256x128xf32>
      %86 = vector.broadcast %cst_27 : f32 to vector<256x128xf32>
      %87 = arith.select %84, %85, %86 : vector<256x128xi1>, vector<256x128xf32>
      %88 = arith.addf %81, %87 : vector<256x128xf32>
      %89 = vector.extract_strided_slice %6 {offsets = [9, 0], sizes = [1, 128], strides = [1, 1]} : vector<27x128xi32> to vector<1x128xi32>
      %90 = vector.broadcast %89 : vector<1x128xi32> to vector<256x128xi32>
      %91 = arith.cmpi eq, %24, %90 : vector<256x128xi32>
      %cst_28 = arith.constant 0.0158575177 : f32
      %cst_29 = arith.constant 0.000000e+00 : f32
      %92 = vector.broadcast %cst_28 : f32 to vector<256x128xf32>
      %93 = vector.broadcast %cst_29 : f32 to vector<256x128xf32>
      %94 = arith.select %91, %92, %93 : vector<256x128xi1>, vector<256x128xf32>
      %95 = arith.addf %88, %94 : vector<256x128xf32>
      %96 = vector.extract_strided_slice %6 {offsets = [10, 0], sizes = [1, 128], strides = [1, 1]} : vector<27x128xi32> to vector<1x128xi32>
      %97 = vector.broadcast %96 : vector<1x128xi32> to vector<256x128xi32>
      %98 = arith.cmpi eq, %24, %97 : vector<256x128xi32>
      %cst_30 = arith.constant 0.166666657 : f32
      %cst_31 = arith.constant 0.000000e+00 : f32
      %99 = vector.broadcast %cst_30 : f32 to vector<256x128xf32>
      %100 = vector.broadcast %cst_31 : f32 to vector<256x128xf32>
      %101 = arith.select %98, %99, %100 : vector<256x128xi1>, vector<256x128xf32>
      %102 = arith.addf %95, %101 : vector<256x128xf32>
      %103 = vector.extract_strided_slice %6 {offsets = [11, 0], sizes = [1, 128], strides = [1, 1]} : vector<27x128xi32> to vector<1x128xi32>
      %104 = vector.broadcast %103 : vector<1x128xi32> to vector<256x128xi32>
      %105 = arith.cmpi eq, %24, %104 : vector<256x128xi32>
      %cst_32 = arith.constant 0.0158575177 : f32
      %cst_33 = arith.constant 0.000000e+00 : f32
      %106 = vector.broadcast %cst_32 : f32 to vector<256x128xf32>
      %107 = vector.broadcast %cst_33 : f32 to vector<256x128xf32>
      %108 = arith.select %105, %106, %107 : vector<256x128xi1>, vector<256x128xf32>
      %109 = arith.addf %102, %108 : vector<256x128xf32>
      %110 = vector.extract_strided_slice %6 {offsets = [12, 0], sizes = [1, 128], strides = [1, 1]} : vector<27x128xi32> to vector<1x128xi32>
      %111 = vector.broadcast %110 : vector<1x128xi32> to vector<256x128xi32>
      %112 = arith.cmpi eq, %24, %111 : vector<256x128xi32>
      %cst_34 = arith.constant 0.166666657 : f32
      %cst_35 = arith.constant 0.000000e+00 : f32
      %113 = vector.broadcast %cst_34 : f32 to vector<256x128xf32>
      %114 = vector.broadcast %cst_35 : f32 to vector<256x128xf32>
      %115 = arith.select %112, %113, %114 : vector<256x128xi1>, vector<256x128xf32>
      %116 = arith.addf %109, %115 : vector<256x128xf32>
      %117 = vector.extract_strided_slice %6 {offsets = [13, 0], sizes = [1, 128], strides = [1, 1]} : vector<27x128xi32> to vector<1x128xi32>
      %118 = vector.broadcast %117 : vector<1x128xi32> to vector<256x128xi32>
      %119 = arith.cmpi eq, %24, %118 : vector<256x128xi32>
      %cst_36 = arith.constant 1.000000e+00 : f32
      %cst_37 = arith.constant 0.000000e+00 : f32
      %120 = vector.broadcast %cst_36 : f32 to vector<256x128xf32>
      %121 = vector.broadcast %cst_37 : f32 to vector<256x128xf32>
      %122 = arith.select %119, %120, %121 : vector<256x128xi1>, vector<256x128xf32>
      %123 = arith.addf %116, %122 : vector<256x128xf32>
      %124 = vector.extract_strided_slice %6 {offsets = [14, 0], sizes = [1, 128], strides = [1, 1]} : vector<27x128xi32> to vector<1x128xi32>
      %125 = vector.broadcast %124 : vector<1x128xi32> to vector<256x128xi32>
      %126 = arith.cmpi eq, %24, %125 : vector<256x128xi32>
      %cst_38 = arith.constant 0.166666657 : f32
      %cst_39 = arith.constant 0.000000e+00 : f32
      %127 = vector.broadcast %cst_38 : f32 to vector<256x128xf32>
      %128 = vector.broadcast %cst_39 : f32 to vector<256x128xf32>
      %129 = arith.select %126, %127, %128 : vector<256x128xi1>, vector<256x128xf32>
      %130 = arith.addf %123, %129 : vector<256x128xf32>
      %131 = vector.extract_strided_slice %6 {offsets = [15, 0], sizes = [1, 128], strides = [1, 1]} : vector<27x128xi32> to vector<1x128xi32>
      %132 = vector.broadcast %131 : vector<1x128xi32> to vector<256x128xi32>
      %133 = arith.cmpi eq, %24, %132 : vector<256x128xi32>
      %cst_40 = arith.constant 0.0158575177 : f32
      %cst_41 = arith.constant 0.000000e+00 : f32
      %134 = vector.broadcast %cst_40 : f32 to vector<256x128xf32>
      %135 = vector.broadcast %cst_41 : f32 to vector<256x128xf32>
      %136 = arith.select %133, %134, %135 : vector<256x128xi1>, vector<256x128xf32>
      %137 = arith.addf %130, %136 : vector<256x128xf32>
      %138 = vector.extract_strided_slice %6 {offsets = [16, 0], sizes = [1, 128], strides = [1, 1]} : vector<27x128xi32> to vector<1x128xi32>
      %139 = vector.broadcast %138 : vector<1x128xi32> to vector<256x128xi32>
      %140 = arith.cmpi eq, %24, %139 : vector<256x128xi32>
      %cst_42 = arith.constant 0.166666657 : f32
      %cst_43 = arith.constant 0.000000e+00 : f32
      %141 = vector.broadcast %cst_42 : f32 to vector<256x128xf32>
      %142 = vector.broadcast %cst_43 : f32 to vector<256x128xf32>
      %143 = arith.select %140, %141, %142 : vector<256x128xi1>, vector<256x128xf32>
      %144 = arith.addf %137, %143 : vector<256x128xf32>
      %145 = vector.extract_strided_slice %6 {offsets = [17, 0], sizes = [1, 128], strides = [1, 1]} : vector<27x128xi32> to vector<1x128xi32>
      %146 = vector.broadcast %145 : vector<1x128xi32> to vector<256x128xi32>
      %147 = arith.cmpi eq, %24, %146 : vector<256x128xi32>
      %cst_44 = arith.constant 0.0158575177 : f32
      %cst_45 = arith.constant 0.000000e+00 : f32
      %148 = vector.broadcast %cst_44 : f32 to vector<256x128xf32>
      %149 = vector.broadcast %cst_45 : f32 to vector<256x128xf32>
      %150 = arith.select %147, %148, %149 : vector<256x128xi1>, vector<256x128xf32>
      %151 = arith.addf %144, %150 : vector<256x128xf32>
      %152 = vector.extract_strided_slice %6 {offsets = [18, 0], sizes = [1, 128], strides = [1, 1]} : vector<27x128xi32> to vector<1x128xi32>
      %153 = vector.broadcast %152 : vector<1x128xi32> to vector<256x128xi32>
      %154 = arith.cmpi eq, %24, %153 : vector<256x128xi32>
      %cst_46 = arith.constant 3.61330807E-4 : f32
      %cst_47 = arith.constant 0.000000e+00 : f32
      %155 = vector.broadcast %cst_46 : f32 to vector<256x128xf32>
      %156 = vector.broadcast %cst_47 : f32 to vector<256x128xf32>
      %157 = arith.select %154, %155, %156 : vector<256x128xi1>, vector<256x128xf32>
      %158 = arith.addf %151, %157 : vector<256x128xf32>
      %159 = vector.extract_strided_slice %6 {offsets = [19, 0], sizes = [1, 128], strides = [1, 1]} : vector<27x128xi32> to vector<1x128xi32>
      %160 = vector.broadcast %159 : vector<1x128xi32> to vector<256x128xi32>
      %161 = arith.cmpi eq, %24, %160 : vector<256x128xi32>
      %cst_48 = arith.constant 0.0158575177 : f32
      %cst_49 = arith.constant 0.000000e+00 : f32
      %162 = vector.broadcast %cst_48 : f32 to vector<256x128xf32>
      %163 = vector.broadcast %cst_49 : f32 to vector<256x128xf32>
      %164 = arith.select %161, %162, %163 : vector<256x128xi1>, vector<256x128xf32>
      %165 = arith.addf %158, %164 : vector<256x128xf32>
      %166 = vector.extract_strided_slice %6 {offsets = [20, 0], sizes = [1, 128], strides = [1, 1]} : vector<27x128xi32> to vector<1x128xi32>
      %167 = vector.broadcast %166 : vector<1x128xi32> to vector<256x128xi32>
      %168 = arith.cmpi eq, %24, %167 : vector<256x128xi32>
      %cst_50 = arith.constant 3.61330807E-4 : f32
      %cst_51 = arith.constant 0.000000e+00 : f32
      %169 = vector.broadcast %cst_50 : f32 to vector<256x128xf32>
      %170 = vector.broadcast %cst_51 : f32 to vector<256x128xf32>
      %171 = arith.select %168, %169, %170 : vector<256x128xi1>, vector<256x128xf32>
      %172 = arith.addf %165, %171 : vector<256x128xf32>
      %173 = vector.extract_strided_slice %6 {offsets = [21, 0], sizes = [1, 128], strides = [1, 1]} : vector<27x128xi32> to vector<1x128xi32>
      %174 = vector.broadcast %173 : vector<1x128xi32> to vector<256x128xi32>
      %175 = arith.cmpi eq, %24, %174 : vector<256x128xi32>
      %cst_52 = arith.constant 0.0158575177 : f32
      %cst_53 = arith.constant 0.000000e+00 : f32
      %176 = vector.broadcast %cst_52 : f32 to vector<256x128xf32>
      %177 = vector.broadcast %cst_53 : f32 to vector<256x128xf32>
      %178 = arith.select %175, %176, %177 : vector<256x128xi1>, vector<256x128xf32>
      %179 = arith.addf %172, %178 : vector<256x128xf32>
      %180 = vector.extract_strided_slice %6 {offsets = [22, 0], sizes = [1, 128], strides = [1, 1]} : vector<27x128xi32> to vector<1x128xi32>
      %181 = vector.broadcast %180 : vector<1x128xi32> to vector<256x128xi32>
      %182 = arith.cmpi eq, %24, %181 : vector<256x128xi32>
      %cst_54 = arith.constant 0.166666657 : f32
      %cst_55 = arith.constant 0.000000e+00 : f32
      %183 = vector.broadcast %cst_54 : f32 to vector<256x128xf32>
      %184 = vector.broadcast %cst_55 : f32 to vector<256x128xf32>
      %185 = arith.select %182, %183, %184 : vector<256x128xi1>, vector<256x128xf32>
      %186 = arith.addf %179, %185 : vector<256x128xf32>
      %187 = vector.extract_strided_slice %6 {offsets = [23, 0], sizes = [1, 128], strides = [1, 1]} : vector<27x128xi32> to vector<1x128xi32>
      %188 = vector.broadcast %187 : vector<1x128xi32> to vector<256x128xi32>
      %189 = arith.cmpi eq, %24, %188 : vector<256x128xi32>
      %cst_56 = arith.constant 0.0158575177 : f32
      %cst_57 = arith.constant 0.000000e+00 : f32
      %190 = vector.broadcast %cst_56 : f32 to vector<256x128xf32>
      %191 = vector.broadcast %cst_57 : f32 to vector<256x128xf32>
      %192 = arith.select %189, %190, %191 : vector<256x128xi1>, vector<256x128xf32>
      %193 = arith.addf %186, %192 : vector<256x128xf32>
      %194 = vector.extract_strided_slice %6 {offsets = [24, 0], sizes = [1, 128], strides = [1, 1]} : vector<27x128xi32> to vector<1x128xi32>
      %195 = vector.broadcast %194 : vector<1x128xi32> to vector<256x128xi32>
      %196 = arith.cmpi eq, %24, %195 : vector<256x128xi32>
      %cst_58 = arith.constant 3.61330807E-4 : f32
      %cst_59 = arith.constant 0.000000e+00 : f32
      %197 = vector.broadcast %cst_58 : f32 to vector<256x128xf32>
      %198 = vector.broadcast %cst_59 : f32 to vector<256x128xf32>
      %199 = arith.select %196, %197, %198 : vector<256x128xi1>, vector<256x128xf32>
      %200 = arith.addf %193, %199 : vector<256x128xf32>
      %201 = vector.extract_strided_slice %6 {offsets = [25, 0], sizes = [1, 128], strides = [1, 1]} : vector<27x128xi32> to vector<1x128xi32>
      %202 = vector.broadcast %201 : vector<1x128xi32> to vector<256x128xi32>
      %203 = arith.cmpi eq, %24, %202 : vector<256x128xi32>
      %cst_60 = arith.constant 0.0158575177 : f32
      %cst_61 = arith.constant 0.000000e+00 : f32
      %204 = vector.broadcast %cst_60 : f32 to vector<256x128xf32>
      %205 = vector.broadcast %cst_61 : f32 to vector<256x128xf32>
      %206 = arith.select %203, %204, %205 : vector<256x128xi1>, vector<256x128xf32>
      %207 = arith.addf %200, %206 : vector<256x128xf32>
      %208 = vector.extract_strided_slice %6 {offsets = [26, 0], sizes = [1, 128], strides = [1, 1]} : vector<27x128xi32> to vector<1x128xi32>
      %209 = vector.broadcast %208 : vector<1x128xi32> to vector<256x128xi32>
      %210 = arith.cmpi eq, %24, %209 : vector<256x128xi32>
      %cst_62 = arith.constant 3.61330807E-4 : f32
      %cst_63 = arith.constant 0.000000e+00 : f32
      %211 = vector.broadcast %cst_62 : f32 to vector<256x128xf32>
      %212 = vector.broadcast %cst_63 : f32 to vector<256x128xf32>
      %213 = arith.select %210, %211, %212 : vector<256x128xi1>, vector<256x128xf32>
      %214 = arith.addf %207, %213 : vector<256x128xf32>
      %c0_64 = arith.constant 0 : index
      %c0_65 = arith.constant 0 : index
      %215 = vector.load %arg10[%c0_64, %c0_65] : memref<256x128xf32, #tpu.memory_space<vmem>>, vector<256x128xf32>
      %216 = arith.truncf %214 : vector<256x128xf32> to vector<256x128xbf16>
      %cst_66 = arith.constant dense<0.000000e+00> : vector<256x128xf32>
      %217 = tpu.matmul %216, %23, %cst_66 {dimension_numbers = #tpu.dot_dimension_numbers<[1], [0], [0], [1], [0, 0, 1, 1], [], []>} : vector<256x128xbf16>, vector<128x128xbf16>, vector<256x128xf32> -> vector<256x128xf32>
      %218 = arith.addf %215, %217 : vector<256x128xf32>
      %c0_67 = arith.constant 0 : index
      %c0_68 = arith.constant 0 : index
      %219 = vector.load %arg10[%c0_67, %c0_68] : memref<256x128xf32, #tpu.memory_space<vmem>>, vector<256x128xf32>
      tpu.vector_store %arg10[%c0_67, %c0_68], %218 {strides = array<i32>} : memref<256x128xf32, #tpu.memory_space<vmem>>, vector<256x128xf32>,
    } else {
    }
    %c1_i32 = arith.constant 1 : i32
    %20 = arith.cmpi eq, %arg1, %c1_i32 : i32
    %21 = arith.extui %20 : i1 to i32
    %c0_i32_6 = arith.constant 0 : i32
    %22 = arith.cmpi ne, %21, %c0_i32_6 : i32
    scf.if %22 {
      %c0_7 = arith.constant 0 : index
      %c0_8 = arith.constant 0 : index
      %23 = vector.load %arg10[%c0_7, %c0_8] : memref<256x128xf32, #tpu.memory_space<vmem>>, vector<256x128xf32>
      %24 = vector.extract_strided_slice %23 {offsets = [0, 0], sizes = [256, 32], strides = [1, 1]} : vector<256x128xf32> to vector<256x32xf32>
      %25 = vector.extract_strided_slice %23 {offsets = [0, 32], sizes = [256, 32], strides = [1, 1]} : vector<256x128xf32> to vector<256x32xf32>
      %26 = vector.extract_strided_slice %23 {offsets = [0, 64], sizes = [256, 1], strides = [1, 1]} : vector<256x128xf32> to vector<256x1xf32>
      %c0_9 = arith.constant 0 : index
      %c0_10 = arith.constant 0 : index
      %27 = vector.load %arg4[%c0_9, %c0_10] : memref<256x128xf32, #tpu.memory_space<vmem>>, vector<256x32xf32>
      %c0_11 = arith.constant 0 : index
      %c0_12 = arith.constant 0 : index
      %28 = vector.load %arg5[%c0_11, %c0_12] : memref<256x128xf32, #tpu.memory_space<vmem>>, vector<256x32xf32>
      %c0_13 = arith.constant 0 : index
      %c0_14 = arith.constant 0 : index
      %29 = vector.load %arg6[%c0_13, %c0_14] : memref<256x1xf32, #tpu.memory_space<vmem>>, vector<256x1xf32>
      %cst_15 = arith.constant 9.99999997E-7 : f32
      %30 = vector.broadcast %cst_15 : f32 to vector<256x1xf32>
      %31 = arith.addf %26, %30 : vector<256x1xf32>
      %cst_16 = arith.constant 1.000000e+00 : f32
      %32 = vector.broadcast %cst_16 : f32 to vector<256x1xf32>
      %33 = arith.divf %32, %31 : vector<256x1xf32>
      %34 = vector.broadcast %33 : vector<256x1xf32> to vector<256x32xf32>
      %35 = arith.mulf %24, %34 : vector<256x32xf32>
      %cst_17 = arith.constant 2.000000e+00 : f32
      %36 = vector.broadcast %cst_17 : f32 to vector<256x32xf32>
      %37 = arith.mulf %36, %24 : vector<256x32xf32>
      %38 = vector.broadcast %26 : vector<256x1xf32> to vector<256x32xf32>
      %39 = arith.mulf %38, %35 : vector<256x32xf32>
      %40 = arith.subf %37, %39 : vector<256x32xf32>
      %41 = arith.mulf %35, %40 : vector<256x32xf32>
      %42 = arith.subf %25, %41 : vector<256x32xf32>
      %cst_18 = arith.constant 0.000000e+00 : f32
      %43 = vector.broadcast %cst_18 : f32 to vector<256x32xf32>
      %44 = arith.maximumf %42, %43 : vector<256x32xf32>
      %45 = arith.addf %29, %26 : vector<256x1xf32>
      %cst_19 = arith.constant 9.99999997E-7 : f32
      %46 = vector.broadcast %cst_19 : f32 to vector<256x1xf32>
      %47 = arith.addf %45, %46 : vector<256x1xf32>
      %cst_20 = arith.constant 1.000000e+00 : f32
      %48 = vector.broadcast %cst_20 : f32 to vector<256x1xf32>
      %49 = arith.divf %48, %47 : vector<256x1xf32>
      %50 = arith.mulf %29, %26 : vector<256x1xf32>
      %51 = arith.mulf %50, %49 : vector<256x1xf32>
      %52 = arith.subf %35, %27 : vector<256x32xf32>
      %53 = arith.addf %28, %44 : vector<256x32xf32>
      %54 = arith.mulf %52, %52 : vector<256x32xf32>
      %55 = vector.broadcast %51 : vector<256x1xf32> to vector<256x32xf32>
      %56 = arith.mulf %55, %54 : vector<256x32xf32>
      %57 = arith.addf %53, %56 : vector<256x32xf32>
      %c0_21 = arith.constant 0 : index
      %c0_22 = arith.constant 0 : index
      %58 = vector.load %arg8[%c0_21, %c0_22] : memref<256x128xf32, #tpu.memory_space<vmem>>, vector<256x32xf32>
      tpu.vector_store %arg8[%c0_21, %c0_22], %57 {strides = array<i32>} : memref<256x128xf32, #tpu.memory_space<vmem>>, vector<256x32xf32>,
      %59 = vector.broadcast %29 : vector<256x1xf32> to vector<256x32xf32>
      %60 = arith.mulf %59, %27 : vector<256x32xf32>
      %61 = vector.broadcast %26 : vector<256x1xf32> to vector<256x32xf32>
      %62 = arith.mulf %61, %35 : vector<256x32xf32>
      %63 = arith.addf %60, %62 : vector<256x32xf32>
      %64 = vector.broadcast %49 : vector<256x1xf32> to vector<256x32xf32>
      %65 = arith.mulf %63, %64 : vector<256x32xf32>
      %c0_23 = arith.constant 0 : index
      %c0_24 = arith.constant 0 : index
      %66 = vector.load %arg7[%c0_23, %c0_24] : memref<256x128xf32, #tpu.memory_space<vmem>>, vector<256x32xf32>
      tpu.vector_store %arg7[%c0_23, %c0_24], %65 {strides = array<i32>} : memref<256x128xf32, #tpu.memory_space<vmem>>, vector<256x32xf32>,
      %67 = arith.addf %29, %26 : vector<256x1xf32>
      %c0_25 = arith.constant 0 : index
      %c0_26 = arith.constant 0 : index
      %68 = vector.load %arg9[%c0_25, %c0_26] : memref<256x1xf32, #tpu.memory_space<vmem>>, vector<256x1xf32>
      tpu.vector_store %arg9[%c0_25, %c0_26], %67 {strides = array<i32>} : memref<256x1xf32, #tpu.memory_space<vmem>>, vector<256x1xf32>,
      %cst_27 = arith.constant 0.000000e+00 : f32
      %69 = vector.broadcast %cst_27 : f32 to vector<256x96xf32>
      %c0_28 = arith.constant 0 : index
      %c32 = arith.constant 32 : index
      %70 = vector.load %arg7[%c0_28, %c32] : memref<256x128xf32, #tpu.memory_space<vmem>>, vector<256x96xf32>
      tpu.vector_store %arg7[%c0_28, %c32], %69 {strides = array<i32>} : memref<256x128xf32, #tpu.memory_space<vmem>>, vector<256x96xf32>,
      %c0_29 = arith.constant 0 : index
      %c32_30 = arith.constant 32 : index
      %71 = vector.load %arg8[%c0_29, %c32_30] : memref<256x128xf32, #tpu.memory_space<vmem>>, vector<256x96xf32>
      tpu.vector_store %arg8[%c0_29, %c32_30], %69 {strides = array<i32>} : memref<256x128xf32, #tpu.memory_space<vmem>>, vector<256x96xf32>,
    } else {
    }
    return
  }
  func.func @transform_0(%arg0: i32, %arg1: i32) -> (i32, i32) {
    %c0_i32 = arith.constant 0 : i32
    %c0_i32_0 = arith.constant 0 : i32
    return %c0_i32, %arg1 : i32, i32
  }
  func.func @transform_1(%arg0: i32, %arg1: i32) -> (i32, i32) {
    %c0_i32 = arith.constant 0 : i32
    %c0_i32_0 = arith.constant 0 : i32
    return %arg1, %c0_i32 : i32, i32
  }
  func.func @transform_2(%arg0: i32, %arg1: i32) -> (i32, i32) {
    %c0_i32 = arith.constant 0 : i32
    %c0_i32_0 = arith.constant 0 : i32
    return %arg0, %c0_i32 : i32, i32
  }
  func.func @transform_3(%arg0: i32, %arg1: i32) -> (i32, i32) {
    %c0_i32 = arith.constant 0 : i32
    %c0_i32_0 = arith.constant 0 : i32
    return %arg0, %c0_i32 : i32, i32
  }
  func.func @transform_4(%arg0: i32, %arg1: i32) -> (i32, i32) {
    %c0_i32 = arith.constant 0 : i32
    %c0_i32_0 = arith.constant 0 : i32
    return %arg0, %c0_i32 : i32, i32
  }
  func.func @transform_5(%arg0: i32, %arg1: i32) -> (i32, i32) {
    %c0_i32 = arith.constant 0 : i32
    %c0_i32_0 = arith.constant 0 : i32
    return %arg0, %c0_i32 : i32, i32
  }
  func.func @transform_6(%arg0: i32, %arg1: i32) -> (i32, i32) {
    %c0_i32 = arith.constant 0 : i32
    %c0_i32_0 = arith.constant 0 : i32
    return %arg0, %c0_i32 : i32, i32
  }
  func.func @transform_7(%arg0: i32, %arg1: i32) -> (i32, i32) {
    %c0_i32 = arith.constant 0 : i32
    %c0_i32_0 = arith.constant 0 : i32
    return %arg0, %c0_i32 : i32, i32
  }
}

</mosaic_0001>

<bundles_post_ra>
// kernel: tpu_custom_call.1
= control target key start
LH: loop header
LB: loop body
LE: loop exit
PB: predicated region body
PF: predicated region fallthrough
CT: control target
= control target key end

     0   :  { %s12001_s0 = inlined_call_operand.hbm [shape: s32[27,256], index: 0, kind: input, shape index: {}]   ;;  %s12002_s1 = inlined_call_operand.hbm [shape: bf16[256,128], index: 1, kind: input, shape index: {}]   ;;  %s12003_s2 = inlined_call_operand.vmem [shape: f32[512,128], index: 2, kind: input, shape index: {}]   ;;  %s12004_s3 = inlined_call_operand.hbm [shape: f32[512,128], index: 3, kind: input, shape index: {}]   ;;  %s12005_s4 = inlined_call_operand.vmem [shape: f32[512,1], index: 4, kind: input, shape index: {}]   ;;  %s12006_s5 = inlined_call_operand.hbm [shape: f32[512,128], index: 5, kind: output, shape index: {0}]   ;;  %s12007_s6 = inlined_call_operand.hbm [shape: f32[512,128], index: 6, kind: output, shape index: {1}]   ;;  %s12008_s7 = inlined_call_operand.vmem [shape: f32[512,1], index: 7, kind: output, shape index: {2}]  }
   0x1   :  { %12128 = sst [smem:[#allocation113_spill]] %s12001_s0 }
   0x2   :  { %12129 = sst [smem:[#allocation114_spill]] %s12002_s1 }
   0x3   :  { %12130 = sst [smem:[#allocation115_spill]] %s12004_s3 }
   0x4   :  { %12131 = sst [smem:[#allocation116_spill]] %s12006_s5 }
   0x5   :  { %12132 = sst [smem:[#allocation117_spill]] %s12007_s6 }
   0x6   :  { %13 = vsyncpa [#allocation4], 0 }
   0x7   :  { %15 = vsyncpa [#allocation4 + $0x1], 0 }
   0x8   :  { %16 = vsyncpa [#allocation7], 0 }
   0x9   :  { %18 = vsyncpa [#allocation7 + $0x1], 0 }
   0xa   :  { %19 = vsyncpa [#allocation5], 0 }
   0xb   :  { %21 = vsyncpa [#allocation5 + $0x1], 0 }
   0xc   :  { %22 = vsyncpa [#allocation11], 0 }
   0xd   :  { %24 = vsyncpa [#allocation11 + $0x1], 0  ;;  %s6811_s24 = smov 0   ;;  %s6813_s25 = smov 0  }
   0xe   :  { %s6815_s26 = smov 0   ;;  %s6817_s27 = smov 0  }
   0xf   :  { %s6819_s28 = smov 0   ;;  %s6821_s29 = smov 0  }
  0x10   :  { %s6823_s30 = smov 0   ;;  %s6825_s8 = smov 0  }
  0x11   :  { %s6827_s9 = smov 0   ;;  %s6829_s10 = smov 0  }
  0x12   :  { %s6831_s11 = smov 0  }
  0x13 LB: > { %12133 = sst [smem:[#allocation17_spill]] %s6728_s29  ;;  %s6865_s12 = sadd.s32 4294967295, %s6748_s11   ;;  %s6748_s11 = sphi %s6831_s11, %s30_s11   ;;  %s6744_s10 = sphi %s6829_s10, %s12400_s10   ;;  %s6740_s9 = sphi %s6827_s9, %s12407_s9   ;;  %s6736_s8 = sphi %s6825_s8, %s12398_s8   ;;  %s6732_s30 = sphi %s6823_s30, %s12406_s30   ;;  %s6728_s29 = sphi %s6821_s29, %s12397_s29   ;;  %s6724_s28 = sphi %s6819_s28, %s12405_s28   ;;  %s6720_s27 = sphi %s6817_s27, %s12404_s27   ;;  %s6716_s26 = sphi %s6815_s26, %s12403_s26   ;;  %s6712_s25 = sphi %s6813_s25, %s12402_s25   ;;  %s6708_s24 = sphi %s6811_s24, %s12401_s24  }
  0x14   : > { %12134 = sst [smem:[#allocation18_spill]] %s6732_s30  ;;  %s39_s13 = sadd.s32 1, %s6740_s9 }
  0x15   : > { %12135 = sst [smem:[#allocation19_spill]] %s6744_s10  ;;  %p6868_p0 = scmp.ge.s32.totalorder %s39_s13, 2 }
  0x16   : > { %s49_s15 = sadd.s32 1, %s6728_s29  ;;  %p56_p1 = scmp.ne.s32.totalorder %s6728_s29, %s6724_s28 }
  0x17   : > { %p12015_p2 = scmp.eq.s32.totalorder %s6748_s11, 0  ;;  %s12409_s13 = smov (%p6868_p0, %s39_s13), 0 }
  0x18   : > { %12137 = sst [smem:[#allocation20_spill]] %s12409_s13  ;;  %p62_p4 = scmp.ne.s32.totalorder %s6724_s28, %s6720_s27 }
  0x19   : > { %p58_p3 = por %p12015_p2, %p56_p1  ;;  %s46_s16 = ssub.s32 %s6740_s9, %s12409_s13 }
  0x1a   : > { %p12014_p5 = scmp.eq.s32.totalorder %s6865_s12, 0  ;;  %p47_p6 = scmp.eq.s32.totalorder %s46_s16, 0 }
  0x1b   : > { %p12013_p8 = scmp.lt.s32.totalorder %s6748_s11, 4  ;;  %s6897_s19 = sand.u32 1, %s6728_s29  }
  0x1c   : > { %p6888_p7 = por %p12014_p5, %p62_p4  ;;  %s288_s21 = sand.u32 1, %s6748_s11  }
  0x1d   : > { %s6894_s18 = scalar_select %p47_p6, %s6728_s29, %s49_s15  }
  0x1e   : > { %s12138_s17 = scalar_select %p6888_p7, 1, 0 }
  0x1f   : > { %12139 = sst [smem:[#allocation21_spill]] %s6894_s18  ;;  %p6901_p9 = pnand %p12013_p8, %p58_p3 }
  0x20   : > { %s6091_s22 = sshll.u32 %s6897_s19, 6  ;;  %s6129_s23 = sshll.u32 %s6740_s9, 10 }
  0x21   : > { %s12141_s1 = sld [smem:[#allocation114_spill]]  ;;  %s292_s15 = scalar_lea.vmem [#allocation6], %s6091_s22 }
  0x22   : > { %s299_s18 = sshll.u32 %s292_s15, 4  ;;  %s6916_s29 = scalar_lea.sflag [#allocation7], %s288_s21  ;;  %s6913_s18 = int_to_ptr.vmem [resolvable:$true] %s299_s18 }
  0x23   : > { %p6498_p12 = pneg %p6901_p9 }
  0x27   : > { %s6911_s13 = scalar_lea.hbm %s12141_s1, %s6129_s23  ;;  %s6501_s16 = scalar_lea.hbm %s12141_s1, 2048 }
  0x28   : > { %s6496_s6 = scalar_lea.hbm %s6911_s13, 1024  ;;  %p6502_p3 = scmp.lt.u32.totalorder %s6911_s13, %s12141_s1 }
  0x29   : > { %p6497_p11 = scmp.ne.s32.totalorder %s6911_s13, %s6496_s6  ;;  %p6503_p4 = scmp.lt.u32.totalorder %s6501_s16, %s6496_s6 }
  0x2a   : > { %p6505_p8 = scmp.lt.u32.totalorder %s6496_s6, %s6911_s13 }
  0x2b   : > { %p6499_p13 = pnand %p6498_p12, %p6497_p11  ;;  %p6504_p6 = por %p6503_p4, %p6502_p3 }
  0x2d   : > { %p6500_p1 = pneg %p6499_p13  ;;  %p6506_p5 = por %p6505_p8, %p6504_p6 }
  0x2f   : > { %p6507_p2 = pnand %p6506_p5, %p6500_p1 }
  0x31   : > { %6510 = shalt.err (!%p6507_p2)
}
  0x32   : > { %s6511_s21 = scalar_lea.vmem %s6913_s18, 1024  ;;  %s6750_s15 = smov [#allocation6]  }
  0x33   : > { %p6512_p11 = scmp.ne.s32.totalorder %s6913_s18, %s6511_s21  ;;  %s6516_s23 = sshll.u32 %s6750_s15, 4  ;;  %s6517_s23 = int_to_ptr.vmem [resolvable:$false] %s6516_s23 }
  0x34   : > { %s6518_s5 = scalar_lea.vmem %s6517_s23, 2048  ;;  %p6519_p7 = scmp.lt.s32.totalorder %s6913_s18, %s6517_s23 }
  0x35   : > { %p6514_p13 = pnand %p6512_p11, %p6498_p12  ;;  %p6520_p3 = scmp.lt.s32.totalorder %s6518_s5, %s6511_s21 }
  0x37   : > { %p6515_p10 = pneg %p6514_p13  ;;  %p6521_p4 = por %p6520_p3, %p6519_p7 }
  0x39   : > { %p6522_p8 = pnand %p6521_p4, %p6515_p10 }
  0x3b   : > { %6525 = shalt.err (!%p6522_p8)
}
  0x3c   : > { %s6751_s6 = smov 64   ;;  %s6752_s27 = smov 4  }
  0x3d   : > { %6239 = dma.hbm_to_vmem [thread:$0]  (!%p6901_p9), %s6911_s13, 1024, %s6913_s18, %s6916_s29, %s6751_s6, %s6751_s6, %s6752_s27  }
  0x3e   : > { %p346_p2 = scmp.lt.s32.totalorder %s6748_s11, 5  ;;  %p12142_p5 = scmp.ge.s32.totalorder %s6748_s11, 1 }
  0x3f   : > { %s6089_s22 = sshll.u32 %s6897_s19, 5  ;;  %s6090_s21 = sshll.u32 %s6740_s9, 7 }
  0x40   : > { %p6947_p1 = pnand %p12142_p5, %p346_p2  ;;  %s12144_s0 = sld [smem:[#allocation113_spill]] }
  0x41   : > { %s272_s1 = scalar_lea.vmem [#allocation3], %s6089_s22  ;;  %s269_s13 = scalar_lea.sflag [#allocation4], %s6897_s19 }
  0x42   : > { %s12143_s16 = scalar_select %p6947_p1, 1, 0 }
  0x43   : > { %s278_s30 = sshll.u32 %s272_s1, 4  ;;  %s6958_s30 = int_to_ptr.vmem [resolvable:$true] %s278_s30 }
  0x46   : > { %s6956_s5 = scalar_lea.hbm %s12144_s0, %s6090_s21  ;;  %s6531_s21 = scalar_lea.hbm %s12144_s0, 1024 }
  0x47   : > { %s6526_s18 = scalar_lea.hbm %s6956_s5, 512  ;;  %p6532_p11 = scmp.lt.u32.totalorder %s6956_s5, %s12144_s0 }
  0x48   : > { %p6527_p7 = scmp.ne.s32.totalorder %s6956_s5, %s6526_s18  ;;  %p6533_p13 = scmp.lt.u32.totalorder %s6531_s21, %s6526_s18 }
  0x49   : > { %p6535_p4 = scmp.lt.u32.totalorder %s6526_s18, %s6956_s5 }
  0x4a   : > { %p6529_p10 = pnand %p6527_p7, %p6498_p12  ;;  %p6534_p3 = por %p6533_p13, %p6532_p11 }
  0x4c   : > { %p6530_p6 = pneg %p6529_p10  ;;  %p6536_p8 = por %p6535_p4, %p6534_p3 }
  0x4e   : > { %p6537_p2 = pnand %p6536_p8, %p6530_p6 }
  0x50   : > { %6540 = shalt.err (!%p6537_p2)
}
  0x51   : > { %s6541_s1 = scalar_lea.vmem %s6958_s30, 512  ;;  %s6753_s22 = smov [#allocation3]  }
  0x52   : > { %p6542_p5 = scmp.ne.s32.totalorder %s6958_s30, %s6541_s1  ;;  %s6546_s6 = sshll.u32 %s6753_s22, 4  ;;  %s6547_s6 = int_to_ptr.vmem [resolvable:$false] %s6546_s6 }
  0x53   : > { %s6548_s27 = scalar_lea.vmem %s6547_s6, 1024  ;;  %p6549_p1 = scmp.lt.s32.totalorder %s6958_s30, %s6547_s6 }
  0x54   : > { %p6544_p7 = pnand %p6542_p5, %p6498_p12  ;;  %p6550_p11 = scmp.lt.s32.totalorder %s6548_s27, %s6541_s1 }
  0x56   : > { %p6545_p10 = pneg %p6544_p7  ;;  %p6551_p13 = por %p6550_p11, %p6549_p1 }
  0x58   : > { %p6552_p3 = pnand %p6551_p13, %p6545_p10 }
  0x5a   : > { %6555 = shalt.err (!%p6552_p3)
}
  0x5b   : > { %s6754_s18 = smov 256   ;;  %s12017_s21 = smov 128  }
  0x5c   : > { %s12018_s15 = smov 8   ;;  %s6086_s23 = sadd.s32 4294967294, %s6748_s11  }
  0x5d   : > { %6236 = dma.hbm_to_vmem [thread:$0]  (!%p6901_p9), %s6956_s5, 512, %s6958_s30, %s269_s13, %s6754_s18, %s12017_s21, %s12018_s15  }
  0x5e   : > { %s42_s1 = sadd.s32 1, %s6744_s10  ;;  %s127_s22 = sadd.s32 1, %s6716_s26 }
  0x5f   : > { %s12411_s1 = smov (!%p6868_p0, %s42_s1), %s6744_s10  ;;  %p134_p12 = scmp.ne.s32.totalorder %s6716_s26, %s6712_s25 }
  0x60   : > { %p44_p1 = scmp.ge.s32.totalorder %s12411_s1, 2  ;;  %p140_p6 = scmp.ne.s32.totalorder %s6712_s25, %s6708_s24 }
  0x61   : > { %p12145_p4 = scmp.eq.s32.totalorder %s6748_s11, 0  ;;  %p190_p2 = scmp.eq.s32.totalorder %s6865_s12, 3 }
  0x62   : > { %s12413_s1 = smov (%p44_p1, %s12411_s1), 0  ;;  %p12148_p9 = scmp.eq.s32.totalorder %s6865_s12, 0 }
  0x63   : > { %p7000_p8 = por %p134_p12, %p12145_p4  ;;  %12147 = sst [smem:[#allocation22_spill]] %s12413_s1 }
  0x64   : > { %p7009_p5 = por %p140_p6, %p12148_p9  ;;  %p7013_p0 = por %p190_p2, %p134_p12 }
  0x65   : > { %s124_s19 = ssub.s32 %s6744_s10, %s12413_s1  ;;  %p196_p7 = scmp.eq.s32.totalorder %s6086_s23, 3 }
  0x66   : > { %s12150_s14 = scalar_select %p7013_p0, 1, 0 }
  0x67   : > { %p125_p10 = scmp.eq.s32.totalorder %s124_s19, 0  ;;  %s320_s20 = sand.u32 1, %s6716_s26  }
  0x68   : > { %p7020_p11 = por %p196_p7, %p140_p6  ;;  %s6094_s13 = sshll.u32 %s320_s20, 8 }
  0x69   : > { %s7025_s27 = scalar_select %p125_p10, %s6716_s26, %s127_s22  }
  0x6a   : > { %s12151_s5 = scalar_select %p7020_p11, 1, 0 }
  0x6b   : > { %s6130_s18 = sshll.u32 %s6744_s10, 12  ;;  %s12152_s3 = sld [smem:[#allocation115_spill]] }
  0x6c   : > { %s322_s23 = scalar_lea.vmem [#allocation8], %s6094_s13  ;;  %p12153_p13 = scmp.lt.s32.totalorder %s6748_s11, 4 }
  0x6d   : > { %s329_s19 = sshll.u32 %s322_s23, 4  ;;  %s7033_s19 = int_to_ptr.vmem [resolvable:$true] %s329_s19 }
  0x6e   : > { %p7039_p3 = pnand %p12153_p13, %p7000_p8 }
  0x70   : > { %p6558_p1 = pneg %p7039_p3 }
  0x71   : > { %s7031_s0 = scalar_lea.hbm %s12152_s3, %s6130_s18  ;;  %s6561_s13 = scalar_lea.hbm %s12152_s3, 8192 }
  0x72   : > { %s6556_s22 = scalar_lea.hbm %s7031_s0, 4096  ;;  %p6562_p8 = scmp.lt.u32.totalorder %s7031_s0, %s12152_s3 }
  0x73   : > { %p6557_p12 = scmp.ne.s32.totalorder %s7031_s0, %s6556_s22  ;;  %p6563_p2 = scmp.lt.u32.totalorder %s6561_s13, %s6556_s22 }
  0x74   : > { %p6565_p7 = scmp.lt.u32.totalorder %s6556_s22, %s7031_s0 }
  0x75   : > { %p6559_p6 = pnand %p6558_p1, %p6557_p12  ;;  %p6564_p9 = por %p6563_p2, %p6562_p8 }
  0x77   : > { %p6560_p4 = pneg %p6559_p6  ;;  %p6566_p10 = por %p6565_p7, %p6564_p9 }
  0x79   : > { %p6567_p13 = pnand %p6566_p10, %p6560_p4 }
  0x7b   : > { %6570 = shalt.err (!%p6567_p13)
}
  0x7c   : > { %s6571_s23 = scalar_lea.vmem %s7033_s19, 4096  ;;  %s6757_s21 = smov [#allocation8]  }
  0x7d   : > { %p6572_p12 = scmp.ne.s32.totalorder %s7033_s19, %s6571_s23  ;;  %s6576_s15 = sshll.u32 %s6757_s21, 4  ;;  %s6577_s15 = int_to_ptr.vmem [resolvable:$false] %s6576_s15 }
  0x7e   : > { %s6578_s6 = scalar_lea.vmem %s6577_s15, 8192  ;;  %p6579_p0 = scmp.lt.s32.totalorder %s7033_s19, %s6577_s15 }
  0x7f   : > { %p6574_p6 = pnand %p6572_p12, %p6558_p1  ;;  %p6580_p8 = scmp.lt.s32.totalorder %s6578_s6, %s6571_s23 }
  0x81   : > { %p6575_p11 = pneg %p6574_p6  ;;  %p6581_p2 = por %p6580_p8, %p6579_p0 }
  0x83   : > { %p6582_p9 = pnand %p6581_p2, %p6575_p11 }
  0x85   : > { %6585 = shalt.err (!%p6582_p9)
}
  0x86   : > { %s12155_s22 = smov 8   ;;  %s12156_s13 = smov 128  }
  0x87   : > { %6242 = dma.hbm_to_vmem [thread:$0]  (!%p7039_p3), %s7031_s0, 4096, %s7033_s19, %s6916_s29, %s12156_s13, %s12156_s13, %s12155_s22  }
  0x88   : > { %p12157_p1 = scmp.ne.s32.totalorder %s12143_s16, 0 }
  0x89   : > { %s352_s18 = sand.u32 (!%p12157_p1), 1, %s6724_s28   ;;  %p12158_p0 = scmp.ne.s32.totalorder (!%p12157_p1), %s12138_s17, 0 }
  0x8a   : > { %350 = sbr.rel (%p12157_p1) target bundleno = 2112 (0x840), region = 40  ;;  %s6098_s21 = sshll.u32 (!%p12157_p1), %s352_s18, 5 }
  0x8b   : > { %s353_s23 = scalar_lea.sflag (!%p12157_p1), [#allocation4], %s352_s18  ;;  %s7075_s15 = scalar_lea.vmem (!%p12157_p1), [#allocation3], %s6098_s21 }
  0x91   : > { %6687 = dma.done.wait (%p12158_p0), %s353_s23, 512  }
  0x92   : > { %6689 = vsyncadd (%p12158_p0), %s353_s23, 4294966784  ;;  %s361_s20 = sand.u32 1, %s6865_s12   ;;  %s6099_s6 = sshll.u32 %s352_s18, 6 }
  0x93   : > { %s362_s0 = scalar_lea.sflag [#allocation7], %s361_s20  ;;  %s7082_s29 = scalar_lea.vmem [#allocation6], %s6099_s6 }
  0x94   : > { %6691 = dma.done.wait (%p12158_p0), %s362_s0, 1024  }
  0x95   : > { %6693 = vsyncadd (%p12158_p0), %s362_s0, 4294966272  ;;  %s7089_s16 = sand.u32 1, %s6712_s25  }
  0x96   : > { %s6100_s19 = sshll.u32 %s7089_s16, 8 }
  0x97   : > { %s7092_s22 = scalar_lea.vmem [#allocation8], %s6100_s19 }
  0x98   : > { %6695 = dma.done.wait (%p7009_p5), %s362_s0, 4096  }
  0x99   : > { %6697 = vsyncadd (%p7009_p5), %s362_s0, 4294963200  ;;  %s6103_s12 = sshll.u32 %s6736_s8, 5  ;;  %s7114_s0 = scalar_lea.vmem [#allocation9], %s6100_s19 }
  0x9a   : > { %p437_p11 = scmp.lt.s32.totalorder %s6103_s12, 63  ;;  %s7116_s10 = scalar_lea.vmem [#allocation10], %s6100_s19 }
  0x9c   : > { %s12415_s12 = smov (!%p437_p11, %s6103_s12), 63 }
  0x9d   : > { %s6104_s13 = sshll.u32 %s12415_s12, 3  ;;  %s12159_s12 = sld [smem:[#allocation18_spill]] }
  0x9e   : > { %s7102_s21 = scalar_lea.vmem %s12003_s2, %s6104_s13  ;;  %s7107_s6 = scalar_lea.vmem %s12005_s4, %s6104_s13 }
  0x9f   : > { %s7112_s30 = scalar_lea.vmem %s12008_s7, %s6104_s13 }
  0xa3   : > { %p6109_p5 = scmp.ne.s32.totalorder %s12159_s12, 0 }
  0xa4   : > { %v6758_v0 = vmov (!%p6109_p5), 0.0  }
  0xa5   : > { %461 = sbr.rel (%p6109_p5) target bundleno = 181 (0xb5), region = 56  ;;  %462 = vst [vmem:[#allocation2] sm:$0xff] (!%p6109_p5), %v6758_v0  ;;  %463 = vst [vmem:[#allocation2 + $0x8] sm:$0xff] (!%p6109_p5), %v6758_v0 }
  0xa6   : > { %464 = vst [vmem:[#allocation2 + $0x10] sm:$0xff] (!%p6109_p5), %v6758_v0  ;;  %465 = vst [vmem:[#allocation2 + $0x18] sm:$0xff] (!%p6109_p5), %v6758_v0 }
  0xa7   : > { %466 = vst [vmem:[#allocation2 + $0x20] sm:$0xff] (!%p6109_p5), %v6758_v0  ;;  %467 = vst [vmem:[#allocation2 + $0x28] sm:$0xff] (!%p6109_p5), %v6758_v0 }
  0xa8   : > { %468 = vst [vmem:[#allocation2 + $0x30] sm:$0xff] (!%p6109_p5), %v6758_v0  ;;  %469 = vst [vmem:[#allocation2 + $0x38] sm:$0xff] (!%p6109_p5), %v6758_v0 }
  0xa9   : > { %470 = vst [vmem:[#allocation2 + $0x40] sm:$0xff] (!%p6109_p5), %v6758_v0  ;;  %471 = vst [vmem:[#allocation2 + $0x48] sm:$0xff] (!%p6109_p5), %v6758_v0 }
  0xaa   : > { %472 = vst [vmem:[#allocation2 + $0x50] sm:$0xff] (!%p6109_p5), %v6758_v0  ;;  %473 = vst [vmem:[#allocation2 + $0x58] sm:$0xff] (!%p6109_p5), %v6758_v0 }
  0xab   : > { %474 = vst [vmem:[#allocation2 + $0x60] sm:$0xff] (!%p6109_p5), %v6758_v0  ;;  %475 = vst [vmem:[#allocation2 + $0x68] sm:$0xff] (!%p6109_p5), %v6758_v0 }
  0xac   : > { %476 = vst [vmem:[#allocation2 + $0x70] sm:$0xff] %v6758_v0  ;;  %477 = vst [vmem:[#allocation2 + $0x78] sm:$0xff] %v6758_v0 }
  0xad   : > { %478 = vst [vmem:[#allocation2 + $0x80] sm:$0xff] %v6758_v0  ;;  %479 = vst [vmem:[#allocation2 + $0x88] sm:$0xff] %v6758_v0 }
  0xae   : > { %480 = vst [vmem:[#allocation2 + $0x90] sm:$0xff] %v6758_v0  ;;  %481 = vst [vmem:[#allocation2 + $0x98] sm:$0xff] %v6758_v0 }
  0xaf   : > { %482 = vst [vmem:[#allocation2 + $0xa0] sm:$0xff] %v6758_v0  ;;  %483 = vst [vmem:[#allocation2 + $0xa8] sm:$0xff] %v6758_v0 }
  0xb0   : > { %484 = vst [vmem:[#allocation2 + $0xb0] sm:$0xff] %v6758_v0  ;;  %485 = vst [vmem:[#allocation2 + $0xb8] sm:$0xff] %v6758_v0 }
  0xb1   : > { %486 = vst [vmem:[#allocation2 + $0xc0] sm:$0xff] %v6758_v0  ;;  %487 = vst [vmem:[#allocation2 + $0xc8] sm:$0xff] %v6758_v0 }
  0xb2   : > { %488 = vst [vmem:[#allocation2 + $0xd0] sm:$0xff] %v6758_v0  ;;  %489 = vst [vmem:[#allocation2 + $0xd8] sm:$0xff] %v6758_v0 }
  0xb3   : > { %490 = vst [vmem:[#allocation2 + $0xe0] sm:$0xff] %v6758_v0  ;;  %491 = vst [vmem:[#allocation2 + $0xe8] sm:$0xff] %v6758_v0 }
  0xb4   : > { %492 = vst [vmem:[#allocation2 + $0xf0] sm:$0xff] %v6758_v0  ;;  %493 = vst [vmem:[#allocation2 + $0xf8] sm:$0xff] %v6758_v0 }
  0xb5 PF: > { %s6110_s3 = sshll.u32 %s6736_s8, 8  ;;  %v495_v1 = vld [vmem:[%s7075_s15] sm:$0xff]  ;;  %v496_v2 = vld [vmem:[%s7075_s15 + $0x8] sm:$0xff]  ;;  %v497_v3 = vld [vmem:[%s7075_s15 + $0x10] sm:$0xff]  ;;  %v6759_v10 = vmov 0   ;;  %vm520_vm11 = vcmask 1042432  }
  0xb6   : > { %v498_v4 = vld [vmem:[%s7075_s15 + $0x18] sm:$0x7]  ;;  %v499_v5 = vstv %s6110_s3 }
  0xb7   : > { %v7124_v6 = vsub.s32 %v495_v1, %v499_v5  ;;  %v7126_v7 = vsub.s32 %v496_v2, %v499_v5  ;;  %v7128_v8 = vsub.s32 %v497_v3, %v499_v5  ;;  %v7130_v9 = vsub.s32 %v498_v4, %v499_v5 }
  0xb9   : > { %vm504_vm0 = vcmp.ge.s32.totalorder %v7124_v6, 0  ;;  %vm505_vm1 = vcmp.ge.s32.totalorder %v7126_v7, 0  ;;  %vm506_vm2 = vcmp.ge.s32.totalorder %v7128_v8, 0  ;;  %vm508_vm3 = vcmp.lt.s32.totalorder %v7124_v6, 256 }
  0xba   : > { %vm509_vm4 = vcmp.lt.s32.totalorder %v7126_v7, 256  ;;  %vm510_vm5 = vcmp.lt.s32.totalorder %v7128_v8, 256  ;;  %vm507_vm6 = vcmp.ge.s32.totalorder %v7130_v9, 0  ;;  %vm511_vm7 = vcmp.lt.s32.totalorder %v7130_v9, 256  ;;  %vm512_vm8 = vmand %vm504_vm0, %vm508_vm3 }
  0xbb   : > { %vm513_vm9 = vmand %vm505_vm1, %vm509_vm4  ;;  %v516_v11 = vsel %vm512_vm8, 1, %v6759_v10 }
  0xbc   : > { %vm514_vm10 = vmand %vm506_vm2, %vm510_vm5  ;;  %v517_v12 = vsel %vm513_vm9, 1, %v6759_v10 }
  0xbd   : > { %vm515_vm12 = vmand %vm507_vm6, %vm511_vm7  ;;  %v518_v13 = vsel %vm514_vm10, 1, %v6759_v10  ;;  %v522_v15 = vadd.s32 %v517_v12, %v516_v11 }
  0xbe   : > { %v519_v14 = vsel %vm515_vm12, 1, %v6759_v10 }
  0xbf   : > { %v521_v16 = vsel %vm520_vm11, %v519_v14, 0 }
  0xc0   : > { %v523_v17 = vadd.s32 %v521_v16, %v518_v13 }
  0xc2   : > { %v524_v18 = vadd.s32 %v523_v17, %v522_v15 }
  0xc4   : > { %v526_v19 = vshrl.u32 %v524_v18, 16  ;;  %v525_v20 = vand.u32 65535, %v524_v18 }
  0xc6   : > { %v528_v21 = vcvt.s32.f32 %v526_v19  ;;  %v527_v22 = vcvt.s32.f32 %v525_v20 }
  0xc8   : > { %531 = vadd.xlane.f32.xlu0 %v528_v21 }
  0xcc   : > { %529 = vadd.xlane.f32.xlu0 %v527_v22 }
 0x155   : > { %v532_v23 = vpop.xlane.xlu0 %531 }
 0x156   : > { %v534_v24 = vcvt.f32.s32 %v532_v23 }
 0x158   : > { %v535_v26 = vshll.u32 %v534_v24, 16 }
 0x159   : > { %v530_v25 = vpop.xlane.xlu0 %529 }
 0x15a   : > { %v533_v27 = vcvt.f32.s32 %v530_v25 }
 0x15c   : > { %v536_v28 = vadd.s32 %v535_v26, %v533_v27 }
 0x15e   : > { %v537_v29 = vrot.slane %v536_v28, 4 }
 0x160   : > { %v538_v30 = vadd.s32 %v537_v29, %v536_v28 }
 0x162   : > { %v539_v31 = vrot.slane %v538_v30, 2 }
 0x164   : > { %v540_v32 = vadd.s32 %v539_v31, %v538_v30 }
 0x166   : > { %v541_v33 = vrot.slane %v540_v32, 1 }
 0x168   : > { %v542_v34 = vadd.s32 %v541_v33, %v540_v32 }
 0x16a   : > { %6221 = vpush %v542_v34 }
 0x19b   : > { %s6222_s1 = spop %6221 }
 0x19c   : > { %p6111_p3 = scmp.le.s32.totalorder %s6222_s1, 0 }
 0x19e   : > { %547 = sbr.rel (%p6111_p3) target bundleno = 1317 (0x525), region = 60 }
 0x1a5   : > { %v6356_v35 = vld [vmem:[%s7082_s29] sm:$0xff]   ;;  %v564_v36 = vlaneseq  ;;  %v6357_v37 = vld [vmem:[%s7082_s29 + $0x8] sm:$0xff]   ;;  %v6358_v39 = vld [vmem:[%s7082_s29 + $0x10] sm:$0xff]   ;;  %v6760_v54 = vmov 0.0  }
 0x1a6   : > { %6157 = vmatprep.subr.bf16.mxu0 %v6356_v35  ;;  %6205 = vmatprep.subr.bf16.mxu1 %v6356_v35  ;;  %v6359_v47 = vld [vmem:[%s7082_s29 + $0x18] sm:$0xff]   ;;  %v6360_v59 = vld [vmem:[%s7082_s29 + $0x20] sm:$0xff]   ;;  %v6361_v11 = vld [vmem:[%s7082_s29 + $0x28] sm:$0xff]  }
 0x1a7   : > { %v7142_v38 = vshrl.u32 %v564_v36, 7  ;;  %6158 = vmatpush3.bf16.msra.mxu0 %v6356_v35  ;;  %6213 = vmatpush3.bf16.msra.mxu1 %v6356_v35  ;;  %v6362_v24 = vld [vmem:[%s7082_s29 + $0x30] sm:$0xff]   ;;  %v6363_v35 = vld [vmem:[%s7082_s29 + $0x38] sm:$0xff]  }
 0x1a8   : > { %6159 = vmatprep.subr.bf16.mxu0 %v6357_v37  ;;  %6206 = vmatprep.subr.bf16.mxu1 %v6357_v37 }
 0x1a9   : > { %v7146_v40 = vadd.s32 8, %v7142_v38  ;;  %v7149_v41 = vsub.s32 0, %v7142_v38  ;;  %v7152_v42 = vsub.s32 1, %v7142_v38  ;;  %v7159_v44 = vsub.s32 2, %v7142_v38 }
 0x1aa   : > { %v7175_v49 = vsub.s32 3, %v7142_v38  ;;  %v7178_v50 = vsub.s32 4, %v7142_v38  ;;  %v7181_v51 = vsub.s32 5, %v7142_v38  ;;  %v7192_v53 = vsub.s32 6, %v7142_v38 }
 0x1ab   : > { %6160 = vmatpush3.bf16.msra.mxu0 %v6357_v37  ;;  %6214 = vmatpush3.bf16.msra.mxu1 %v6357_v37  ;;  %v7156_v43 = vrot.slane %v7124_v6, %v7149_v41  ;;  %v7163_v45 = vrot.slane %v7126_v7, %v7149_v41  ;;  %v7167_v46 = vrot.slane %v7128_v8, %v7149_v41  ;;  %v7226_v10 = vsub.s32 7, %v7142_v38 }
 0x1ac   : > { %6161 = vmatprep.subr.bf16.mxu0 %v6358_v39  ;;  %6207 = vmatprep.subr.bf16.mxu1 %v6358_v39  ;;  %v7172_v48 = vrot.slane %v7124_v6, %v7152_v42  ;;  %v7189_v52 = vrot.slane %v7124_v6, %v7159_v44  ;;  %v7211_v0 = vrot.slane %v7124_v6, %v7175_v49 }
 0x1ad   : > { %vm601_vm13 = vcmp.eq.s32.totalorder %v7142_v38, %v7156_v43  ;;  %vm602_vm14 = vcmp.eq.s32.totalorder %v7146_v40, %v7156_v43  ;;  %v7215_v1 = vrot.slane %v7124_v6, %v7178_v50  ;;  %v7219_v2 = vrot.slane %v7124_v6, %v7181_v51 }
 0x1ae   : > { %v633_v55 = vsel %vm601_vm13, 0.0003613308, %v6760_v54  ;;  %v634_v56 = vsel %vm602_vm14, 0.0003613308, %v6760_v54  ;;  %vm701_vm15 = vcmp.eq.s32.totalorder %v7142_v38, %v7172_v48  ;;  %vm702_vm0 = vcmp.eq.s32.totalorder %v7146_v40, %v7172_v48 }
 0x1af   : > { %6162 = vmatpush3.bf16.msra.mxu0 %v6358_v39  ;;  %6215 = vmatpush3.bf16.msra.mxu1 %v6358_v39  ;;  %v733_v57 = vsel %vm701_vm15, 0.015857518, %v6760_v54  ;;  %v734_v58 = vsel %vm702_vm0, 0.015857518, %v6760_v54  ;;  %vm801_vm1 = vcmp.eq.s32.totalorder %v7142_v38, %v7189_v52  ;;  %vm802_vm2 = vcmp.eq.s32.totalorder %v7146_v40, %v7189_v52 }
 0x1b0   : > { %6163 = vmatprep.subr.bf16.mxu0 %v6359_v47  ;;  %6208 = vmatprep.subr.bf16.mxu1 %v6359_v47  ;;  %v765_v60 = vadd.f32 %v733_v57, %v633_v55  ;;  %v766_v61 = vadd.f32 %v734_v58, %v634_v56  ;;  %v833_v62 = vsel %vm801_vm1, 0.0003613308, %v6760_v54  ;;  %v834_v63 = vsel %vm802_vm2, 0.0003613308, %v6760_v54 }
 0x1b1   : > { %v7223_v3 = vrot.slane %v7124_v6, %v7192_v53  ;;  %vm1401_vm3 = vcmp.eq.s32.totalorder %v7142_v38, %v7163_v45  ;;  %vm901_vm4 = vcmp.eq.s32.totalorder %v7142_v38, %v7211_v0  ;;  %vm902_vm5 = vcmp.eq.s32.totalorder %v7146_v40, %v7211_v0 }
 0x1b2   : > { %v865_v4 = vadd.f32 %v833_v62, %v765_v60  ;;  %v866_v5 = vadd.f32 %v834_v63, %v766_v61  ;;  %vm1001_vm6 = vcmp.eq.s32.totalorder %v7142_v38, %v7215_v1  ;;  %v1433_v12 = vsel %vm1401_vm3, 0.0003613308, %v6760_v54 }
 0x1b3   : > { %6164 = vmatpush3.bf16.msra.mxu0 %v6359_v47  ;;  %6216 = vmatpush3.bf16.msra.mxu1 %v6359_v47  ;;  %v933_v13 = vsel %vm901_vm4, 0.015857518, %v6760_v54  ;;  %v934_v14 = vsel %vm902_vm5, 0.015857518, %v6760_v54  ;;  %vm1002_vm7 = vcmp.eq.s32.totalorder %v7146_v40, %v7215_v1  ;;  %v1033_v15 = vsel %vm1001_vm6, 0.16666666, %v6760_v54 }
 0x1b4   : > { %6165 = vmatprep.subr.bf16.mxu0 %v6360_v59  ;;  %6209 = vmatprep.subr.bf16.mxu1 %v6360_v59  ;;  %v965_v16 = vadd.f32 %v933_v13, %v865_v4  ;;  %v966_v17 = vadd.f32 %v934_v14, %v866_v5  ;;  %v1034_v18 = vsel %vm1002_vm7, 0.16666666, %v6760_v54  ;;  %vm1101_vm8 = vcmp.eq.s32.totalorder %v7142_v38, %v7219_v2 }
 0x1b5   : > { %vm1102_vm9 = vcmp.eq.s32.totalorder %v7146_v40, %v7219_v2  ;;  %v1133_v19 = vsel %vm1101_vm8, 0.015857518, %v6760_v54  ;;  %vm1201_vm10 = vcmp.eq.s32.totalorder %v7142_v38, %v7223_v3  ;;  %vm1202_vm11 = vcmp.eq.s32.totalorder %v7146_v40, %v7223_v3 }
 0x1b6   : > { %v1065_v20 = vadd.f32 %v1033_v15, %v965_v16  ;;  %v1066_v21 = vadd.f32 %v1034_v18, %v966_v17  ;;  %v1134_v22 = vsel %vm1102_vm9, 0.015857518, %v6760_v54  ;;  %v1233_v23 = vsel %vm1201_vm10, 0.0003613308, %v6760_v54 }
 0x1b7   : > { %6166 = vmatpush3.bf16.msra.mxu0 %v6360_v59  ;;  %6217 = vmatpush3.bf16.msra.mxu1 %v6360_v59  ;;  %v1234_v25 = vsel %vm1202_vm11, 0.0003613308, %v6760_v54  ;;  %v7259_v26 = vrot.slane %v7124_v6, %v7226_v10  ;;  %vm1402_vm12 = vcmp.eq.s32.totalorder %v7146_v40, %v7163_v45  ;;  %v7265_v27 = vrot.slane %v7126_v7, %v7152_v42 }
 0x1b8   : > { %6167 = vmatprep.subr.bf16.mxu0 %v6361_v11  ;;  %6210 = vmatprep.subr.bf16.mxu1 %v6361_v11  ;;  %v1165_v28 = vadd.f32 %v1133_v19, %v1065_v20  ;;  %v1166_v29 = vadd.f32 %v1134_v22, %v1066_v21  ;;  %v1434_v30 = vsel %vm1402_vm12, 0.0003613308, %v6760_v54  ;;  %v7270_v31 = vrot.slane %v7126_v7, %v7159_v44 }
 0x1b9   : > { %vm1301_vm13 = vcmp.eq.s32.totalorder %v7142_v38, %v7259_v26  ;;  %vm1302_vm14 = vcmp.eq.s32.totalorder %v7146_v40, %v7259_v26  ;;  %vm1501_vm15 = vcmp.eq.s32.totalorder %v7142_v38, %v7265_v27  ;;  %vm1502_vm0 = vcmp.eq.s32.totalorder %v7146_v40, %v7265_v27 }
 0x1ba   : > { %v1265_v6 = vadd.f32 %v1233_v23, %v1165_v28  ;;  %v1266_v32 = vadd.f32 %v1234_v25, %v1166_v29  ;;  %v1333_v33 = vsel %vm1301_vm13, 0.015857518, %v6760_v54  ;;  %v1334_v34 = vsel %vm1302_vm14, 0.015857518, %v6760_v54 }
 0x1bb   : > { %6168 = vmatpush3.bf16.msra.mxu0 %v6361_v11  ;;  %6218 = vmatpush3.bf16.msra.mxu1 %v6361_v11  ;;  %v1533_v36 = vsel %vm1501_vm15, 0.015857518, %v6760_v54  ;;  %v1534_v37 = vsel %vm1502_vm0, 0.015857518, %v6760_v54  ;;  %vm1601_vm1 = vcmp.eq.s32.totalorder %v7142_v38, %v7270_v31  ;;  %vm1602_vm2 = vcmp.eq.s32.totalorder %v7146_v40, %v7270_v31 }
 0x1bc   : > { %6169 = vmatprep.subr.bf16.mxu0 %v6362_v24  ;;  %6211 = vmatprep.subr.bf16.mxu1 %v6362_v24  ;;  %v1365_v39 = vadd.f32 %v1333_v33, %v1265_v6  ;;  %v1366_v47 = vadd.f32 %v1334_v34, %v1266_v32  ;;  %v1633_v55 = vsel %vm1601_vm1, 0.16666666, %v6760_v54  ;;  %v1634_v56 = vsel %vm1602_vm2, 0.16666666, %v6760_v54 }
 0x1bd   : > { %v7293_v57 = vrot.slane %v7126_v7, %v7175_v49  ;;  %v7297_v58 = vrot.slane %v7126_v7, %v7178_v50  ;;  %v7301_v59 = vrot.slane %v7126_v7, %v7181_v51  ;;  %v7305_v60 = vrot.slane %v7126_v7, %v7192_v53 }
 0x1be   : > { %v1465_v61 = vadd.f32 %v1433_v12, %v1365_v39  ;;  %v1466_v62 = vadd.f32 %v1434_v30, %v1366_v47  ;;  %v7309_v63 = vrot.slane %v7126_v7, %v7226_v10  ;;  %v7312_v4 = vadd.s32 128, %v7142_v38 }
 0x1bf   : > { %6170 = vmatpush3.bf16.msra.mxu0 %v6362_v24  ;;  %6219 = vmatpush3.bf16.msra.mxu1 %v6362_v24  ;;  %vm1701_vm3 = vcmp.eq.s32.totalorder %v7142_v38, %v7293_v57  ;;  %vm1702_vm4 = vcmp.eq.s32.totalorder %v7146_v40, %v7293_v57  ;;  %vm1801_vm5 = vcmp.eq.s32.totalorder %v7142_v38, %v7297_v58  ;;  %v7321_v5 = vadd.s32 136, %v7142_v38 }
 0x1c0   : > { %6171 = vmatprep.subr.bf16.mxu0 %v6363_v35  ;;  %6212 = vmatprep.subr.bf16.mxu1 %v6363_v35  ;;  %v1565_v11 = vadd.f32 %v1533_v36, %v1465_v61  ;;  %v1566_v7 = vadd.f32 %v1534_v37, %v1466_v62  ;;  %v1733_v12 = vsel %vm1701_vm3, 0.015857518, %v6760_v54  ;;  %v1734_v13 = vsel %vm1702_vm4, 0.015857518, %v6760_v54 }
 0x1c1   : > { %vm1802_vm6 = vcmp.eq.s32.totalorder %v7146_v40, %v7297_v58  ;;  %v1833_v14 = vsel %vm1801_vm5, 0.16666666, %v6760_v54  ;;  %vm1901_vm7 = vcmp.eq.s32.totalorder %v7142_v38, %v7301_v59  ;;  %vm1902_vm8 = vcmp.eq.s32.totalorder %v7146_v40, %v7301_v59 }
 0x1c2   : > { %v1665_v15 = vadd.f32 %v1633_v55, %v1565_v11  ;;  %v1666_v16 = vadd.f32 %v1634_v56, %v1566_v7  ;;  %v1834_v17 = vsel %vm1802_vm6, 0.16666666, %v6760_v54  ;;  %v1933_v18 = vsel %vm1901_vm7, 1.0, %v6760_v54 }
 0x1c3   : > { %6172 = vmatpush3.bf16.msra.mxu0 %v6363_v35  ;;  %6220 = vmatpush3.bf16.msra.mxu1 %v6363_v35  ;;  %v1934_v19 = vsel %vm1902_vm8, 1.0, %v6760_v54  ;;  %vm2001_vm9 = vcmp.eq.s32.totalorder %v7142_v38, %v7305_v60  ;;  %vm2002_vm10 = vcmp.eq.s32.totalorder %v7146_v40, %v7305_v60  ;;  %vm2101_vm11 = vcmp.eq.s32.totalorder %v7142_v38, %v7309_v63 }
 0x1c4   : > { %v1765_v20 = vadd.f32 %v1733_v12, %v1665_v15  ;;  %v1766_v21 = vadd.f32 %v1734_v13, %v1666_v16  ;;  %v2033_v22 = vsel %vm2001_vm9, 0.16666666, %v6760_v54  ;;  %v2034_v23 = vsel %vm2002_vm10, 0.16666666, %v6760_v54 }
 0x1c5   : > { %vm2102_vm12 = vcmp.eq.s32.totalorder %v7146_v40, %v7309_v63  ;;  %v2133_v24 = vsel %vm2101_vm11, 0.015857518, %v6760_v54  ;;  %vm2201_vm13 = vcmp.eq.s32.totalorder %v7142_v38, %v7167_v46  ;;  %vm2202_vm14 = vcmp.eq.s32.totalorder %v7146_v40, %v7167_v46 }
 0x1c6   : > { %v1865_v25 = vadd.f32 %v1833_v14, %v1765_v20  ;;  %v1866_v28 = vadd.f32 %v1834_v17, %v1766_v21  ;;  %v2134_v29 = vsel %vm2102_vm12, 0.015857518, %v6760_v54  ;;  %v2233_v30 = vsel %vm2201_vm13, 0.16666666, %v6760_v54 }
 0x1c7   : > { %v2234_v6 = vsel %vm2202_vm14, 0.16666666, %v6760_v54  ;;  %v7355_v32 = vrot.slane %v7128_v8, %v7152_v42  ;;  %v7359_v33 = vrot.slane %v7128_v8, %v7159_v44  ;;  %v7363_v34 = vrot.slane %v7128_v8, %v7175_v49 }
 0x1c8   : > { %v1965_v35 = vadd.f32 %v1933_v18, %v1865_v25  ;;  %v1966_v36 = vadd.f32 %v1934_v19, %v1866_v28  ;;  %v7367_v37 = vrot.slane %v7128_v8, %v7178_v50  ;;  %v7371_v39 = vrot.slane %v7128_v8, %v7181_v51 }
 0x1c9   : > { %vm2301_vm15 = vcmp.eq.s32.totalorder %v7142_v38, %v7355_v32  ;;  %vm2302_vm0 = vcmp.eq.s32.totalorder %v7146_v40, %v7355_v32  ;;  %vm2401_vm1 = vcmp.eq.s32.totalorder %v7142_v38, %v7359_v33  ;;  %vm2402_vm2 = vcmp.eq.s32.totalorder %v7146_v40, %v7359_v33 }
 0x1ca   : > { %v2065_v49 = vadd.f32 %v2033_v22, %v1965_v35  ;;  %v2066_v47 = vadd.f32 %v2034_v23, %v1966_v36  ;;  %v2333_v50 = vsel %vm2301_vm15, 0.015857518, %v6760_v54  ;;  %v2334_v55 = vsel %vm2302_vm0, 0.015857518, %v6760_v54 }
 0x1cb   : > { %v2433_v51 = vsel %vm2401_vm1, 0.0003613308, %v6760_v54  ;;  %v2434_v56 = vsel %vm2402_vm2, 0.0003613308, %v6760_v54  ;;  %vm2501_vm3 = vcmp.eq.s32.totalorder %v7142_v38, %v7363_v34  ;;  %vm2502_vm4 = vcmp.eq.s32.totalorder %v7146_v40, %v7363_v34 }
 0x1cc   : > { %v2165_v61 = vadd.f32 %v2133_v24, %v2065_v49  ;;  %v2166_v62 = vadd.f32 %v2134_v29, %v2066_v47  ;;  %v2533_v11 = vsel %vm2501_vm3, 0.015857518, %v6760_v54  ;;  %v2534_v7 = vsel %vm2502_vm4, 0.015857518, %v6760_v54 }
 0x1cd   : > { %vm2601_vm5 = vcmp.eq.s32.totalorder %v7142_v38, %v7367_v37  ;;  %vm2602_vm6 = vcmp.eq.s32.totalorder %v7146_v40, %v7367_v37  ;;  %vm2701_vm7 = vcmp.eq.s32.totalorder %v7142_v38, %v7371_v39  ;;  %vm2702_vm8 = vcmp.eq.s32.totalorder %v7146_v40, %v7371_v39 }
 0x1ce   : > { %v2265_v12 = vadd.f32 %v2233_v30, %v2165_v61  ;;  %v2266_v13 = vadd.f32 %v2234_v6, %v2166_v62  ;;  %v2633_v14 = vsel %vm2601_vm5, 0.0003613308, %v6760_v54  ;;  %v2634_v15 = vsel %vm2602_vm6, 0.0003613308, %v6760_v54 }
 0x1cf   : > { %v2733_v16 = vsel %vm2701_vm7, 0.015857518, %v6760_v54  ;;  %v2734_v17 = vsel %vm2702_vm8, 0.015857518, %v6760_v54  ;;  %v7405_v18 = vrot.slane %v7128_v8, %v7192_v53  ;;  %v7409_v19 = vrot.slane %v7128_v8, %v7226_v10 }
 0x1d0   : > { %v2365_v20 = vadd.f32 %v2333_v50, %v2265_v12  ;;  %v2366_v21 = vadd.f32 %v2334_v55, %v2266_v13  ;;  %v7413_v22 = vrot.slane %v7130_v9, %v7149_v41  ;;  %v7417_v23 = vrot.slane %v7130_v9, %v7152_v42 }
 0x1d1   : > { %vm2801_vm9 = vcmp.eq.s32.totalorder %v7142_v38, %v7405_v18  ;;  %vm2802_vm10 = vcmp.eq.s32.totalorder %v7146_v40, %v7405_v18  ;;  %vm2901_vm11 = vcmp.eq.s32.totalorder %v7142_v38, %v7409_v19  ;;  %vm2902_vm12 = vcmp.eq.s32.totalorder %v7146_v40, %v7409_v19 }
 0x1d2   : > { %v2465_v8 = vadd.f32 %v2433_v51, %v2365_v20  ;;  %v2466_v53 = vadd.f32 %v2434_v56, %v2366_v21  ;;  %v2833_v41 = vsel %vm2801_vm9, 0.16666666, %v6760_v54  ;;  %v2834_v10 = vsel %vm2802_vm10, 0.16666666, %v6760_v54 }
 0x1d3   : > { %v2933_v42 = vsel %vm2901_vm11, 0.015857518, %v6760_v54  ;;  %v2934_v24 = vsel %vm2902_vm12, 0.015857518, %v6760_v54  ;;  %vm3001_vm13 = vcmp.eq.s32.totalorder %v7142_v38, %v7413_v22  ;;  %vm3002_vm14 = vcmp.eq.s32.totalorder %v7146_v40, %v7413_v22 }
 0x1d4   : > { %v2565_v25 = vadd.f32 %v2533_v11, %v2465_v8  ;;  %v2566_v28 = vadd.f32 %v2534_v7, %v2466_v53  ;;  %v3033_v29 = vsel %vm3001_vm13, 0.0003613308, %v6760_v54  ;;  %v3034_v30 = vsel %vm3002_vm14, 0.0003613308, %v6760_v54 }
 0x1d5   : > { %vm3101_vm15 = vcmp.eq.s32.totalorder %v7142_v38, %v7417_v23  ;;  %vm3102_vm0 = vcmp.eq.s32.totalorder %v7146_v40, %v7417_v23  ;;  %v7443_v6 = vrot.slane %v7130_v9, %v7159_v44  ;;  %vm617_vm1 = vcmp.eq.s32.totalorder %v7312_v4, %v7156_v43 }
 0x1d6   : > { %v2665_v35 = vadd.f32 %v2633_v14, %v2565_v25  ;;  %v2666_v36 = vadd.f32 %v2634_v15, %v2566_v28  ;;  %v3133_v49 = vsel %vm3101_vm15, 0.015857518, %v6760_v54  ;;  %v3134_v47 = vsel %vm3102_vm0, 0.015857518, %v6760_v54 }
 0x1d7   : > { %vm3201_vm2 = vcmp.eq.s32.totalorder %v7142_v38, %v7443_v6  ;;  %vm3202_vm3 = vcmp.eq.s32.totalorder %v7146_v40, %v7443_v6  ;;  %vm618_vm4 = vcmp.eq.s32.totalorder %v7321_v5, %v7156_v43  ;;  %v649_v9 = vsel %vm617_vm1, 0.0003613308, %v6760_v54 }
 0x1d8   : > { %v2765_v44 = vadd.f32 %v2733_v16, %v2665_v35  ;;  %v2766_v50 = vadd.f32 %v2734_v17, %v2666_v36  ;;  %v3233_v55 = vsel %vm3201_vm2, 0.0003613308, %v6760_v54  ;;  %v3234_v51 = vsel %vm3202_vm3, 0.0003613308, %v6760_v54 }
 0x1d9   : > { %v650_v56 = vsel %vm618_vm4, 0.0003613308, %v6760_v54  ;;  %vm717_vm5 = vcmp.eq.s32.totalorder %v7312_v4, %v7172_v48  ;;  %vm718_vm6 = vcmp.eq.s32.totalorder %v7321_v5, %v7172_v48  ;;  %vm817_vm7 = vcmp.eq.s32.totalorder %v7312_v4, %v7189_v52 }
 0x1da   : > { %v2865_v40 = vadd.f32 %v2833_v41, %v2765_v44  ;;  %v2866_v61 = vadd.f32 %v2834_v10, %v2766_v50  ;;  %v749_v62 = vsel %vm717_vm5, 0.015857518, %v6760_v54  ;;  %v750_v11 = vsel %vm718_vm6, 0.015857518, %v6760_v54 }
 0x1db   : > { %v781_v7 = vadd.f32 %v749_v62, %v649_v9  ;;  %v782_v12 = vadd.f32 %v750_v11, %v650_v56  ;;  %vm818_vm8 = vcmp.eq.s32.totalorder %v7321_v5, %v7189_v52  ;;  %v849_v13 = vsel %vm817_vm7, 0.0003613308, %v6760_v54 }
 0x1dc   : > { %v2965_v14 = vadd.f32 %v2933_v42, %v2865_v40  ;;  %v2966_v15 = vadd.f32 %v2934_v24, %v2866_v61  ;;  %v850_v16 = vsel %vm818_vm8, 0.0003613308, %v6760_v54  ;;  %vm917_vm9 = vcmp.eq.s32.totalorder %v7312_v4, %v7211_v0 }
 0x1dd   : > { %v881_v17 = vadd.f32 %v849_v13, %v781_v7  ;;  %v882_v20 = vadd.f32 %v850_v16, %v782_v12  ;;  %vm918_vm10 = vcmp.eq.s32.totalorder %v7321_v5, %v7211_v0  ;;  %v949_v21 = vsel %vm917_vm9, 0.015857518, %v6760_v54 }
 0x1de   : > { %v3065_v8 = vadd.f32 %v3033_v29, %v2965_v14  ;;  %v3066_v53 = vadd.f32 %v3034_v30, %v2966_v15  ;;  %v950_v41 = vsel %vm918_vm10, 0.015857518, %v6760_v54  ;;  %vm1017_vm11 = vcmp.eq.s32.totalorder %v7312_v4, %v7215_v1 }
 0x1df   : > { %v981_v10 = vadd.f32 %v949_v21, %v881_v17  ;;  %v982_v42 = vadd.f32 %v950_v41, %v882_v20  ;;  %vm1018_vm12 = vcmp.eq.s32.totalorder %v7321_v5, %v7215_v1  ;;  %v1049_v24 = vsel %vm1017_vm11, 0.16666666, %v6760_v54 }
 0x1e0   : > { %v3165_v25 = vadd.f32 %v3133_v49, %v3065_v8  ;;  %v3166_v28 = vadd.f32 %v3134_v47, %v3066_v53  ;;  %v1050_v35 = vsel %vm1018_vm12, 0.16666666, %v6760_v54  ;;  %vm1117_vm13 = vcmp.eq.s32.totalorder %v7312_v4, %v7219_v2 }
 0x1e1   : > { %v1081_v29 = vadd.f32 %v1049_v24, %v981_v10  ;;  %v1082_v30 = vadd.f32 %v1050_v35, %v982_v42  ;;  %vm1118_vm14 = vcmp.eq.s32.totalorder %v7321_v5, %v7219_v2  ;;  %v1149_v36 = vsel %vm1117_vm13, 0.015857518, %v6760_v54 }
 0x1e2   : > { %v3265_v9 = vadd.f32 %v3233_v55, %v3165_v25  ;;  %v3266_v44 = vadd.f32 %v3234_v51, %v3166_v28  ;;  %v1150_v50 = vsel %vm1118_vm14, 0.015857518, %v6760_v54  ;;  %vm1217_vm15 = vcmp.eq.s32.totalorder %v7312_v4, %v7223_v3 }
 0x1e3   : > { %v1181_v49 = vadd.f32 %v1149_v36, %v1081_v29  ;;  %v1182_v47 = vadd.f32 %v1150_v50, %v1082_v30  ;;  %vm1218_vm0 = vcmp.eq.s32.totalorder %v7321_v5, %v7223_v3  ;;  %v1249_v56 = vsel %vm1217_vm15, 0.0003613308, %v6760_v54 }
 0x1e4   : > { %v3329_v40 = vpack.c.bf16 %v3266_v44, %v3265_v9  ;;  %v1250_v61 = vsel %vm1218_vm0, 0.0003613308, %v6760_v54  ;;  %vm1317_vm1 = vcmp.eq.s32.totalorder %v7312_v4, %v7259_v26  ;;  %vm1318_vm2 = vcmp.eq.s32.totalorder %v7321_v5, %v7259_v26 }
 0x1e5   : > { %v1281_v55 = vadd.f32 %v1249_v56, %v1181_v49  ;;  %v1282_v51 = vadd.f32 %v1250_v61, %v1182_v47  ;;  %v1349_v62 = vsel %vm1317_vm1, 0.015857518, %v6760_v54  ;;  %v1350_v11 = vsel %vm1318_vm2, 0.015857518, %v6760_v54 }
 0x1e6   : > { %6173 = vmatprep.mubr.bf16.mxu0 %v3329_v40  ;;  %vm1417_vm3 = vcmp.eq.s32.totalorder %v7312_v4, %v7163_v45  ;;  %vm1418_vm4 = vcmp.eq.s32.totalorder %v7321_v5, %v7163_v45  ;;  %vm1517_vm5 = vcmp.eq.s32.totalorder %v7312_v4, %v7265_v27  ;;  %vm1518_vm6 = vcmp.eq.s32.totalorder %v7321_v5, %v7265_v27 }
 0x1e7   : > { %v1381_v7 = vadd.f32 %v1349_v62, %v1281_v55  ;;  %v1382_v12 = vadd.f32 %v1350_v11, %v1282_v51  ;;  %v1449_v13 = vsel %vm1417_vm3, 0.0003613308, %v6760_v54  ;;  %v1450_v14 = vsel %vm1418_vm4, 0.0003613308, %v6760_v54 }
 0x1e8   : > { %v1549_v15 = vsel %vm1517_vm5, 0.015857518, %v6760_v54  ;;  %v1550_v16 = vsel %vm1518_vm6, 0.015857518, %v6760_v54  ;;  %vm1617_vm7 = vcmp.eq.s32.totalorder %v7312_v4, %v7270_v31  ;;  %vm1618_vm8 = vcmp.eq.s32.totalorder %v7321_v5, %v7270_v31 }
 0x1e9   : > { %v1481_v17 = vadd.f32 %v1449_v13, %v1381_v7  ;;  %v1482_v20 = vadd.f32 %v1450_v14, %v1382_v12  ;;  %v1649_v21 = vsel %vm1617_vm7, 0.16666666, %v6760_v54  ;;  %v1650_v8 = vsel %vm1618_vm8, 0.16666666, %v6760_v54 }
 0x1ea   : > { %vm1717_vm9 = vcmp.eq.s32.totalorder %v7312_v4, %v7293_v57  ;;  %vm1718_vm10 = vcmp.eq.s32.totalorder %v7321_v5, %v7293_v57  ;;  %vm1817_vm11 = vcmp.eq.s32.totalorder %v7312_v4, %v7297_v58  ;;  %vm1818_vm12 = vcmp.eq.s32.totalorder %v7321_v5, %v7297_v58 }
 0x1eb   : > { %v1581_v53 = vadd.f32 %v1549_v15, %v1481_v17  ;;  %v1582_v41 = vadd.f32 %v1550_v16, %v1482_v20  ;;  %v1749_v10 = vsel %vm1717_vm9, 0.015857518, %v6760_v54  ;;  %v1750_v42 = vsel %vm1718_vm10, 0.015857518, %v6760_v54 }
 0x1ec   : > { %v1849_v24 = vsel %vm1817_vm11, 0.16666666, %v6760_v54  ;;  %v1850_v25 = vsel %vm1818_vm12, 0.16666666, %v6760_v54  ;;  %vm1917_vm13 = vcmp.eq.s32.totalorder %v7312_v4, %v7301_v59  ;;  %vm1918_vm14 = vcmp.eq.s32.totalorder %v7321_v5, %v7301_v59 }
 0x1ed   : > { %v1681_v28 = vadd.f32 %v1649_v21, %v1581_v53  ;;  %v1682_v35 = vadd.f32 %v1650_v8, %v1582_v41  ;;  %v1949_v29 = vsel %vm1917_vm13, 1.0, %v6760_v54  ;;  %v1950_v30 = vsel %vm1918_vm14, 1.0, %v6760_v54 }
 0x1ee   : > { %vm2017_vm15 = vcmp.eq.s32.totalorder %v7312_v4, %v7305_v60  ;;  %vm2018_vm0 = vcmp.eq.s32.totalorder %v7321_v5, %v7305_v60  ;;  %vm2117_vm1 = vcmp.eq.s32.totalorder %v7312_v4, %v7309_v63  ;;  %vm2118_vm2 = vcmp.eq.s32.totalorder %v7321_v5, %v7309_v63 }
 0x1ef   : > { %v1781_v36 = vadd.f32 %v1749_v10, %v1681_v28  ;;  %v1782_v9 = vadd.f32 %v1750_v42, %v1682_v35  ;;  %v2049_v44 = vsel %vm2017_vm15, 0.16666666, %v6760_v54  ;;  %v2050_v50 = vsel %vm2018_vm0, 0.16666666, %v6760_v54 }
 0x1f0   : > { %v2149_v49 = vsel %vm2117_vm1, 0.015857518, %v6760_v54  ;;  %v2150_v47 = vsel %vm2118_vm2, 0.015857518, %v6760_v54  ;;  %vm2217_vm3 = vcmp.eq.s32.totalorder %v7312_v4, %v7167_v46  ;;  %vm2218_vm4 = vcmp.eq.s32.totalorder %v7321_v5, %v7167_v46 }
 0x1f1   : > { %v1881_v56 = vadd.f32 %v1849_v24, %v1781_v36  ;;  %v1882_v40 = vadd.f32 %v1850_v25, %v1782_v9  ;;  %v2249_v61 = vsel %vm2217_vm3, 0.16666666, %v6760_v54  ;;  %v2250_v55 = vsel %vm2218_vm4, 0.16666666, %v6760_v54 }
 0x1f2   : > { %vm2317_vm5 = vcmp.eq.s32.totalorder %v7312_v4, %v7355_v32  ;;  %vm2318_vm6 = vcmp.eq.s32.totalorder %v7321_v5, %v7355_v32  ;;  %vm2417_vm7 = vcmp.eq.s32.totalorder %v7312_v4, %v7359_v33  ;;  %vm2418_vm8 = vcmp.eq.s32.totalorder %v7321_v5, %v7359_v33 }
 0x1f3   : > { %v1981_v51 = vadd.f32 %v1949_v29, %v1881_v56  ;;  %v1982_v62 = vadd.f32 %v1950_v30, %v1882_v40  ;;  %v2349_v11 = vsel %vm2317_vm5, 0.015857518, %v6760_v54  ;;  %v2350_v7 = vsel %vm2318_vm6, 0.015857518, %v6760_v54 }
 0x1f4   : > { %v2449_v12 = vsel %vm2417_vm7, 0.0003613308, %v6760_v54  ;;  %v2450_v13 = vsel %vm2418_vm8, 0.0003613308, %v6760_v54  ;;  %vm2517_vm9 = vcmp.eq.s32.totalorder %v7312_v4, %v7363_v34  ;;  %vm2518_vm10 = vcmp.eq.s32.totalorder %v7321_v5, %v7363_v34 }
 0x1f5   : > { %v2081_v14 = vadd.f32 %v2049_v44, %v1981_v51  ;;  %v2082_v15 = vadd.f32 %v2050_v50, %v1982_v62  ;;  %v2549_v16 = vsel %vm2517_vm9, 0.015857518, %v6760_v54  ;;  %v2550_v17 = vsel %vm2518_vm10, 0.015857518, %v6760_v54 }
 0x1f6   : > { %vm2617_vm11 = vcmp.eq.s32.totalorder %v7312_v4, %v7367_v37  ;;  %vm2618_vm12 = vcmp.eq.s32.totalorder %v7321_v5, %v7367_v37  ;;  %vm2717_vm13 = vcmp.eq.s32.totalorder %v7312_v4, %v7371_v39  ;;  %vm2718_vm14 = vcmp.eq.s32.totalorder %v7321_v5, %v7371_v39 }
 0x1f7   : > { %v2181_v20 = vadd.f32 %v2149_v49, %v2081_v14  ;;  %v2182_v21 = vadd.f32 %v2150_v47, %v2082_v15  ;;  %v2649_v8 = vsel %vm2617_vm11, 0.0003613308, %v6760_v54  ;;  %v2650_v53 = vsel %vm2618_vm12, 0.0003613308, %v6760_v54 }
 0x1f8   : > { %v2749_v41 = vsel %vm2717_vm13, 0.015857518, %v6760_v54  ;;  %v2750_v10 = vsel %vm2718_vm14, 0.015857518, %v6760_v54  ;;  %vm2817_vm15 = vcmp.eq.s32.totalorder %v7312_v4, %v7405_v18  ;;  %vm2818_vm0 = vcmp.eq.s32.totalorder %v7321_v5, %v7405_v18 }
 0x1f9   : > { %v2281_v42 = vadd.f32 %v2249_v61, %v2181_v20  ;;  %v2282_v24 = vadd.f32 %v2250_v55, %v2182_v21  ;;  %v2849_v25 = vsel %vm2817_vm15, 0.16666666, %v6760_v54  ;;  %v2850_v28 = vsel %vm2818_vm0, 0.16666666, %v6760_v54 }
 0x1fa   : > { %vm2917_vm1 = vcmp.eq.s32.totalorder %v7312_v4, %v7409_v19  ;;  %vm2918_vm2 = vcmp.eq.s32.totalorder %v7321_v5, %v7409_v19  ;;  %vm3017_vm3 = vcmp.eq.s32.totalorder %v7312_v4, %v7413_v22  ;;  %vm3018_vm4 = vcmp.eq.s32.totalorder %v7321_v5, %v7413_v22 }
 0x1fb   : > { %v2381_v35 = vadd.f32 %v2349_v11, %v2281_v42  ;;  %v2382_v29 = vadd.f32 %v2350_v7, %v2282_v24  ;;  %v2949_v30 = vsel %vm2917_vm1, 0.015857518, %v6760_v54  ;;  %v2950_v36 = vsel %vm2918_vm2, 0.015857518, %v6760_v54 }
 0x1fc   : > { %v3049_v9 = vsel %vm3017_vm3, 0.0003613308, %v6760_v54  ;;  %v3050_v44 = vsel %vm3018_vm4, 0.0003613308, %v6760_v54  ;;  %vm3117_vm5 = vcmp.eq.s32.totalorder %v7312_v4, %v7417_v23  ;;  %vm3118_vm6 = vcmp.eq.s32.totalorder %v7321_v5, %v7417_v23 }
 0x1fd   : > { %v2481_v50 = vadd.f32 %v2449_v12, %v2381_v35  ;;  %v2482_v49 = vadd.f32 %v2450_v13, %v2382_v29  ;;  %v3149_v47 = vsel %vm3117_vm5, 0.015857518, %v6760_v54  ;;  %v3150_v56 = vsel %vm3118_vm6, 0.015857518, %v6760_v54 }
 0x1fe   : > { %vm3217_vm7 = vcmp.eq.s32.totalorder %v7312_v4, %v7443_v6  ;;  %vm3218_vm8 = vcmp.eq.s32.totalorder %v7321_v5, %v7443_v6  ;;  %v7614_v40 = vadd.s32 16, %v7142_v38  ;;  %v7617_v61 = vadd.s32 24, %v7142_v38 }
 0x1ff   : > { %v2581_v55 = vadd.f32 %v2549_v16, %v2481_v50  ;;  %v2582_v51 = vadd.f32 %v2550_v17, %v2482_v49  ;;  %v3249_v62 = vsel %vm3217_vm7, 0.0003613308, %v6760_v54  ;;  %v3250_v11 = vsel %vm3218_vm8, 0.0003613308, %v6760_v54 }
 0x200   : > { %vm603_vm9 = vcmp.eq.s32.totalorder %v7614_v40, %v7156_v43  ;;  %vm604_vm10 = vcmp.eq.s32.totalorder %v7617_v61, %v7156_v43  ;;  %vm703_vm11 = vcmp.eq.s32.totalorder %v7614_v40, %v7172_v48  ;;  %vm704_vm12 = vcmp.eq.s32.totalorder %v7617_v61, %v7172_v48 }
 0x201   : > { %v2681_v4 = vadd.f32 %v2649_v8, %v2581_v55  ;;  %v2682_v5 = vadd.f32 %v2650_v53, %v2582_v51  ;;  %v635_v7 = vsel %vm603_vm9, 0.0003613308, %v6760_v54  ;;  %v636_v12 = vsel %vm604_vm10, 0.0003613308, %v6760_v54 }
 0x202   : > { %v735_v13 = vsel %vm703_vm11, 0.015857518, %v6760_v54  ;;  %v736_v14 = vsel %vm704_vm12, 0.015857518, %v6760_v54  ;;  %vm803_vm13 = vcmp.eq.s32.totalorder %v7614_v40, %v7189_v52  ;;  %vm804_vm14 = vcmp.eq.s32.totalorder %v7617_v61, %v7189_v52 }
 0x203   : > { %v2781_v15 = vadd.f32 %v2749_v41, %v2681_v4  ;;  %v2782_v16 = vadd.f32 %v2750_v10, %v2682_v5  ;;  %v767_v17 = vadd.f32 %v735_v13, %v635_v7  ;;  %v768_v20 = vadd.f32 %v736_v14, %v636_v12 }
 0x204   : > { %v835_v21 = vsel %vm803_vm13, 0.0003613308, %v6760_v54  ;;  %v836_v8 = vsel %vm804_vm14, 0.0003613308, %v6760_v54  ;;  %vm903_vm15 = vcmp.eq.s32.totalorder %v7614_v40, %v7211_v0  ;;  %vm904_vm0 = vcmp.eq.s32.totalorder %v7617_v61, %v7211_v0 }
 0x205   : > { %v2881_v53 = vadd.f32 %v2849_v25, %v2781_v15  ;;  %v2882_v42 = vadd.f32 %v2850_v28, %v2782_v16  ;;  %v867_v24 = vadd.f32 %v835_v21, %v767_v17  ;;  %v868_v35 = vadd.f32 %v836_v8, %v768_v20 }
 0x206   : > { %v935_v29 = vsel %vm903_vm15, 0.015857518, %v6760_v54  ;;  %v936_v41 = vsel %vm904_vm0, 0.015857518, %v6760_v54  ;;  %vm1003_vm1 = vcmp.eq.s32.totalorder %v7614_v40, %v7215_v1  ;;  %vm1004_vm2 = vcmp.eq.s32.totalorder %v7617_v61, %v7215_v1 }
 0x207   : > { %v2981_v10 = vadd.f32 %v2949_v30, %v2881_v53  ;;  %v2982_v50 = vadd.f32 %v2950_v36, %v2882_v42  ;;  %v967_v49 = vadd.f32 %v935_v29, %v867_v24  ;;  %v968_v55 = vadd.f32 %v936_v41, %v868_v35 }
 0x208   : > { %v1035_v51 = vsel %vm1003_vm1, 0.16666666, %v6760_v54  ;;  %v1036_v25 = vsel %vm1004_vm2, 0.16666666, %v6760_v54  ;;  %vm1103_vm3 = vcmp.eq.s32.totalorder %v7614_v40, %v7219_v2  ;;  %vm1104_vm4 = vcmp.eq.s32.totalorder %v7617_v61, %v7219_v2 }
 0x209   : > { %v3081_v28 = vadd.f32 %v3049_v9, %v2981_v10  ;;  %v3082_v4 = vadd.f32 %v3050_v44, %v2982_v50  ;;  %v1067_v5 = vadd.f32 %v1035_v51, %v967_v49  ;;  %v1068_v7 = vadd.f32 %v1036_v25, %v968_v55 }
 0x20a   : > { %v1135_v12 = vsel %vm1103_vm3, 0.015857518, %v6760_v54  ;;  %v1136_v30 = vsel %vm1104_vm4, 0.015857518, %v6760_v54  ;;  %vm1203_vm5 = vcmp.eq.s32.totalorder %v7614_v40, %v7223_v3  ;;  %vm1204_vm6 = vcmp.eq.s32.totalorder %v7617_v61, %v7223_v3 }
 0x20b   : > { %v3181_v36 = vadd.f32 %v3149_v47, %v3081_v28  ;;  %v3182_v13 = vadd.f32 %v3150_v56, %v3082_v4  ;;  %v1167_v14 = vadd.f32 %v1135_v12, %v1067_v5  ;;  %v1168_v15 = vadd.f32 %v1136_v30, %v1068_v7 }
 0x20c   : > { %v1235_v16 = vsel %vm1203_vm5, 0.0003613308, %v6760_v54  ;;  %v1236_v9 = vsel %vm1204_vm6, 0.0003613308, %v6760_v54  ;;  %vm1303_vm7 = vcmp.eq.s32.totalorder %v7614_v40, %v7259_v26  ;;  %vm1304_vm8 = vcmp.eq.s32.totalorder %v7617_v61, %v7259_v26 }
 0x20d   : > { %v3281_v44 = vadd.f32 %v3249_v62, %v3181_v36  ;;  %v3282_v17 = vadd.f32 %v3250_v11, %v3182_v13  ;;  %v1267_v20 = vadd.f32 %v1235_v16, %v1167_v14  ;;  %v1268_v21 = vadd.f32 %v1236_v9, %v1168_v15 }
 0x20e   : > { %v1335_v8 = vsel %vm1303_vm7, 0.015857518, %v6760_v54  ;;  %v1336_v47 = vsel %vm1304_vm8, 0.015857518, %v6760_v54  ;;  %vm1403_vm9 = vcmp.eq.s32.totalorder %v7614_v40, %v7163_v45  ;;  %vm1404_vm10 = vcmp.eq.s32.totalorder %v7617_v61, %v7163_v45 }
 0x20f   : > { %v3337_v56 = vpack.c.bf16 %v3282_v17, %v3281_v44  ;;  %v1367_v53 = vadd.f32 %v1335_v8, %v1267_v20  ;;  %v1368_v42 = vadd.f32 %v1336_v47, %v1268_v21  ;;  %v1435_v24 = vsel %vm1403_vm9, 0.0003613308, %v6760_v54 }
 0x210   : > { %v1436_v62 = vsel %vm1404_vm10, 0.0003613308, %v6760_v54  ;;  %vm1503_vm11 = vcmp.eq.s32.totalorder %v7614_v40, %v7265_v27  ;;  %vm1504_vm12 = vcmp.eq.s32.totalorder %v7617_v61, %v7265_v27  ;;  %vm1603_vm13 = vcmp.eq.s32.totalorder %v7614_v40, %v7270_v31 }
 0x211   : > { %6189 = vmatprep.mubr.bf16.mxu1 %v3337_v56  ;;  %v1467_v11 = vadd.f32 %v1435_v24, %v1367_v53  ;;  %v1468_v35 = vadd.f32 %v1436_v62, %v1368_v42  ;;  %v1535_v29 = vsel %vm1503_vm11, 0.015857518, %v6760_v54  ;;  %v1536_v41 = vsel %vm1504_vm12, 0.015857518, %v6760_v54 }
 0x212   : > { %vm1604_vm14 = vcmp.eq.s32.totalorder %v7617_v61, %v7270_v31  ;;  %v1635_v10 = vsel %vm1603_vm13, 0.16666666, %v6760_v54  ;;  %vm1703_vm15 = vcmp.eq.s32.totalorder %v7614_v40, %v7293_v57  ;;  %vm1704_vm0 = vcmp.eq.s32.totalorder %v7617_v61, %v7293_v57 }
 0x213   : > { %v1567_v50 = vadd.f32 %v1535_v29, %v1467_v11  ;;  %v1568_v49 = vadd.f32 %v1536_v41, %v1468_v35  ;;  %v1636_v55 = vsel %vm1604_vm14, 0.16666666, %v6760_v54  ;;  %v1735_v51 = vsel %vm1703_vm15, 0.015857518, %v6760_v54 }
 0x214   : > { %v1736_v25 = vsel %vm1704_vm0, 0.015857518, %v6760_v54  ;;  %vm1803_vm1 = vcmp.eq.s32.totalorder %v7614_v40, %v7297_v58  ;;  %vm1804_vm2 = vcmp.eq.s32.totalorder %v7617_v61, %v7297_v58  ;;  %vm1903_vm3 = vcmp.eq.s32.totalorder %v7614_v40, %v7301_v59 }
 0x215   : > { %v1667_v28 = vadd.f32 %v1635_v10, %v1567_v50  ;;  %v1668_v4 = vadd.f32 %v1636_v55, %v1568_v49  ;;  %v1835_v5 = vsel %vm1803_vm1, 0.16666666, %v6760_v54  ;;  %v1836_v7 = vsel %vm1804_vm2, 0.16666666, %v6760_v54 }
 0x216   : > { %vm1904_vm4 = vcmp.eq.s32.totalorder %v7617_v61, %v7301_v59  ;;  %v1935_v12 = vsel %vm1903_vm3, 1.0, %v6760_v54  ;;  %vm2003_vm5 = vcmp.eq.s32.totalorder %v7614_v40, %v7305_v60  ;;  %vm2004_vm6 = vcmp.eq.s32.totalorder %v7617_v61, %v7305_v60 }
 0x217   : > { %v1767_v30 = vadd.f32 %v1735_v51, %v1667_v28  ;;  %v1768_v36 = vadd.f32 %v1736_v25, %v1668_v4  ;;  %v1936_v13 = vsel %vm1904_vm4, 1.0, %v6760_v54  ;;  %v2035_v14 = vsel %vm2003_vm5, 0.16666666, %v6760_v54 }
 0x218   : > { %v2036_v15 = vsel %vm2004_vm6, 0.16666666, %v6760_v54  ;;  %vm2103_vm7 = vcmp.eq.s32.totalorder %v7614_v40, %v7309_v63  ;;  %vm2104_vm8 = vcmp.eq.s32.totalorder %v7617_v61, %v7309_v63  ;;  %vm2203_vm9 = vcmp.eq.s32.totalorder %v7614_v40, %v7167_v46 }
 0x219   : > { %v1867_v16 = vadd.f32 %v1835_v5, %v1767_v30  ;;  %v1868_v9 = vadd.f32 %v1836_v7, %v1768_v36  ;;  %v2135_v44 = vsel %vm2103_vm7, 0.015857518, %v6760_v54  ;;  %v2136_v17 = vsel %vm2104_vm8, 0.015857518, %v6760_v54 }
 0x21a   : > { %vm2204_vm10 = vcmp.eq.s32.totalorder %v7617_v61, %v7167_v46  ;;  %v2235_v20 = vsel %vm2203_vm9, 0.16666666, %v6760_v54  ;;  %vm2303_vm11 = vcmp.eq.s32.totalorder %v7614_v40, %v7355_v32  ;;  %vm2304_vm12 = vcmp.eq.s32.totalorder %v7617_v61, %v7355_v32 }
 0x21b   : > { %v1967_v21 = vadd.f32 %v1935_v12, %v1867_v16  ;;  %v1968_v8 = vadd.f32 %v1936_v13, %v1868_v9  ;;  %v2236_v47 = vsel %vm2204_vm10, 0.16666666, %v6760_v54  ;;  %v2335_v56 = vsel %vm2303_vm11, 0.015857518, %v6760_v54 }
 0x21c   : > { %v2336_v53 = vsel %vm2304_vm12, 0.015857518, %v6760_v54  ;;  %vm2403_vm13 = vcmp.eq.s32.totalorder %v7614_v40, %v7359_v33  ;;  %vm2404_vm14 = vcmp.eq.s32.totalorder %v7617_v61, %v7359_v33  ;;  %vm2503_vm15 = vcmp.eq.s32.totalorder %v7614_v40, %v7363_v34 }
 0x21d   : > { %v2067_v42 = vadd.f32 %v2035_v14, %v1967_v21  ;;  %v2068_v24 = vadd.f32 %v2036_v15, %v1968_v8  ;;  %v2435_v62 = vsel %vm2403_vm13, 0.0003613308, %v6760_v54  ;;  %v2436_v11 = vsel %vm2404_vm14, 0.0003613308, %v6760_v54 }
 0x21e   : > { %vm2504_vm0 = vcmp.eq.s32.totalorder %v7617_v61, %v7363_v34  ;;  %v2535_v35 = vsel %vm2503_vm15, 0.015857518, %v6760_v54  ;;  %vm2603_vm1 = vcmp.eq.s32.totalorder %v7614_v40, %v7367_v37  ;;  %vm2604_vm2 = vcmp.eq.s32.totalorder %v7617_v61, %v7367_v37 }
 0x21f   : > { %v2167_v29 = vadd.f32 %v2135_v44, %v2067_v42  ;;  %v2168_v41 = vadd.f32 %v2136_v17, %v2068_v24  ;;  %v2536_v10 = vsel %vm2504_vm0, 0.015857518, %v6760_v54  ;;  %v2635_v50 = vsel %vm2603_vm1, 0.0003613308, %v6760_v54 }
 0x220   : > { %v2636_v49 = vsel %vm2604_vm2, 0.0003613308, %v6760_v54  ;;  %vm2703_vm3 = vcmp.eq.s32.totalorder %v7614_v40, %v7371_v39  ;;  %vm2704_vm4 = vcmp.eq.s32.totalorder %v7617_v61, %v7371_v39  ;;  %vm2803_vm5 = vcmp.eq.s32.totalorder %v7614_v40, %v7405_v18 }
 0x221   : > { %v2267_v55 = vadd.f32 %v2235_v20, %v2167_v29  ;;  %v2268_v51 = vadd.f32 %v2236_v47, %v2168_v41  ;;  %v2735_v25 = vsel %vm2703_vm3, 0.015857518, %v6760_v54  ;;  %v2736_v28 = vsel %vm2704_vm4, 0.015857518, %v6760_v54 }
 0x222   : > { %vm2804_vm6 = vcmp.eq.s32.totalorder %v7617_v61, %v7405_v18  ;;  %v2835_v4 = vsel %vm2803_vm5, 0.16666666, %v6760_v54  ;;  %vm2903_vm7 = vcmp.eq.s32.totalorder %v7614_v40, %v7409_v19  ;;  %vm2904_vm8 = vcmp.eq.s32.totalorder %v7617_v61, %v7409_v19 }
 0x223   : > { %v2367_v5 = vadd.f32 %v2335_v56, %v2267_v55  ;;  %v2368_v7 = vadd.f32 %v2336_v53, %v2268_v51  ;;  %v2836_v12 = vsel %vm2804_vm6, 0.16666666, %v6760_v54  ;;  %v2935_v30 = vsel %vm2903_vm7, 0.015857518, %v6760_v54 }
 0x224   : > { %v2936_v36 = vsel %vm2904_vm8, 0.015857518, %v6760_v54  ;;  %vm3003_vm9 = vcmp.eq.s32.totalorder %v7614_v40, %v7413_v22  ;;  %vm3004_vm10 = vcmp.eq.s32.totalorder %v7617_v61, %v7413_v22  ;;  %vm3103_vm11 = vcmp.eq.s32.totalorder %v7614_v40, %v7417_v23 }
 0x225   : > { %v2467_v13 = vadd.f32 %v2435_v62, %v2367_v5  ;;  %v2468_v14 = vadd.f32 %v2436_v11, %v2368_v7  ;;  %v3035_v15 = vsel %vm3003_vm9, 0.0003613308, %v6760_v54  ;;  %v3036_v16 = vsel %vm3004_vm10, 0.0003613308, %v6760_v54 }
 0x226   : > { %vm3104_vm12 = vcmp.eq.s32.totalorder %v7617_v61, %v7417_v23  ;;  %v3135_v9 = vsel %vm3103_vm11, 0.015857518, %v6760_v54  ;;  %vm3203_vm13 = vcmp.eq.s32.totalorder %v7614_v40, %v7443_v6  ;;  %vm3204_vm14 = vcmp.eq.s32.totalorder %v7617_v61, %v7443_v6 }
 0x227   : > { %v2567_v44 = vadd.f32 %v2535_v35, %v2467_v13  ;;  %v2568_v17 = vadd.f32 %v2536_v10, %v2468_v14  ;;  %v3136_v20 = vsel %vm3104_vm12, 0.015857518, %v6760_v54  ;;  %v3235_v21 = vsel %vm3203_vm13, 0.0003613308, %v6760_v54 }
 0x228   : > { %v3236_v8 = vsel %vm3204_vm14, 0.0003613308, %v6760_v54  ;;  %v7784_v47 = vadd.s32 144, %v7142_v38  ;;  %v7787_v56 = vadd.s32 152, %v7142_v38  ;;  %v7790_v53 = vadd.s32 32, %v7142_v38 }
 0x229   : > { %v2667_v40 = vadd.f32 %v2635_v50, %v2567_v44  ;;  %v2668_v42 = vadd.f32 %v2636_v49, %v2568_v17  ;;  %v7793_v61 = vadd.s32 40, %v7142_v38  ;;  %v7796_v24 = vadd.s32 160, %v7142_v38 }
 0x22a   : > { %vm619_vm15 = vcmp.eq.s32.totalorder %v7784_v47, %v7156_v43  ;;  %vm620_vm0 = vcmp.eq.s32.totalorder %v7787_v56, %v7156_v43  ;;  %vm719_vm1 = vcmp.eq.s32.totalorder %v7784_v47, %v7172_v48  ;;  %vm720_vm2 = vcmp.eq.s32.totalorder %v7787_v56, %v7172_v48 }
 0x22b   : > { %v2767_v62 = vadd.f32 %v2735_v25, %v2667_v40  ;;  %v2768_v11 = vadd.f32 %v2736_v28, %v2668_v42  ;;  %v651_v35 = vsel %vm619_vm15, 0.0003613308, %v6760_v54  ;;  %v652_v29 = vsel %vm620_vm0, 0.0003613308, %v6760_v54 }
 0x22c   : > { %v751_v41 = vsel %vm719_vm1, 0.015857518, %v6760_v54  ;;  %v752_v10 = vsel %vm720_vm2, 0.015857518, %v6760_v54  ;;  %vm819_vm3 = vcmp.eq.s32.totalorder %v7784_v47, %v7189_v52  ;;  %vm820_vm4 = vcmp.eq.s32.totalorder %v7787_v56, %v7189_v52 }
 0x22d   : > { %v2867_v50 = vadd.f32 %v2835_v4, %v2767_v62  ;;  %v2868_v49 = vadd.f32 %v2836_v12, %v2768_v11  ;;  %v783_v55 = vadd.f32 %v751_v41, %v651_v35  ;;  %v784_v51 = vadd.f32 %v752_v10, %v652_v29 }
 0x22e   : > { %v851_v25 = vsel %vm819_vm3, 0.0003613308, %v6760_v54  ;;  %v852_v28 = vsel %vm820_vm4, 0.0003613308, %v6760_v54  ;;  %vm919_vm5 = vcmp.eq.s32.totalorder %v7784_v47, %v7211_v0  ;;  %vm920_vm6 = vcmp.eq.s32.totalorder %v7787_v56, %v7211_v0 }
 0x22f   : > { %v2967_v5 = vadd.f32 %v2935_v30, %v2867_v50  ;;  %v2968_v7 = vadd.f32 %v2936_v36, %v2868_v49  ;;  %v883_v13 = vadd.f32 %v851_v25, %v783_v55  ;;  %v884_v14 = vadd.f32 %v852_v28, %v784_v51 }
 0x230   : > { %v951_v44 = vsel %vm919_vm5, 0.015857518, %v6760_v54  ;;  %v952_v4 = vsel %vm920_vm6, 0.015857518, %v6760_v54  ;;  %vm1019_vm7 = vcmp.eq.s32.totalorder %v7784_v47, %v7215_v1  ;;  %vm1020_vm8 = vcmp.eq.s32.totalorder %v7787_v56, %v7215_v1 }
 0x231   : > { %v3067_v12 = vadd.f32 %v3035_v15, %v2967_v5  ;;  %v3068_v17 = vadd.f32 %v3036_v16, %v2968_v7  ;;  %v983_v40 = vadd.f32 %v951_v44, %v883_v13  ;;  %v984_v42 = vadd.f32 %v952_v4, %v884_v14 }
 0x232   : > { %v1051_v62 = vsel %vm1019_vm7, 0.16666666, %v6760_v54  ;;  %v1052_v30 = vsel %vm1020_vm8, 0.16666666, %v6760_v54  ;;  %vm1119_vm9 = vcmp.eq.s32.totalorder %v7784_v47, %v7219_v2  ;;  %vm1120_vm10 = vcmp.eq.s32.totalorder %v7787_v56, %v7219_v2 }
 0x233   : > { %v3167_v36 = vadd.f32 %v3135_v9, %v3067_v12  ;;  %v3168_v11 = vadd.f32 %v3136_v20, %v3068_v17  ;;  %v1083_v35 = vadd.f32 %v1051_v62, %v983_v40  ;;  %v1084_v29 = vadd.f32 %v1052_v30, %v984_v42 }
 0x234   : > { %v1151_v41 = vsel %vm1119_vm9, 0.015857518, %v6760_v54  ;;  %v1152_v15 = vsel %vm1120_vm10, 0.015857518, %v6760_v54  ;;  %vm1219_vm11 = vcmp.eq.s32.totalorder %v7784_v47, %v7223_v3  ;;  %vm1220_vm12 = vcmp.eq.s32.totalorder %v7787_v56, %v7223_v3 }
 0x235   : > { %v3267_v16 = vadd.f32 %v3235_v21, %v3167_v36  ;;  %v3268_v10 = vadd.f32 %v3236_v8, %v3168_v11  ;;  %v1183_v50 = vadd.f32 %v1151_v41, %v1083_v35  ;;  %v1184_v49 = vadd.f32 %v1152_v15, %v1084_v29 }
 0x236   : > { %v1251_v55 = vsel %vm1219_vm11, 0.0003613308, %v6760_v54  ;;  %v1252_v9 = vsel %vm1220_vm12, 0.0003613308, %v6760_v54  ;;  %vm1319_vm13 = vcmp.eq.s32.totalorder %v7784_v47, %v7259_v26  ;;  %vm1320_vm14 = vcmp.eq.s32.totalorder %v7787_v56, %v7259_v26 }
 0x237   : > { %v3330_v20 = vpack.c.bf16 %v3268_v10, %v3267_v16  ;;  %v1283_v51 = vadd.f32 %v1251_v55, %v1183_v50  ;;  %v1284_v25 = vadd.f32 %v1252_v9, %v1184_v49  ;;  %v1351_v28 = vsel %vm1319_vm13, 0.015857518, %v6760_v54 }
 0x238   : > { %v1352_v21 = vsel %vm1320_vm14, 0.015857518, %v6760_v54  ;;  %vm1419_vm15 = vcmp.eq.s32.totalorder %v7784_v47, %v7163_v45  ;;  %vm1420_vm0 = vcmp.eq.s32.totalorder %v7787_v56, %v7163_v45  ;;  %vm1519_vm1 = vcmp.eq.s32.totalorder %v7784_v47, %v7265_v27 }
 0x239   : > { %6174 = vmatmul.mubr.bf16.vlgmr.msra.gmra.mrb[0].mxu0 %v3330_v20  ;;  %v1383_v8 = vadd.f32 %v1351_v28, %v1283_v51  ;;  %v1384_v5 = vadd.f32 %v1352_v21, %v1284_v25  ;;  %v1451_v7 = vsel %vm1419_vm15, 0.0003613308, %v6760_v54  ;;  %v1452_v13 = vsel %vm1420_vm0, 0.0003613308, %v6760_v54 }
 0x23a   : > { %vm1520_vm2 = vcmp.eq.s32.totalorder %v7787_v56, %v7265_v27  ;;  %v1551_v14 = vsel %vm1519_vm1, 0.015857518, %v6760_v54  ;;  %vm1619_vm3 = vcmp.eq.s32.totalorder %v7784_v47, %v7270_v31  ;;  %vm1620_vm4 = vcmp.eq.s32.totalorder %v7787_v56, %v7270_v31 }
 0x23b   : > { %v1483_v44 = vadd.f32 %v1451_v7, %v1383_v8  ;;  %v1484_v4 = vadd.f32 %v1452_v13, %v1384_v5  ;;  %v1552_v12 = vsel %vm1520_vm2, 0.015857518, %v6760_v54  ;;  %v1651_v17 = vsel %vm1619_vm3, 0.16666666, %v6760_v54 }
 0x23c   : > { %v1652_v40 = vsel %vm1620_vm4, 0.16666666, %v6760_v54  ;;  %vm1719_vm5 = vcmp.eq.s32.totalorder %v7784_v47, %v7293_v57  ;;  %vm1720_vm6 = vcmp.eq.s32.totalorder %v7787_v56, %v7293_v57  ;;  %vm1819_vm7 = vcmp.eq.s32.totalorder %v7784_v47, %v7297_v58 }
 0x23d   : > { %v1583_v42 = vadd.f32 %v1551_v14, %v1483_v44  ;;  %v1584_v62 = vadd.f32 %v1552_v12, %v1484_v4  ;;  %v1751_v30 = vsel %vm1719_vm5, 0.015857518, %v6760_v54  ;;  %v1752_v36 = vsel %vm1720_vm6, 0.015857518, %v6760_v54 }
 0x23e   : > { %vm1820_vm8 = vcmp.eq.s32.totalorder %v7787_v56, %v7297_v58  ;;  %v1851_v11 = vsel %vm1819_vm7, 0.16666666, %v6760_v54  ;;  %vm1919_vm9 = vcmp.eq.s32.totalorder %v7784_v47, %v7301_v59  ;;  %vm1920_vm10 = vcmp.eq.s32.totalorder %v7787_v56, %v7301_v59 }
 0x23f   : > { %v1683_v35 = vadd.f32 %v1651_v17, %v1583_v42  ;;  %v1684_v29 = vadd.f32 %v1652_v40, %v1584_v62  ;;  %v1852_v41 = vsel %vm1820_vm8, 0.16666666, %v6760_v54  ;;  %v1951_v15 = vsel %vm1919_vm9, 1.0, %v6760_v54 }
 0x240   : > { %v1952_v16 = vsel %vm1920_vm10, 1.0, %v6760_v54  ;;  %vm2019_vm11 = vcmp.eq.s32.totalorder %v7784_v47, %v7305_v60  ;;  %vm2020_vm12 = vcmp.eq.s32.totalorder %v7787_v56, %v7305_v60  ;;  %vm2119_vm13 = vcmp.eq.s32.totalorder %v7784_v47, %v7309_v63 }
 0x241   : > { %v1783_v10 = vadd.f32 %v1751_v30, %v1683_v35  ;;  %v1784_v50 = vadd.f32 %v1752_v36, %v1684_v29  ;;  %v2051_v49 = vsel %vm2019_vm11, 0.16666666, %v6760_v54  ;;  %v2052_v55 = vsel %vm2020_vm12, 0.16666666, %v6760_v54 }
 0x242   : > { %vm2120_vm14 = vcmp.eq.s32.totalorder %v7787_v56, %v7309_v63  ;;  %v2151_v9 = vsel %vm2119_vm13, 0.015857518, %v6760_v54  ;;  %vm2219_vm15 = vcmp.eq.s32.totalorder %v7784_v47, %v7167_v46  ;;  %vm2220_vm0 = vcmp.eq.s32.totalorder %v7787_v56, %v7167_v46 }
 0x243   : > { %v1883_v20 = vadd.f32 %v1851_v11, %v1783_v10  ;;  %v1884_v51 = vadd.f32 %v1852_v41, %v1784_v50  ;;  %v2152_v25 = vsel %vm2120_vm14, 0.015857518, %v6760_v54  ;;  %v2251_v28 = vsel %vm2219_vm15, 0.16666666, %v6760_v54 }
 0x244   : > { %v2252_v21 = vsel %vm2220_vm0, 0.16666666, %v6760_v54  ;;  %vm2319_vm1 = vcmp.eq.s32.totalorder %v7784_v47, %v7355_v32  ;;  %vm2320_vm2 = vcmp.eq.s32.totalorder %v7787_v56, %v7355_v32  ;;  %vm2419_vm3 = vcmp.eq.s32.totalorder %v7784_v47, %v7359_v33 }
 0x245   : > { %v1983_v8 = vadd.f32 %v1951_v15, %v1883_v20  ;;  %v1984_v5 = vadd.f32 %v1952_v16, %v1884_v51  ;;  %v2351_v7 = vsel %vm2319_vm1, 0.015857518, %v6760_v54  ;;  %v2352_v13 = vsel %vm2320_vm2, 0.015857518, %v6760_v54 }
 0x246   : > { %vm2420_vm4 = vcmp.eq.s32.totalorder %v7787_v56, %v7359_v33  ;;  %v2451_v14 = vsel %vm2419_vm3, 0.0003613308, %v6760_v54  ;;  %vm2519_vm5 = vcmp.eq.s32.totalorder %v7784_v47, %v7363_v34  ;;  %vm2520_vm6 = vcmp.eq.s32.totalorder %v7787_v56, %v7363_v34 }
 0x247   : > { %v2083_v44 = vadd.f32 %v2051_v49, %v1983_v8  ;;  %v2084_v4 = vadd.f32 %v2052_v55, %v1984_v5  ;;  %v2452_v12 = vsel %vm2420_vm4, 0.0003613308, %v6760_v54  ;;  %v2551_v17 = vsel %vm2519_vm5, 0.015857518, %v6760_v54 }
 0x248   : > { %v2552_v40 = vsel %vm2520_vm6, 0.015857518, %v6760_v54  ;;  %vm2619_vm7 = vcmp.eq.s32.totalorder %v7784_v47, %v7367_v37  ;;  %vm2620_vm8 = vcmp.eq.s32.totalorder %v7787_v56, %v7367_v37  ;;  %vm2719_vm9 = vcmp.eq.s32.totalorder %v7784_v47, %v7371_v39 }
 0x249   : > { %v2183_v42 = vadd.f32 %v2151_v9, %v2083_v44  ;;  %v2184_v62 = vadd.f32 %v2152_v25, %v2084_v4  ;;  %v2651_v30 = vsel %vm2619_vm7, 0.0003613308, %v6760_v54  ;;  %v2652_v36 = vsel %vm2620_vm8, 0.0003613308, %v6760_v54 }
 0x24a   : > { %vm2720_vm10 = vcmp.eq.s32.totalorder %v7787_v56, %v7371_v39  ;;  %v2751_v11 = vsel %vm2719_vm9, 0.015857518, %v6760_v54  ;;  %vm2819_vm11 = vcmp.eq.s32.totalorder %v7784_v47, %v7405_v18  ;;  %vm2820_vm12 = vcmp.eq.s32.totalorder %v7787_v56, %v7405_v18 }
 0x24b   : > { %v2283_v35 = vadd.f32 %v2251_v28, %v2183_v42  ;;  %v2284_v29 = vadd.f32 %v2252_v21, %v2184_v62  ;;  %v2752_v41 = vsel %vm2720_vm10, 0.015857518, %v6760_v54  ;;  %v2851_v15 = vsel %vm2819_vm11, 0.16666666, %v6760_v54 }
 0x24c   : > { %v2852_v16 = vsel %vm2820_vm12, 0.16666666, %v6760_v54  ;;  %vm2919_vm13 = vcmp.eq.s32.totalorder %v7784_v47, %v7409_v19  ;;  %vm2920_vm14 = vcmp.eq.s32.totalorder %v7787_v56, %v7409_v19  ;;  %vm3019_vm15 = vcmp.eq.s32.totalorder %v7784_v47, %v7413_v22 }
 0x24d   : > { %v2383_v10 = vadd.f32 %v2351_v7, %v2283_v35  ;;  %v2384_v50 = vadd.f32 %v2352_v13, %v2284_v29  ;;  %v2951_v49 = vsel %vm2919_vm13, 0.015857518, %v6760_v54  ;;  %v2952_v55 = vsel %vm2920_vm14, 0.015857518, %v6760_v54 }
 0x24e   : > { %vm3020_vm0 = vcmp.eq.s32.totalorder %v7787_v56, %v7413_v22  ;;  %v3051_v9 = vsel %vm3019_vm15, 0.0003613308, %v6760_v54  ;;  %vm3119_vm1 = vcmp.eq.s32.totalorder %v7784_v47, %v7417_v23  ;;  %vm3120_vm2 = vcmp.eq.s32.totalorder %v7787_v56, %v7417_v23 }
 0x24f   : > { %v2483_v20 = vadd.f32 %v2451_v14, %v2383_v10  ;;  %v2484_v51 = vadd.f32 %v2452_v12, %v2384_v50  ;;  %v3052_v25 = vsel %vm3020_vm0, 0.0003613308, %v6760_v54  ;;  %v3151_v28 = vsel %vm3119_vm1, 0.015857518, %v6760_v54 }
 0x250   : > { %v3152_v21 = vsel %vm3120_vm2, 0.015857518, %v6760_v54  ;;  %vm3219_vm3 = vcmp.eq.s32.totalorder %v7784_v47, %v7443_v6  ;;  %vm3220_vm4 = vcmp.eq.s32.totalorder %v7787_v56, %v7443_v6  ;;  %vm605_vm5 = vcmp.eq.s32.totalorder %v7790_v53, %v7156_v43 }
 0x251   : > { %v2583_v8 = vadd.f32 %v2551_v17, %v2483_v20  ;;  %v2584_v5 = vadd.f32 %v2552_v40, %v2484_v51  ;;  %v3251_v7 = vsel %vm3219_vm3, 0.0003613308, %v6760_v54  ;;  %v3252_v13 = vsel %vm3220_vm4, 0.0003613308, %v6760_v54 }
 0x252   : > { %vm606_vm6 = vcmp.eq.s32.totalorder %v7793_v61, %v7156_v43  ;;  %v637_v14 = vsel %vm605_vm5, 0.0003613308, %v6760_v54  ;;  %vm705_vm7 = vcmp.eq.s32.totalorder %v7790_v53, %v7172_v48  ;;  %vm706_vm8 = vcmp.eq.s32.totalorder %v7793_v61, %v7172_v48 }
 0x253   : > { %v2683_v47 = vadd.f32 %v2651_v30, %v2583_v8  ;;  %v2684_v56 = vadd.f32 %v2652_v36, %v2584_v5  ;;  %v638_v44 = vsel %vm606_vm6, 0.0003613308, %v6760_v54  ;;  %v737_v4 = vsel %vm705_vm7, 0.015857518, %v6760_v54 }
 0x254   : > { %v738_v12 = vsel %vm706_vm8, 0.015857518, %v6760_v54  ;;  %v769_v17 = vadd.f32 %v737_v4, %v637_v14  ;;  %vm805_vm9 = vcmp.eq.s32.totalorder %v7790_v53, %v7189_v52  ;;  %vm806_vm10 = vcmp.eq.s32.totalorder %v7793_v61, %v7189_v52 }
 0x255   : > { %v2783_v40 = vadd.f32 %v2751_v11, %v2683_v47  ;;  %v2784_v42 = vadd.f32 %v2752_v41, %v2684_v56  ;;  %v770_v62 = vadd.f32 %v738_v12, %v638_v44  ;;  %v837_v35 = vsel %vm805_vm9, 0.0003613308, %v6760_v54 }
 0x256   : > { %v838_v30 = vsel %vm806_vm10, 0.0003613308, %v6760_v54  ;;  %v869_v36 = vadd.f32 %v837_v35, %v769_v17  ;;  %vm905_vm11 = vcmp.eq.s32.totalorder %v7790_v53, %v7211_v0  ;;  %vm906_vm12 = vcmp.eq.s32.totalorder %v7793_v61, %v7211_v0 }
 0x257   : > { %v2883_v29 = vadd.f32 %v2851_v15, %v2783_v40  ;;  %v2884_v10 = vadd.f32 %v2852_v16, %v2784_v42  ;;  %v870_v50 = vadd.f32 %v838_v30, %v770_v62  ;;  %v937_v20 = vsel %vm905_vm11, 0.015857518, %v6760_v54 }
 0x258   : > { %v938_v11 = vsel %vm906_vm12, 0.015857518, %v6760_v54  ;;  %v969_v41 = vadd.f32 %v937_v20, %v869_v36  ;;  %vm1005_vm13 = vcmp.eq.s32.totalorder %v7790_v53, %v7215_v1  ;;  %vm1006_vm14 = vcmp.eq.s32.totalorder %v7793_v61, %v7215_v1 }
 0x259   : > { %v2983_v51 = vadd.f32 %v2951_v49, %v2883_v29  ;;  %v2984_v8 = vadd.f32 %v2952_v55, %v2884_v10  ;;  %v970_v5 = vadd.f32 %v938_v11, %v870_v50  ;;  %v1037_v14 = vsel %vm1005_vm13, 0.16666666, %v6760_v54 }
 0x25a   : > { %v1038_v15 = vsel %vm1006_vm14, 0.16666666, %v6760_v54  ;;  %v1069_v16 = vadd.f32 %v1037_v14, %v969_v41  ;;  %vm1105_vm15 = vcmp.eq.s32.totalorder %v7790_v53, %v7219_v2  ;;  %vm1106_vm0 = vcmp.eq.s32.totalorder %v7793_v61, %v7219_v2 }
 0x25b   : > { %v3083_v47 = vadd.f32 %v3051_v9, %v2983_v51  ;;  %v3084_v56 = vadd.f32 %v3052_v25, %v2984_v8  ;;  %v1070_v44 = vadd.f32 %v1038_v15, %v970_v5  ;;  %v1137_v4 = vsel %vm1105_vm15, 0.015857518, %v6760_v54 }
 0x25c   : > { %v1138_v49 = vsel %vm1106_vm0, 0.015857518, %v6760_v54  ;;  %v1169_v55 = vadd.f32 %v1137_v4, %v1069_v16  ;;  %vm1205_vm1 = vcmp.eq.s32.totalorder %v7790_v53, %v7223_v3  ;;  %vm1206_vm2 = vcmp.eq.s32.totalorder %v7793_v61, %v7223_v3 }
 0x25d   : > { %v3183_v12 = vadd.f32 %v3151_v28, %v3083_v47  ;;  %v3184_v17 = vadd.f32 %v3152_v21, %v3084_v56  ;;  %v1170_v40 = vadd.f32 %v1138_v49, %v1070_v44  ;;  %v1237_v42 = vsel %vm1205_vm1, 0.0003613308, %v6760_v54 }
 0x25e   : > { %v1238_v9 = vsel %vm1206_vm2, 0.0003613308, %v6760_v54  ;;  %v1269_v25 = vadd.f32 %v1237_v42, %v1169_v55  ;;  %vm1305_vm3 = vcmp.eq.s32.totalorder %v7790_v53, %v7259_v26  ;;  %vm1306_vm4 = vcmp.eq.s32.totalorder %v7793_v61, %v7259_v26 }
 0x25f   : > { %v3283_v62 = vadd.f32 %v3251_v7, %v3183_v12  ;;  %v3284_v35 = vadd.f32 %v3252_v13, %v3184_v17  ;;  %v1270_v30 = vadd.f32 %v1238_v9, %v1170_v40  ;;  %v1337_v36 = vsel %vm1305_vm3, 0.015857518, %v6760_v54 }
 0x260   : > { %v1338_v28 = vsel %vm1306_vm4, 0.015857518, %v6760_v54  ;;  %v1369_v21 = vadd.f32 %v1337_v36, %v1269_v25  ;;  %vm1405_vm5 = vcmp.eq.s32.totalorder %v7790_v53, %v7163_v45  ;;  %vm1406_vm6 = vcmp.eq.s32.totalorder %v7793_v61, %v7163_v45 }
 0x261   : > { %v3338_v29 = vpack.c.bf16 %v3284_v35, %v3283_v62  ;;  %v1370_v10 = vadd.f32 %v1338_v28, %v1270_v30  ;;  %v1437_v50 = vsel %vm1405_vm5, 0.0003613308, %v6760_v54  ;;  %v1438_v20 = vsel %vm1406_vm6, 0.0003613308, %v6760_v54 }
 0x262   : > { %v1469_v7 = vadd.f32 %v1437_v50, %v1369_v21  ;;  %vm1505_vm7 = vcmp.eq.s32.totalorder %v7790_v53, %v7265_v27  ;;  %vm1506_vm8 = vcmp.eq.s32.totalorder %v7793_v61, %v7265_v27  ;;  %vm1605_vm9 = vcmp.eq.s32.totalorder %v7790_v53, %v7270_v31 }
 0x263   : > { %6190 = vmatmul.mubr.bf16.vlgmr.msra.gmra.mrb[0].mxu1 %v3338_v29  ;;  %v1470_v13 = vadd.f32 %v1438_v20, %v1370_v10  ;;  %v1537_v11 = vsel %vm1505_vm7, 0.015857518, %v6760_v54  ;;  %v1538_v41 = vsel %vm1506_vm8, 0.015857518, %v6760_v54  ;;  %vm1606_vm10 = vcmp.eq.s32.totalorder %v7793_v61, %v7270_v31 }
 0x264   : > { %v1569_v51 = vadd.f32 %v1537_v11, %v1469_v7  ;;  %v1637_v8 = vsel %vm1605_vm9, 0.16666666, %v6760_v54  ;;  %v1638_v5 = vsel %vm1606_vm10, 0.16666666, %v6760_v54  ;;  %vm1705_vm11 = vcmp.eq.s32.totalorder %v7790_v53, %v7293_v57 }
 0x265   : > { %v1570_v14 = vadd.f32 %v1538_v41, %v1470_v13  ;;  %vm1706_vm12 = vcmp.eq.s32.totalorder %v7793_v61, %v7293_v57  ;;  %v1737_v15 = vsel %vm1705_vm11, 0.015857518, %v6760_v54  ;;  %vm1805_vm13 = vcmp.eq.s32.totalorder %v7790_v53, %v7297_v58 }
 0x266   : > { %v1669_v16 = vadd.f32 %v1637_v8, %v1569_v51  ;;  %v1738_v47 = vsel %vm1706_vm12, 0.015857518, %v6760_v54  ;;  %vm1806_vm14 = vcmp.eq.s32.totalorder %v7793_v61, %v7297_v58  ;;  %v1837_v56 = vsel %vm1805_vm13, 0.16666666, %v6760_v54 }
 0x267   : > { %v1670_v44 = vadd.f32 %v1638_v5, %v1570_v14  ;;  %v1838_v4 = vsel %vm1806_vm14, 0.16666666, %v6760_v54  ;;  %vm1905_vm15 = vcmp.eq.s32.totalorder %v7790_v53, %v7301_v59  ;;  %vm1906_vm0 = vcmp.eq.s32.totalorder %v7793_v61, %v7301_v59 }
 0x268   : > { %v1769_v49 = vadd.f32 %v1737_v15, %v1669_v16  ;;  %v1937_v55 = vsel %vm1905_vm15, 1.0, %v6760_v54  ;;  %v1938_v12 = vsel %vm1906_vm0, 1.0, %v6760_v54  ;;  %vm2005_vm1 = vcmp.eq.s32.totalorder %v7790_v53, %v7305_v60 }
 0x269   : > { %v1770_v17 = vadd.f32 %v1738_v47, %v1670_v44  ;;  %vm2006_vm2 = vcmp.eq.s32.totalorder %v7793_v61, %v7305_v60  ;;  %v2037_v40 = vsel %vm2005_vm1, 0.16666666, %v6760_v54  ;;  %vm2105_vm3 = vcmp.eq.s32.totalorder %v7790_v53, %v7309_v63 }
 0x26a   : > { %v1869_v42 = vadd.f32 %v1837_v56, %v1769_v49  ;;  %v2038_v9 = vsel %vm2006_vm2, 0.16666666, %v6760_v54  ;;  %vm2106_vm4 = vcmp.eq.s32.totalorder %v7793_v61, %v7309_v63  ;;  %v2137_v25 = vsel %vm2105_vm3, 0.015857518, %v6760_v54 }
 0x26b   : > { %v1870_v62 = vadd.f32 %v1838_v4, %v1770_v17  ;;  %v2138_v35 = vsel %vm2106_vm4, 0.015857518, %v6760_v54  ;;  %vm2205_vm5 = vcmp.eq.s32.totalorder %v7790_v53, %v7167_v46  ;;  %vm2206_vm6 = vcmp.eq.s32.totalorder %v7793_v61, %v7167_v46 }
 0x26c   : > { %v1969_v30 = vadd.f32 %v1937_v55, %v1869_v42  ;;  %v2237_v36 = vsel %vm2205_vm5, 0.16666666, %v6760_v54  ;;  %v2238_v28 = vsel %vm2206_vm6, 0.16666666, %v6760_v54  ;;  %vm2305_vm7 = vcmp.eq.s32.totalorder %v7790_v53, %v7355_v32 }
 0x26d   : > { %v1970_v21 = vadd.f32 %v1938_v12, %v1870_v62  ;;  %vm2306_vm8 = vcmp.eq.s32.totalorder %v7793_v61, %v7355_v32  ;;  %v2337_v29 = vsel %vm2305_vm7, 0.015857518, %v6760_v54  ;;  %vm2405_vm9 = vcmp.eq.s32.totalorder %v7790_v53, %v7359_v33 }
 0x26e   : > { %v2069_v10 = vadd.f32 %v2037_v40, %v1969_v30  ;;  %v2338_v50 = vsel %vm2306_vm8, 0.015857518, %v6760_v54  ;;  %vm2406_vm10 = vcmp.eq.s32.totalorder %v7793_v61, %v7359_v33  ;;  %v2437_v20 = vsel %vm2405_vm9, 0.0003613308, %v6760_v54 }
 0x26f   : > { %v2070_v7 = vadd.f32 %v2038_v9, %v1970_v21  ;;  %v2438_v13 = vsel %vm2406_vm10, 0.0003613308, %v6760_v54  ;;  %vm2505_vm11 = vcmp.eq.s32.totalorder %v7790_v53, %v7363_v34  ;;  %vm2506_vm12 = vcmp.eq.s32.totalorder %v7793_v61, %v7363_v34 }
 0x270   : > { %v2169_v11 = vadd.f32 %v2137_v25, %v2069_v10  ;;  %v2537_v41 = vsel %vm2505_vm11, 0.015857518, %v6760_v54  ;;  %v2538_v51 = vsel %vm2506_vm12, 0.015857518, %v6760_v54  ;;  %vm2605_vm13 = vcmp.eq.s32.totalorder %v7790_v53, %v7367_v37 }
 0x271   : > { %v2170_v8 = vadd.f32 %v2138_v35, %v2070_v7  ;;  %vm2606_vm14 = vcmp.eq.s32.totalorder %v7793_v61, %v7367_v37  ;;  %v2637_v5 = vsel %vm2605_vm13, 0.0003613308, %v6760_v54  ;;  %vm2705_vm15 = vcmp.eq.s32.totalorder %v7790_v53, %v7371_v39 }
 0x272   : > { %v2269_v14 = vadd.f32 %v2237_v36, %v2169_v11  ;;  %v2638_v15 = vsel %vm2606_vm14, 0.0003613308, %v6760_v54  ;;  %vm2706_vm0 = vcmp.eq.s32.totalorder %v7793_v61, %v7371_v39  ;;  %v2737_v16 = vsel %vm2705_vm15, 0.015857518, %v6760_v54 }
 0x273   : > { %v2270_v47 = vadd.f32 %v2238_v28, %v2170_v8  ;;  %v2738_v56 = vsel %vm2706_vm0, 0.015857518, %v6760_v54  ;;  %vm2805_vm1 = vcmp.eq.s32.totalorder %v7790_v53, %v7405_v18  ;;  %vm2806_vm2 = vcmp.eq.s32.totalorder %v7793_v61, %v7405_v18 }
 0x274   : > { %v2369_v44 = vadd.f32 %v2337_v29, %v2269_v14  ;;  %v2837_v4 = vsel %vm2805_vm1, 0.16666666, %v6760_v54  ;;  %v2838_v49 = vsel %vm2806_vm2, 0.16666666, %v6760_v54  ;;  %vm2905_vm3 = vcmp.eq.s32.totalorder %v7790_v53, %v7409_v19 }
 0x275   : > { %v2370_v55 = vadd.f32 %v2338_v50, %v2270_v47  ;;  %vm2906_vm4 = vcmp.eq.s32.totalorder %v7793_v61, %v7409_v19  ;;  %v2937_v12 = vsel %vm2905_vm3, 0.015857518, %v6760_v54  ;;  %vm3005_vm5 = vcmp.eq.s32.totalorder %v7790_v53, %v7413_v22 }
 0x276   : > { %v2469_v17 = vadd.f32 %v2437_v20, %v2369_v44  ;;  %v2938_v40 = vsel %vm2906_vm4, 0.015857518, %v6760_v54  ;;  %vm3006_vm6 = vcmp.eq.s32.totalorder %v7793_v61, %v7413_v22  ;;  %v3037_v42 = vsel %vm3005_vm5, 0.0003613308, %v6760_v54 }
 0x277   : > { %v2470_v9 = vadd.f32 %v2438_v13, %v2370_v55  ;;  %v3038_v25 = vsel %vm3006_vm6, 0.0003613308, %v6760_v54  ;;  %vm3105_vm7 = vcmp.eq.s32.totalorder %v7790_v53, %v7417_v23  ;;  %vm3106_vm8 = vcmp.eq.s32.totalorder %v7793_v61, %v7417_v23 }
 0x278   : > { %v2569_v62 = vadd.f32 %v2537_v41, %v2469_v17  ;;  %v3137_v35 = vsel %vm3105_vm7, 0.015857518, %v6760_v54  ;;  %v3138_v30 = vsel %vm3106_vm8, 0.015857518, %v6760_v54  ;;  %vm3205_vm9 = vcmp.eq.s32.totalorder %v7790_v53, %v7443_v6 }
 0x279   : > { %v2570_v36 = vadd.f32 %v2538_v51, %v2470_v9  ;;  %vm3206_vm10 = vcmp.eq.s32.totalorder %v7793_v61, %v7443_v6  ;;  %v3237_v28 = vsel %vm3205_vm9, 0.0003613308, %v6760_v54  ;;  %v8122_v21 = vadd.s32 168, %v7142_v38 }
 0x27a   : > { %v2669_v29 = vadd.f32 %v2637_v5, %v2569_v62  ;;  %v3238_v10 = vsel %vm3206_vm10, 0.0003613308, %v6760_v54  ;;  %vm621_vm11 = vcmp.eq.s32.totalorder %v7796_v24, %v7156_v43  ;;  %vm721_vm12 = vcmp.eq.s32.totalorder %v7796_v24, %v7172_v48 }
 0x27b   : > { %v2670_v50 = vadd.f32 %v2638_v15, %v2570_v36  ;;  %vm622_vm13 = vcmp.eq.s32.totalorder %v8122_v21, %v7156_v43  ;;  %v653_v53 = vsel %vm621_vm11, 0.0003613308, %v6760_v54  ;;  %vm722_vm14 = vcmp.eq.s32.totalorder %v8122_v21, %v7172_v48 }
 0x27c   : > { %v2769_v61 = vadd.f32 %v2737_v16, %v2669_v29  ;;  %v654_v20 = vsel %vm622_vm13, 0.0003613308, %v6760_v54  ;;  %v753_v7 = vsel %vm721_vm12, 0.015857518, %v6760_v54  ;;  %v754_v13 = vsel %vm722_vm14, 0.015857518, %v6760_v54 }
 0x27d   : > { %v2770_v11 = vadd.f32 %v2738_v56, %v2670_v50  ;;  %v785_v41 = vadd.f32 %v753_v7, %v653_v53  ;;  %v786_v51 = vadd.f32 %v754_v13, %v654_v20  ;;  %vm821_vm15 = vcmp.eq.s32.totalorder %v7796_v24, %v7189_v52 }
 0x27e   : > { %v2869_v8 = vadd.f32 %v2837_v4, %v2769_v61  ;;  %vm822_vm0 = vcmp.eq.s32.totalorder %v8122_v21, %v7189_v52  ;;  %v853_v5 = vsel %vm821_vm15, 0.0003613308, %v6760_v54  ;;  %vm921_vm1 = vcmp.eq.s32.totalorder %v7796_v24, %v7211_v0 }
 0x27f   : > { %v2870_v14 = vadd.f32 %v2838_v49, %v2770_v11  ;;  %v854_v15 = vsel %vm822_vm0, 0.0003613308, %v6760_v54  ;;  %v885_v16 = vadd.f32 %v853_v5, %v785_v41  ;;  %vm922_vm2 = vcmp.eq.s32.totalorder %v8122_v21, %v7211_v0 }
 0x280   : > { %v2969_v47 = vadd.f32 %v2937_v12, %v2869_v8  ;;  %v886_v56 = vadd.f32 %v854_v15, %v786_v51  ;;  %v953_v44 = vsel %vm921_vm1, 0.015857518, %v6760_v54  ;;  %v954_v4 = vsel %vm922_vm2, 0.015857518, %v6760_v54 }
 0x281   : > { %v2970_v55 = vadd.f32 %v2938_v40, %v2870_v14  ;;  %v985_v17 = vadd.f32 %v953_v44, %v885_v16  ;;  %vm1021_vm3 = vcmp.eq.s32.totalorder %v7796_v24, %v7215_v1  ;;  %vm1022_vm4 = vcmp.eq.s32.totalorder %v8122_v21, %v7215_v1 }
 0x282   : > { %v3069_v49 = vadd.f32 %v3037_v42, %v2969_v47  ;;  %v986_v9 = vadd.f32 %v954_v4, %v886_v56  ;;  %v1053_v62 = vsel %vm1021_vm3, 0.16666666, %v6760_v54  ;;  %v1054_v36 = vsel %vm1022_vm4, 0.16666666, %v6760_v54 }
 0x283   : > { %v3070_v12 = vadd.f32 %v3038_v25, %v2970_v55  ;;  %v1085_v29 = vadd.f32 %v1053_v62, %v985_v17  ;;  %vm1121_vm5 = vcmp.eq.s32.totalorder %v7796_v24, %v7219_v2  ;;  %vm1122_vm6 = vcmp.eq.s32.totalorder %v8122_v21, %v7219_v2 }
 0x284   : > { %v3169_v40 = vadd.f32 %v3137_v35, %v3069_v49  ;;  %v1086_v50 = vadd.f32 %v1054_v36, %v986_v9  ;;  %v1153_v53 = vsel %vm1121_vm5, 0.015857518, %v6760_v54  ;;  %v1154_v61 = vsel %vm1122_vm6, 0.015857518, %v6760_v54 }
 0x285   : > { %v3170_v42 = vadd.f32 %v3138_v30, %v3070_v12  ;;  %v1185_v20 = vadd.f32 %v1153_v53, %v1085_v29  ;;  %vm1221_vm7 = vcmp.eq.s32.totalorder %v7796_v24, %v7223_v3  ;;  %vm1222_vm8 = vcmp.eq.s32.totalorder %v8122_v21, %v7223_v3 }
 0x286   : > { %v3269_v25 = vadd.f32 %v3237_v28, %v3169_v40  ;;  %v1186_v7 = vadd.f32 %v1154_v61, %v1086_v50  ;;  %v1253_v13 = vsel %vm1221_vm7, 0.0003613308, %v6760_v54  ;;  %v1254_v11 = vsel %vm1222_vm8, 0.0003613308, %v6760_v54 }
 0x287   : > { %v3270_v35 = vadd.f32 %v3238_v10, %v3170_v42  ;;  %v1285_v41 = vadd.f32 %v1253_v13, %v1185_v20  ;;  %vm1321_vm9 = vcmp.eq.s32.totalorder %v7796_v24, %v7259_v26  ;;  %vm1322_vm10 = vcmp.eq.s32.totalorder %v8122_v21, %v7259_v26 }
 0x288   : > { %v1286_v30 = vadd.f32 %v1254_v11, %v1186_v7  ;;  %v1353_v51 = vsel %vm1321_vm9, 0.015857518, %v6760_v54  ;;  %v1354_v8 = vsel %vm1322_vm10, 0.015857518, %v6760_v54  ;;  %vm1421_vm11 = vcmp.eq.s32.totalorder %v7796_v24, %v7163_v45 }
 0x289   : > { %v3331_v28 = vpack.c.bf16 %v3270_v35, %v3269_v25  ;;  %v1385_v5 = vadd.f32 %v1353_v51, %v1285_v41  ;;  %vm1422_vm12 = vcmp.eq.s32.totalorder %v8122_v21, %v7163_v45  ;;  %v1453_v10 = vsel %vm1421_vm11, 0.0003613308, %v6760_v54 }
 0x28a   : > { %v1386_v14 = vadd.f32 %v1354_v8, %v1286_v30  ;;  %v1454_v15 = vsel %vm1422_vm12, 0.0003613308, %v6760_v54  ;;  %vm1521_vm13 = vcmp.eq.s32.totalorder %v7796_v24, %v7265_v27  ;;  %vm1522_vm14 = vcmp.eq.s32.totalorder %v8122_v21, %v7265_v27 }
 0x28b   : > { %6177 = vmatprep.mubr.bf16.mxu0 %v3331_v28  ;;  %v1485_v16 = vadd.f32 %v1453_v10, %v1385_v5  ;;  %v1553_v47 = vsel %vm1521_vm13, 0.015857518, %v6760_v54  ;;  %v1554_v56 = vsel %vm1522_vm14, 0.015857518, %v6760_v54  ;;  %vm1621_vm15 = vcmp.eq.s32.totalorder %v7796_v24, %v7270_v31 }
 0x28c   : > { %v1486_v44 = vadd.f32 %v1454_v15, %v1386_v14  ;;  %vm1622_vm0 = vcmp.eq.s32.totalorder %v8122_v21, %v7270_v31  ;;  %v1653_v4 = vsel %vm1621_vm15, 0.16666666, %v6760_v54  ;;  %vm1721_vm1 = vcmp.eq.s32.totalorder %v7796_v24, %v7293_v57 }
 0x28d   : > { %v1585_v55 = vadd.f32 %v1553_v47, %v1485_v16  ;;  %v1654_v17 = vsel %vm1622_vm0, 0.16666666, %v6760_v54  ;;  %vm1722_vm2 = vcmp.eq.s32.totalorder %v8122_v21, %v7293_v57  ;;  %v1753_v49 = vsel %vm1721_vm1, 0.015857518, %v6760_v54 }
 0x28e   : > { %v1586_v9 = vadd.f32 %v1554_v56, %v1486_v44  ;;  %v1754_v62 = vsel %vm1722_vm2, 0.015857518, %v6760_v54  ;;  %vm1821_vm3 = vcmp.eq.s32.totalorder %v7796_v24, %v7297_v58  ;;  %vm1822_vm4 = vcmp.eq.s32.totalorder %v8122_v21, %v7297_v58 }
 0x28f   : > { %v1685_v36 = vadd.f32 %v1653_v4, %v1585_v55  ;;  %v1853_v12 = vsel %vm1821_vm3, 0.16666666, %v6760_v54  ;;  %v1854_v29 = vsel %vm1822_vm4, 0.16666666, %v6760_v54  ;;  %vm1921_vm5 = vcmp.eq.s32.totalorder %v7796_v24, %v7301_v59 }
 0x290   : > { %v1686_v40 = vadd.f32 %v1654_v17, %v1586_v9  ;;  %vm1922_vm6 = vcmp.eq.s32.totalorder %v8122_v21, %v7301_v59  ;;  %v1953_v50 = vsel %vm1921_vm5, 1.0, %v6760_v54  ;;  %vm2021_vm7 = vcmp.eq.s32.totalorder %v7796_v24, %v7305_v60 }
 0x291   : > { %v1785_v53 = vadd.f32 %v1753_v49, %v1685_v36  ;;  %v1954_v61 = vsel %vm1922_vm6, 1.0, %v6760_v54  ;;  %vm2022_vm8 = vcmp.eq.s32.totalorder %v8122_v21, %v7305_v60  ;;  %v2053_v42 = vsel %vm2021_vm7, 0.16666666, %v6760_v54 }
 0x292   : > { %v1786_v20 = vadd.f32 %v1754_v62, %v1686_v40  ;;  %v2054_v25 = vsel %vm2022_vm8, 0.16666666, %v6760_v54  ;;  %vm2121_vm9 = vcmp.eq.s32.totalorder %v7796_v24, %v7309_v63  ;;  %vm2122_vm10 = vcmp.eq.s32.totalorder %v8122_v21, %v7309_v63 }
 0x293   : > { %v1885_v7 = vadd.f32 %v1853_v12, %v1785_v53  ;;  %v2153_v13 = vsel %vm2121_vm9, 0.015857518, %v6760_v54  ;;  %v2154_v11 = vsel %vm2122_vm10, 0.015857518, %v6760_v54  ;;  %vm2221_vm11 = vcmp.eq.s32.totalorder %v7796_v24, %v7167_v46 }
 0x294   : > { %v1886_v35 = vadd.f32 %v1854_v29, %v1786_v20  ;;  %vm2222_vm12 = vcmp.eq.s32.totalorder %v8122_v21, %v7167_v46  ;;  %v2253_v41 = vsel %vm2221_vm11, 0.16666666, %v6760_v54  ;;  %vm2321_vm13 = vcmp.eq.s32.totalorder %v7796_v24, %v7355_v32 }
 0x295   : > { %v1985_v30 = vadd.f32 %v1953_v50, %v1885_v7  ;;  %v2254_v51 = vsel %vm2222_vm12, 0.16666666, %v6760_v54  ;;  %vm2322_vm14 = vcmp.eq.s32.totalorder %v8122_v21, %v7355_v32  ;;  %v2353_v8 = vsel %vm2321_vm13, 0.015857518, %v6760_v54 }
 0x296   : > { %v1986_v28 = vadd.f32 %v1954_v61, %v1886_v35  ;;  %v2354_v5 = vsel %vm2322_vm14, 0.015857518, %v6760_v54  ;;  %vm2421_vm15 = vcmp.eq.s32.totalorder %v7796_v24, %v7359_v33  ;;  %vm2422_vm0 = vcmp.eq.s32.totalorder %v8122_v21, %v7359_v33 }
 0x297   : > { %v2085_v10 = vadd.f32 %v2053_v42, %v1985_v30  ;;  %v2453_v14 = vsel %vm2421_vm15, 0.0003613308, %v6760_v54  ;;  %v2454_v15 = vsel %vm2422_vm0, 0.0003613308, %v6760_v54  ;;  %vm2521_vm1 = vcmp.eq.s32.totalorder %v7796_v24, %v7363_v34 }
 0x298   : > { %v2086_v16 = vadd.f32 %v2054_v25, %v1986_v28  ;;  %vm2522_vm2 = vcmp.eq.s32.totalorder %v8122_v21, %v7363_v34  ;;  %v2553_v47 = vsel %vm2521_vm1, 0.015857518, %v6760_v54  ;;  %vm2621_vm3 = vcmp.eq.s32.totalorder %v7796_v24, %v7367_v37 }
 0x299   : > { %v2185_v56 = vadd.f32 %v2153_v13, %v2085_v10  ;;  %v2554_v44 = vsel %vm2522_vm2, 0.015857518, %v6760_v54  ;;  %vm2622_vm4 = vcmp.eq.s32.totalorder %v8122_v21, %v7367_v37  ;;  %v2653_v4 = vsel %vm2621_vm3, 0.0003613308, %v6760_v54 }
 0x29a   : > { %v2186_v55 = vadd.f32 %v2154_v11, %v2086_v16  ;;  %v2654_v17 = vsel %vm2622_vm4, 0.0003613308, %v6760_v54  ;;  %vm2721_vm5 = vcmp.eq.s32.totalorder %v7796_v24, %v7371_v39  ;;  %vm2722_vm6 = vcmp.eq.s32.totalorder %v8122_v21, %v7371_v39 }
 0x29b   : > { %v2285_v49 = vadd.f32 %v2253_v41, %v2185_v56  ;;  %v2753_v9 = vsel %vm2721_vm5, 0.015857518, %v6760_v54  ;;  %v2754_v62 = vsel %vm2722_vm6, 0.015857518, %v6760_v54  ;;  %vm2821_vm7 = vcmp.eq.s32.totalorder %v7796_v24, %v7405_v18 }
 0x29c   : > { %v2286_v36 = vadd.f32 %v2254_v51, %v2186_v55  ;;  %vm2822_vm8 = vcmp.eq.s32.totalorder %v8122_v21, %v7405_v18  ;;  %v2853_v12 = vsel %vm2821_vm7, 0.16666666, %v6760_v54  ;;  %vm2921_vm9 = vcmp.eq.s32.totalorder %v7796_v24, %v7409_v19 }
 0x29d   : > { %v2385_v29 = vadd.f32 %v2353_v8, %v2285_v49  ;;  %v2854_v40 = vsel %vm2822_vm8, 0.16666666, %v6760_v54  ;;  %vm2922_vm10 = vcmp.eq.s32.totalorder %v8122_v21, %v7409_v19  ;;  %v2953_v50 = vsel %vm2921_vm9, 0.015857518, %v6760_v54 }
 0x29e   : > { %v2386_v53 = vadd.f32 %v2354_v5, %v2286_v36  ;;  %v2954_v61 = vsel %vm2922_vm10, 0.015857518, %v6760_v54  ;;  %vm3021_vm11 = vcmp.eq.s32.totalorder %v7796_v24, %v7413_v22  ;;  %vm3022_vm12 = vcmp.eq.s32.totalorder %v8122_v21, %v7413_v22 }
 0x29f   : > { %v2485_v42 = vadd.f32 %v2453_v14, %v2385_v29  ;;  %v3053_v20 = vsel %vm3021_vm11, 0.0003613308, %v6760_v54  ;;  %v3054_v25 = vsel %vm3022_vm12, 0.0003613308, %v6760_v54  ;;  %vm3121_vm13 = vcmp.eq.s32.totalorder %v7796_v24, %v7417_v23 }
 0x2a0   : > { %v2486_v7 = vadd.f32 %v2454_v15, %v2386_v53  ;;  %vm3122_vm14 = vcmp.eq.s32.totalorder %v8122_v21, %v7417_v23  ;;  %v3153_v13 = vsel %vm3121_vm13, 0.015857518, %v6760_v54  ;;  %vm3221_vm15 = vcmp.eq.s32.totalorder %v7796_v24, %v7443_v6 }
 0x2a1   : > { %v2585_v11 = vadd.f32 %v2553_v47, %v2485_v42  ;;  %v3154_v35 = vsel %vm3122_vm14, 0.015857518, %v6760_v54  ;;  %vm3222_vm0 = vcmp.eq.s32.totalorder %v8122_v21, %v7443_v6  ;;  %v3253_v41 = vsel %vm3221_vm15, 0.0003613308, %v6760_v54 }
 0x2a2   : > { %v2586_v30 = vadd.f32 %v2554_v44, %v2486_v7  ;;  %v3254_v51 = vsel %vm3222_vm0, 0.0003613308, %v6760_v54  ;;  %v8288_v8 = vadd.s32 48, %v7142_v38  ;;  %v8291_v28 = vadd.s32 56, %v7142_v38 }
 0x2a3   : > { %v2685_v5 = vadd.f32 %v2653_v4, %v2585_v11  ;;  %v8294_v24 = vadd.s32 176, %v7142_v38  ;;  %v8297_v10 = vadd.s32 184, %v7142_v38  ;;  %v8300_v21 = vadd.s32 64, %v7142_v38 }
 0x2a4   : > { %v2686_v14 = vadd.f32 %v2654_v17, %v2586_v30  ;;  %vm607_vm1 = vcmp.eq.s32.totalorder %v8288_v8, %v7156_v43  ;;  %vm608_vm2 = vcmp.eq.s32.totalorder %v8291_v28, %v7156_v43  ;;  %vm707_vm3 = vcmp.eq.s32.totalorder %v8288_v8, %v7172_v48 }
 0x2a5   : > { %v2785_v15 = vadd.f32 %v2753_v9, %v2685_v5  ;;  %v639_v16 = vsel %vm607_vm1, 0.0003613308, %v6760_v54  ;;  %v640_v47 = vsel %vm608_vm2, 0.0003613308, %v6760_v54  ;;  %vm708_vm4 = vcmp.eq.s32.totalorder %v8291_v28, %v7172_v48 }
 0x2a6   : > { %v2786_v56 = vadd.f32 %v2754_v62, %v2686_v14  ;;  %v739_v44 = vsel %vm707_vm3, 0.015857518, %v6760_v54  ;;  %v740_v4 = vsel %vm708_vm4, 0.015857518, %v6760_v54  ;;  %vm807_vm5 = vcmp.eq.s32.totalorder %v8288_v8, %v7189_v52 }
 0x2a7   : > { %v2885_v55 = vadd.f32 %v2853_v12, %v2785_v15  ;;  %v771_v17 = vadd.f32 %v739_v44, %v639_v16  ;;  %v772_v49 = vadd.f32 %v740_v4, %v640_v47  ;;  %vm808_vm6 = vcmp.eq.s32.totalorder %v8291_v28, %v7189_v52 }
 0x2a8   : > { %v2886_v9 = vadd.f32 %v2854_v40, %v2786_v56  ;;  %v839_v36 = vsel %vm807_vm5, 0.0003613308, %v6760_v54  ;;  %v840_v29 = vsel %vm808_vm6, 0.0003613308, %v6760_v54  ;;  %vm907_vm7 = vcmp.eq.s32.totalorder %v8288_v8, %v7211_v0 }
 0x2a9   : > { %v2985_v62 = vadd.f32 %v2953_v50, %v2885_v55  ;;  %v871_v53 = vadd.f32 %v839_v36, %v771_v17  ;;  %v872_v42 = vadd.f32 %v840_v29, %v772_v49  ;;  %vm908_vm8 = vcmp.eq.s32.totalorder %v8291_v28, %v7211_v0 }
 0x2aa   : > { %v2986_v12 = vadd.f32 %v2954_v61, %v2886_v9  ;;  %v939_v7 = vsel %vm907_vm7, 0.015857518, %v6760_v54  ;;  %v940_v11 = vsel %vm908_vm8, 0.015857518, %v6760_v54  ;;  %vm1007_vm9 = vcmp.eq.s32.totalorder %v8288_v8, %v7215_v1 }
 0x2ab   : > { %v3085_v40 = vadd.f32 %v3053_v20, %v2985_v62  ;;  %v971_v30 = vadd.f32 %v939_v7, %v871_v53  ;;  %v972_v5 = vadd.f32 %v940_v11, %v872_v42  ;;  %vm1008_vm10 = vcmp.eq.s32.totalorder %v8291_v28, %v7215_v1 }
 0x2ac   : > { %v3086_v50 = vadd.f32 %v3054_v25, %v2986_v12  ;;  %v1039_v14 = vsel %vm1007_vm9, 0.16666666, %v6760_v54  ;;  %v1040_v15 = vsel %vm1008_vm10, 0.16666666, %v6760_v54  ;;  %vm1107_vm11 = vcmp.eq.s32.totalorder %v8288_v8, %v7219_v2 }
 0x2ad   : > { %v3185_v61 = vadd.f32 %v3153_v13, %v3085_v40  ;;  %v1071_v16 = vadd.f32 %v1039_v14, %v971_v30  ;;  %v1072_v47 = vadd.f32 %v1040_v15, %v972_v5  ;;  %vm1108_vm12 = vcmp.eq.s32.totalorder %v8291_v28, %v7219_v2 }
 0x2ae   : > { %v3186_v20 = vadd.f32 %v3154_v35, %v3086_v50  ;;  %v1139_v56 = vsel %vm1107_vm11, 0.015857518, %v6760_v54  ;;  %v1140_v44 = vsel %vm1108_vm12, 0.015857518, %v6760_v54  ;;  %vm1207_vm13 = vcmp.eq.s32.totalorder %v8288_v8, %v7223_v3 }
 0x2af   : > { %v3285_v25 = vadd.f32 %v3253_v41, %v3185_v61  ;;  %v1171_v4 = vadd.f32 %v1139_v56, %v1071_v16  ;;  %v1172_v55 = vadd.f32 %v1140_v44, %v1072_v47  ;;  %vm1208_vm14 = vcmp.eq.s32.totalorder %v8291_v28, %v7223_v3 }
 0x2b0   : > { %v3286_v13 = vadd.f32 %v3254_v51, %v3186_v20  ;;  %v1239_v17 = vsel %vm1207_vm13, 0.0003613308, %v6760_v54  ;;  %v1240_v49 = vsel %vm1208_vm14, 0.0003613308, %v6760_v54  ;;  %vm1307_vm15 = vcmp.eq.s32.totalorder %v8288_v8, %v7259_v26 }
 0x2b1   : > { %v1271_v35 = vadd.f32 %v1239_v17, %v1171_v4  ;;  %v1272_v9 = vadd.f32 %v1240_v49, %v1172_v55  ;;  %vm1308_vm0 = vcmp.eq.s32.totalorder %v8291_v28, %v7259_v26  ;;  %v1339_v41 = vsel %vm1307_vm15, 0.015857518, %v6760_v54 }
 0x2b2   : > { %v3339_v36 = vpack.c.bf16 %v3286_v13, %v3285_v25  ;;  %v1340_v29 = vsel %vm1308_vm0, 0.015857518, %v6760_v54  ;;  %vm1407_vm1 = vcmp.eq.s32.totalorder %v8288_v8, %v7163_v45  ;;  %vm1408_vm2 = vcmp.eq.s32.totalorder %v8291_v28, %v7163_v45 }
 0x2b3   : > { %v1371_v51 = vadd.f32 %v1339_v41, %v1271_v35  ;;  %v1372_v62 = vadd.f32 %v1340_v29, %v1272_v9  ;;  %v1439_v53 = vsel %vm1407_vm1, 0.0003613308, %v6760_v54  ;;  %v1440_v42 = vsel %vm1408_vm2, 0.0003613308, %v6760_v54 }
 0x2b4   : > { %6193 = vmatprep.mubr.bf16.mxu1 %v3339_v36  ;;  %vm1507_vm3 = vcmp.eq.s32.totalorder %v8288_v8, %v7265_v27  ;;  %vm1508_vm4 = vcmp.eq.s32.totalorder %v8291_v28, %v7265_v27  ;;  %vm1607_vm5 = vcmp.eq.s32.totalorder %v8288_v8, %v7270_v31  ;;  %vm1608_vm6 = vcmp.eq.s32.totalorder %v8291_v28, %v7270_v31 }
 0x2b5   : > { %v1471_v12 = vadd.f32 %v1439_v53, %v1371_v51  ;;  %v1472_v7 = vadd.f32 %v1440_v42, %v1372_v62  ;;  %v1539_v11 = vsel %vm1507_vm3, 0.015857518, %v6760_v54  ;;  %v1540_v40 = vsel %vm1508_vm4, 0.015857518, %v6760_v54 }
 0x2b6   : > { %v1639_v30 = vsel %vm1607_vm5, 0.16666666, %v6760_v54  ;;  %v1640_v5 = vsel %vm1608_vm6, 0.16666666, %v6760_v54  ;;  %vm1707_vm7 = vcmp.eq.s32.totalorder %v8288_v8, %v7293_v57  ;;  %vm1708_vm8 = vcmp.eq.s32.totalorder %v8291_v28, %v7293_v57 }
 0x2b7   : > { %v1571_v50 = vadd.f32 %v1539_v11, %v1471_v12  ;;  %v1572_v14 = vadd.f32 %v1540_v40, %v1472_v7  ;;  %v1739_v15 = vsel %vm1707_vm7, 0.015857518, %v6760_v54  ;;  %v1740_v61 = vsel %vm1708_vm8, 0.015857518, %v6760_v54 }
 0x2b8   : > { %vm1807_vm9 = vcmp.eq.s32.totalorder %v8288_v8, %v7297_v58  ;;  %vm1808_vm10 = vcmp.eq.s32.totalorder %v8291_v28, %v7297_v58  ;;  %vm1907_vm11 = vcmp.eq.s32.totalorder %v8288_v8, %v7301_v59  ;;  %vm1908_vm12 = vcmp.eq.s32.totalorder %v8291_v28, %v7301_v59 }
 0x2b9   : > { %v1671_v16 = vadd.f32 %v1639_v30, %v1571_v50  ;;  %v1672_v47 = vadd.f32 %v1640_v5, %v1572_v14  ;;  %v1839_v20 = vsel %vm1807_vm9, 0.16666666, %v6760_v54  ;;  %v1840_v56 = vsel %vm1808_vm10, 0.16666666, %v6760_v54 }
 0x2ba   : > { %v1939_v44 = vsel %vm1907_vm11, 1.0, %v6760_v54  ;;  %v1940_v25 = vsel %vm1908_vm12, 1.0, %v6760_v54  ;;  %vm2007_vm13 = vcmp.eq.s32.totalorder %v8288_v8, %v7305_v60  ;;  %vm2008_vm14 = vcmp.eq.s32.totalorder %v8291_v28, %v7305_v60 }
 0x2bb   : > { %v1771_v4 = vadd.f32 %v1739_v15, %v1671_v16  ;;  %v1772_v55 = vadd.f32 %v1740_v61, %v1672_v47  ;;  %v2039_v13 = vsel %vm2007_vm13, 0.16666666, %v6760_v54  ;;  %v2040_v17 = vsel %vm2008_vm14, 0.16666666, %v6760_v54 }
 0x2bc   : > { %vm2107_vm15 = vcmp.eq.s32.totalorder %v8288_v8, %v7309_v63  ;;  %vm2108_vm0 = vcmp.eq.s32.totalorder %v8291_v28, %v7309_v63  ;;  %vm2207_vm1 = vcmp.eq.s32.totalorder %v8288_v8, %v7167_v46  ;;  %vm2208_vm2 = vcmp.eq.s32.totalorder %v8291_v28, %v7167_v46 }
 0x2bd   : > { %v1871_v49 = vadd.f32 %v1839_v20, %v1771_v4  ;;  %v1872_v35 = vadd.f32 %v1840_v56, %v1772_v55  ;;  %v2139_v9 = vsel %vm2107_vm15, 0.015857518, %v6760_v54  ;;  %v2140_v41 = vsel %vm2108_vm0, 0.015857518, %v6760_v54 }
 0x2be   : > { %v2239_v36 = vsel %vm2207_vm1, 0.16666666, %v6760_v54  ;;  %v2240_v29 = vsel %vm2208_vm2, 0.16666666, %v6760_v54  ;;  %vm2307_vm3 = vcmp.eq.s32.totalorder %v8288_v8, %v7355_v32  ;;  %vm2308_vm4 = vcmp.eq.s32.totalorder %v8291_v28, %v7355_v32 }
 0x2bf   : > { %v1971_v51 = vadd.f32 %v1939_v44, %v1871_v49  ;;  %v1972_v62 = vadd.f32 %v1940_v25, %v1872_v35  ;;  %v2339_v53 = vsel %vm2307_vm3, 0.015857518, %v6760_v54  ;;  %v2340_v42 = vsel %vm2308_vm4, 0.015857518, %v6760_v54 }
 0x2c0   : > { %vm2407_vm5 = vcmp.eq.s32.totalorder %v8288_v8, %v7359_v33  ;;  %vm2408_vm6 = vcmp.eq.s32.totalorder %v8291_v28, %v7359_v33  ;;  %vm2507_vm7 = vcmp.eq.s32.totalorder %v8288_v8, %v7363_v34  ;;  %vm2508_vm8 = vcmp.eq.s32.totalorder %v8291_v28, %v7363_v34 }
 0x2c1   : > { %v2071_v12 = vadd.f32 %v2039_v13, %v1971_v51  ;;  %v2072_v7 = vadd.f32 %v2040_v17, %v1972_v62  ;;  %v2439_v11 = vsel %vm2407_vm5, 0.0003613308, %v6760_v54  ;;  %v2440_v40 = vsel %vm2408_vm6, 0.0003613308, %v6760_v54 }
 0x2c2   : > { %v2539_v30 = vsel %vm2507_vm7, 0.015857518, %v6760_v54  ;;  %v2540_v5 = vsel %vm2508_vm8, 0.015857518, %v6760_v54  ;;  %vm2607_vm9 = vcmp.eq.s32.totalorder %v8288_v8, %v7367_v37  ;;  %vm2608_vm10 = vcmp.eq.s32.totalorder %v8291_v28, %v7367_v37 }
 0x2c3   : > { %v2171_v50 = vadd.f32 %v2139_v9, %v2071_v12  ;;  %v2172_v14 = vadd.f32 %v2140_v41, %v2072_v7  ;;  %v2639_v15 = vsel %vm2607_vm9, 0.0003613308, %v6760_v54  ;;  %v2640_v61 = vsel %vm2608_vm10, 0.0003613308, %v6760_v54 }
 0x2c4   : > { %vm2707_vm11 = vcmp.eq.s32.totalorder %v8288_v8, %v7371_v39  ;;  %vm2708_vm12 = vcmp.eq.s32.totalorder %v8291_v28, %v7371_v39  ;;  %vm2807_vm13 = vcmp.eq.s32.totalorder %v8288_v8, %v7405_v18  ;;  %vm2808_vm14 = vcmp.eq.s32.totalorder %v8291_v28, %v7405_v18 }
 0x2c5   : > { %v2271_v16 = vadd.f32 %v2239_v36, %v2171_v50  ;;  %v2272_v47 = vadd.f32 %v2240_v29, %v2172_v14  ;;  %v2739_v20 = vsel %vm2707_vm11, 0.015857518, %v6760_v54  ;;  %v2740_v56 = vsel %vm2708_vm12, 0.015857518, %v6760_v54 }
 0x2c6   : > { %v2839_v44 = vsel %vm2807_vm13, 0.16666666, %v6760_v54  ;;  %v2840_v25 = vsel %vm2808_vm14, 0.16666666, %v6760_v54  ;;  %vm2907_vm15 = vcmp.eq.s32.totalorder %v8288_v8, %v7409_v19  ;;  %vm2908_vm0 = vcmp.eq.s32.totalorder %v8291_v28, %v7409_v19 }
 0x2c7   : > { %v2371_v4 = vadd.f32 %v2339_v53, %v2271_v16  ;;  %v2372_v55 = vadd.f32 %v2340_v42, %v2272_v47  ;;  %v2939_v13 = vsel %vm2907_vm15, 0.015857518, %v6760_v54  ;;  %v2940_v17 = vsel %vm2908_vm0, 0.015857518, %v6760_v54 }
 0x2c8   : > { %vm3007_vm1 = vcmp.eq.s32.totalorder %v8288_v8, %v7413_v22  ;;  %vm3008_vm2 = vcmp.eq.s32.totalorder %v8291_v28, %v7413_v22  ;;  %vm3107_vm3 = vcmp.eq.s32.totalorder %v8288_v8, %v7417_v23  ;;  %vm3108_vm4 = vcmp.eq.s32.totalorder %v8291_v28, %v7417_v23 }
 0x2c9   : > { %v2471_v49 = vadd.f32 %v2439_v11, %v2371_v4  ;;  %v2472_v35 = vadd.f32 %v2440_v40, %v2372_v55  ;;  %v3039_v9 = vsel %vm3007_vm1, 0.0003613308, %v6760_v54  ;;  %v3040_v41 = vsel %vm3008_vm2, 0.0003613308, %v6760_v54 }
 0x2ca   : > { %v3139_v36 = vsel %vm3107_vm3, 0.015857518, %v6760_v54  ;;  %v3140_v29 = vsel %vm3108_vm4, 0.015857518, %v6760_v54  ;;  %vm3207_vm5 = vcmp.eq.s32.totalorder %v8288_v8, %v7443_v6  ;;  %vm3208_vm6 = vcmp.eq.s32.totalorder %v8291_v28, %v7443_v6 }
 0x2cb   : > { %v2571_v51 = vadd.f32 %v2539_v30, %v2471_v49  ;;  %v2572_v62 = vadd.f32 %v2540_v5, %v2472_v35  ;;  %v3239_v53 = vsel %vm3207_vm5, 0.0003613308, %v6760_v54  ;;  %v3240_v42 = vsel %vm3208_vm6, 0.0003613308, %v6760_v54 }
 0x2cc   : > { %vm623_vm7 = vcmp.eq.s32.totalorder %v8294_v24, %v7156_v43  ;;  %vm624_vm8 = vcmp.eq.s32.totalorder %v8297_v10, %v7156_v43  ;;  %vm723_vm9 = vcmp.eq.s32.totalorder %v8294_v24, %v7172_v48  ;;  %vm724_vm10 = vcmp.eq.s32.totalorder %v8297_v10, %v7172_v48 }
 0x2cd   : > { %v2671_v8 = vadd.f32 %v2639_v15, %v2571_v51  ;;  %v2672_v28 = vadd.f32 %v2640_v61, %v2572_v62  ;;  %v655_v12 = vsel %vm623_vm7, 0.0003613308, %v6760_v54  ;;  %v656_v7 = vsel %vm624_vm8, 0.0003613308, %v6760_v54 }
 0x2ce   : > { %v755_v11 = vsel %vm723_vm9, 0.015857518, %v6760_v54  ;;  %v756_v40 = vsel %vm724_vm10, 0.015857518, %v6760_v54  ;;  %vm823_vm11 = vcmp.eq.s32.totalorder %v8294_v24, %v7189_v52  ;;  %vm824_vm12 = vcmp.eq.s32.totalorder %v8297_v10, %v7189_v52 }
 0x2cf   : > { %v2771_v30 = vadd.f32 %v2739_v20, %v2671_v8  ;;  %v2772_v5 = vadd.f32 %v2740_v56, %v2672_v28  ;;  %v787_v50 = vadd.f32 %v755_v11, %v655_v12  ;;  %v788_v14 = vadd.f32 %v756_v40, %v656_v7 }
 0x2d0   : > { %v855_v15 = vsel %vm823_vm11, 0.0003613308, %v6760_v54  ;;  %v856_v61 = vsel %vm824_vm12, 0.0003613308, %v6760_v54  ;;  %vm923_vm13 = vcmp.eq.s32.totalorder %v8294_v24, %v7211_v0  ;;  %vm924_vm14 = vcmp.eq.s32.totalorder %v8297_v10, %v7211_v0 }
 0x2d1   : > { %v2871_v16 = vadd.f32 %v2839_v44, %v2771_v30  ;;  %v2872_v47 = vadd.f32 %v2840_v25, %v2772_v5  ;;  %v887_v4 = vadd.f32 %v855_v15, %v787_v50  ;;  %v888_v55 = vadd.f32 %v856_v61, %v788_v14 }
 0x2d2   : > { %v955_v49 = vsel %vm923_vm13, 0.015857518, %v6760_v54  ;;  %v956_v20 = vsel %vm924_vm14, 0.015857518, %v6760_v54  ;;  %vm1023_vm15 = vcmp.eq.s32.totalorder %v8294_v24, %v7215_v1  ;;  %vm1024_vm0 = vcmp.eq.s32.totalorder %v8297_v10, %v7215_v1 }
 0x2d3   : > { %v2971_v56 = vadd.f32 %v2939_v13, %v2871_v16  ;;  %v2972_v35 = vadd.f32 %v2940_v17, %v2872_v47  ;;  %v987_v51 = vadd.f32 %v955_v49, %v887_v4  ;;  %v988_v62 = vadd.f32 %v956_v20, %v888_v55 }
 0x2d4   : > { %v1055_v8 = vsel %vm1023_vm15, 0.16666666, %v6760_v54  ;;  %v1056_v44 = vsel %vm1024_vm0, 0.16666666, %v6760_v54  ;;  %vm1123_vm1 = vcmp.eq.s32.totalorder %v8294_v24, %v7219_v2  ;;  %vm1124_vm2 = vcmp.eq.s32.totalorder %v8297_v10, %v7219_v2 }
 0x2d5   : > { %v3071_v25 = vadd.f32 %v3039_v9, %v2971_v56  ;;  %v3072_v28 = vadd.f32 %v3040_v41, %v2972_v35  ;;  %v1087_v12 = vadd.f32 %v1055_v8, %v987_v51  ;;  %v1088_v7 = vadd.f32 %v1056_v44, %v988_v62 }
 0x2d6   : > { %v1155_v11 = vsel %vm1123_vm1, 0.015857518, %v6760_v54  ;;  %v1156_v13 = vsel %vm1124_vm2, 0.015857518, %v6760_v54  ;;  %vm1223_vm3 = vcmp.eq.s32.totalorder %v8294_v24, %v7223_v3  ;;  %vm1224_vm4 = vcmp.eq.s32.totalorder %v8297_v10, %v7223_v3 }
 0x2d7   : > { %v3171_v17 = vadd.f32 %v3139_v36, %v3071_v25  ;;  %v3172_v40 = vadd.f32 %v3140_v29, %v3072_v28  ;;  %v1187_v30 = vadd.f32 %v1155_v11, %v1087_v12  ;;  %v1188_v5 = vadd.f32 %v1156_v13, %v1088_v7 }
 0x2d8   : > { %v1255_v50 = vsel %vm1223_vm3, 0.0003613308, %v6760_v54  ;;  %v1256_v9 = vsel %vm1224_vm4, 0.0003613308, %v6760_v54  ;;  %vm1323_vm5 = vcmp.eq.s32.totalorder %v8294_v24, %v7259_v26  ;;  %vm1324_vm6 = vcmp.eq.s32.totalorder %v8297_v10, %v7259_v26 }
 0x2d9   : > { %v3271_v41 = vadd.f32 %v3239_v53, %v3171_v17  ;;  %v3272_v14 = vadd.f32 %v3240_v42, %v3172_v40  ;;  %v1287_v15 = vadd.f32 %v1255_v50, %v1187_v30  ;;  %v1288_v61 = vadd.f32 %v1256_v9, %v1188_v5 }
 0x2da   : > { %v1355_v16 = vsel %vm1323_vm5, 0.015857518, %v6760_v54  ;;  %v1356_v36 = vsel %vm1324_vm6, 0.015857518, %v6760_v54  ;;  %vm1423_vm7 = vcmp.eq.s32.totalorder %v8294_v24, %v7163_v45  ;;  %vm1424_vm8 = vcmp.eq.s32.totalorder %v8297_v10, %v7163_v45 }
 0x2db   : > { %v3332_v29 = vpack.c.bf16 %v3272_v14, %v3271_v41  ;;  %v1387_v47 = vadd.f32 %v1355_v16, %v1287_v15  ;;  %v1388_v4 = vadd.f32 %v1356_v36, %v1288_v61  ;;  %v1455_v55 = vsel %vm1423_vm7, 0.0003613308, %v6760_v54 }
 0x2dc   : > { %v1456_v53 = vsel %vm1424_vm8, 0.0003613308, %v6760_v54  ;;  %vm1523_vm9 = vcmp.eq.s32.totalorder %v8294_v24, %v7265_v27  ;;  %vm1524_vm10 = vcmp.eq.s32.totalorder %v8297_v10, %v7265_v27  ;;  %vm1623_vm11 = vcmp.eq.s32.totalorder %v8294_v24, %v7270_v31 }
 0x2dd   : > { %6178 = vmatmul.mubr.bf16.gmra.mrb[4].mxu0 %v3332_v29  ;;  %v1487_v42 = vadd.f32 %v1455_v55, %v1387_v47  ;;  %v1488_v49 = vadd.f32 %v1456_v53, %v1388_v4  ;;  %v1555_v20 = vsel %vm1523_vm9, 0.015857518, %v6760_v54  ;;  %v1556_v56 = vsel %vm1524_vm10, 0.015857518, %v6760_v54 }
 0x2de   : > { %vm1624_vm12 = vcmp.eq.s32.totalorder %v8297_v10, %v7270_v31  ;;  %v1655_v35 = vsel %vm1623_vm11, 0.16666666, %v6760_v54  ;;  %vm1723_vm13 = vcmp.eq.s32.totalorder %v8294_v24, %v7293_v57  ;;  %vm1724_vm14 = vcmp.eq.s32.totalorder %v8297_v10, %v7293_v57 }
 0x2df   : > { %v1587_v51 = vadd.f32 %v1555_v20, %v1487_v42  ;;  %v1588_v62 = vadd.f32 %v1556_v56, %v1488_v49  ;;  %v1656_v8 = vsel %vm1624_vm12, 0.16666666, %v6760_v54  ;;  %v1755_v44 = vsel %vm1723_vm13, 0.015857518, %v6760_v54 }
 0x2e0   : > { %v1756_v25 = vsel %vm1724_vm14, 0.015857518, %v6760_v54  ;;  %vm1823_vm15 = vcmp.eq.s32.totalorder %v8294_v24, %v7297_v58  ;;  %vm1824_vm0 = vcmp.eq.s32.totalorder %v8297_v10, %v7297_v58  ;;  %vm1923_vm1 = vcmp.eq.s32.totalorder %v8294_v24, %v7301_v59 }
 0x2e1   : > { %v1687_v28 = vadd.f32 %v1655_v35, %v1587_v51  ;;  %v1688_v12 = vadd.f32 %v1656_v8, %v1588_v62  ;;  %v1855_v7 = vsel %vm1823_vm15, 0.16666666, %v6760_v54  ;;  %v1856_v11 = vsel %vm1824_vm0, 0.16666666, %v6760_v54 }
 0x2e2   : > { %vm1924_vm2 = vcmp.eq.s32.totalorder %v8297_v10, %v7301_v59  ;;  %v1955_v13 = vsel %vm1923_vm1, 1.0, %v6760_v54  ;;  %vm2023_vm3 = vcmp.eq.s32.totalorder %v8294_v24, %v7305_v60  ;;  %vm2024_vm4 = vcmp.eq.s32.totalorder %v8297_v10, %v7305_v60 }
 0x2e3   : > { %v1787_v17 = vadd.f32 %v1755_v44, %v1687_v28  ;;  %v1788_v40 = vadd.f32 %v1756_v25, %v1688_v12  ;;  %v1956_v30 = vsel %vm1924_vm2, 1.0, %v6760_v54  ;;  %v2055_v5 = vsel %vm2023_vm3, 0.16666666, %v6760_v54 }
 0x2e4   : > { %v2056_v50 = vsel %vm2024_vm4, 0.16666666, %v6760_v54  ;;  %vm2123_vm5 = vcmp.eq.s32.totalorder %v8294_v24, %v7309_v63  ;;  %vm2124_vm6 = vcmp.eq.s32.totalorder %v8297_v10, %v7309_v63  ;;  %vm2223_vm7 = vcmp.eq.s32.totalorder %v8294_v24, %v7167_v46 }
 0x2e5   : > { %v1887_v9 = vadd.f32 %v1855_v7, %v1787_v17  ;;  %v1888_v41 = vadd.f32 %v1856_v11, %v1788_v40  ;;  %v2155_v14 = vsel %vm2123_vm5, 0.015857518, %v6760_v54  ;;  %v2156_v15 = vsel %vm2124_vm6, 0.015857518, %v6760_v54 }
 0x2e6   : > { %vm2224_vm8 = vcmp.eq.s32.totalorder %v8297_v10, %v7167_v46  ;;  %v2255_v61 = vsel %vm2223_vm7, 0.16666666, %v6760_v54  ;;  %vm2323_vm9 = vcmp.eq.s32.totalorder %v8294_v24, %v7355_v32  ;;  %vm2324_vm10 = vcmp.eq.s32.totalorder %v8297_v10, %v7355_v32 }
 0x2e7   : > { %v1987_v16 = vadd.f32 %v1955_v13, %v1887_v9  ;;  %v1988_v36 = vadd.f32 %v1956_v30, %v1888_v41  ;;  %v2256_v29 = vsel %vm2224_vm8, 0.16666666, %v6760_v54  ;;  %v2355_v47 = vsel %vm2323_vm9, 0.015857518, %v6760_v54 }
 0x2e8   : > { %v2356_v4 = vsel %vm2324_vm10, 0.015857518, %v6760_v54  ;;  %vm2423_vm11 = vcmp.eq.s32.totalorder %v8294_v24, %v7359_v33  ;;  %vm2424_vm12 = vcmp.eq.s32.totalorder %v8297_v10, %v7359_v33  ;;  %vm2523_vm13 = vcmp.eq.s32.totalorder %v8294_v24, %v7363_v34 }
 0x2e9   : > { %v2087_v55 = vadd.f32 %v2055_v5, %v1987_v16  ;;  %v2088_v53 = vadd.f32 %v2056_v50, %v1988_v36  ;;  %v2455_v42 = vsel %vm2423_vm11, 0.0003613308, %v6760_v54  ;;  %v2456_v49 = vsel %vm2424_vm12, 0.0003613308, %v6760_v54 }
 0x2ea   : > { %vm2524_vm14 = vcmp.eq.s32.totalorder %v8297_v10, %v7363_v34  ;;  %v2555_v20 = vsel %vm2523_vm13, 0.015857518, %v6760_v54  ;;  %vm2623_vm15 = vcmp.eq.s32.totalorder %v8294_v24, %v7367_v37  ;;  %vm2624_vm0 = vcmp.eq.s32.totalorder %v8297_v10, %v7367_v37 }
 0x2eb   : > { %v2187_v56 = vadd.f32 %v2155_v14, %v2087_v55  ;;  %v2188_v35 = vadd.f32 %v2156_v15, %v2088_v53  ;;  %v2556_v51 = vsel %vm2524_vm14, 0.015857518, %v6760_v54  ;;  %v2655_v62 = vsel %vm2623_vm15, 0.0003613308, %v6760_v54 }
 0x2ec   : > { %v2656_v8 = vsel %vm2624_vm0, 0.0003613308, %v6760_v54  ;;  %vm2723_vm1 = vcmp.eq.s32.totalorder %v8294_v24, %v7371_v39  ;;  %vm2724_vm2 = vcmp.eq.s32.totalorder %v8297_v10, %v7371_v39  ;;  %vm2823_vm3 = vcmp.eq.s32.totalorder %v8294_v24, %v7405_v18 }
 0x2ed   : > { %v2287_v44 = vadd.f32 %v2255_v61, %v2187_v56  ;;  %v2288_v25 = vadd.f32 %v2256_v29, %v2188_v35  ;;  %v2755_v28 = vsel %vm2723_vm1, 0.015857518, %v6760_v54  ;;  %v2756_v12 = vsel %vm2724_vm2, 0.015857518, %v6760_v54 }
 0x2ee   : > { %vm2824_vm4 = vcmp.eq.s32.totalorder %v8297_v10, %v7405_v18  ;;  %v2855_v7 = vsel %vm2823_vm3, 0.16666666, %v6760_v54  ;;  %vm2923_vm5 = vcmp.eq.s32.totalorder %v8294_v24, %v7409_v19  ;;  %vm2924_vm6 = vcmp.eq.s32.totalorder %v8297_v10, %v7409_v19 }
 0x2ef   : > { %v2387_v11 = vadd.f32 %v2355_v47, %v2287_v44  ;;  %v2388_v13 = vadd.f32 %v2356_v4, %v2288_v25  ;;  %v2856_v17 = vsel %vm2824_vm4, 0.16666666, %v6760_v54  ;;  %v2955_v40 = vsel %vm2923_vm5, 0.015857518, %v6760_v54 }
 0x2f0   : > { %v2956_v30 = vsel %vm2924_vm6, 0.015857518, %v6760_v54  ;;  %vm3023_vm7 = vcmp.eq.s32.totalorder %v8294_v24, %v7413_v22  ;;  %vm3024_vm8 = vcmp.eq.s32.totalorder %v8297_v10, %v7413_v22  ;;  %vm3123_vm9 = vcmp.eq.s32.totalorder %v8294_v24, %v7417_v23 }
 0x2f1   : > { %v2487_v5 = vadd.f32 %v2455_v42, %v2387_v11  ;;  %v2488_v50 = vadd.f32 %v2456_v49, %v2388_v13  ;;  %v3055_v9 = vsel %vm3023_vm7, 0.0003613308, %v6760_v54  ;;  %v3056_v41 = vsel %vm3024_vm8, 0.0003613308, %v6760_v54 }
 0x2f2   : > { %vm3124_vm10 = vcmp.eq.s32.totalorder %v8297_v10, %v7417_v23  ;;  %v3155_v14 = vsel %vm3123_vm9, 0.015857518, %v6760_v54  ;;  %vm3223_vm11 = vcmp.eq.s32.totalorder %v8294_v24, %v7443_v6  ;;  %vm3224_vm12 = vcmp.eq.s32.totalorder %v8297_v10, %v7443_v6 }
 0x2f3   : > { %v2587_v15 = vadd.f32 %v2555_v20, %v2487_v5  ;;  %v2588_v61 = vadd.f32 %v2556_v51, %v2488_v50  ;;  %v3156_v16 = vsel %vm3124_vm10, 0.015857518, %v6760_v54  ;;  %v3255_v36 = vsel %vm3223_vm11, 0.0003613308, %v6760_v54 }
 0x2f4   : > { %v3256_v29 = vsel %vm3224_vm12, 0.0003613308, %v6760_v54  ;;  %v8627_v47 = vadd.s32 72, %v7142_v38  ;;  %vm609_vm13 = vcmp.eq.s32.totalorder %v8300_v21, %v7156_v43  ;;  %vm709_vm14 = vcmp.eq.s32.totalorder %v8300_v21, %v7172_v48 }
 0x2f5   : > { %v2687_v24 = vadd.f32 %v2655_v62, %v2587_v15  ;;  %v2688_v4 = vadd.f32 %v2656_v8, %v2588_v61  ;;  %v641_v10 = vsel %vm609_vm13, 0.0003613308, %v6760_v54  ;;  %v741_v55 = vsel %vm709_vm14, 0.015857518, %v6760_v54 }
 0x2f6   : > { %vm610_vm15 = vcmp.eq.s32.totalorder %v8627_v47, %v7156_v43  ;;  %vm710_vm0 = vcmp.eq.s32.totalorder %v8627_v47, %v7172_v48  ;;  %v773_v53 = vadd.f32 %v741_v55, %v641_v10  ;;  %vm809_vm1 = vcmp.eq.s32.totalorder %v8300_v21, %v7189_v52 }
 0x2f7   : > { %v2787_v42 = vadd.f32 %v2755_v28, %v2687_v24  ;;  %v2788_v49 = vadd.f32 %v2756_v12, %v2688_v4  ;;  %v642_v20 = vsel %vm610_vm15, 0.0003613308, %v6760_v54  ;;  %v742_v56 = vsel %vm710_vm0, 0.015857518, %v6760_v54 }
 0x2f8   : > { %v774_v35 = vadd.f32 %v742_v56, %v642_v20  ;;  %vm810_vm2 = vcmp.eq.s32.totalorder %v8627_v47, %v7189_v52  ;;  %v841_v51 = vsel %vm809_vm1, 0.0003613308, %v6760_v54  ;;  %vm909_vm3 = vcmp.eq.s32.totalorder %v8300_v21, %v7211_v0 }
 0x2f9   : > { %v2887_v62 = vadd.f32 %v2855_v7, %v2787_v42  ;;  %v2888_v8 = vadd.f32 %v2856_v17, %v2788_v49  ;;  %v842_v44 = vsel %vm810_vm2, 0.0003613308, %v6760_v54  ;;  %v873_v25 = vadd.f32 %v841_v51, %v773_v53 }
 0x2fa   : > { %v874_v28 = vadd.f32 %v842_v44, %v774_v35  ;;  %vm910_vm4 = vcmp.eq.s32.totalorder %v8627_v47, %v7211_v0  ;;  %v941_v12 = vsel %vm909_vm3, 0.015857518, %v6760_v54  ;;  %vm1009_vm5 = vcmp.eq.s32.totalorder %v8300_v21, %v7215_v1 }
 0x2fb   : > { %v2987_v11 = vadd.f32 %v2955_v40, %v2887_v62  ;;  %v2988_v13 = vadd.f32 %v2956_v30, %v2888_v8  ;;  %v942_v5 = vsel %vm910_vm4, 0.015857518, %v6760_v54  ;;  %v973_v50 = vadd.f32 %v941_v12, %v873_v25 }
 0x2fc   : > { %v974_v15 = vadd.f32 %v942_v5, %v874_v28  ;;  %vm1010_vm6 = vcmp.eq.s32.totalorder %v8627_v47, %v7215_v1  ;;  %v1041_v7 = vsel %vm1009_vm5, 0.16666666, %v6760_v54  ;;  %vm1109_vm7 = vcmp.eq.s32.totalorder %v8300_v21, %v7219_v2 }
 0x2fd   : > { %v3087_v17 = vadd.f32 %v3055_v9, %v2987_v11  ;;  %v3088_v61 = vadd.f32 %v3056_v41, %v2988_v13  ;;  %v1042_v24 = vsel %vm1010_vm6, 0.16666666, %v6760_v54  ;;  %v1073_v4 = vadd.f32 %v1041_v7, %v973_v50 }
 0x2fe   : > { %v1074_v10 = vadd.f32 %v1042_v24, %v974_v15  ;;  %vm1110_vm8 = vcmp.eq.s32.totalorder %v8627_v47, %v7219_v2  ;;  %v1141_v40 = vsel %vm1109_vm7, 0.015857518, %v6760_v54  ;;  %vm1209_vm9 = vcmp.eq.s32.totalorder %v8300_v21, %v7223_v3 }
 0x2ff   : > { %v3187_v30 = vadd.f32 %v3155_v14, %v3087_v17  ;;  %v3188_v55 = vadd.f32 %v3156_v16, %v3088_v61  ;;  %v1142_v53 = vsel %vm1110_vm8, 0.015857518, %v6760_v54  ;;  %v1173_v42 = vadd.f32 %v1141_v40, %v1073_v4 }
 0x300   : > { %v1174_v49 = vadd.f32 %v1142_v53, %v1074_v10  ;;  %vm1210_vm10 = vcmp.eq.s32.totalorder %v8627_v47, %v7223_v3  ;;  %v1241_v9 = vsel %vm1209_vm9, 0.0003613308, %v6760_v54  ;;  %vm1309_vm11 = vcmp.eq.s32.totalorder %v8300_v21, %v7259_v26 }
 0x301   : > { %v3287_v41 = vadd.f32 %v3255_v36, %v3187_v30  ;;  %v3288_v20 = vadd.f32 %v3256_v29, %v3188_v55  ;;  %v1242_v56 = vsel %vm1210_vm10, 0.0003613308, %v6760_v54  ;;  %v1273_v35 = vadd.f32 %v1241_v9, %v1173_v42 }
 0x302   : > { %v1274_v51 = vadd.f32 %v1242_v56, %v1174_v49  ;;  %vm1310_vm12 = vcmp.eq.s32.totalorder %v8627_v47, %v7259_v26  ;;  %v1341_v14 = vsel %vm1309_vm11, 0.015857518, %v6760_v54  ;;  %vm1409_vm13 = vcmp.eq.s32.totalorder %v8300_v21, %v7163_v45 }
 0x303   : > { %v3340_v16 = vpack.c.bf16 %v3288_v20, %v3287_v41  ;;  %v1342_v62 = vsel %vm1310_vm12, 0.015857518, %v6760_v54  ;;  %v1373_v8 = vadd.f32 %v1341_v14, %v1273_v35  ;;  %vm1410_vm14 = vcmp.eq.s32.totalorder %v8627_v47, %v7163_v45 }
 0x304   : > { %v1374_v36 = vadd.f32 %v1342_v62, %v1274_v51  ;;  %v1441_v29 = vsel %vm1409_vm13, 0.0003613308, %v6760_v54  ;;  %v1442_v44 = vsel %vm1410_vm14, 0.0003613308, %v6760_v54  ;;  %vm1509_vm15 = vcmp.eq.s32.totalorder %v8300_v21, %v7265_v27 }
 0x305   : > { %6194 = vmatmul.mubr.bf16.gmra.mrb[4].mxu1 %v3340_v16  ;;  %v1473_v25 = vadd.f32 %v1441_v29, %v1373_v8  ;;  %vm1510_vm0 = vcmp.eq.s32.totalorder %v8627_v47, %v7265_v27  ;;  %v1541_v28 = vsel %vm1509_vm15, 0.015857518, %v6760_v54  ;;  %vm1609_vm1 = vcmp.eq.s32.totalorder %v8300_v21, %v7270_v31 }
 0x306   : > { %v1474_v12 = vadd.f32 %v1442_v44, %v1374_v36  ;;  %v1542_v11 = vsel %vm1510_vm0, 0.015857518, %v6760_v54  ;;  %vm1610_vm2 = vcmp.eq.s32.totalorder %v8627_v47, %v7270_v31  ;;  %v1641_v13 = vsel %vm1609_vm1, 0.16666666, %v6760_v54 }
 0x307   : > { %v1573_v5 = vadd.f32 %v1541_v28, %v1473_v25  ;;  %v1642_v50 = vsel %vm1610_vm2, 0.16666666, %v6760_v54  ;;  %vm1709_vm3 = vcmp.eq.s32.totalorder %v8300_v21, %v7293_v57  ;;  %vm1710_vm4 = vcmp.eq.s32.totalorder %v8627_v47, %v7293_v57 }
 0x308   : > { %v1574_v15 = vadd.f32 %v1542_v11, %v1474_v12  ;;  %v1741_v7 = vsel %vm1709_vm3, 0.015857518, %v6760_v54  ;;  %v1742_v17 = vsel %vm1710_vm4, 0.015857518, %v6760_v54  ;;  %vm1809_vm5 = vcmp.eq.s32.totalorder %v8300_v21, %v7297_v58 }
 0x309   : > { %v1673_v61 = vadd.f32 %v1641_v13, %v1573_v5  ;;  %vm1810_vm6 = vcmp.eq.s32.totalorder %v8627_v47, %v7297_v58  ;;  %v1841_v24 = vsel %vm1809_vm5, 0.16666666, %v6760_v54  ;;  %vm1909_vm7 = vcmp.eq.s32.totalorder %v8300_v21, %v7301_v59 }
 0x30a   : > { %v1674_v4 = vadd.f32 %v1642_v50, %v1574_v15  ;;  %v1842_v10 = vsel %vm1810_vm6, 0.16666666, %v6760_v54  ;;  %vm1910_vm8 = vcmp.eq.s32.totalorder %v8627_v47, %v7301_v59  ;;  %v1941_v40 = vsel %vm1909_vm7, 1.0, %v6760_v54 }
 0x30b   : > { %v1773_v30 = vadd.f32 %v1741_v7, %v1673_v61  ;;  %v1942_v55 = vsel %vm1910_vm8, 1.0, %v6760_v54  ;;  %vm2009_vm9 = vcmp.eq.s32.totalorder %v8300_v21, %v7305_v60  ;;  %vm2010_vm10 = vcmp.eq.s32.totalorder %v8627_v47, %v7305_v60 }
 0x30c   : > { %v1774_v53 = vadd.f32 %v1742_v17, %v1674_v4  ;;  %v2041_v42 = vsel %vm2009_vm9, 0.16666666, %v6760_v54  ;;  %v2042_v49 = vsel %vm2010_vm10, 0.16666666, %v6760_v54  ;;  %vm2109_vm11 = vcmp.eq.s32.totalorder %v8300_v21, %v7309_v63 }
 0x30d   : > { %v1873_v9 = vadd.f32 %v1841_v24, %v1773_v30  ;;  %vm2110_vm12 = vcmp.eq.s32.totalorder %v8627_v47, %v7309_v63  ;;  %v2141_v41 = vsel %vm2109_vm11, 0.015857518, %v6760_v54  ;;  %vm2209_vm13 = vcmp.eq.s32.totalorder %v8300_v21, %v7167_v46 }
 0x30e   : > { %v1874_v20 = vadd.f32 %v1842_v10, %v1774_v53  ;;  %v2142_v56 = vsel %vm2110_vm12, 0.015857518, %v6760_v54  ;;  %vm2210_vm14 = vcmp.eq.s32.totalorder %v8627_v47, %v7167_v46  ;;  %v2241_v35 = vsel %vm2209_vm13, 0.16666666, %v6760_v54 }
 0x30f   : > { %v1973_v51 = vadd.f32 %v1941_v40, %v1873_v9  ;;  %v2242_v14 = vsel %vm2210_vm14, 0.16666666, %v6760_v54  ;;  %vm2309_vm15 = vcmp.eq.s32.totalorder %v8300_v21, %v7355_v32  ;;  %vm2310_vm0 = vcmp.eq.s32.totalorder %v8627_v47, %v7355_v32 }
 0x310   : > { %v1974_v16 = vadd.f32 %v1942_v55, %v1874_v20  ;;  %v2341_v62 = vsel %vm2309_vm15, 0.015857518, %v6760_v54  ;;  %v2342_v8 = vsel %vm2310_vm0, 0.015857518, %v6760_v54  ;;  %vm2409_vm1 = vcmp.eq.s32.totalorder %v8300_v21, %v7359_v33 }
 0x311   : > { %v2073_v36 = vadd.f32 %v2041_v42, %v1973_v51  ;;  %vm2410_vm2 = vcmp.eq.s32.totalorder %v8627_v47, %v7359_v33  ;;  %v2441_v29 = vsel %vm2409_vm1, 0.0003613308, %v6760_v54  ;;  %vm2509_vm3 = vcmp.eq.s32.totalorder %v8300_v21, %v7363_v34 }
 0x312   : > { %v2074_v44 = vadd.f32 %v2042_v49, %v1974_v16  ;;  %v2442_v25 = vsel %vm2410_vm2, 0.0003613308, %v6760_v54  ;;  %vm2510_vm4 = vcmp.eq.s32.totalorder %v8627_v47, %v7363_v34  ;;  %v2541_v28 = vsel %vm2509_vm3, 0.015857518, %v6760_v54 }
 0x313   : > { %v2173_v12 = vadd.f32 %v2141_v41, %v2073_v36  ;;  %v2542_v11 = vsel %vm2510_vm4, 0.015857518, %v6760_v54  ;;  %vm2609_vm5 = vcmp.eq.s32.totalorder %v8300_v21, %v7367_v37  ;;  %vm2610_vm6 = vcmp.eq.s32.totalorder %v8627_v47, %v7367_v37 }
 0x314   : > { %v2174_v13 = vadd.f32 %v2142_v56, %v2074_v44  ;;  %v2641_v5 = vsel %vm2609_vm5, 0.0003613308, %v6760_v54  ;;  %v2642_v50 = vsel %vm2610_vm6, 0.0003613308, %v6760_v54  ;;  %vm2709_vm7 = vcmp.eq.s32.totalorder %v8300_v21, %v7371_v39 }
 0x315   : > { %v2273_v15 = vadd.f32 %v2241_v35, %v2173_v12  ;;  %vm2710_vm8 = vcmp.eq.s32.totalorder %v8627_v47, %v7371_v39  ;;  %v2741_v7 = vsel %vm2709_vm7, 0.015857518, %v6760_v54  ;;  %vm2809_vm9 = vcmp.eq.s32.totalorder %v8300_v21, %v7405_v18 }
 0x316   : > { %v2274_v17 = vadd.f32 %v2242_v14, %v2174_v13  ;;  %v2742_v61 = vsel %vm2710_vm8, 0.015857518, %v6760_v54  ;;  %vm2810_vm10 = vcmp.eq.s32.totalorder %v8627_v47, %v7405_v18  ;;  %v2841_v24 = vsel %vm2809_vm9, 0.16666666, %v6760_v54 }
 0x317   : > { %v2373_v4 = vadd.f32 %v2341_v62, %v2273_v15  ;;  %v2842_v10 = vsel %vm2810_vm10, 0.16666666, %v6760_v54  ;;  %vm2909_vm11 = vcmp.eq.s32.totalorder %v8300_v21, %v7409_v19  ;;  %vm2910_vm12 = vcmp.eq.s32.totalorder %v8627_v47, %v7409_v19 }
 0x318   : > { %v2374_v40 = vadd.f32 %v2342_v8, %v2274_v17  ;;  %v2941_v30 = vsel %vm2909_vm11, 0.015857518, %v6760_v54  ;;  %v2942_v55 = vsel %vm2910_vm12, 0.015857518, %v6760_v54  ;;  %vm3009_vm13 = vcmp.eq.s32.totalorder %v8300_v21, %v7413_v22 }
 0x319   : > { %v2473_v53 = vadd.f32 %v2441_v29, %v2373_v4  ;;  %vm3010_vm14 = vcmp.eq.s32.totalorder %v8627_v47, %v7413_v22  ;;  %v3041_v42 = vsel %vm3009_vm13, 0.0003613308, %v6760_v54  ;;  %vm3109_vm15 = vcmp.eq.s32.totalorder %v8300_v21, %v7417_v23 }
 0x31a   : > { %v2474_v49 = vadd.f32 %v2442_v25, %v2374_v40  ;;  %v3042_v9 = vsel %vm3010_vm14, 0.0003613308, %v6760_v54  ;;  %vm3110_vm0 = vcmp.eq.s32.totalorder %v8627_v47, %v7417_v23  ;;  %v3141_v41 = vsel %vm3109_vm15, 0.015857518, %v6760_v54 }
 0x31b   : > { %v2573_v20 = vadd.f32 %v2541_v28, %v2473_v53  ;;  %v3142_v56 = vsel %vm3110_vm0, 0.015857518, %v6760_v54  ;;  %vm3209_vm1 = vcmp.eq.s32.totalorder %v8300_v21, %v7443_v6  ;;  %vm3210_vm2 = vcmp.eq.s32.totalorder %v8627_v47, %v7443_v6 }
 0x31c   : > { %v2574_v35 = vadd.f32 %v2542_v11, %v2474_v49  ;;  %v3241_v51 = vsel %vm3209_vm1, 0.0003613308, %v6760_v54  ;;  %v3242_v14 = vsel %vm3210_vm2, 0.0003613308, %v6760_v54  ;;  %v8792_v16 = vadd.s32 192, %v7142_v38 }
 0x31d   : > { %v2673_v62 = vadd.f32 %v2641_v5, %v2573_v20  ;;  %v8795_v8 = vadd.s32 200, %v7142_v38  ;;  %v8798_v36 = vadd.s32 80, %v7142_v38  ;;  %v8801_v21 = vadd.s32 88, %v7142_v38 }
 0x31e   : > { %v2674_v29 = vadd.f32 %v2642_v50, %v2574_v35  ;;  %vm625_vm3 = vcmp.eq.s32.totalorder %v8792_v16, %v7156_v43  ;;  %vm725_vm4 = vcmp.eq.s32.totalorder %v8792_v16, %v7172_v48  ;;  %vm825_vm5 = vcmp.eq.s32.totalorder %v8792_v16, %v7189_v52 }
 0x31f   : > { %v2773_v47 = vadd.f32 %v2741_v7, %v2673_v62  ;;  %vm626_vm6 = vcmp.eq.s32.totalorder %v8795_v8, %v7156_v43  ;;  %v657_v44 = vsel %vm625_vm3, 0.0003613308, %v6760_v54  ;;  %vm726_vm7 = vcmp.eq.s32.totalorder %v8795_v8, %v7172_v48 }
 0x320   : > { %v2774_v25 = vadd.f32 %v2742_v61, %v2674_v29  ;;  %v658_v28 = vsel %vm626_vm6, 0.0003613308, %v6760_v54  ;;  %v757_v12 = vsel %vm725_vm4, 0.015857518, %v6760_v54  ;;  %v758_v11 = vsel %vm726_vm7, 0.015857518, %v6760_v54 }
 0x321   : > { %v2873_v13 = vadd.f32 %v2841_v24, %v2773_v47  ;;  %v789_v5 = vadd.f32 %v757_v12, %v657_v44  ;;  %v790_v50 = vadd.f32 %v758_v11, %v658_v28  ;;  %vm826_vm8 = vcmp.eq.s32.totalorder %v8795_v8, %v7189_v52 }
 0x322   : > { %v2874_v15 = vadd.f32 %v2842_v10, %v2774_v25  ;;  %v857_v7 = vsel %vm825_vm5, 0.0003613308, %v6760_v54  ;;  %v858_v17 = vsel %vm826_vm8, 0.0003613308, %v6760_v54  ;;  %vm925_vm9 = vcmp.eq.s32.totalorder %v8792_v16, %v7211_v0 }
 0x323   : > { %v2973_v61 = vadd.f32 %v2941_v30, %v2873_v13  ;;  %v889_v4 = vadd.f32 %v857_v7, %v789_v5  ;;  %v890_v40 = vadd.f32 %v858_v17, %v790_v50  ;;  %vm926_vm10 = vcmp.eq.s32.totalorder %v8795_v8, %v7211_v0 }
 0x324   : > { %v2974_v24 = vadd.f32 %v2942_v55, %v2874_v15  ;;  %v957_v53 = vsel %vm925_vm9, 0.015857518, %v6760_v54  ;;  %v958_v49 = vsel %vm926_vm10, 0.015857518, %v6760_v54  ;;  %vm1025_vm11 = vcmp.eq.s32.totalorder %v8792_v16, %v7215_v1 }
 0x325   : > { %v3073_v10 = vadd.f32 %v3041_v42, %v2973_v61  ;;  %v989_v20 = vadd.f32 %v957_v53, %v889_v4  ;;  %v990_v35 = vadd.f32 %v958_v49, %v890_v40  ;;  %vm1026_vm12 = vcmp.eq.s32.totalorder %v8795_v8, %v7215_v1 }
 0x326   : > { %v3074_v30 = vadd.f32 %v3042_v9, %v2974_v24  ;;  %v1057_v62 = vsel %vm1025_vm11, 0.16666666, %v6760_v54  ;;  %v1058_v29 = vsel %vm1026_vm12, 0.16666666, %v6760_v54  ;;  %vm1125_vm13 = vcmp.eq.s32.totalorder %v8792_v16, %v7219_v2 }
 0x327   : > { %v3173_v55 = vadd.f32 %v3141_v41, %v3073_v10  ;;  %v1089_v47 = vadd.f32 %v1057_v62, %v989_v20  ;;  %v1090_v44 = vadd.f32 %v1058_v29, %v990_v35  ;;  %vm1126_vm14 = vcmp.eq.s32.totalorder %v8795_v8, %v7219_v2 }
 0x328   : > { %v3174_v42 = vadd.f32 %v3142_v56, %v3074_v30  ;;  %v1157_v25 = vsel %vm1125_vm13, 0.015857518, %v6760_v54  ;;  %v1158_v28 = vsel %vm1126_vm14, 0.015857518, %v6760_v54  ;;  %vm1225_vm15 = vcmp.eq.s32.totalorder %v8792_v16, %v7223_v3 }
 0x329   : > { %v3273_v9 = vadd.f32 %v3241_v51, %v3173_v55  ;;  %v1189_v12 = vadd.f32 %v1157_v25, %v1089_v47  ;;  %v1190_v11 = vadd.f32 %v1158_v28, %v1090_v44  ;;  %vm1226_vm0 = vcmp.eq.s32.totalorder %v8795_v8, %v7223_v3 }
 0x32a   : > { %v3274_v41 = vadd.f32 %v3242_v14, %v3174_v42  ;;  %v1257_v13 = vsel %vm1225_vm15, 0.0003613308, %v6760_v54  ;;  %v1258_v5 = vsel %vm1226_vm0, 0.0003613308, %v6760_v54  ;;  %vm1325_vm1 = vcmp.eq.s32.totalorder %v8792_v16, %v7259_v26 }
 0x32b   : > { %v1289_v56 = vadd.f32 %v1257_v13, %v1189_v12  ;;  %v1290_v50 = vadd.f32 %v1258_v5, %v1190_v11  ;;  %vm1326_vm2 = vcmp.eq.s32.totalorder %v8795_v8, %v7259_v26  ;;  %v1357_v51 = vsel %vm1325_vm1, 0.015857518, %v6760_v54 }
 0x32c   : > { %v3333_v15 = vpack.c.bf16 %v3274_v41, %v3273_v9  ;;  %v1358_v7 = vsel %vm1326_vm2, 0.015857518, %v6760_v54  ;;  %vm1425_vm3 = vcmp.eq.s32.totalorder %v8792_v16, %v7163_v45  ;;  %vm1426_vm4 = vcmp.eq.s32.totalorder %v8795_v8, %v7163_v45 }
 0x32d   : > { %v1389_v14 = vadd.f32 %v1357_v51, %v1289_v56  ;;  %v1390_v17 = vadd.f32 %v1358_v7, %v1290_v50  ;;  %v1457_v61 = vsel %vm1425_vm3, 0.0003613308, %v6760_v54  ;;  %v1458_v4 = vsel %vm1426_vm4, 0.0003613308, %v6760_v54 }
 0x32e   : > { %6181 = vmatprep.mubr.bf16.mxu0 %v3333_v15  ;;  %vm1525_vm5 = vcmp.eq.s32.totalorder %v8792_v16, %v7265_v27  ;;  %vm1526_vm6 = vcmp.eq.s32.totalorder %v8795_v8, %v7265_v27  ;;  %vm1625_vm7 = vcmp.eq.s32.totalorder %v8792_v16, %v7270_v31  ;;  %vm1626_vm8 = vcmp.eq.s32.totalorder %v8795_v8, %v7270_v31 }
 0x32f   : > { %v1489_v40 = vadd.f32 %v1457_v61, %v1389_v14  ;;  %v1490_v24 = vadd.f32 %v1458_v4, %v1390_v17  ;;  %v1557_v53 = vsel %vm1525_vm5, 0.015857518, %v6760_v54  ;;  %v1558_v49 = vsel %vm1526_vm6, 0.015857518, %v6760_v54 }
 0x330   : > { %v1657_v10 = vsel %vm1625_vm7, 0.16666666, %v6760_v54  ;;  %v1658_v20 = vsel %vm1626_vm8, 0.16666666, %v6760_v54  ;;  %vm1725_vm9 = vcmp.eq.s32.totalorder %v8792_v16, %v7293_v57  ;;  %vm1726_vm10 = vcmp.eq.s32.totalorder %v8795_v8, %v7293_v57 }
 0x331   : > { %v1589_v35 = vadd.f32 %v1557_v53, %v1489_v40  ;;  %v1590_v30 = vadd.f32 %v1558_v49, %v1490_v24  ;;  %v1757_v62 = vsel %vm1725_vm9, 0.015857518, %v6760_v54  ;;  %v1758_v29 = vsel %vm1726_vm10, 0.015857518, %v6760_v54 }
 0x332   : > { %vm1825_vm11 = vcmp.eq.s32.totalorder %v8792_v16, %v7297_v58  ;;  %vm1826_vm12 = vcmp.eq.s32.totalorder %v8795_v8, %v7297_v58  ;;  %vm1925_vm13 = vcmp.eq.s32.totalorder %v8792_v16, %v7301_v59  ;;  %vm1926_vm14 = vcmp.eq.s32.totalorder %v8795_v8, %v7301_v59 }
 0x333   : > { %v1689_v55 = vadd.f32 %v1657_v10, %v1589_v35  ;;  %v1690_v47 = vadd.f32 %v1658_v20, %v1590_v30  ;;  %v1857_v44 = vsel %vm1825_vm11, 0.16666666, %v6760_v54  ;;  %v1858_v42 = vsel %vm1826_vm12, 0.16666666, %v6760_v54 }
 0x334   : > { %v1957_v25 = vsel %vm1925_vm13, 1.0, %v6760_v54  ;;  %v1958_v28 = vsel %vm1926_vm14, 1.0, %v6760_v54  ;;  %vm2025_vm15 = vcmp.eq.s32.totalorder %v8792_v16, %v7305_v60  ;;  %vm2026_vm0 = vcmp.eq.s32.totalorder %v8795_v8, %v7305_v60 }
 0x335   : > { %v1789_v9 = vadd.f32 %v1757_v62, %v1689_v55  ;;  %v1790_v12 = vadd.f32 %v1758_v29, %v1690_v47  ;;  %v2057_v11 = vsel %vm2025_vm15, 0.16666666, %v6760_v54  ;;  %v2058_v41 = vsel %vm2026_vm0, 0.16666666, %v6760_v54 }
 0x336   : > { %vm2125_vm1 = vcmp.eq.s32.totalorder %v8792_v16, %v7309_v63  ;;  %vm2126_vm2 = vcmp.eq.s32.totalorder %v8795_v8, %v7309_v63  ;;  %vm2225_vm3 = vcmp.eq.s32.totalorder %v8792_v16, %v7167_v46  ;;  %vm2226_vm4 = vcmp.eq.s32.totalorder %v8795_v8, %v7167_v46 }
 0x337   : > { %v1889_v13 = vadd.f32 %v1857_v44, %v1789_v9  ;;  %v1890_v5 = vadd.f32 %v1858_v42, %v1790_v12  ;;  %v2157_v56 = vsel %vm2125_vm1, 0.015857518, %v6760_v54  ;;  %v2158_v50 = vsel %vm2126_vm2, 0.015857518, %v6760_v54 }
 0x338   : > { %v2257_v51 = vsel %vm2225_vm3, 0.16666666, %v6760_v54  ;;  %v2258_v15 = vsel %vm2226_vm4, 0.16666666, %v6760_v54  ;;  %vm2325_vm5 = vcmp.eq.s32.totalorder %v8792_v16, %v7355_v32  ;;  %vm2326_vm6 = vcmp.eq.s32.totalorder %v8795_v8, %v7355_v32 }
 0x339   : > { %v1989_v7 = vadd.f32 %v1957_v25, %v1889_v13  ;;  %v1990_v14 = vadd.f32 %v1958_v28, %v1890_v5  ;;  %v2357_v17 = vsel %vm2325_vm5, 0.015857518, %v6760_v54  ;;  %v2358_v61 = vsel %vm2326_vm6, 0.015857518, %v6760_v54 }
 0x33a   : > { %vm2425_vm7 = vcmp.eq.s32.totalorder %v8792_v16, %v7359_v33  ;;  %vm2426_vm8 = vcmp.eq.s32.totalorder %v8795_v8, %v7359_v33  ;;  %vm2525_vm9 = vcmp.eq.s32.totalorder %v8792_v16, %v7363_v34  ;;  %vm2526_vm10 = vcmp.eq.s32.totalorder %v8795_v8, %v7363_v34 }
 0x33b   : > { %v2089_v4 = vadd.f32 %v2057_v11, %v1989_v7  ;;  %v2090_v40 = vadd.f32 %v2058_v41, %v1990_v14  ;;  %v2457_v24 = vsel %vm2425_vm7, 0.0003613308, %v6760_v54  ;;  %v2458_v53 = vsel %vm2426_vm8, 0.0003613308, %v6760_v54 }
 0x33c   : > { %v2557_v49 = vsel %vm2525_vm9, 0.015857518, %v6760_v54  ;;  %v2558_v10 = vsel %vm2526_vm10, 0.015857518, %v6760_v54  ;;  %vm2625_vm11 = vcmp.eq.s32.totalorder %v8792_v16, %v7367_v37  ;;  %vm2626_vm12 = vcmp.eq.s32.totalorder %v8795_v8, %v7367_v37 }
 0x33d   : > { %v2189_v20 = vadd.f32 %v2157_v56, %v2089_v4  ;;  %v2190_v35 = vadd.f32 %v2158_v50, %v2090_v40  ;;  %v2657_v30 = vsel %vm2625_vm11, 0.0003613308, %v6760_v54  ;;  %v2658_v62 = vsel %vm2626_vm12, 0.0003613308, %v6760_v54 }
 0x33e   : > { %vm2725_vm13 = vcmp.eq.s32.totalorder %v8792_v16, %v7371_v39  ;;  %vm2726_vm14 = vcmp.eq.s32.totalorder %v8795_v8, %v7371_v39  ;;  %vm2825_vm15 = vcmp.eq.s32.totalorder %v8792_v16, %v7405_v18  ;;  %vm2826_vm0 = vcmp.eq.s32.totalorder %v8795_v8, %v7405_v18 }
 0x33f   : > { %v2289_v29 = vadd.f32 %v2257_v51, %v2189_v20  ;;  %v2290_v55 = vadd.f32 %v2258_v15, %v2190_v35  ;;  %v2757_v47 = vsel %vm2725_vm13, 0.015857518, %v6760_v54  ;;  %v2758_v44 = vsel %vm2726_vm14, 0.015857518, %v6760_v54 }
 0x340   : > { %v2857_v42 = vsel %vm2825_vm15, 0.16666666, %v6760_v54  ;;  %v2858_v25 = vsel %vm2826_vm0, 0.16666666, %v6760_v54  ;;  %vm2925_vm1 = vcmp.eq.s32.totalorder %v8792_v16, %v7409_v19  ;;  %vm2926_vm2 = vcmp.eq.s32.totalorder %v8795_v8, %v7409_v19 }
 0x341   : > { %v2389_v28 = vadd.f32 %v2357_v17, %v2289_v29  ;;  %v2390_v9 = vadd.f32 %v2358_v61, %v2290_v55  ;;  %v2957_v12 = vsel %vm2925_vm1, 0.015857518, %v6760_v54  ;;  %v2958_v11 = vsel %vm2926_vm2, 0.015857518, %v6760_v54 }
 0x342   : > { %vm3025_vm3 = vcmp.eq.s32.totalorder %v8792_v16, %v7413_v22  ;;  %vm3026_vm4 = vcmp.eq.s32.totalorder %v8795_v8, %v7413_v22  ;;  %vm3125_vm5 = vcmp.eq.s32.totalorder %v8792_v16, %v7417_v23  ;;  %vm3126_vm6 = vcmp.eq.s32.totalorder %v8795_v8, %v7417_v23 }
 0x343   : > { %v2489_v41 = vadd.f32 %v2457_v24, %v2389_v28  ;;  %v2490_v13 = vadd.f32 %v2458_v53, %v2390_v9  ;;  %v3057_v5 = vsel %vm3025_vm3, 0.0003613308, %v6760_v54  ;;  %v3058_v56 = vsel %vm3026_vm4, 0.0003613308, %v6760_v54 }
 0x344   : > { %v3157_v50 = vsel %vm3125_vm5, 0.015857518, %v6760_v54  ;;  %v3158_v51 = vsel %vm3126_vm6, 0.015857518, %v6760_v54  ;;  %vm3225_vm7 = vcmp.eq.s32.totalorder %v8792_v16, %v7443_v6  ;;  %vm3226_vm8 = vcmp.eq.s32.totalorder %v8795_v8, %v7443_v6 }
 0x345   : > { %v2589_v15 = vadd.f32 %v2557_v49, %v2489_v41  ;;  %v2590_v7 = vadd.f32 %v2558_v10, %v2490_v13  ;;  %v3257_v14 = vsel %vm3225_vm7, 0.0003613308, %v6760_v54  ;;  %v3258_v17 = vsel %vm3226_vm8, 0.0003613308, %v6760_v54 }
 0x346   : > { %vm611_vm9 = vcmp.eq.s32.totalorder %v8798_v36, %v7156_v43  ;;  %vm612_vm10 = vcmp.eq.s32.totalorder %v8801_v21, %v7156_v43  ;;  %vm711_vm11 = vcmp.eq.s32.totalorder %v8798_v36, %v7172_v48  ;;  %vm712_vm12 = vcmp.eq.s32.totalorder %v8801_v21, %v7172_v48 }
 0x347   : > { %v2689_v16 = vadd.f32 %v2657_v30, %v2589_v15  ;;  %v2690_v8 = vadd.f32 %v2658_v62, %v2590_v7  ;;  %v643_v61 = vsel %vm611_vm9, 0.0003613308, %v6760_v54  ;;  %v644_v4 = vsel %vm612_vm10, 0.0003613308, %v6760_v54 }
 0x348   : > { %v743_v40 = vsel %vm711_vm11, 0.015857518, %v6760_v54  ;;  %v744_v24 = vsel %vm712_vm12, 0.015857518, %v6760_v54  ;;  %vm811_vm13 = vcmp.eq.s32.totalorder %v8798_v36, %v7189_v52  ;;  %vm812_vm14 = vcmp.eq.s32.totalorder %v8801_v21, %v7189_v52 }
 0x349   : > { %v2789_v53 = vadd.f32 %v2757_v47, %v2689_v16  ;;  %v2790_v49 = vadd.f32 %v2758_v44, %v2690_v8  ;;  %v775_v10 = vadd.f32 %v743_v40, %v643_v61  ;;  %v776_v20 = vadd.f32 %v744_v24, %v644_v4 }
 0x34a   : > { %v843_v35 = vsel %vm811_vm13, 0.0003613308, %v6760_v54  ;;  %v844_v30 = vsel %vm812_vm14, 0.0003613308, %v6760_v54  ;;  %vm911_vm15 = vcmp.eq.s32.totalorder %v8798_v36, %v7211_v0  ;;  %vm912_vm0 = vcmp.eq.s32.totalorder %v8801_v21, %v7211_v0 }
 0x34b   : > { %v2889_v62 = vadd.f32 %v2857_v42, %v2789_v53  ;;  %v2890_v29 = vadd.f32 %v2858_v25, %v2790_v49  ;;  %v875_v55 = vadd.f32 %v843_v35, %v775_v10  ;;  %v876_v28 = vadd.f32 %v844_v30, %v776_v20 }
 0x34c   : > { %v943_v9 = vsel %vm911_vm15, 0.015857518, %v6760_v54  ;;  %v944_v47 = vsel %vm912_vm0, 0.015857518, %v6760_v54  ;;  %vm1011_vm1 = vcmp.eq.s32.totalorder %v8798_v36, %v7215_v1  ;;  %vm1012_vm2 = vcmp.eq.s32.totalorder %v8801_v21, %v7215_v1 }
 0x34d   : > { %v2989_v44 = vadd.f32 %v2957_v12, %v2889_v62  ;;  %v2990_v41 = vadd.f32 %v2958_v11, %v2890_v29  ;;  %v975_v13 = vadd.f32 %v943_v9, %v875_v55  ;;  %v976_v15 = vadd.f32 %v944_v47, %v876_v28 }
 0x34e   : > { %v1043_v7 = vsel %vm1011_vm1, 0.16666666, %v6760_v54  ;;  %v1044_v42 = vsel %vm1012_vm2, 0.16666666, %v6760_v54  ;;  %vm1111_vm3 = vcmp.eq.s32.totalorder %v8798_v36, %v7219_v2  ;;  %vm1112_vm4 = vcmp.eq.s32.totalorder %v8801_v21, %v7219_v2 }
 0x34f   : > { %v3089_v25 = vadd.f32 %v3057_v5, %v2989_v44  ;;  %v3090_v16 = vadd.f32 %v3058_v56, %v2990_v41  ;;  %v1075_v8 = vadd.f32 %v1043_v7, %v975_v13  ;;  %v1076_v61 = vadd.f32 %v1044_v42, %v976_v15 }
 0x350   : > { %v1143_v4 = vsel %vm1111_vm3, 0.015857518, %v6760_v54  ;;  %v1144_v12 = vsel %vm1112_vm4, 0.015857518, %v6760_v54  ;;  %vm1211_vm5 = vcmp.eq.s32.totalorder %v8798_v36, %v7223_v3  ;;  %vm1212_vm6 = vcmp.eq.s32.totalorder %v8801_v21, %v7223_v3 }
 0x351   : > { %v3189_v11 = vadd.f32 %v3157_v50, %v3089_v25  ;;  %v3190_v40 = vadd.f32 %v3158_v51, %v3090_v16  ;;  %v1175_v24 = vadd.f32 %v1143_v4, %v1075_v8  ;;  %v1176_v53 = vadd.f32 %v1144_v12, %v1076_v61 }
 0x352   : > { %v1243_v49 = vsel %vm1211_vm5, 0.0003613308, %v6760_v54  ;;  %v1244_v5 = vsel %vm1212_vm6, 0.0003613308, %v6760_v54  ;;  %vm1311_vm7 = vcmp.eq.s32.totalorder %v8798_v36, %v7259_v26  ;;  %vm1312_vm8 = vcmp.eq.s32.totalorder %v8801_v21, %v7259_v26 }
 0x353   : > { %v3289_v56 = vadd.f32 %v3257_v14, %v3189_v11  ;;  %v3290_v10 = vadd.f32 %v3258_v17, %v3190_v40  ;;  %v1275_v20 = vadd.f32 %v1243_v49, %v1175_v24  ;;  %v1276_v35 = vadd.f32 %v1244_v5, %v1176_v53 }
 0x354   : > { %v1343_v30 = vsel %vm1311_vm7, 0.015857518, %v6760_v54  ;;  %v1344_v50 = vsel %vm1312_vm8, 0.015857518, %v6760_v54  ;;  %vm1411_vm9 = vcmp.eq.s32.totalorder %v8798_v36, %v7163_v45  ;;  %vm1412_vm10 = vcmp.eq.s32.totalorder %v8801_v21, %v7163_v45 }
 0x355   : > { %v3341_v51 = vpack.c.bf16 %v3290_v10, %v3289_v56  ;;  %v1375_v62 = vadd.f32 %v1343_v30, %v1275_v20  ;;  %v1376_v29 = vadd.f32 %v1344_v50, %v1276_v35  ;;  %v1443_v55 = vsel %vm1411_vm9, 0.0003613308, %v6760_v54 }
 0x356   : > { %v1444_v14 = vsel %vm1412_vm10, 0.0003613308, %v6760_v54  ;;  %vm1511_vm11 = vcmp.eq.s32.totalorder %v8798_v36, %v7265_v27  ;;  %vm1512_vm12 = vcmp.eq.s32.totalorder %v8801_v21, %v7265_v27  ;;  %vm1611_vm13 = vcmp.eq.s32.totalorder %v8798_v36, %v7270_v31 }
 0x357   : > { %6197 = vmatprep.mubr.bf16.mxu1 %v3341_v51  ;;  %v1475_v17 = vadd.f32 %v1443_v55, %v1375_v62  ;;  %v1476_v28 = vadd.f32 %v1444_v14, %v1376_v29  ;;  %v1543_v9 = vsel %vm1511_vm11, 0.015857518, %v6760_v54  ;;  %v1544_v47 = vsel %vm1512_vm12, 0.015857518, %v6760_v54 }
 0x358   : > { %vm1612_vm14 = vcmp.eq.s32.totalorder %v8801_v21, %v7270_v31  ;;  %v1643_v44 = vsel %vm1611_vm13, 0.16666666, %v6760_v54  ;;  %vm1711_vm15 = vcmp.eq.s32.totalorder %v8798_v36, %v7293_v57  ;;  %vm1712_vm0 = vcmp.eq.s32.totalorder %v8801_v21, %v7293_v57 }
 0x359   : > { %v1575_v41 = vadd.f32 %v1543_v9, %v1475_v17  ;;  %v1576_v13 = vadd.f32 %v1544_v47, %v1476_v28  ;;  %v1644_v15 = vsel %vm1612_vm14, 0.16666666, %v6760_v54  ;;  %v1743_v7 = vsel %vm1711_vm15, 0.015857518, %v6760_v54 }
 0x35a   : > { %v1744_v42 = vsel %vm1712_vm0, 0.015857518, %v6760_v54  ;;  %vm1811_vm1 = vcmp.eq.s32.totalorder %v8798_v36, %v7297_v58  ;;  %vm1812_vm2 = vcmp.eq.s32.totalorder %v8801_v21, %v7297_v58  ;;  %vm1911_vm3 = vcmp.eq.s32.totalorder %v8798_v36, %v7301_v59 }
 0x35b   : > { %v1675_v25 = vadd.f32 %v1643_v44, %v1575_v41  ;;  %v1676_v16 = vadd.f32 %v1644_v15, %v1576_v13  ;;  %v1843_v8 = vsel %vm1811_vm1, 0.16666666, %v6760_v54  ;;  %v1844_v61 = vsel %vm1812_vm2, 0.16666666, %v6760_v54 }
 0x35c   : > { %vm1912_vm4 = vcmp.eq.s32.totalorder %v8801_v21, %v7301_v59  ;;  %v1943_v4 = vsel %vm1911_vm3, 1.0, %v6760_v54  ;;  %vm2011_vm5 = vcmp.eq.s32.totalorder %v8798_v36, %v7305_v60  ;;  %vm2012_vm6 = vcmp.eq.s32.totalorder %v8801_v21, %v7305_v60 }
 0x35d   : > { %v1775_v12 = vadd.f32 %v1743_v7, %v1675_v25  ;;  %v1776_v11 = vadd.f32 %v1744_v42, %v1676_v16  ;;  %v1944_v40 = vsel %vm1912_vm4, 1.0, %v6760_v54  ;;  %v2043_v24 = vsel %vm2011_vm5, 0.16666666, %v6760_v54 }
 0x35e   : > { %v2044_v53 = vsel %vm2012_vm6, 0.16666666, %v6760_v54  ;;  %vm2111_vm7 = vcmp.eq.s32.totalorder %v8798_v36, %v7309_v63  ;;  %vm2112_vm8 = vcmp.eq.s32.totalorder %v8801_v21, %v7309_v63  ;;  %vm2211_vm9 = vcmp.eq.s32.totalorder %v8798_v36, %v7167_v46 }
 0x35f   : > { %v1875_v49 = vadd.f32 %v1843_v8, %v1775_v12  ;;  %v1876_v5 = vadd.f32 %v1844_v61, %v1776_v11  ;;  %v2143_v56 = vsel %vm2111_vm7, 0.015857518, %v6760_v54  ;;  %v2144_v10 = vsel %vm2112_vm8, 0.015857518, %v6760_v54 }
 0x360   : > { %vm2212_vm10 = vcmp.eq.s32.totalorder %v8801_v21, %v7167_v46  ;;  %v2243_v20 = vsel %vm2211_vm9, 0.16666666, %v6760_v54  ;;  %vm2311_vm11 = vcmp.eq.s32.totalorder %v8798_v36, %v7355_v32  ;;  %vm2312_vm12 = vcmp.eq.s32.totalorder %v8801_v21, %v7355_v32 }
 0x361   : > { %v1975_v35 = vadd.f32 %v1943_v4, %v1875_v49  ;;  %v1976_v30 = vadd.f32 %v1944_v40, %v1876_v5  ;;  %v2244_v50 = vsel %vm2212_vm10, 0.16666666, %v6760_v54  ;;  %v2343_v51 = vsel %vm2311_vm11, 0.015857518, %v6760_v54 }
 0x362   : > { %v2344_v62 = vsel %vm2312_vm12, 0.015857518, %v6760_v54  ;;  %vm2411_vm13 = vcmp.eq.s32.totalorder %v8798_v36, %v7359_v33  ;;  %vm2412_vm14 = vcmp.eq.s32.totalorder %v8801_v21, %v7359_v33  ;;  %vm2511_vm15 = vcmp.eq.s32.totalorder %v8798_v36, %v7363_v34 }
 0x363   : > { %v2075_v29 = vadd.f32 %v2043_v24, %v1975_v35  ;;  %v2076_v55 = vadd.f32 %v2044_v53, %v1976_v30  ;;  %v2443_v14 = vsel %vm2411_vm13, 0.0003613308, %v6760_v54  ;;  %v2444_v17 = vsel %vm2412_vm14, 0.0003613308, %v6760_v54 }
 0x364   : > { %vm2512_vm0 = vcmp.eq.s32.totalorder %v8801_v21, %v7363_v34  ;;  %v2543_v28 = vsel %vm2511_vm15, 0.015857518, %v6760_v54  ;;  %vm2611_vm1 = vcmp.eq.s32.totalorder %v8798_v36, %v7367_v37  ;;  %vm2612_vm2 = vcmp.eq.s32.totalorder %v8801_v21, %v7367_v37 }
 0x365   : > { %v2175_v9 = vadd.f32 %v2143_v56, %v2075_v29  ;;  %v2176_v47 = vadd.f32 %v2144_v10, %v2076_v55  ;;  %v2544_v44 = vsel %vm2512_vm0, 0.015857518, %v6760_v54  ;;  %v2643_v41 = vsel %vm2611_vm1, 0.0003613308, %v6760_v54 }
 0x366   : > { %v2644_v13 = vsel %vm2612_vm2, 0.0003613308, %v6760_v54  ;;  %vm2711_vm3 = vcmp.eq.s32.totalorder %v8798_v36, %v7371_v39  ;;  %vm2712_vm4 = vcmp.eq.s32.totalorder %v8801_v21, %v7371_v39  ;;  %vm2811_vm5 = vcmp.eq.s32.totalorder %v8798_v36, %v7405_v18 }
 0x367   : > { %v2275_v15 = vadd.f32 %v2243_v20, %v2175_v9  ;;  %v2276_v7 = vadd.f32 %v2244_v50, %v2176_v47  ;;  %v2743_v42 = vsel %vm2711_vm3, 0.015857518, %v6760_v54  ;;  %v2744_v25 = vsel %vm2712_vm4, 0.015857518, %v6760_v54 }
 0x368   : > { %vm2812_vm6 = vcmp.eq.s32.totalorder %v8801_v21, %v7405_v18  ;;  %v2843_v16 = vsel %vm2811_vm5, 0.16666666, %v6760_v54  ;;  %vm2911_vm7 = vcmp.eq.s32.totalorder %v8798_v36, %v7409_v19  ;;  %vm2912_vm8 = vcmp.eq.s32.totalorder %v8801_v21, %v7409_v19 }
 0x369   : > { %v2375_v8 = vadd.f32 %v2343_v51, %v2275_v15  ;;  %v2376_v61 = vadd.f32 %v2344_v62, %v2276_v7  ;;  %v2844_v4 = vsel %vm2812_vm6, 0.16666666, %v6760_v54  ;;  %v2943_v12 = vsel %vm2911_vm7, 0.015857518, %v6760_v54 }
 0x36a   : > { %v2944_v11 = vsel %vm2912_vm8, 0.015857518, %v6760_v54  ;;  %vm3011_vm9 = vcmp.eq.s32.totalorder %v8798_v36, %v7413_v22  ;;  %vm3012_vm10 = vcmp.eq.s32.totalorder %v8801_v21, %v7413_v22  ;;  %vm3111_vm11 = vcmp.eq.s32.totalorder %v8798_v36, %v7417_v23 }
 0x36b   : > { %v2475_v40 = vadd.f32 %v2443_v14, %v2375_v8  ;;  %v2476_v24 = vadd.f32 %v2444_v17, %v2376_v61  ;;  %v3043_v53 = vsel %vm3011_vm9, 0.0003613308, %v6760_v54  ;;  %v3044_v49 = vsel %vm3012_vm10, 0.0003613308, %v6760_v54 }
 0x36c   : > { %vm3112_vm12 = vcmp.eq.s32.totalorder %v8801_v21, %v7417_v23  ;;  %v3143_v5 = vsel %vm3111_vm11, 0.015857518, %v6760_v54  ;;  %vm3211_vm13 = vcmp.eq.s32.totalorder %v8798_v36, %v7443_v6  ;;  %vm3212_vm14 = vcmp.eq.s32.totalorder %v8801_v21, %v7443_v6 }
 0x36d   : > { %v2575_v56 = vadd.f32 %v2543_v28, %v2475_v40  ;;  %v2576_v10 = vadd.f32 %v2544_v44, %v2476_v24  ;;  %v3144_v20 = vsel %vm3112_vm12, 0.015857518, %v6760_v54  ;;  %v3243_v35 = vsel %vm3211_vm13, 0.0003613308, %v6760_v54 }
 0x36e   : > { %v3244_v30 = vsel %vm3212_vm14, 0.0003613308, %v6760_v54  ;;  %v9128_v50 = vadd.s32 208, %v7142_v38  ;;  %v9131_v51 = vadd.s32 216, %v7142_v38  ;;  %v9134_v62 = vadd.s32 96, %v7142_v38 }
 0x36f   : > { %v2675_v36 = vadd.f32 %v2643_v41, %v2575_v56  ;;  %v2676_v29 = vadd.f32 %v2644_v13, %v2576_v10  ;;  %v9137_v21 = vadd.s32 104, %v7142_v38  ;;  %v9140_v55 = vadd.s32 224, %v7142_v38 }
 0x370   : > { %vm627_vm15 = vcmp.eq.s32.totalorder %v9128_v50, %v7156_v43  ;;  %vm628_vm0 = vcmp.eq.s32.totalorder %v9131_v51, %v7156_v43  ;;  %vm727_vm1 = vcmp.eq.s32.totalorder %v9128_v50, %v7172_v48  ;;  %vm728_vm2 = vcmp.eq.s32.totalorder %v9131_v51, %v7172_v48 }
 0x371   : > { %v2775_v14 = vadd.f32 %v2743_v42, %v2675_v36  ;;  %v2776_v17 = vadd.f32 %v2744_v25, %v2676_v29  ;;  %v659_v28 = vsel %vm627_vm15, 0.0003613308, %v6760_v54  ;;  %v660_v9 = vsel %vm628_vm0, 0.0003613308, %v6760_v54 }
 0x372   : > { %v759_v47 = vsel %vm727_vm1, 0.015857518, %v6760_v54  ;;  %v760_v44 = vsel %vm728_vm2, 0.015857518, %v6760_v54  ;;  %vm827_vm3 = vcmp.eq.s32.totalorder %v9128_v50, %v7189_v52  ;;  %vm828_vm4 = vcmp.eq.s32.totalorder %v9131_v51, %v7189_v52 }
 0x373   : > { %v2875_v41 = vadd.f32 %v2843_v16, %v2775_v14  ;;  %v2876_v13 = vadd.f32 %v2844_v4, %v2776_v17  ;;  %v791_v15 = vadd.f32 %v759_v47, %v659_v28  ;;  %v792_v7 = vadd.f32 %v760_v44, %v660_v9 }
 0x374   : > { %v859_v42 = vsel %vm827_vm3, 0.0003613308, %v6760_v54  ;;  %v860_v25 = vsel %vm828_vm4, 0.0003613308, %v6760_v54  ;;  %vm927_vm5 = vcmp.eq.s32.totalorder %v9128_v50, %v7211_v0  ;;  %vm928_vm6 = vcmp.eq.s32.totalorder %v9131_v51, %v7211_v0 }
 0x375   : > { %v2975_v8 = vadd.f32 %v2943_v12, %v2875_v41  ;;  %v2976_v61 = vadd.f32 %v2944_v11, %v2876_v13  ;;  %v891_v40 = vadd.f32 %v859_v42, %v791_v15  ;;  %v892_v24 = vadd.f32 %v860_v25, %v792_v7 }
 0x376   : > { %v959_v56 = vsel %vm927_vm5, 0.015857518, %v6760_v54  ;;  %v960_v16 = vsel %vm928_vm6, 0.015857518, %v6760_v54  ;;  %vm1027_vm7 = vcmp.eq.s32.totalorder %v9128_v50, %v7215_v1  ;;  %vm1028_vm8 = vcmp.eq.s32.totalorder %v9131_v51, %v7215_v1 }
 0x377   : > { %v3075_v4 = vadd.f32 %v3043_v53, %v2975_v8  ;;  %v3076_v10 = vadd.f32 %v3044_v49, %v2976_v61  ;;  %v991_v36 = vadd.f32 %v959_v56, %v891_v40  ;;  %v992_v29 = vadd.f32 %v960_v16, %v892_v24 }
 0x378   : > { %v1059_v14 = vsel %vm1027_vm7, 0.16666666, %v6760_v54  ;;  %v1060_v12 = vsel %vm1028_vm8, 0.16666666, %v6760_v54  ;;  %vm1127_vm9 = vcmp.eq.s32.totalorder %v9128_v50, %v7219_v2  ;;  %vm1128_vm10 = vcmp.eq.s32.totalorder %v9131_v51, %v7219_v2 }
 0x379   : > { %v3175_v11 = vadd.f32 %v3143_v5, %v3075_v4  ;;  %v3176_v17 = vadd.f32 %v3144_v20, %v3076_v10  ;;  %v1091_v28 = vadd.f32 %v1059_v14, %v991_v36  ;;  %v1092_v9 = vadd.f32 %v1060_v12, %v992_v29 }
 0x37a   : > { %v1159_v47 = vsel %vm1127_vm9, 0.015857518, %v6760_v54  ;;  %v1160_v53 = vsel %vm1128_vm10, 0.015857518, %v6760_v54  ;;  %vm1227_vm11 = vcmp.eq.s32.totalorder %v9128_v50, %v7223_v3  ;;  %vm1228_vm12 = vcmp.eq.s32.totalorder %v9131_v51, %v7223_v3 }
 0x37b   : > { %v3275_v49 = vadd.f32 %v3243_v35, %v3175_v11  ;;  %v3276_v44 = vadd.f32 %v3244_v30, %v3176_v17  ;;  %v1191_v41 = vadd.f32 %v1159_v47, %v1091_v28  ;;  %v1192_v13 = vadd.f32 %v1160_v53, %v1092_v9 }
 0x37c   : > { %v1259_v15 = vsel %vm1227_vm11, 0.0003613308, %v6760_v54  ;;  %v1260_v5 = vsel %vm1228_vm12, 0.0003613308, %v6760_v54  ;;  %vm1327_vm13 = vcmp.eq.s32.totalorder %v9128_v50, %v7259_v26  ;;  %vm1328_vm14 = vcmp.eq.s32.totalorder %v9131_v51, %v7259_v26 }
 0x37d   : > { %v3334_v20 = vpack.c.bf16 %v3276_v44, %v3275_v49  ;;  %v1291_v7 = vadd.f32 %v1259_v15, %v1191_v41  ;;  %v1292_v42 = vadd.f32 %v1260_v5, %v1192_v13  ;;  %v1359_v25 = vsel %vm1327_vm13, 0.015857518, %v6760_v54 }
 0x37e   : > { %v1360_v35 = vsel %vm1328_vm14, 0.015857518, %v6760_v54  ;;  %vm1427_vm15 = vcmp.eq.s32.totalorder %v9128_v50, %v7163_v45  ;;  %vm1428_vm0 = vcmp.eq.s32.totalorder %v9131_v51, %v7163_v45  ;;  %vm1527_vm1 = vcmp.eq.s32.totalorder %v9128_v50, %v7265_v27 }
 0x37f   : > { %6182 = vmatmul.mubr.bf16.gmra.mrb[8].mxu0 %v3334_v20  ;;  %v1391_v30 = vadd.f32 %v1359_v25, %v1291_v7  ;;  %v1392_v8 = vadd.f32 %v1360_v35, %v1292_v42  ;;  %v1459_v61 = vsel %vm1427_vm15, 0.0003613308, %v6760_v54  ;;  %v1460_v40 = vsel %vm1428_vm0, 0.0003613308, %v6760_v54 }
 0x380   : > { %vm1528_vm2 = vcmp.eq.s32.totalorder %v9131_v51, %v7265_v27  ;;  %v1559_v24 = vsel %vm1527_vm1, 0.015857518, %v6760_v54  ;;  %vm1627_vm3 = vcmp.eq.s32.totalorder %v9128_v50, %v7270_v31  ;;  %vm1628_vm4 = vcmp.eq.s32.totalorder %v9131_v51, %v7270_v31 }
 0x381   : > { %v1491_v56 = vadd.f32 %v1459_v61, %v1391_v30  ;;  %v1492_v16 = vadd.f32 %v1460_v40, %v1392_v8  ;;  %v1560_v4 = vsel %vm1528_vm2, 0.015857518, %v6760_v54  ;;  %v1659_v10 = vsel %vm1627_vm3, 0.16666666, %v6760_v54 }
 0x382   : > { %v1660_v36 = vsel %vm1628_vm4, 0.16666666, %v6760_v54  ;;  %vm1727_vm5 = vcmp.eq.s32.totalorder %v9128_v50, %v7293_v57  ;;  %vm1728_vm6 = vcmp.eq.s32.totalorder %v9131_v51, %v7293_v57  ;;  %vm1827_vm7 = vcmp.eq.s32.totalorder %v9128_v50, %v7297_v58 }
 0x383   : > { %v1591_v29 = vadd.f32 %v1559_v24, %v1491_v56  ;;  %v1592_v14 = vadd.f32 %v1560_v4, %v1492_v16  ;;  %v1759_v12 = vsel %vm1727_vm5, 0.015857518, %v6760_v54  ;;  %v1760_v11 = vsel %vm1728_vm6, 0.015857518, %v6760_v54 }
 0x384   : > { %vm1828_vm8 = vcmp.eq.s32.totalorder %v9131_v51, %v7297_v58  ;;  %v1859_v17 = vsel %vm1827_vm7, 0.16666666, %v6760_v54  ;;  %vm1927_vm9 = vcmp.eq.s32.totalorder %v9128_v50, %v7301_v59  ;;  %vm1928_vm10 = vcmp.eq.s32.totalorder %v9131_v51, %v7301_v59 }
 0x385   : > { %v1691_v28 = vadd.f32 %v1659_v10, %v1591_v29  ;;  %v1692_v9 = vadd.f32 %v1660_v36, %v1592_v14  ;;  %v1860_v47 = vsel %vm1828_vm8, 0.16666666, %v6760_v54  ;;  %v1959_v53 = vsel %vm1927_vm9, 1.0, %v6760_v54 }
 0x386   : > { %v1960_v49 = vsel %vm1928_vm10, 1.0, %v6760_v54  ;;  %vm2027_vm11 = vcmp.eq.s32.totalorder %v9128_v50, %v7305_v60  ;;  %vm2028_vm12 = vcmp.eq.s32.totalorder %v9131_v51, %v7305_v60  ;;  %vm2127_vm13 = vcmp.eq.s32.totalorder %v9128_v50, %v7309_v63 }
 0x387   : > { %v1791_v44 = vadd.f32 %v1759_v12, %v1691_v28  ;;  %v1792_v41 = vadd.f32 %v1760_v11, %v1692_v9  ;;  %v2059_v13 = vsel %vm2027_vm11, 0.16666666, %v6760_v54  ;;  %v2060_v15 = vsel %vm2028_vm12, 0.16666666, %v6760_v54 }
 0x388   : > { %vm2128_vm14 = vcmp.eq.s32.totalorder %v9131_v51, %v7309_v63  ;;  %v2159_v5 = vsel %vm2127_vm13, 0.015857518, %v6760_v54  ;;  %vm2227_vm15 = vcmp.eq.s32.totalorder %v9128_v50, %v7167_v46  ;;  %vm2228_vm0 = vcmp.eq.s32.totalorder %v9131_v51, %v7167_v46 }
 0x389   : > { %v1891_v20 = vadd.f32 %v1859_v17, %v1791_v44  ;;  %v1892_v7 = vadd.f32 %v1860_v47, %v1792_v41  ;;  %v2160_v42 = vsel %vm2128_vm14, 0.015857518, %v6760_v54  ;;  %v2259_v25 = vsel %vm2227_vm15, 0.16666666, %v6760_v54 }
 0x38a   : > { %v2260_v35 = vsel %vm2228_vm0, 0.16666666, %v6760_v54  ;;  %vm2327_vm1 = vcmp.eq.s32.totalorder %v9128_v50, %v7355_v32  ;;  %vm2328_vm2 = vcmp.eq.s32.totalorder %v9131_v51, %v7355_v32  ;;  %vm2427_vm3 = vcmp.eq.s32.totalorder %v9128_v50, %v7359_v33 }
 0x38b   : > { %v1991_v30 = vadd.f32 %v1959_v53, %v1891_v20  ;;  %v1992_v8 = vadd.f32 %v1960_v49, %v1892_v7  ;;  %v2359_v61 = vsel %vm2327_vm1, 0.015857518, %v6760_v54  ;;  %v2360_v40 = vsel %vm2328_vm2, 0.015857518, %v6760_v54 }
 0x38c   : > { %vm2428_vm4 = vcmp.eq.s32.totalorder %v9131_v51, %v7359_v33  ;;  %v2459_v24 = vsel %vm2427_vm3, 0.0003613308, %v6760_v54  ;;  %vm2527_vm5 = vcmp.eq.s32.totalorder %v9128_v50, %v7363_v34  ;;  %vm2528_vm6 = vcmp.eq.s32.totalorder %v9131_v51, %v7363_v34 }
 0x38d   : > { %v2091_v56 = vadd.f32 %v2059_v13, %v1991_v30  ;;  %v2092_v16 = vadd.f32 %v2060_v15, %v1992_v8  ;;  %v2460_v4 = vsel %vm2428_vm4, 0.0003613308, %v6760_v54  ;;  %v2559_v10 = vsel %vm2527_vm5, 0.015857518, %v6760_v54 }
 0x38e   : > { %v2560_v36 = vsel %vm2528_vm6, 0.015857518, %v6760_v54  ;;  %vm2627_vm7 = vcmp.eq.s32.totalorder %v9128_v50, %v7367_v37  ;;  %vm2628_vm8 = vcmp.eq.s32.totalorder %v9131_v51, %v7367_v37  ;;  %vm2727_vm9 = vcmp.eq.s32.totalorder %v9128_v50, %v7371_v39 }
 0x38f   : > { %v2191_v29 = vadd.f32 %v2159_v5, %v2091_v56  ;;  %v2192_v14 = vadd.f32 %v2160_v42, %v2092_v16  ;;  %v2659_v12 = vsel %vm2627_vm7, 0.0003613308, %v6760_v54  ;;  %v2660_v11 = vsel %vm2628_vm8, 0.0003613308, %v6760_v54 }
 0x390   : > { %vm2728_vm10 = vcmp.eq.s32.totalorder %v9131_v51, %v7371_v39  ;;  %v2759_v17 = vsel %vm2727_vm9, 0.015857518, %v6760_v54  ;;  %vm2827_vm11 = vcmp.eq.s32.totalorder %v9128_v50, %v7405_v18  ;;  %vm2828_vm12 = vcmp.eq.s32.totalorder %v9131_v51, %v7405_v18 }
 0x391   : > { %v2291_v28 = vadd.f32 %v2259_v25, %v2191_v29  ;;  %v2292_v9 = vadd.f32 %v2260_v35, %v2192_v14  ;;  %v2760_v47 = vsel %vm2728_vm10, 0.015857518, %v6760_v54  ;;  %v2859_v53 = vsel %vm2827_vm11, 0.16666666, %v6760_v54 }
 0x392   : > { %v2860_v49 = vsel %vm2828_vm12, 0.16666666, %v6760_v54  ;;  %vm2927_vm13 = vcmp.eq.s32.totalorder %v9128_v50, %v7409_v19  ;;  %vm2928_vm14 = vcmp.eq.s32.totalorder %v9131_v51, %v7409_v19  ;;  %vm3027_vm15 = vcmp.eq.s32.totalorder %v9128_v50, %v7413_v22 }
 0x393   : > { %v2391_v44 = vadd.f32 %v2359_v61, %v2291_v28  ;;  %v2392_v41 = vadd.f32 %v2360_v40, %v2292_v9  ;;  %v2959_v13 = vsel %vm2927_vm13, 0.015857518, %v6760_v54  ;;  %v2960_v15 = vsel %vm2928_vm14, 0.015857518, %v6760_v54 }
 0x394   : > { %vm3028_vm0 = vcmp.eq.s32.totalorder %v9131_v51, %v7413_v22  ;;  %v3059_v5 = vsel %vm3027_vm15, 0.0003613308, %v6760_v54  ;;  %vm3127_vm1 = vcmp.eq.s32.totalorder %v9128_v50, %v7417_v23  ;;  %vm3128_vm2 = vcmp.eq.s32.totalorder %v9131_v51, %v7417_v23 }
 0x395   : > { %v2491_v20 = vadd.f32 %v2459_v24, %v2391_v44  ;;  %v2492_v7 = vadd.f32 %v2460_v4, %v2392_v41  ;;  %v3060_v42 = vsel %vm3028_vm0, 0.0003613308, %v6760_v54  ;;  %v3159_v25 = vsel %vm3127_vm1, 0.015857518, %v6760_v54 }
 0x396   : > { %v3160_v35 = vsel %vm3128_vm2, 0.015857518, %v6760_v54  ;;  %vm3227_vm3 = vcmp.eq.s32.totalorder %v9128_v50, %v7443_v6  ;;  %vm3228_vm4 = vcmp.eq.s32.totalorder %v9131_v51, %v7443_v6  ;;  %vm613_vm5 = vcmp.eq.s32.totalorder %v9134_v62, %v7156_v43 }
 0x397   : > { %v2591_v30 = vadd.f32 %v2559_v10, %v2491_v20  ;;  %v2592_v8 = vadd.f32 %v2560_v36, %v2492_v7  ;;  %v3259_v61 = vsel %vm3227_vm3, 0.0003613308, %v6760_v54  ;;  %v3260_v40 = vsel %vm3228_vm4, 0.0003613308, %v6760_v54 }
 0x398   : > { %vm614_vm6 = vcmp.eq.s32.totalorder %v9137_v21, %v7156_v43  ;;  %v645_v24 = vsel %vm613_vm5, 0.0003613308, %v6760_v54  ;;  %vm713_vm7 = vcmp.eq.s32.totalorder %v9134_v62, %v7172_v48  ;;  %vm714_vm8 = vcmp.eq.s32.totalorder %v9137_v21, %v7172_v48 }
 0x399   : > { %v2691_v50 = vadd.f32 %v2659_v12, %v2591_v30  ;;  %v2692_v51 = vadd.f32 %v2660_v11, %v2592_v8  ;;  %v646_v56 = vsel %vm614_vm6, 0.0003613308, %v6760_v54  ;;  %v745_v16 = vsel %vm713_vm7, 0.015857518, %v6760_v54 }
 0x39a   : > { %v746_v4 = vsel %vm714_vm8, 0.015857518, %v6760_v54  ;;  %v777_v10 = vadd.f32 %v745_v16, %v645_v24  ;;  %vm813_vm9 = vcmp.eq.s32.totalorder %v9134_v62, %v7189_v52  ;;  %vm814_vm10 = vcmp.eq.s32.totalorder %v9137_v21, %v7189_v52 }
 0x39b   : > { %v2791_v36 = vadd.f32 %v2759_v17, %v2691_v50  ;;  %v2792_v29 = vadd.f32 %v2760_v47, %v2692_v51  ;;  %v778_v14 = vadd.f32 %v746_v4, %v646_v56  ;;  %v845_v28 = vsel %vm813_vm9, 0.0003613308, %v6760_v54 }
 0x39c   : > { %v846_v12 = vsel %vm814_vm10, 0.0003613308, %v6760_v54  ;;  %v877_v11 = vadd.f32 %v845_v28, %v777_v10  ;;  %vm913_vm11 = vcmp.eq.s32.totalorder %v9134_v62, %v7211_v0  ;;  %vm914_vm12 = vcmp.eq.s32.totalorder %v9137_v21, %v7211_v0 }
 0x39d   : > { %v2891_v9 = vadd.f32 %v2859_v53, %v2791_v36  ;;  %v2892_v44 = vadd.f32 %v2860_v49, %v2792_v29  ;;  %v878_v41 = vadd.f32 %v846_v12, %v778_v14  ;;  %v945_v20 = vsel %vm913_vm11, 0.015857518, %v6760_v54 }
 0x39e   : > { %v946_v17 = vsel %vm914_vm12, 0.015857518, %v6760_v54  ;;  %v977_v47 = vadd.f32 %v945_v20, %v877_v11  ;;  %vm1013_vm13 = vcmp.eq.s32.totalorder %v9134_v62, %v7215_v1  ;;  %vm1014_vm14 = vcmp.eq.s32.totalorder %v9137_v21, %v7215_v1 }
 0x39f   : > { %v2991_v7 = vadd.f32 %v2959_v13, %v2891_v9  ;;  %v2992_v30 = vadd.f32 %v2960_v15, %v2892_v44  ;;  %v978_v8 = vadd.f32 %v946_v17, %v878_v41  ;;  %v1045_v24 = vsel %vm1013_vm13, 0.16666666, %v6760_v54 }
 0x3a0   : > { %v1046_v53 = vsel %vm1014_vm14, 0.16666666, %v6760_v54  ;;  %v1077_v49 = vadd.f32 %v1045_v24, %v977_v47  ;;  %vm1113_vm15 = vcmp.eq.s32.totalorder %v9134_v62, %v7219_v2  ;;  %vm1114_vm0 = vcmp.eq.s32.totalorder %v9137_v21, %v7219_v2 }
 0x3a1   : > { %v3091_v50 = vadd.f32 %v3059_v5, %v2991_v7  ;;  %v3092_v51 = vadd.f32 %v3060_v42, %v2992_v30  ;;  %v1078_v56 = vadd.f32 %v1046_v53, %v978_v8  ;;  %v1145_v16 = vsel %vm1113_vm15, 0.015857518, %v6760_v54 }
 0x3a2   : > { %v1146_v13 = vsel %vm1114_vm0, 0.015857518, %v6760_v54  ;;  %v1177_v15 = vadd.f32 %v1145_v16, %v1077_v49  ;;  %vm1213_vm1 = vcmp.eq.s32.totalorder %v9134_v62, %v7223_v3  ;;  %vm1214_vm2 = vcmp.eq.s32.totalorder %v9137_v21, %v7223_v3 }
 0x3a3   : > { %v3191_v4 = vadd.f32 %v3159_v25, %v3091_v50  ;;  %v3192_v10 = vadd.f32 %v3160_v35, %v3092_v51  ;;  %v1178_v36 = vadd.f32 %v1146_v13, %v1078_v56  ;;  %v1245_v29 = vsel %vm1213_vm1, 0.0003613308, %v6760_v54 }
 0x3a4   : > { %v1246_v5 = vsel %vm1214_vm2, 0.0003613308, %v6760_v54  ;;  %v1277_v42 = vadd.f32 %v1245_v29, %v1177_v15  ;;  %vm1313_vm3 = vcmp.eq.s32.totalorder %v9134_v62, %v7259_v26  ;;  %vm1314_vm4 = vcmp.eq.s32.totalorder %v9137_v21, %v7259_v26 }
 0x3a5   : > { %v3291_v14 = vadd.f32 %v3259_v61, %v3191_v4  ;;  %v3292_v28 = vadd.f32 %v3260_v40, %v3192_v10  ;;  %v1278_v12 = vadd.f32 %v1246_v5, %v1178_v36  ;;  %v1345_v11 = vsel %vm1313_vm3, 0.015857518, %v6760_v54 }
 0x3a6   : > { %v1346_v25 = vsel %vm1314_vm4, 0.015857518, %v6760_v54  ;;  %v1377_v35 = vadd.f32 %v1345_v11, %v1277_v42  ;;  %vm1413_vm5 = vcmp.eq.s32.totalorder %v9134_v62, %v7163_v45  ;;  %vm1414_vm6 = vcmp.eq.s32.totalorder %v9137_v21, %v7163_v45 }
 0x3a7   : > { %v3342_v9 = vpack.c.bf16 %v3292_v28, %v3291_v14  ;;  %v1378_v44 = vadd.f32 %v1346_v25, %v1278_v12  ;;  %v1445_v41 = vsel %vm1413_vm5, 0.0003613308, %v6760_v54  ;;  %v1446_v20 = vsel %vm1414_vm6, 0.0003613308, %v6760_v54 }
 0x3a8   : > { %v1477_v61 = vadd.f32 %v1445_v41, %v1377_v35  ;;  %vm1513_vm7 = vcmp.eq.s32.totalorder %v9134_v62, %v7265_v27  ;;  %vm1514_vm8 = vcmp.eq.s32.totalorder %v9137_v21, %v7265_v27  ;;  %vm1613_vm9 = vcmp.eq.s32.totalorder %v9134_v62, %v7270_v31 }
 0x3a9   : > { %6198 = vmatmul.mubr.bf16.gmra.mrb[8].mxu1 %v3342_v9  ;;  %v1478_v40 = vadd.f32 %v1446_v20, %v1378_v44  ;;  %v1545_v17 = vsel %vm1513_vm7, 0.015857518, %v6760_v54  ;;  %v1546_v47 = vsel %vm1514_vm8, 0.015857518, %v6760_v54  ;;  %vm1614_vm10 = vcmp.eq.s32.totalorder %v9137_v21, %v7270_v31 }
 0x3aa   : > { %v1577_v7 = vadd.f32 %v1545_v17, %v1477_v61  ;;  %v1645_v30 = vsel %vm1613_vm9, 0.16666666, %v6760_v54  ;;  %v1646_v8 = vsel %vm1614_vm10, 0.16666666, %v6760_v54  ;;  %vm1713_vm11 = vcmp.eq.s32.totalorder %v9134_v62, %v7293_v57 }
 0x3ab   : > { %v1578_v24 = vadd.f32 %v1546_v47, %v1478_v40  ;;  %vm1714_vm12 = vcmp.eq.s32.totalorder %v9137_v21, %v7293_v57  ;;  %v1745_v53 = vsel %vm1713_vm11, 0.015857518, %v6760_v54  ;;  %vm1813_vm13 = vcmp.eq.s32.totalorder %v9134_v62, %v7297_v58 }
 0x3ac   : > { %v1677_v49 = vadd.f32 %v1645_v30, %v1577_v7  ;;  %v1746_v50 = vsel %vm1714_vm12, 0.015857518, %v6760_v54  ;;  %vm1814_vm14 = vcmp.eq.s32.totalorder %v9137_v21, %v7297_v58  ;;  %v1845_v51 = vsel %vm1813_vm13, 0.16666666, %v6760_v54 }
 0x3ad   : > { %v1678_v56 = vadd.f32 %v1646_v8, %v1578_v24  ;;  %v1846_v16 = vsel %vm1814_vm14, 0.16666666, %v6760_v54  ;;  %vm1913_vm15 = vcmp.eq.s32.totalorder %v9134_v62, %v7301_v59  ;;  %vm1914_vm0 = vcmp.eq.s32.totalorder %v9137_v21, %v7301_v59 }
 0x3ae   : > { %v1777_v13 = vadd.f32 %v1745_v53, %v1677_v49  ;;  %v1945_v15 = vsel %vm1913_vm15, 1.0, %v6760_v54  ;;  %v1946_v4 = vsel %vm1914_vm0, 1.0, %v6760_v54  ;;  %vm2013_vm1 = vcmp.eq.s32.totalorder %v9134_v62, %v7305_v60 }
 0x3af   : > { %v1778_v10 = vadd.f32 %v1746_v50, %v1678_v56  ;;  %vm2014_vm2 = vcmp.eq.s32.totalorder %v9137_v21, %v7305_v60  ;;  %v2045_v36 = vsel %vm2013_vm1, 0.16666666, %v6760_v54  ;;  %vm2113_vm3 = vcmp.eq.s32.totalorder %v9134_v62, %v7309_v63 }
 0x3b0   : > { %v1877_v29 = vadd.f32 %v1845_v51, %v1777_v13  ;;  %v2046_v5 = vsel %vm2014_vm2, 0.16666666, %v6760_v54  ;;  %vm2114_vm4 = vcmp.eq.s32.totalorder %v9137_v21, %v7309_v63  ;;  %v2145_v42 = vsel %vm2113_vm3, 0.015857518, %v6760_v54 }
 0x3b1   : > { %v1878_v14 = vadd.f32 %v1846_v16, %v1778_v10  ;;  %v2146_v28 = vsel %vm2114_vm4, 0.015857518, %v6760_v54  ;;  %vm2213_vm5 = vcmp.eq.s32.totalorder %v9134_v62, %v7167_v46  ;;  %vm2214_vm6 = vcmp.eq.s32.totalorder %v9137_v21, %v7167_v46 }
 0x3b2   : > { %v1977_v12 = vadd.f32 %v1945_v15, %v1877_v29  ;;  %v2245_v11 = vsel %vm2213_vm5, 0.16666666, %v6760_v54  ;;  %v2246_v25 = vsel %vm2214_vm6, 0.16666666, %v6760_v54  ;;  %vm2313_vm7 = vcmp.eq.s32.totalorder %v9134_v62, %v7355_v32 }
 0x3b3   : > { %v1978_v35 = vadd.f32 %v1946_v4, %v1878_v14  ;;  %vm2314_vm8 = vcmp.eq.s32.totalorder %v9137_v21, %v7355_v32  ;;  %v2345_v9 = vsel %vm2313_vm7, 0.015857518, %v6760_v54  ;;  %vm2413_vm9 = vcmp.eq.s32.totalorder %v9134_v62, %v7359_v33 }
 0x3b4   : > { %v2077_v44 = vadd.f32 %v2045_v36, %v1977_v12  ;;  %v2346_v41 = vsel %vm2314_vm8, 0.015857518, %v6760_v54  ;;  %vm2414_vm10 = vcmp.eq.s32.totalorder %v9137_v21, %v7359_v33  ;;  %v2445_v20 = vsel %vm2413_vm9, 0.0003613308, %v6760_v54 }
 0x3b5   : > { %v2078_v61 = vadd.f32 %v2046_v5, %v1978_v35  ;;  %v2446_v40 = vsel %vm2414_vm10, 0.0003613308, %v6760_v54  ;;  %vm2513_vm11 = vcmp.eq.s32.totalorder %v9134_v62, %v7363_v34  ;;  %vm2514_vm12 = vcmp.eq.s32.totalorder %v9137_v21, %v7363_v34 }
 0x3b6   : > { %v2177_v17 = vadd.f32 %v2145_v42, %v2077_v44  ;;  %v2545_v47 = vsel %vm2513_vm11, 0.015857518, %v6760_v54  ;;  %v2546_v7 = vsel %vm2514_vm12, 0.015857518, %v6760_v54  ;;  %vm2613_vm13 = vcmp.eq.s32.totalorder %v9134_v62, %v7367_v37 }
 0x3b7   : > { %v2178_v30 = vadd.f32 %v2146_v28, %v2078_v61  ;;  %vm2614_vm14 = vcmp.eq.s32.totalorder %v9137_v21, %v7367_v37  ;;  %v2645_v8 = vsel %vm2613_vm13, 0.0003613308, %v6760_v54  ;;  %vm2713_vm15 = vcmp.eq.s32.totalorder %v9134_v62, %v7371_v39 }
 0x3b8   : > { %v2277_v24 = vadd.f32 %v2245_v11, %v2177_v17  ;;  %v2646_v53 = vsel %vm2614_vm14, 0.0003613308, %v6760_v54  ;;  %vm2714_vm0 = vcmp.eq.s32.totalorder %v9137_v21, %v7371_v39  ;;  %v2745_v49 = vsel %vm2713_vm15, 0.015857518, %v6760_v54 }
 0x3b9   : > { %v2278_v50 = vadd.f32 %v2246_v25, %v2178_v30  ;;  %v2746_v51 = vsel %vm2714_vm0, 0.015857518, %v6760_v54  ;;  %vm2813_vm1 = vcmp.eq.s32.totalorder %v9134_v62, %v7405_v18  ;;  %vm2814_vm2 = vcmp.eq.s32.totalorder %v9137_v21, %v7405_v18 }
 0x3ba   : > { %v2377_v56 = vadd.f32 %v2345_v9, %v2277_v24  ;;  %v2845_v16 = vsel %vm2813_vm1, 0.16666666, %v6760_v54  ;;  %v2846_v13 = vsel %vm2814_vm2, 0.16666666, %v6760_v54  ;;  %vm2913_vm3 = vcmp.eq.s32.totalorder %v9134_v62, %v7409_v19 }
 0x3bb   : > { %v2378_v15 = vadd.f32 %v2346_v41, %v2278_v50  ;;  %vm2914_vm4 = vcmp.eq.s32.totalorder %v9137_v21, %v7409_v19  ;;  %v2945_v4 = vsel %vm2913_vm3, 0.015857518, %v6760_v54  ;;  %vm3013_vm5 = vcmp.eq.s32.totalorder %v9134_v62, %v7413_v22 }
 0x3bc   : > { %v2477_v10 = vadd.f32 %v2445_v20, %v2377_v56  ;;  %v2946_v36 = vsel %vm2914_vm4, 0.015857518, %v6760_v54  ;;  %vm3014_vm6 = vcmp.eq.s32.totalorder %v9137_v21, %v7413_v22  ;;  %v3045_v29 = vsel %vm3013_vm5, 0.0003613308, %v6760_v54 }
 0x3bd   : > { %v2478_v5 = vadd.f32 %v2446_v40, %v2378_v15  ;;  %v3046_v42 = vsel %vm3014_vm6, 0.0003613308, %v6760_v54  ;;  %vm3113_vm7 = vcmp.eq.s32.totalorder %v9134_v62, %v7417_v23  ;;  %vm3114_vm8 = vcmp.eq.s32.totalorder %v9137_v21, %v7417_v23 }
 0x3be   : > { %v2577_v14 = vadd.f32 %v2545_v47, %v2477_v10  ;;  %v3145_v28 = vsel %vm3113_vm7, 0.015857518, %v6760_v54  ;;  %v3146_v12 = vsel %vm3114_vm8, 0.015857518, %v6760_v54  ;;  %vm3213_vm9 = vcmp.eq.s32.totalorder %v9134_v62, %v7443_v6 }
 0x3bf   : > { %v2578_v11 = vadd.f32 %v2546_v7, %v2478_v5  ;;  %vm3214_vm10 = vcmp.eq.s32.totalorder %v9137_v21, %v7443_v6  ;;  %v3245_v25 = vsel %vm3213_vm9, 0.0003613308, %v6760_v54  ;;  %v9466_v35 = vadd.s32 232, %v7142_v38 }
 0x3c0   : > { %v2677_v9 = vadd.f32 %v2645_v8, %v2577_v14  ;;  %v3246_v44 = vsel %vm3214_vm10, 0.0003613308, %v6760_v54  ;;  %vm629_vm11 = vcmp.eq.s32.totalorder %v9140_v55, %v7156_v43  ;;  %vm729_vm12 = vcmp.eq.s32.totalorder %v9140_v55, %v7172_v48 }
 0x3c1   : > { %v2678_v41 = vadd.f32 %v2646_v53, %v2578_v11  ;;  %vm630_vm13 = vcmp.eq.s32.totalorder %v9466_v35, %v7156_v43  ;;  %v661_v62 = vsel %vm629_vm11, 0.0003613308, %v6760_v54  ;;  %vm730_vm14 = vcmp.eq.s32.totalorder %v9466_v35, %v7172_v48 }
 0x3c2   : > { %v2777_v21 = vadd.f32 %v2745_v49, %v2677_v9  ;;  %v662_v20 = vsel %vm630_vm13, 0.0003613308, %v6760_v54  ;;  %v761_v61 = vsel %vm729_vm12, 0.015857518, %v6760_v54  ;;  %v762_v40 = vsel %vm730_vm14, 0.015857518, %v6760_v54 }
 0x3c3   : > { %v2778_v17 = vadd.f32 %v2746_v51, %v2678_v41  ;;  %v793_v47 = vadd.f32 %v761_v61, %v661_v62  ;;  %v794_v7 = vadd.f32 %v762_v40, %v662_v20  ;;  %vm829_vm15 = vcmp.eq.s32.totalorder %v9140_v55, %v7189_v52  ;;  %v9511_v61 = vpop.f32.mrb[0].mxu1 }
 0x3c4   : > { %v2877_v30 = vadd.f32 %v2845_v16, %v2777_v21  ;;  %vm830_vm0 = vcmp.eq.s32.totalorder %v9466_v35, %v7189_v52  ;;  %v861_v8 = vsel %vm829_vm15, 0.0003613308, %v6760_v54  ;;  %vm929_vm1 = vcmp.eq.s32.totalorder %v9140_v55, %v7211_v0 }
 0x3c5   : > { %v2878_v24 = vadd.f32 %v2846_v13, %v2778_v17  ;;  %v862_v53 = vsel %vm830_vm0, 0.0003613308, %v6760_v54  ;;  %v893_v49 = vadd.f32 %v861_v8, %v793_v47  ;;  %vm930_vm2 = vcmp.eq.s32.totalorder %v9466_v35, %v7211_v0  ;;  %v9521_v8 = vpop.f32.mrb[1].mxu1 }
 0x3c6   : > { %v2977_v50 = vadd.f32 %v2945_v4, %v2877_v30  ;;  %v894_v51 = vadd.f32 %v862_v53, %v794_v7  ;;  %v961_v56 = vsel %vm929_vm1, 0.015857518, %v6760_v54  ;;  %v962_v16 = vsel %vm930_vm2, 0.015857518, %v6760_v54 }
 0x3c7   : > { %v2978_v15 = vadd.f32 %v2946_v36, %v2878_v24  ;;  %v993_v10 = vadd.f32 %v961_v56, %v893_v49  ;;  %vm1029_vm3 = vcmp.eq.s32.totalorder %v9140_v55, %v7215_v1  ;;  %vm1030_vm4 = vcmp.eq.s32.totalorder %v9466_v35, %v7215_v1 }
 0x3c8   : > { %v3077_v13 = vadd.f32 %v3045_v29, %v2977_v50  ;;  %v994_v5 = vadd.f32 %v962_v16, %v894_v51  ;;  %v1061_v14 = vsel %vm1029_vm3, 0.16666666, %v6760_v54  ;;  %v1062_v11 = vsel %vm1030_vm4, 0.16666666, %v6760_v54 }
 0x3c9   : > { %v3078_v4 = vadd.f32 %v3046_v42, %v2978_v15  ;;  %v1093_v9 = vadd.f32 %v1061_v14, %v993_v10  ;;  %vm1129_vm5 = vcmp.eq.s32.totalorder %v9140_v55, %v7219_v2  ;;  %vm1130_vm6 = vcmp.eq.s32.totalorder %v9466_v35, %v7219_v2  ;;  %v9509_v42 = vpop.f32.mrb[0].mxu0 }
 0x3ca   : > { %v3177_v36 = vadd.f32 %v3145_v28, %v3077_v13  ;;  %v1094_v41 = vadd.f32 %v1062_v11, %v994_v5  ;;  %v1161_v62 = vsel %vm1129_vm5, 0.015857518, %v6760_v54  ;;  %v1162_v21 = vsel %vm1130_vm6, 0.015857518, %v6760_v54  ;;  %v9515_v7 = vpop.f32.mrb[1].mxu0 }
 0x3cb   : > { %v3178_v29 = vadd.f32 %v3146_v12, %v3078_v4  ;;  %v1193_v20 = vadd.f32 %v1161_v62, %v1093_v9  ;;  %vm1229_vm7 = vcmp.eq.s32.totalorder %v9140_v55, %v7223_v3  ;;  %vm1230_vm8 = vcmp.eq.s32.totalorder %v9466_v35, %v7223_v3  ;;  %v9523_v24 = vpop.f32.mrb[2].mxu0 }
 0x3cc   : > { %v3277_v40 = vadd.f32 %v3245_v25, %v3177_v36  ;;  %v1194_v17 = vadd.f32 %v1162_v21, %v1094_v41  ;;  %v1261_v28 = vsel %vm1229_vm7, 0.0003613308, %v6760_v54  ;;  %v1262_v47 = vsel %vm1230_vm8, 0.0003613308, %v6760_v54  ;;  %v9531_v50 = vpop.f32.mrb[3].mxu0 }
 0x3cd   : > { %v3278_v12 = vadd.f32 %v3246_v44, %v3178_v29  ;;  %v1293_v30 = vadd.f32 %v1261_v28, %v1193_v20  ;;  %vm1329_vm9 = vcmp.eq.s32.totalorder %v9140_v55, %v7259_v26  ;;  %vm1330_vm10 = vcmp.eq.s32.totalorder %v9466_v35, %v7259_v26  ;;  %v9529_v44 = vpop.f32.mrb[2].mxu1  ;;  %v9538_v10 = vpop.f32.mrb[4].mxu0 }
 0x3ce   : > { %v1294_v25 = vadd.f32 %v1262_v47, %v1194_v17  ;;  %v1361_v53 = vsel %vm1329_vm9, 0.015857518, %v6760_v54  ;;  %v1362_v49 = vsel %vm1330_vm10, 0.015857518, %v6760_v54  ;;  %vm1429_vm11 = vcmp.eq.s32.totalorder %v9140_v55, %v7163_v45  ;;  %v9536_v15 = vpop.f32.mrb[3].mxu1  ;;  %12160 = vst [vmem:[#allocation23_spill] sm:$0xff] %v9538_v10 }
 0x3cf   : > { %v3335_v51 = vpack.c.bf16 %v3278_v12, %v3277_v40  ;;  %v1393_v56 = vadd.f32 %v1361_v53, %v1293_v30  ;;  %vm1430_vm12 = vcmp.eq.s32.totalorder %v9466_v35, %v7163_v45  ;;  %v1461_v16 = vsel %vm1429_vm11, 0.0003613308, %v6760_v54  ;;  %v9545_v14 = vpop.f32.mrb[5].mxu0 }
 0x3d0   : > { %v1394_v13 = vadd.f32 %v1362_v49, %v1294_v25  ;;  %v1462_v5 = vsel %vm1430_vm12, 0.0003613308, %v6760_v54  ;;  %vm1529_vm13 = vcmp.eq.s32.totalorder %v9140_v55, %v7265_v27  ;;  %vm1530_vm14 = vcmp.eq.s32.totalorder %v9466_v35, %v7265_v27  ;;  %12161 = vst [vmem:[#allocation24_spill] sm:$0xff] %v9545_v14  ;;  %v9551_v36 = vpop.f32.mrb[6].mxu0 }
 0x3d1   : > { %6185 = vmatprep.mubr.bf16.mxu0 %v3335_v51  ;;  %v1493_v11 = vadd.f32 %v1461_v16, %v1393_v56  ;;  %v1561_v4 = vsel %vm1529_vm13, 0.015857518, %v6760_v54  ;;  %v1562_v9 = vsel %vm1530_vm14, 0.015857518, %v6760_v54  ;;  %vm1629_vm15 = vcmp.eq.s32.totalorder %v9140_v55, %v7270_v31  ;;  %12162 = vst [vmem:[#allocation25_spill] sm:$0xff] %v9551_v36  ;;  %v9558_v21 = vpop.f32.mrb[7].mxu0 }
 0x3d2   : > { %v1494_v41 = vadd.f32 %v1462_v5, %v1394_v13  ;;  %vm1630_vm0 = vcmp.eq.s32.totalorder %v9466_v35, %v7270_v31  ;;  %v1661_v62 = vsel %vm1629_vm15, 0.16666666, %v6760_v54  ;;  %vm1729_vm1 = vcmp.eq.s32.totalorder %v9140_v55, %v7293_v57  ;;  %12163 = vst [vmem:[#allocation26_spill] sm:$0xff] %v9558_v21 }
 0x3d3   : > { %v1593_v29 = vadd.f32 %v1561_v4, %v1493_v11  ;;  %v1662_v20 = vsel %vm1630_vm0, 0.16666666, %v6760_v54  ;;  %vm1730_vm2 = vcmp.eq.s32.totalorder %v9466_v35, %v7293_v57  ;;  %v1761_v40 = vsel %vm1729_vm1, 0.015857518, %v6760_v54 }
 0x3d4   : > { %v1594_v17 = vadd.f32 %v1562_v9, %v1494_v41  ;;  %v1762_v28 = vsel %vm1730_vm2, 0.015857518, %v6760_v54  ;;  %vm1829_vm3 = vcmp.eq.s32.totalorder %v9140_v55, %v7297_v58  ;;  %vm1830_vm4 = vcmp.eq.s32.totalorder %v9466_v35, %v7297_v58 }
 0x3d5   : > { %v1693_v47 = vadd.f32 %v1661_v62, %v1593_v29  ;;  %v1861_v12 = vsel %vm1829_vm3, 0.16666666, %v6760_v54  ;;  %v1862_v30 = vsel %vm1830_vm4, 0.16666666, %v6760_v54  ;;  %vm1929_vm5 = vcmp.eq.s32.totalorder %v9140_v55, %v7301_v59 }
 0x3d6   : > { %v1694_v25 = vadd.f32 %v1662_v20, %v1594_v17  ;;  %vm1930_vm6 = vcmp.eq.s32.totalorder %v9466_v35, %v7301_v59  ;;  %v1961_v53 = vsel %vm1929_vm5, 1.0, %v6760_v54  ;;  %vm2029_vm7 = vcmp.eq.s32.totalorder %v9140_v55, %v7305_v60 }
 0x3d7   : > { %v1793_v49 = vadd.f32 %v1761_v40, %v1693_v47  ;;  %v1962_v51 = vsel %vm1930_vm6, 1.0, %v6760_v54  ;;  %vm2030_vm8 = vcmp.eq.s32.totalorder %v9466_v35, %v7305_v60  ;;  %v2061_v56 = vsel %vm2029_vm7, 0.16666666, %v6760_v54 }
 0x3d8   : > { %v1794_v16 = vadd.f32 %v1762_v28, %v1694_v25  ;;  %v2062_v13 = vsel %vm2030_vm8, 0.16666666, %v6760_v54  ;;  %vm2129_vm9 = vcmp.eq.s32.totalorder %v9140_v55, %v7309_v63  ;;  %vm2130_vm10 = vcmp.eq.s32.totalorder %v9466_v35, %v7309_v63  ;;  %v9587_v5 = vpop.f32.mrb[4].mxu1 }
 0x3d9   : > { %12164 = vst [vmem:[#allocation27_spill] sm:$0xff] %v9587_v5  ;;  %v1893_v11 = vadd.f32 %v1861_v12, %v1793_v49  ;;  %v2161_v4 = vsel %vm2129_vm9, 0.015857518, %v6760_v54  ;;  %v2162_v9 = vsel %vm2130_vm10, 0.015857518, %v6760_v54  ;;  %vm2229_vm11 = vcmp.eq.s32.totalorder %v9140_v55, %v7167_v46  ;;  %v9593_v41 = vpop.f32.mrb[5].mxu1 }
 0x3da   : > { %12165 = vst [vmem:[#allocation28_spill] sm:$0xff] %v9593_v41  ;;  %v1894_v62 = vadd.f32 %v1862_v30, %v1794_v16  ;;  %vm2230_vm12 = vcmp.eq.s32.totalorder %v9466_v35, %v7167_v46  ;;  %v2261_v29 = vsel %vm2229_vm11, 0.16666666, %v6760_v54  ;;  %vm2329_vm13 = vcmp.eq.s32.totalorder %v9140_v55, %v7355_v32  ;;  %v9600_v20 = vpop.f32.mrb[6].mxu1 }
 0x3db   : > { %12166 = vst [vmem:[#allocation29_spill] sm:$0xff] %v9600_v20  ;;  %v1993_v40 = vadd.f32 %v1961_v53, %v1893_v11  ;;  %v2262_v17 = vsel %vm2230_vm12, 0.16666666, %v6760_v54  ;;  %vm2330_vm14 = vcmp.eq.s32.totalorder %v9466_v35, %v7355_v32  ;;  %v2361_v28 = vsel %vm2329_vm13, 0.015857518, %v6760_v54  ;;  %v9606_v47 = vpop.f32.mrb[7].mxu1 }
 0x3dc   : > { %12167 = vst [vmem:[#allocation30_spill] sm:$0xff] %v9606_v47  ;;  %v1994_v12 = vadd.f32 %v1962_v51, %v1894_v62  ;;  %v2362_v30 = vsel %vm2330_vm14, 0.015857518, %v6760_v54  ;;  %vm2429_vm15 = vcmp.eq.s32.totalorder %v9140_v55, %v7359_v33  ;;  %vm2430_vm0 = vcmp.eq.s32.totalorder %v9466_v35, %v7359_v33 }
 0x3dd   : > { %v2093_v25 = vadd.f32 %v2061_v56, %v1993_v40  ;;  %v2461_v53 = vsel %vm2429_vm15, 0.0003613308, %v6760_v54  ;;  %v2462_v49 = vsel %vm2430_vm0, 0.0003613308, %v6760_v54  ;;  %vm2529_vm1 = vcmp.eq.s32.totalorder %v9140_v55, %v7363_v34 }
 0x3de   : > { %v2094_v16 = vadd.f32 %v2062_v13, %v1994_v12  ;;  %vm2530_vm2 = vcmp.eq.s32.totalorder %v9466_v35, %v7363_v34  ;;  %v2561_v51 = vsel %vm2529_vm1, 0.015857518, %v6760_v54  ;;  %vm2629_vm3 = vcmp.eq.s32.totalorder %v9140_v55, %v7367_v37 }
 0x3df   : > { %v2193_v11 = vadd.f32 %v2161_v4, %v2093_v25  ;;  %v2562_v62 = vsel %vm2530_vm2, 0.015857518, %v6760_v54  ;;  %vm2630_vm4 = vcmp.eq.s32.totalorder %v9466_v35, %v7367_v37  ;;  %v2661_v56 = vsel %vm2629_vm3, 0.0003613308, %v6760_v54 }
 0x3e0   : > { %v2194_v40 = vadd.f32 %v2162_v9, %v2094_v16  ;;  %v2662_v47 = vsel %vm2630_vm4, 0.0003613308, %v6760_v54  ;;  %vm2729_vm5 = vcmp.eq.s32.totalorder %v9140_v55, %v7371_v39  ;;  %vm2730_vm6 = vcmp.eq.s32.totalorder %v9466_v35, %v7371_v39 }
 0x3e1   : > { %v2293_v13 = vadd.f32 %v2261_v29, %v2193_v11  ;;  %v2761_v12 = vsel %vm2729_vm5, 0.015857518, %v6760_v54  ;;  %v2762_v4 = vsel %vm2730_vm6, 0.015857518, %v6760_v54  ;;  %vm2829_vm7 = vcmp.eq.s32.totalorder %v9140_v55, %v7405_v18 }
 0x3e2   : > { %v2294_v25 = vadd.f32 %v2262_v17, %v2194_v40  ;;  %vm2830_vm8 = vcmp.eq.s32.totalorder %v9466_v35, %v7405_v18  ;;  %v2861_v9 = vsel %vm2829_vm7, 0.16666666, %v6760_v54  ;;  %vm2929_vm9 = vcmp.eq.s32.totalorder %v9140_v55, %v7409_v19 }
 0x3e3   : > { %v2393_v16 = vadd.f32 %v2361_v28, %v2293_v13  ;;  %v2862_v21 = vsel %vm2830_vm8, 0.16666666, %v6760_v54  ;;  %vm2930_vm10 = vcmp.eq.s32.totalorder %v9466_v35, %v7409_v19  ;;  %v2961_v29 = vsel %vm2929_vm9, 0.015857518, %v6760_v54 }
 0x3e4   : > { %v2394_v11 = vadd.f32 %v2362_v30, %v2294_v25  ;;  %v2962_v20 = vsel %vm2930_vm10, 0.015857518, %v6760_v54  ;;  %vm3029_vm11 = vcmp.eq.s32.totalorder %v9140_v55, %v7413_v22  ;;  %vm3030_vm12 = vcmp.eq.s32.totalorder %v9466_v35, %v7413_v22  ;;  %v3299_v25 = vld [vmem:[#allocation2 + $0x10] sm:$0xff] }
 0x3e5   : > { %v2493_v17 = vadd.f32 %v2461_v53, %v2393_v16  ;;  %v3061_v40 = vsel %vm3029_vm11, 0.0003613308, %v6760_v54  ;;  %v3062_v28 = vsel %vm3030_vm12, 0.0003613308, %v6760_v54  ;;  %vm3129_vm13 = vcmp.eq.s32.totalorder %v9140_v55, %v7417_v23 }
 0x3e6   : > { %v2494_v13 = vadd.f32 %v2462_v49, %v2394_v11  ;;  %vm3130_vm14 = vcmp.eq.s32.totalorder %v9466_v35, %v7417_v23  ;;  %v3161_v30 = vsel %vm3129_vm13, 0.015857518, %v6760_v54  ;;  %vm3229_vm15 = vcmp.eq.s32.totalorder %v9140_v55, %v7443_v6 }
 0x3e7   : > { %v2593_v36 = vadd.f32 %v2561_v51, %v2493_v17  ;;  %v3162_v53 = vsel %vm3130_vm14, 0.015857518, %v6760_v54  ;;  %vm3230_vm0 = vcmp.eq.s32.totalorder %v9466_v35, %v7443_v6  ;;  %v3261_v16 = vsel %vm3229_vm15, 0.0003613308, %v6760_v54 }
 0x3e8   : > { %v2594_v41 = vadd.f32 %v2562_v62, %v2494_v13  ;;  %v3262_v49 = vsel %vm3230_vm0, 0.0003613308, %v6760_v54  ;;  %v9664_v11 = vadd.s32 112, %v7142_v38  ;;  %v9667_v14 = vadd.s32 120, %v7142_v38 }
 0x3e9   : > { %v2693_v5 = vadd.f32 %v2661_v56, %v2593_v36  ;;  %v9670_v55 = vadd.s32 240, %v7142_v38  ;;  %v9673_v51 = vadd.s32 248, %v7142_v38  ;;  %v3556_v35 = vadd.f32 %v9509_v42, %v3299_v25 }
 0x3ea   : > { %v2694_v17 = vadd.f32 %v2662_v47, %v2594_v41  ;;  %vm615_vm1 = vcmp.eq.s32.totalorder %v9664_v11, %v7156_v43  ;;  %vm616_vm2 = vcmp.eq.s32.totalorder %v9667_v14, %v7156_v43  ;;  %vm715_vm3 = vcmp.eq.s32.totalorder %v9664_v11, %v7172_v48 }
 0x3eb   : > { %v2793_v62 = vadd.f32 %v2761_v12, %v2693_v5  ;;  %v647_v36 = vsel %vm615_vm1, 0.0003613308, %v6760_v54  ;;  %v648_v56 = vsel %vm616_vm2, 0.0003613308, %v6760_v54  ;;  %vm716_vm4 = vcmp.eq.s32.totalorder %v9667_v14, %v7172_v48  ;;  %3588 = vst [vmem:[#allocation2 + $0x10] sm:$0xff] %v3556_v35 }
 0x3ec   : > { %v2794_v38 = vadd.f32 %v2762_v4, %v2694_v17  ;;  %v747_v42 = vsel %vm715_vm3, 0.015857518, %v6760_v54  ;;  %v748_v41 = vsel %vm716_vm4, 0.015857518, %v6760_v54  ;;  %vm815_vm5 = vcmp.eq.s32.totalorder %v9664_v11, %v7189_v52 }
 0x3ed   : > { %v2893_v47 = vadd.f32 %v2861_v9, %v2793_v62  ;;  %v779_v13 = vadd.f32 %v747_v42, %v647_v36  ;;  %v780_v25 = vadd.f32 %v748_v41, %v648_v56  ;;  %vm816_vm6 = vcmp.eq.s32.totalorder %v9667_v14, %v7189_v52 }
 0x3ee   : > { %v2894_v5 = vadd.f32 %v2862_v21, %v2794_v38  ;;  %v847_v12 = vsel %vm815_vm5, 0.0003613308, %v6760_v54  ;;  %v848_v10 = vsel %vm816_vm6, 0.0003613308, %v6760_v54  ;;  %vm915_vm7 = vcmp.eq.s32.totalorder %v9664_v11, %v7211_v0 }
 0x3ef   : > { %v2993_v4 = vadd.f32 %v2961_v29, %v2893_v47  ;;  %v879_v35 = vadd.f32 %v847_v12, %v779_v13  ;;  %v880_v17 = vadd.f32 %v848_v10, %v780_v25  ;;  %vm916_vm8 = vcmp.eq.s32.totalorder %v9667_v14, %v7211_v0 }
 0x3f0   : > { %v2994_v9 = vadd.f32 %v2962_v20, %v2894_v5  ;;  %v947_v62 = vsel %vm915_vm7, 0.015857518, %v6760_v54  ;;  %v948_v36 = vsel %vm916_vm8, 0.015857518, %v6760_v54  ;;  %vm1015_vm9 = vcmp.eq.s32.totalorder %v9664_v11, %v7215_v1 }
 0x3f1   : > { %v3093_v21 = vadd.f32 %v3061_v40, %v2993_v4  ;;  %v979_v56 = vadd.f32 %v947_v62, %v879_v35  ;;  %v980_v38 = vadd.f32 %v948_v36, %v880_v17  ;;  %vm1016_vm10 = vcmp.eq.s32.totalorder %v9667_v14, %v7215_v1 }
 0x3f2   : > { %v3094_v29 = vadd.f32 %v3062_v28, %v2994_v9  ;;  %v1047_v10 = vsel %vm1015_vm9, 0.16666666, %v6760_v54  ;;  %v1048_v42 = vsel %vm1016_vm10, 0.16666666, %v6760_v54  ;;  %vm1115_vm11 = vcmp.eq.s32.totalorder %v9664_v11, %v7219_v2 }
 0x3f3   : > { %v3193_v20 = vadd.f32 %v3161_v30, %v3093_v21  ;;  %v1079_v41 = vadd.f32 %v1047_v10, %v979_v56  ;;  %v1080_v47 = vadd.f32 %v1048_v42, %v980_v38  ;;  %vm1116_vm12 = vcmp.eq.s32.totalorder %v9667_v14, %v7219_v2 }
 0x3f4   : > { %v3194_v40 = vadd.f32 %v3162_v53, %v3094_v29  ;;  %v1147_v13 = vsel %vm1115_vm11, 0.015857518, %v6760_v54  ;;  %v1148_v25 = vsel %vm1116_vm12, 0.015857518, %v6760_v54  ;;  %vm1215_vm13 = vcmp.eq.s32.totalorder %v9664_v11, %v7223_v3 }
 0x3f5   : > { %v3293_v28 = vadd.f32 %v3261_v16, %v3193_v20  ;;  %v1179_v5 = vadd.f32 %v1147_v13, %v1079_v41  ;;  %v1180_v12 = vadd.f32 %v1148_v25, %v1080_v47  ;;  %vm1216_vm14 = vcmp.eq.s32.totalorder %v9667_v14, %v7223_v3 }
 0x3f6   : > { %v3294_v30 = vadd.f32 %v3262_v49, %v3194_v40  ;;  %v1247_v4 = vsel %vm1215_vm13, 0.0003613308, %v6760_v54  ;;  %v1248_v35 = vsel %vm1216_vm14, 0.0003613308, %v6760_v54  ;;  %vm1315_vm15 = vcmp.eq.s32.totalorder %v9664_v11, %v7259_v26 }
 0x3f7   : > { %v1279_v53 = vadd.f32 %v1247_v4, %v1179_v5  ;;  %v1280_v17 = vadd.f32 %v1248_v35, %v1180_v12  ;;  %vm1316_vm0 = vcmp.eq.s32.totalorder %v9667_v14, %v7259_v26  ;;  %v1347_v16 = vsel %vm1315_vm15, 0.015857518, %v6760_v54 }
 0x3f8   : > { %v3343_v9 = vpack.c.bf16 %v3294_v30, %v3293_v28  ;;  %v1348_v62 = vsel %vm1316_vm0, 0.015857518, %v6760_v54  ;;  %vm1415_vm1 = vcmp.eq.s32.totalorder %v9664_v11, %v7163_v45  ;;  %vm1416_vm2 = vcmp.eq.s32.totalorder %v9667_v14, %v7163_v45 }
 0x3f9   : > { %v1379_v49 = vadd.f32 %v1347_v16, %v1279_v53  ;;  %v1380_v36 = vadd.f32 %v1348_v62, %v1280_v17  ;;  %v1447_v21 = vsel %vm1415_vm1, 0.0003613308, %v6760_v54  ;;  %v1448_v56 = vsel %vm1416_vm2, 0.0003613308, %v6760_v54 }
 0x3fa   : > { %6201 = vmatprep.mubr.bf16.mxu1 %v3343_v9  ;;  %vm1515_vm3 = vcmp.eq.s32.totalorder %v9664_v11, %v7265_v27  ;;  %vm1516_vm4 = vcmp.eq.s32.totalorder %v9667_v14, %v7265_v27  ;;  %vm1615_vm5 = vcmp.eq.s32.totalorder %v9664_v11, %v7270_v31  ;;  %vm1616_vm6 = vcmp.eq.s32.totalorder %v9667_v14, %v7270_v31 }
 0x3fb   : > { %v1479_v38 = vadd.f32 %v1447_v21, %v1379_v49  ;;  %v1480_v29 = vadd.f32 %v1448_v56, %v1380_v36  ;;  %v1547_v10 = vsel %vm1515_vm3, 0.015857518, %v6760_v54  ;;  %v1548_v42 = vsel %vm1516_vm4, 0.015857518, %v6760_v54 }
 0x3fc   : > { %v1647_v20 = vsel %vm1615_vm5, 0.16666666, %v6760_v54  ;;  %v1648_v41 = vsel %vm1616_vm6, 0.16666666, %v6760_v54  ;;  %vm1715_vm7 = vcmp.eq.s32.totalorder %v9664_v11, %v7293_v57  ;;  %vm1716_vm8 = vcmp.eq.s32.totalorder %v9667_v14, %v7293_v57 }
 0x3fd   : > { %v1579_v47 = vadd.f32 %v1547_v10, %v1479_v38  ;;  %v1580_v40 = vadd.f32 %v1548_v42, %v1480_v29  ;;  %v1747_v13 = vsel %vm1715_vm7, 0.015857518, %v6760_v54  ;;  %v1748_v25 = vsel %vm1716_vm8, 0.015857518, %v6760_v54 }
 0x3fe   : > { %vm1815_vm9 = vcmp.eq.s32.totalorder %v9664_v11, %v7297_v58  ;;  %vm1816_vm10 = vcmp.eq.s32.totalorder %v9667_v14, %v7297_v58  ;;  %vm1915_vm11 = vcmp.eq.s32.totalorder %v9664_v11, %v7301_v59  ;;  %vm1916_vm12 = vcmp.eq.s32.totalorder %v9667_v14, %v7301_v59 }
 0x3ff   : > { %v1679_v28 = vadd.f32 %v1647_v20, %v1579_v47  ;;  %v1680_v5 = vadd.f32 %v1648_v41, %v1580_v40  ;;  %v1847_v12 = vsel %vm1815_vm9, 0.16666666, %v6760_v54  ;;  %v1848_v30 = vsel %vm1816_vm10, 0.16666666, %v6760_v54 }
 0x400   : > { %v1947_v4 = vsel %vm1915_vm11, 1.0, %v6760_v54  ;;  %v1948_v35 = vsel %vm1916_vm12, 1.0, %v6760_v54  ;;  %vm2015_vm13 = vcmp.eq.s32.totalorder %v9664_v11, %v7305_v60  ;;  %vm2016_vm14 = vcmp.eq.s32.totalorder %v9667_v14, %v7305_v60 }
 0x401   : > { %v1779_v53 = vadd.f32 %v1747_v13, %v1679_v28  ;;  %v1780_v17 = vadd.f32 %v1748_v25, %v1680_v5  ;;  %v2047_v16 = vsel %vm2015_vm13, 0.16666666, %v6760_v54  ;;  %v2048_v9 = vsel %vm2016_vm14, 0.16666666, %v6760_v54 }
 0x402   : > { %vm2115_vm15 = vcmp.eq.s32.totalorder %v9664_v11, %v7309_v63  ;;  %vm2116_vm0 = vcmp.eq.s32.totalorder %v9667_v14, %v7309_v63  ;;  %vm2215_vm1 = vcmp.eq.s32.totalorder %v9664_v11, %v7167_v46  ;;  %vm2216_vm2 = vcmp.eq.s32.totalorder %v9667_v14, %v7167_v46 }
 0x403   : > { %v1879_v62 = vadd.f32 %v1847_v12, %v1779_v53  ;;  %v1880_v49 = vadd.f32 %v1848_v30, %v1780_v17  ;;  %v2147_v36 = vsel %vm2115_vm15, 0.015857518, %v6760_v54  ;;  %v2148_v21 = vsel %vm2116_vm0, 0.015857518, %v6760_v54 }
 0x404   : > { %v2247_v56 = vsel %vm2215_vm1, 0.16666666, %v6760_v54  ;;  %v2248_v38 = vsel %vm2216_vm2, 0.16666666, %v6760_v54  ;;  %vm2315_vm3 = vcmp.eq.s32.totalorder %v9664_v11, %v7355_v32  ;;  %vm2316_vm4 = vcmp.eq.s32.totalorder %v9667_v14, %v7355_v32 }
 0x405   : > { %v1979_v29 = vadd.f32 %v1947_v4, %v1879_v62  ;;  %v1980_v10 = vadd.f32 %v1948_v35, %v1880_v49  ;;  %v2347_v42 = vsel %vm2315_vm3, 0.015857518, %v6760_v54  ;;  %v2348_v20 = vsel %vm2316_vm4, 0.015857518, %v6760_v54 }
 0x406   : > { %vm2415_vm5 = vcmp.eq.s32.totalorder %v9664_v11, %v7359_v33  ;;  %vm2416_vm6 = vcmp.eq.s32.totalorder %v9667_v14, %v7359_v33  ;;  %vm2515_vm7 = vcmp.eq.s32.totalorder %v9664_v11, %v7363_v34  ;;  %vm2516_vm8 = vcmp.eq.s32.totalorder %v9667_v14, %v7363_v34 }
 0x407   : > { %v2079_v41 = vadd.f32 %v2047_v16, %v1979_v29  ;;  %v2080_v47 = vadd.f32 %v2048_v9, %v1980_v10  ;;  %v2447_v40 = vsel %vm2415_vm5, 0.0003613308, %v6760_v54  ;;  %v2448_v13 = vsel %vm2416_vm6, 0.0003613308, %v6760_v54 }
 0x408   : > { %v2547_v25 = vsel %vm2515_vm7, 0.015857518, %v6760_v54  ;;  %v2548_v28 = vsel %vm2516_vm8, 0.015857518, %v6760_v54  ;;  %vm2615_vm9 = vcmp.eq.s32.totalorder %v9664_v11, %v7367_v37  ;;  %vm2616_vm10 = vcmp.eq.s32.totalorder %v9667_v14, %v7367_v37 }
 0x409   : > { %v2179_v5 = vadd.f32 %v2147_v36, %v2079_v41  ;;  %v2180_v12 = vadd.f32 %v2148_v21, %v2080_v47  ;;  %v2647_v30 = vsel %vm2615_vm9, 0.0003613308, %v6760_v54  ;;  %v2648_v4 = vsel %vm2616_vm10, 0.0003613308, %v6760_v54 }
 0x40a   : > { %vm2715_vm11 = vcmp.eq.s32.totalorder %v9664_v11, %v7371_v39  ;;  %vm2716_vm12 = vcmp.eq.s32.totalorder %v9667_v14, %v7371_v39  ;;  %vm2815_vm13 = vcmp.eq.s32.totalorder %v9664_v11, %v7405_v18  ;;  %vm2816_vm14 = vcmp.eq.s32.totalorder %v9667_v14, %v7405_v18 }
 0x40b   : > { %v2279_v35 = vadd.f32 %v2247_v56, %v2179_v5  ;;  %v2280_v53 = vadd.f32 %v2248_v38, %v2180_v12  ;;  %v2747_v17 = vsel %vm2715_vm11, 0.015857518, %v6760_v54  ;;  %v2748_v16 = vsel %vm2716_vm12, 0.015857518, %v6760_v54 }
 0x40c   : > { %v2847_v9 = vsel %vm2815_vm13, 0.16666666, %v6760_v54  ;;  %v2848_v62 = vsel %vm2816_vm14, 0.16666666, %v6760_v54  ;;  %vm2915_vm15 = vcmp.eq.s32.totalorder %v9664_v11, %v7409_v19  ;;  %vm2916_vm0 = vcmp.eq.s32.totalorder %v9667_v14, %v7409_v19 }
 0x40d   : > { %v2379_v49 = vadd.f32 %v2347_v42, %v2279_v35  ;;  %v2380_v36 = vadd.f32 %v2348_v20, %v2280_v53  ;;  %v2947_v21 = vsel %vm2915_vm15, 0.015857518, %v6760_v54  ;;  %v2948_v56 = vsel %vm2916_vm0, 0.015857518, %v6760_v54 }
 0x40e   : > { %vm3015_vm1 = vcmp.eq.s32.totalorder %v9664_v11, %v7413_v22  ;;  %vm3016_vm2 = vcmp.eq.s32.totalorder %v9667_v14, %v7413_v22  ;;  %vm3115_vm3 = vcmp.eq.s32.totalorder %v9664_v11, %v7417_v23  ;;  %vm3116_vm4 = vcmp.eq.s32.totalorder %v9667_v14, %v7417_v23 }
 0x40f   : > { %v2479_v38 = vadd.f32 %v2447_v40, %v2379_v49  ;;  %v2480_v29 = vadd.f32 %v2448_v13, %v2380_v36  ;;  %v3047_v10 = vsel %vm3015_vm1, 0.0003613308, %v6760_v54  ;;  %v3048_v42 = vsel %vm3016_vm2, 0.0003613308, %v6760_v54 }
 0x410   : > { %v3147_v20 = vsel %vm3115_vm3, 0.015857518, %v6760_v54  ;;  %v3148_v41 = vsel %vm3116_vm4, 0.015857518, %v6760_v54  ;;  %vm3215_vm5 = vcmp.eq.s32.totalorder %v9664_v11, %v7443_v6  ;;  %vm3216_vm6 = vcmp.eq.s32.totalorder %v9667_v14, %v7443_v6 }
 0x411   : > { %v2579_v47 = vadd.f32 %v2547_v25, %v2479_v38  ;;  %v2580_v5 = vadd.f32 %v2548_v28, %v2480_v29  ;;  %v3247_v12 = vsel %vm3215_vm5, 0.0003613308, %v6760_v54  ;;  %v3248_v40 = vsel %vm3216_vm6, 0.0003613308, %v6760_v54 }
 0x412   : > { %vm631_vm7 = vcmp.eq.s32.totalorder %v9670_v55, %v7156_v43  ;;  %vm632_vm8 = vcmp.eq.s32.totalorder %v9673_v51, %v7156_v43  ;;  %vm731_vm9 = vcmp.eq.s32.totalorder %v9670_v55, %v7172_v48  ;;  %vm732_vm10 = vcmp.eq.s32.totalorder %v9673_v51, %v7172_v48 }
 0x413   : > { %v2679_v11 = vadd.f32 %v2647_v30, %v2579_v47  ;;  %v2680_v14 = vadd.f32 %v2648_v4, %v2580_v5  ;;  %v663_v13 = vsel %vm631_vm7, 0.0003613308, %v6760_v54  ;;  %v664_v25 = vsel %vm632_vm8, 0.0003613308, %v6760_v54 }
 0x414   : > { %v763_v28 = vsel %vm731_vm9, 0.015857518, %v6760_v54  ;;  %v764_v35 = vsel %vm732_vm10, 0.015857518, %v6760_v54  ;;  %vm831_vm11 = vcmp.eq.s32.totalorder %v9670_v55, %v7189_v52  ;;  %vm832_vm12 = vcmp.eq.s32.totalorder %v9673_v51, %v7189_v52 }
 0x415   : > { %v2779_v43 = vadd.f32 %v2747_v17, %v2679_v11  ;;  %v2780_v53 = vadd.f32 %v2748_v16, %v2680_v14  ;;  %v795_v49 = vadd.f32 %v763_v28, %v663_v13  ;;  %v796_v48 = vadd.f32 %v764_v35, %v664_v25 }
 0x416   : > { %v863_v30 = vsel %vm831_vm11, 0.0003613308, %v6760_v54  ;;  %v864_v4 = vsel %vm832_vm12, 0.0003613308, %v6760_v54  ;;  %vm931_vm13 = vcmp.eq.s32.totalorder %v9670_v55, %v7211_v0  ;;  %vm932_vm14 = vcmp.eq.s32.totalorder %v9673_v51, %v7211_v0 }
 0x417   : > { %v2879_v36 = vadd.f32 %v2847_v9, %v2779_v43  ;;  %v2880_v38 = vadd.f32 %v2848_v62, %v2780_v53  ;;  %v895_v29 = vadd.f32 %v863_v30, %v795_v49  ;;  %v896_v47 = vadd.f32 %v864_v4, %v796_v48 }
 0x418   : > { %v963_v52 = vsel %vm931_vm13, 0.015857518, %v6760_v54  ;;  %v964_v17 = vsel %vm932_vm14, 0.015857518, %v6760_v54  ;;  %vm1031_vm15 = vcmp.eq.s32.totalorder %v9670_v55, %v7215_v1  ;;  %vm1032_vm0 = vcmp.eq.s32.totalorder %v9673_v51, %v7215_v1 }
 0x419   : > { %v2979_v16 = vadd.f32 %v2947_v21, %v2879_v36  ;;  %v2980_v5 = vadd.f32 %v2948_v56, %v2880_v38  ;;  %v995_v11 = vadd.f32 %v963_v52, %v895_v29  ;;  %v996_v14 = vadd.f32 %v964_v17, %v896_v47 }
 0x41a   : > { %v1063_v0 = vsel %vm1031_vm15, 0.16666666, %v6760_v54  ;;  %v1064_v9 = vsel %vm1032_vm0, 0.16666666, %v6760_v54  ;;  %vm1131_vm1 = vcmp.eq.s32.totalorder %v9670_v55, %v7219_v2  ;;  %vm1132_vm2 = vcmp.eq.s32.totalorder %v9673_v51, %v7219_v2 }
 0x41b   : > { %v3079_v62 = vadd.f32 %v3047_v10, %v2979_v16  ;;  %v3080_v13 = vadd.f32 %v3048_v42, %v2980_v5  ;;  %v1095_v25 = vadd.f32 %v1063_v0, %v995_v11  ;;  %v1096_v28 = vadd.f32 %v1064_v9, %v996_v14 }
 0x41c   : > { %v1163_v1 = vsel %vm1131_vm1, 0.015857518, %v6760_v54  ;;  %v1164_v21 = vsel %vm1132_vm2, 0.015857518, %v6760_v54  ;;  %vm1231_vm3 = vcmp.eq.s32.totalorder %v9670_v55, %v7223_v3  ;;  %vm1232_vm4 = vcmp.eq.s32.totalorder %v9673_v51, %v7223_v3 }
 0x41d   : > { %v3179_v56 = vadd.f32 %v3147_v20, %v3079_v62  ;;  %v3180_v35 = vadd.f32 %v3148_v41, %v3080_v13  ;;  %v1195_v43 = vadd.f32 %v1163_v1, %v1095_v25  ;;  %v1196_v53 = vadd.f32 %v1164_v21, %v1096_v28 }
 0x41e   : > { %v1263_v2 = vsel %vm1231_vm3, 0.0003613308, %v6760_v54  ;;  %v1264_v10 = vsel %vm1232_vm4, 0.0003613308, %v6760_v54  ;;  %vm1331_vm5 = vcmp.eq.s32.totalorder %v9670_v55, %v7259_v26  ;;  %vm1332_vm6 = vcmp.eq.s32.totalorder %v9673_v51, %v7259_v26 }
 0x41f   : > { %v3279_v42 = vadd.f32 %v3247_v12, %v3179_v56  ;;  %v3280_v49 = vadd.f32 %v3248_v40, %v3180_v35  ;;  %v1295_v48 = vadd.f32 %v1263_v2, %v1195_v43  ;;  %v1296_v30 = vadd.f32 %v1264_v10, %v1196_v53 }
 0x420   : > { %v1363_v3 = vsel %vm1331_vm5, 0.015857518, %v6760_v54  ;;  %v1364_v20 = vsel %vm1332_vm6, 0.015857518, %v6760_v54  ;;  %vm1431_vm7 = vcmp.eq.s32.totalorder %v9670_v55, %v7163_v45  ;;  %vm1432_vm8 = vcmp.eq.s32.totalorder %v9673_v51, %v7163_v45 }
 0x421   : > { %v3336_v41 = vpack.c.bf16 %v3280_v49, %v3279_v42  ;;  %v1395_v4 = vadd.f32 %v1363_v3, %v1295_v48  ;;  %v1396_v36 = vadd.f32 %v1364_v20, %v1296_v30  ;;  %v1463_v38 = vsel %vm1431_vm7, 0.0003613308, %v6760_v54 }
 0x422   : > { %v1464_v26 = vsel %vm1432_vm8, 0.0003613308, %v6760_v54  ;;  %vm1531_vm9 = vcmp.eq.s32.totalorder %v9670_v55, %v7265_v27  ;;  %vm1532_vm10 = vcmp.eq.s32.totalorder %v9673_v51, %v7265_v27  ;;  %vm1631_vm11 = vcmp.eq.s32.totalorder %v9670_v55, %v7270_v31 }
 0x423   : > { %6186 = vmatmul.mubr.bf16.gmra.mrb[12].mxu0 %v3336_v41  ;;  %v1495_v12 = vadd.f32 %v1463_v38, %v1395_v4  ;;  %v1496_v40 = vadd.f32 %v1464_v26, %v1396_v36  ;;  %v1563_v45 = vsel %vm1531_vm9, 0.015857518, %v6760_v54  ;;  %v1564_v29 = vsel %vm1532_vm10, 0.015857518, %v6760_v54  ;;  %v3297_v41 = vld [vmem:[#allocation2] sm:$0xff] }
 0x424   : > { %vm1632_vm12 = vcmp.eq.s32.totalorder %v9673_v51, %v7270_v31  ;;  %v1663_v47 = vsel %vm1631_vm11, 0.16666666, %v6760_v54  ;;  %vm1731_vm13 = vcmp.eq.s32.totalorder %v9670_v55, %v7293_v57  ;;  %vm1732_vm14 = vcmp.eq.s32.totalorder %v9673_v51, %v7293_v57  ;;  %v3313_v4 = vld [vmem:[#allocation2 + $0x80] sm:$0xff] }
 0x425   : > { %v1595_v27 = vadd.f32 %v1563_v45, %v1495_v12  ;;  %v1596_v52 = vadd.f32 %v1564_v29, %v1496_v40  ;;  %v1664_v17 = vsel %vm1632_vm12, 0.16666666, %v6760_v54  ;;  %v1763_v16 = vsel %vm1731_vm13, 0.015857518, %v6760_v54  ;;  %v3300_v12 = vld [vmem:[#allocation2 + $0x18] sm:$0xff] }
 0x426   : > { %v1764_v5 = vsel %vm1732_vm14, 0.015857518, %v6760_v54  ;;  %vm1831_vm15 = vcmp.eq.s32.totalorder %v9670_v55, %v7297_v58  ;;  %vm1832_vm0 = vcmp.eq.s32.totalorder %v9673_v51, %v7297_v58  ;;  %vm1931_vm1 = vcmp.eq.s32.totalorder %v9670_v55, %v7301_v59 }
 0x427   : > { %v1695_v31 = vadd.f32 %v1663_v47, %v1595_v27  ;;  %v1696_v11 = vadd.f32 %v1664_v17, %v1596_v52  ;;  %v1863_v57 = vsel %vm1831_vm15, 0.16666666, %v6760_v54  ;;  %v1864_v14 = vsel %vm1832_vm0, 0.16666666, %v6760_v54  ;;  %v3316_v47 = vld [vmem:[#allocation2 + $0x98] sm:$0xff]  ;;  %v3298_v27 = vld [vmem:[#allocation2 + $0x8] sm:$0xff] }
 0x428   : > { %vm1932_vm2 = vcmp.eq.s32.totalorder %v9673_v51, %v7301_v59  ;;  %vm2031_vm3 = vcmp.eq.s32.totalorder %v9670_v55, %v7305_v60  ;;  %vm2032_vm4 = vcmp.eq.s32.totalorder %v9673_v51, %v7305_v60  ;;  %v1963_v58 = vsel %vm1931_vm1, 1.0, %v6760_v54 }
 0x429   : > { %v1795_v0 = vadd.f32 %v1763_v16, %v1695_v31  ;;  %v1796_v9 = vadd.f32 %v1764_v5, %v1696_v11  ;;  %v1964_v62 = vsel %vm1932_vm2, 1.0, %v6760_v54  ;;  %vm2131_vm5 = vcmp.eq.s32.totalorder %v9670_v55, %v7309_v63  ;;  %v3314_v11 = vld [vmem:[#allocation2 + $0x88] sm:$0xff] }
 0x42a   : > { %vm2132_vm6 = vcmp.eq.s32.totalorder %v9673_v51, %v7309_v63  ;;  %v2063_v59 = vsel %vm2031_vm3, 0.16666666, %v6760_v54  ;;  %v2064_v28 = vsel %vm2032_vm4, 0.16666666, %v6760_v54  ;;  %vm2231_vm7 = vcmp.eq.s32.totalorder %v9670_v55, %v7167_v46 }
 0x42b   : > { %v1895_v13 = vadd.f32 %v1863_v57, %v1795_v0  ;;  %v1896_v25 = vadd.f32 %v1864_v14, %v1796_v9  ;;  %vm2232_vm8 = vcmp.eq.s32.totalorder %v9673_v51, %v7167_v46  ;;  %v2163_v60 = vsel %vm2131_vm5, 0.015857518, %v6760_v54  ;;  %v3303_v57 = vld [vmem:[#allocation2 + $0x30] sm:$0xff]  ;;  %v3301_v9 = vld [vmem:[#allocation2 + $0x20] sm:$0xff] }
 0x42c   : > { %v2164_v56 = vsel %vm2132_vm6, 0.015857518, %v6760_v54  ;;  %vm2331_vm9 = vcmp.eq.s32.totalorder %v9670_v55, %v7355_v32  ;;  %vm2332_vm10 = vcmp.eq.s32.totalorder %v9673_v51, %v7355_v32  ;;  %vm2431_vm11 = vcmp.eq.s32.totalorder %v9670_v55, %v7359_v33  ;;  %v3319_v14 = vld [vmem:[#allocation2 + $0xb0] sm:$0xff] }
 0x42d   : > { %v1995_v1 = vadd.f32 %v1963_v58, %v1895_v13  ;;  %v1996_v21 = vadd.f32 %v1964_v62, %v1896_v25  ;;  %vm2432_vm12 = vcmp.eq.s32.totalorder %v9673_v51, %v7359_v33  ;;  %v2263_v46 = vsel %vm2231_vm7, 0.16666666, %v6760_v54  ;;  %v3317_v58 = vld [vmem:[#allocation2 + $0xa0] sm:$0xff]  ;;  %v3304_v62 = vld [vmem:[#allocation2 + $0x38] sm:$0xff] }
 0x42e   : > { %v2264_v43 = vsel %vm2232_vm8, 0.16666666, %v6760_v54  ;;  %v2363_v10 = vsel %vm2331_vm9, 0.015857518, %v6760_v54  ;;  %vm2531_vm13 = vcmp.eq.s32.totalorder %v9670_v55, %v7363_v34  ;;  %v2364_v32 = vsel %vm2332_vm10, 0.015857518, %v6760_v54 }
 0x42f   : > { %v2095_v63 = vadd.f32 %v2063_v59, %v1995_v1  ;;  %v2096_v35 = vadd.f32 %v2064_v28, %v1996_v21  ;;  %v2463_v42 = vsel %vm2431_vm11, 0.0003613308, %v6760_v54  ;;  %v2464_v49 = vsel %vm2432_vm12, 0.0003613308, %v6760_v54  ;;  %v3320_v1 = vld [vmem:[#allocation2 + $0xb8] sm:$0xff]  ;;  %v3302_v21 = vld [vmem:[#allocation2 + $0x28] sm:$0xff] }
 0x430   : > { %vm2532_vm14 = vcmp.eq.s32.totalorder %v9673_v51, %v7363_v34  ;;  %vm2631_vm15 = vcmp.eq.s32.totalorder %v9670_v55, %v7367_v37  ;;  %vm2632_vm0 = vcmp.eq.s32.totalorder %v9673_v51, %v7367_v37  ;;  %v2563_v30 = vsel %vm2531_vm13, 0.015857518, %v6760_v54  ;;  %v3315_v37 = vld [vmem:[#allocation2 + $0x90] sm:$0xff] }
 0x431   : > { %v2195_v53 = vadd.f32 %v2163_v60, %v2095_v63  ;;  %v2196_v2 = vadd.f32 %v2164_v56, %v2096_v35  ;;  %vm2731_vm1 = vcmp.eq.s32.totalorder %v9670_v55, %v7371_v39  ;;  %vm2732_vm2 = vcmp.eq.s32.totalorder %v9673_v51, %v7371_v39  ;;  %v3318_v60 = vld [vmem:[#allocation2 + $0xa8] sm:$0xff]  ;;  %v12169_v63 = vld [vmem:[#allocation27_spill] sm:$0xff] }
 0x432   : > { %vm2831_vm3 = vcmp.eq.s32.totalorder %v9670_v55, %v7405_v18  ;;  %vm2832_vm4 = vcmp.eq.s32.totalorder %v9673_v51, %v7405_v18  ;;  %vm2931_vm5 = vcmp.eq.s32.totalorder %v9670_v55, %v7409_v19  ;;  %v2564_v36 = vsel %vm2532_vm14, 0.015857518, %v6760_v54 }
 0x433   : > { %v2295_v33 = vadd.f32 %v2263_v46, %v2195_v53  ;;  %v2296_v48 = vadd.f32 %v2264_v43, %v2196_v2  ;;  %v2663_v38 = vsel %vm2631_vm15, 0.0003613308, %v6760_v54  ;;  %v2664_v26 = vsel %vm2632_vm0, 0.0003613308, %v6760_v54  ;;  %v12171_v53 = vld [vmem:[#allocation28_spill] sm:$0xff] }
 0x434   : > { %vm2932_vm6 = vcmp.eq.s32.totalorder %v9673_v51, %v7409_v19  ;;  %v2763_v29 = vsel %vm2731_vm1, 0.015857518, %v6760_v54  ;;  %v2764_v34 = vsel %vm2732_vm2, 0.015857518, %v6760_v54  ;;  %v2863_v52 = vsel %vm2831_vm3, 0.16666666, %v6760_v54 }
 0x435   : > { %v2395_v3 = vadd.f32 %v2363_v10, %v2295_v33  ;;  %v2396_v20 = vadd.f32 %v2364_v32, %v2296_v48  ;;  %v2864_v17 = vsel %vm2832_vm4, 0.16666666, %v6760_v54  ;;  %v2963_v16 = vsel %vm2931_vm5, 0.015857518, %v6760_v54  ;;  %v12172_v10 = vld [vmem:[#allocation25_spill] sm:$0xff]  ;;  %v12175_v33 = vld [vmem:[#allocation30_spill] sm:$0xff] }
 0x436   : > { %v2964_v31 = vsel %vm2932_vm6, 0.015857518, %v6760_v54  ;;  %vm3031_vm7 = vcmp.eq.s32.totalorder %v9670_v55, %v7413_v22  ;;  %vm3032_vm8 = vcmp.eq.s32.totalorder %v9673_v51, %v7413_v22  ;;  %v3572_v18 = vadd.f32 %v9511_v61, %v3315_v37  ;;  %v12173_v32 = vld [vmem:[#allocation29_spill] sm:$0xff] }
 0x437   : > { %v2495_v40 = vadd.f32 %v2463_v42, %v2395_v3  ;;  %v2496_v45 = vadd.f32 %v2464_v49, %v2396_v20  ;;  %v3554_v0 = vadd.f32 %v9515_v7, %v3297_v41  ;;  %v3570_v19 = vadd.f32 %v9521_v8, %v3313_v4  ;;  %v12168_v8 = vld [vmem:[#allocation23_spill] sm:$0xff]  ;;  %v12174_v42 = vld [vmem:[#allocation26_spill] sm:$0xff] }
 0x438   : > { %v3557_v59 = vadd.f32 %v9523_v24, %v3300_v12  ;;  %v3573_v28 = vadd.f32 %v9529_v44, %v3316_v47  ;;  %3604 = vst [vmem:[#allocation2 + $0x90] sm:$0xff] %v3572_v18  ;;  %v3555_v61 = vadd.f32 %v9531_v50, %v3298_v27  ;;  %v3571_v7 = vadd.f32 %v9536_v15, %v3314_v11  ;;  %v12170_v24 = vld [vmem:[#allocation24_spill] sm:$0xff]  ;;  %v3305_v27 = vld [vmem:[#allocation2 + $0x40] sm:$0xff] }
 0x439   : > { %v2595_v5 = vadd.f32 %v2563_v30, %v2495_v40  ;;  %v2596_v39 = vadd.f32 %v2564_v36, %v2496_v45  ;;  %3586 = vst [vmem:[#allocation2] sm:$0xff] %v3554_v0  ;;  %3602 = vst [vmem:[#allocation2 + $0x80] sm:$0xff] %v3570_v19  ;;  %v3560_v56 = vadd.f32 %v12168_v8, %v3303_v57  ;;  %v3063_v20 = vsel %vm3031_vm7, 0.0003613308, %v6760_v54  ;;  %v3323_v57 = vld [vmem:[#allocation2 + $0xd0] sm:$0xff]  ;;  %v3324_v0 = vld [vmem:[#allocation2 + $0xd8] sm:$0xff] }
 0x43a   : > { %v3576_v35 = vadd.f32 %v12169_v63, %v3319_v14  ;;  %3589 = vst [vmem:[#allocation2 + $0x18] sm:$0xff] %v3557_v59  ;;  %3605 = vst [vmem:[#allocation2 + $0x98] sm:$0xff] %v3573_v28  ;;  %v3558_v44 = vadd.f32 %v12170_v24, %v3301_v9  ;;  %v3574_v2 = vadd.f32 %v12171_v53, %v3317_v58  ;;  %v3064_v37 = vsel %vm3032_vm8, 0.0003613308, %v6760_v54  ;;  %v3321_v14 = vld [vmem:[#allocation2 + $0xc0] sm:$0xff]  ;;  %v3322_v58 = vld [vmem:[#allocation2 + $0xc8] sm:$0xff] }
 0x43b   : > { %v2695_v13 = vadd.f32 %v2663_v38, %v2595_v5  ;;  %v2696_v25 = vadd.f32 %v2664_v26, %v2596_v39  ;;  %3587 = vst [vmem:[#allocation2 + $0x8] sm:$0xff] %v3555_v61  ;;  %3603 = vst [vmem:[#allocation2 + $0x88] sm:$0xff] %v3571_v7  ;;  %v3561_v50 = vadd.f32 %v12172_v10, %v3304_v62  ;;  %v3312_v61 = vld [vmem:[#allocation2 + $0x78] sm:$0xff]  ;;  %v3325_v53 = vld [vmem:[#allocation2 + $0xe0] sm:$0xff] }
 0x43c   : > { %3592 = vst [vmem:[#allocation2 + $0x30] sm:$0xff] %v3560_v56  ;;  %3608 = vst [vmem:[#allocation2 + $0xb0] sm:$0xff] %v3576_v35  ;;  %v3577_v15 = vadd.f32 %v12173_v32, %v3320_v1  ;;  %v3559_v49 = vadd.f32 %v12174_v42, %v3302_v21  ;;  %v3575_v48 = vadd.f32 %v12175_v33, %v3318_v60  ;;  %v3311_v1 = vld [vmem:[#allocation2 + $0x70] sm:$0xff]  ;;  %v3309_v21 = vld [vmem:[#allocation2 + $0x60] sm:$0xff] }
 0x43d   : > { %v2795_v46 = vadd.f32 %v2763_v29, %v2695_v13  ;;  %v2796_v43 = vadd.f32 %v2764_v34, %v2696_v25  ;;  %vm3131_vm9 = vcmp.eq.s32.totalorder %v9670_v55, %v7417_v23  ;;  %vm3132_vm10 = vcmp.eq.s32.totalorder %v9673_v51, %v7417_v23  ;;  %3590 = vst [vmem:[#allocation2 + $0x20] sm:$0xff] %v3558_v44  ;;  %v3310_v56 = vld [vmem:[#allocation2 + $0x68] sm:$0xff]  ;;  %v3327_v44 = vld [vmem:[#allocation2 + $0xf0] sm:$0xff]  ;;  %v3328_v10 = vld [vmem:[#allocation2 + $0xf8] sm:$0xff] }
 0x43e   : > { %3606 = vst [vmem:[#allocation2 + $0xa0] sm:$0xff] %v3574_v2  ;;  %3593 = vst [vmem:[#allocation2 + $0x38] sm:$0xff] %v3561_v50  ;;  %vm3231_vm11 = vcmp.eq.s32.totalorder %v9670_v55, %v7443_v6  ;;  %vm3232_vm12 = vcmp.eq.s32.totalorder %v9673_v51, %v7443_v6  ;;  %v3163_v23 = vsel %vm3131_vm9, 0.015857518, %v6760_v54  ;;  %v3164_v36 = vsel %vm3132_vm10, 0.015857518, %v6760_v54 }
 0x43f   : > { %v2895_v30 = vadd.f32 %v2863_v52, %v2795_v46  ;;  %v2896_v3 = vadd.f32 %v2864_v17, %v2796_v43  ;;  %3609 = vst [vmem:[#allocation2 + $0xb8] sm:$0xff] %v3577_v15  ;;  %3591 = vst [vmem:[#allocation2 + $0x28] sm:$0xff] %v3559_v49  ;;  %v3263_v22 = vsel %vm3231_vm11, 0.0003613308, %v6760_v54  ;;  %v3264_v12 = vsel %vm3232_vm12, 0.0003613308, %v6760_v54 }
 0x440   : > { %3607 = vst [vmem:[#allocation2 + $0xa8] sm:$0xff] %v3575_v48  ;;  %v3307_v55 = vld [vmem:[#allocation2 + $0x50] sm:$0xff]  ;;  %v3308_v6 = vld [vmem:[#allocation2 + $0x58] sm:$0xff]  ;;  %v3326_v15 = vld [vmem:[#allocation2 + $0xe8] sm:$0xff] }
 0x441   : > { %v2995_v41 = vadd.f32 %v2963_v16, %v2895_v30  ;;  %v2996_v4 = vadd.f32 %v2964_v31, %v2896_v3  ;;  %v3306_v16 = vld [vmem:[#allocation2 + $0x48] sm:$0xff] }
 0x443   : > { %v3095_v38 = vadd.f32 %v3063_v20, %v2995_v41  ;;  %v3096_v26 = vadd.f32 %v3064_v37, %v2996_v4 }
 0x445   : > { %v3195_v40 = vadd.f32 %v3163_v23, %v3095_v38  ;;  %v3196_v45 = vadd.f32 %v3164_v36, %v3096_v26 }
 0x447   : > { %v3295_v29 = vadd.f32 %v3263_v22, %v3195_v40  ;;  %v3296_v34 = vadd.f32 %v3264_v12, %v3196_v45 }
 0x449   : > { %v3344_v47 = vpack.c.bf16 %v3296_v34, %v3295_v29 }
 0x44b   : > { %6202 = vmatmul.mubr.bf16.gmra.mrb[12].mxu1 %v3344_v47 }
 0x452   : > { %v6183_v52 = vpop.f32.mrb[8].mxu0 }
 0x453   : > { %v3564_v51 = vadd.f32 %v6183_v52, %v3307_v55  ;;  %v3459_v17 = vpop.f32.mrb[9].mxu0 }
 0x454   : > { %v3562_v5 = vadd.f32 %v3459_v17, %v3305_v27  ;;  %v6184_v39 = vpop.f32.mrb[10].mxu0 }
 0x455   : > { %3596 = vst [vmem:[#allocation2 + $0x50] sm:$0xff] %v3564_v51  ;;  %v3565_v31 = vadd.f32 %v6184_v39, %v3308_v6  ;;  %v3462_v11 = vpop.f32.mrb[11].mxu0 }
 0x456   : > { %3594 = vst [vmem:[#allocation2 + $0x40] sm:$0xff] %v3562_v5  ;;  %v3563_v54 = vadd.f32 %v3462_v11, %v3306_v16 }
 0x457   : > { %3597 = vst [vmem:[#allocation2 + $0x58] sm:$0xff] %v3565_v31 }
 0x458   : > { %3595 = vst [vmem:[#allocation2 + $0x48] sm:$0xff] %v3563_v54 }
 0x47c   : > { %v6199_v18 = vpop.f32.mrb[8].mxu1 }
 0x47d   : > { %v3580_v19 = vadd.f32 %v6199_v18, %v3323_v57  ;;  %v3523_v9 = vpop.f32.mrb[9].mxu1 }
 0x47e   : > { %v3578_v62 = vadd.f32 %v3523_v9, %v3321_v14  ;;  %v6200_v13 = vpop.f32.mrb[10].mxu1 }
 0x47f   : > { %3612 = vst [vmem:[#allocation2 + $0xd0] sm:$0xff] %v3580_v19  ;;  %v3581_v25 = vadd.f32 %v6200_v13, %v3324_v0  ;;  %v3526_v59 = vpop.f32.mrb[11].mxu1 }
 0x480   : > { %3610 = vst [vmem:[#allocation2 + $0xc0] sm:$0xff] %v3578_v62  ;;  %v3579_v28 = vadd.f32 %v3526_v59, %v3322_v58 }
 0x481   : > { %3613 = vst [vmem:[#allocation2 + $0xd8] sm:$0xff] %v3581_v25 }
 0x482   : > { %3611 = vst [vmem:[#allocation2 + $0xc8] sm:$0xff] %v3579_v28 }
 0x4f6   : > { %v6187_v60 = vpop.f32.mrb[12].mxu0 }
 0x4f7   : > { %v3568_v7 = vadd.f32 %v6187_v60, %v3311_v1  ;;  %v3475_v8 = vpop.f32.mrb[13].mxu0 }
 0x4f8   : > { %v3566_v63 = vadd.f32 %v3475_v8, %v3309_v21  ;;  %v6188_v35 = vpop.f32.mrb[14].mxu0 }
 0x4f9   : > { %3600 = vst [vmem:[#allocation2 + $0x70] sm:$0xff] %v3568_v7  ;;  %v3569_v46 = vadd.f32 %v6188_v35, %v3312_v61  ;;  %v3478_v43 = vpop.f32.mrb[15].mxu0 }
 0x4fa   : > { %3598 = vst [vmem:[#allocation2 + $0x60] sm:$0xff] %v3566_v63  ;;  %v3567_v24 = vadd.f32 %v3478_v43, %v3310_v56 }
 0x4fb   : > { %3601 = vst [vmem:[#allocation2 + $0x78] sm:$0xff] %v3569_v46 }
 0x4fc   : > { %3599 = vst [vmem:[#allocation2 + $0x68] sm:$0xff] %v3567_v24 }
 0x51e   : > { %v6203_v2 = vpop.f32.mrb[12].mxu1 }
 0x51f   : > { %v3584_v50 = vadd.f32 %v6203_v2, %v3327_v44  ;;  %v3539_v32 = vpop.f32.mrb[13].mxu1 }
 0x520   : > { %v3582_v42 = vadd.f32 %v3539_v32, %v3325_v53  ;;  %v6204_v49 = vpop.f32.mrb[14].mxu1 }
 0x521   : > { %3616 = vst [vmem:[#allocation2 + $0xf0] sm:$0xff] %v3584_v50  ;;  %v3585_v33 = vadd.f32 %v6204_v49, %v3328_v10  ;;  %v3542_v48 = vpop.f32.mrb[15].mxu1 }
 0x522   : > { %3614 = vst [vmem:[#allocation2 + $0xe0] sm:$0xff] %v3582_v42  ;;  %v3583_v30 = vadd.f32 %v3542_v48, %v3326_v15 }
 0x523   : > { %3617 = vst [vmem:[#allocation2 + $0xf8] sm:$0xff] %v3585_v33 }
 0x524   : > { %3615 = vst [vmem:[#allocation2 + $0xe8] sm:$0xff] %v3583_v30 }
 0x525 PF: > { %s12176_s15 = sld [smem:[#allocation18_spill]] }
 0x52b   : > { %p6120_p4 = scmp.ne.s32.totalorder %s12176_s15, 1 }
 0x52d   : > { %3621 = sbr.rel (%p6120_p4) target bundleno = 2061 (0x80d), region = 64 }
 0x534   : > { %v10040_v3 = vld [vmem:[#allocation2 + $0x10] sm:$0xff]  ;;  %v10042_v20 = vld [vmem:[#allocation2] sm:$0xff]  ;;  %v10044_v37 = vld [vmem:[#allocation2 + $0x18] sm:$0xff]  ;;  %v6761_v41 = vmov 64   ;;  %s6762_s29 = smov 32   ;;  %s6763_s19 = smov 64  }
 0x535   : > { %12177 = vst [vmem:[#allocation31_spill] sm:$0xff] %v10042_v20  ;;  %6365 = vset.pattern.permute.xlu1 %v6761_v41  ;;  %6364 = vset.pattern.permute.xlu0 %v6761_v41  ;;  %v3752_v4 = vadd.f32 1e-06, %v10040_v3  ;;  %v3750_v23 = vadd.f32 1e-06, %v10042_v20  ;;  %v10049_v38 = vld [vmem:[#allocation2 + $0x8] sm:$0xff] }
 0x536   : > { %v3753_v36 = vadd.f32 1e-06, %v10044_v37  ;;  %12178 = vst [vmem:[#allocation32_spill] sm:$0xff] %v10049_v38  ;;  %v10051_v26 = vld [vmem:[#allocation2 + $0x28] sm:$0xff]  ;;  %v3751_v22 = vadd.f32 1e-06, %v10049_v38 }
 0x537   : > { %6368 = vrcp.f32 %v3752_v4  ;;  %v10054_v12 = vld [vmem:[#allocation2 + $0x20] sm:$0xff]  ;;  %v3755_v40 = vadd.f32 1e-06, %v10051_v26  ;;  %v10058_v29 = vld [vmem:[#allocation2 + $0x38] sm:$0xff]  ;;  %v10060_v34 = vld [vmem:[#allocation2 + $0x30] sm:$0xff]  ;;  %s6765_s13 = smov 96  }
 0x538   : > { %6370 = vrcp.f32 %v3750_v23  ;;  %v3754_v45 = vadd.f32 1e-06, %v10054_v12  ;;  %v3757_v47 = vadd.f32 1e-06, %v10058_v29  ;;  %v3756_v55 = vadd.f32 1e-06, %v10060_v34 }
 0x539   : > { %6372 = vrcp.f32 %v3753_v36  ;;  %v10064_v27 = vld [vmem:[#allocation2 + $0x48] sm:$0xff]  ;;  %v10066_v52 = vld [vmem:[#allocation2 + $0x40] sm:$0xff]  ;;  %v10070_v5 = vld [vmem:[#allocation2 + $0x58] sm:$0xff]  ;;  %vm5735_vm13 = vcmask 7168   ;;  %vm5254_vm14 = vcmask 261120   ;;  %vm5768_vm15 = vcmask 1047808  }
 0x53a   : > { %6374 = vrcp.f32 %v3751_v22  ;;  %v3759_v51 = vadd.f32 1e-06, %v10064_v27  ;;  %v3758_v16 = vadd.f32 1e-06, %v10066_v52  ;;  %v10072_v31 = vld [vmem:[#allocation2 + $0x50] sm:$0xff]  ;;  %v10076_v14 = vld [vmem:[#allocation2 + $0x68] sm:$0xff] }
 0x53b   : > { %6376 = vrcp.f32 %v3755_v40  ;;  %v3761_v54 = vadd.f32 1e-06, %v10070_v5  ;;  %v3760_v57 = vadd.f32 1e-06, %v10072_v31  ;;  %v10078_v0 = vld [vmem:[#allocation2 + $0x60] sm:$0xff]  ;;  %v10082_v62 = vld [vmem:[#allocation2 + $0x78] sm:$0xff] }
 0x53c   : > { %6378 = vrcp.f32 %v3754_v45  ;;  %v3763_v9 = vadd.f32 1e-06, %v10076_v14  ;;  %v3762_v58 = vadd.f32 1e-06, %v10078_v0  ;;  %v10084_v25 = vld [vmem:[#allocation2 + $0x70] sm:$0xff]  ;;  %v10088_v21 = vld [vmem:[#allocation2 + $0x88] sm:$0xff] }
 0x53d   : > { %6380 = vrcp.f32 %v3757_v47  ;;  %v3765_v28 = vadd.f32 1e-06, %v10082_v62  ;;  %v3764_v1 = vadd.f32 1e-06, %v10084_v25  ;;  %v10090_v61 = vld [vmem:[#allocation2 + $0x80] sm:$0xff]  ;;  %v10094_v63 = vld [vmem:[#allocation2 + $0x98] sm:$0xff] }
 0x53e   : > { %6382 = vrcp.f32 %v3756_v55  ;;  %v3767_v8 = vadd.f32 1e-06, %v10088_v21  ;;  %v3766_v56 = vadd.f32 1e-06, %v10090_v61  ;;  %v10096_v46 = vld [vmem:[#allocation2 + $0x90] sm:$0xff]  ;;  %v10100_v53 = vld [vmem:[#allocation2 + $0xa8] sm:$0xff] }
 0x53f   : > { %6384 = vrcp.f32 %v3759_v51  ;;  %v3769_v24 = vadd.f32 1e-06, %v10094_v63  ;;  %v3768_v44 = vadd.f32 1e-06, %v10096_v46  ;;  %v10102_v10 = vld [vmem:[#allocation2 + $0xa0] sm:$0xff]  ;;  %v10106_v42 = vld [vmem:[#allocation2 + $0xb8] sm:$0xff] }
 0x540   : > { %6386 = vrcp.f32 %v3758_v16  ;;  %v3771_v32 = vadd.f32 1e-06, %v10100_v53  ;;  %v3770_v15 = vadd.f32 1e-06, %v10102_v10  ;;  %v10108_v33 = vld [vmem:[#allocation2 + $0xb0] sm:$0xff]  ;;  %v10112_v4 = vld [vmem:[#allocation2 + $0xc8] sm:$0xff] }
 0x541   : > { %v6369_v6 = vpop.eup %6368  ;;  %6388 = vrcp.f32 %v3761_v54  ;;  %v3773_v30 = vadd.f32 1e-06, %v10106_v42  ;;  %v3772_v41 = vadd.f32 1e-06, %v10108_v33  ;;  %v10114_v36 = vld [vmem:[#allocation2 + $0xc0] sm:$0xff]  ;;  %v10118_v47 = vld [vmem:[#allocation2 + $0xd8] sm:$0xff] }
 0x542   : > { %v6371_v17 = vpop.eup %6370  ;;  %3858 = vperm.xlu1 %6365, %v6369_v6   ;;  %6390 = vrcp.f32 %v3760_v57  ;;  %v3775_v40 = vadd.f32 1e-06, %v10112_v4  ;;  %v3774_v45 = vadd.f32 1e-06, %v10114_v36  ;;  %12179 = vst [vmem:[#allocation33_spill] sm:$0xff] %v10118_v47  ;;  %v10120_v6 = vld [vmem:[#allocation2 + $0xd0] sm:$0xff] }
 0x543   : > { %v6373_v39 = vpop.eup %6372  ;;  %3848 = vperm.xlu0 %6364, %v6371_v17   ;;  %6392 = vrcp.f32 %v3763_v9  ;;  %12180 = vst [vmem:[#allocation34_spill] sm:$0xff] %v10120_v6  ;;  %v3777_v17 = vadd.f32 1e-06, %v10118_v47  ;;  %v3776_v16 = vadd.f32 1e-06, %v10120_v6  ;;  %v10126_v54 = vld [vmem:[#allocation2 + $0xe0] sm:$0xff] }
 0x544   : > { %v6375_v11 = vpop.eup %6374  ;;  %6394 = vrcp.f32 %v3762_v58  ;;  %12182 = vst [vmem:[#allocation36_spill] sm:$0xff] %v10126_v54  ;;  %v10130_v9 = vld [vmem:[#allocation2 + $0xf8] sm:$0xff] }
 0x545   : > { %v6377_v18 = vpop.eup %6376  ;;  %6396 = vrcp.f32 %v3765_v28  ;;  %12183 = vst [vmem:[#allocation37_spill] sm:$0xff] %v10130_v9  ;;  %v3781_v28 = vadd.f32 1e-06, %v10130_v9 }
 0x546   : > { %3863 = vperm.xlu1 %6365, %v6373_v39   ;;  %v6379_v19 = vpop.eup %6378  ;;  %6398 = vrcp.f32 %v3764_v1  ;;  %v10124_v39 = vld [vmem:[#allocation2 + $0xe8] sm:$0xff] }
 0x547   : > { %3853 = vperm.xlu0 %6364, %v6375_v11   ;;  %v6381_v13 = vpop.eup %6380  ;;  %6400 = vrcp.f32 %v3767_v8  ;;  %12181 = vst [vmem:[#allocation35_spill] sm:$0xff] %v10124_v39 }
 0x548   : > { %v6383_v59 = vpop.eup %6382  ;;  %6402 = vrcp.f32 %v3766_v56 }
 0x549   : > { %v6385_v60 = vpop.eup %6384  ;;  %6404 = vrcp.f32 %v3769_v24 }
 0x54a   : > { %3873 = vperm.xlu1 %6365, %v6377_v18   ;;  %v6387_v7 = vpop.eup %6386  ;;  %6406 = vrcp.f32 %v3768_v44  ;;  %v3779_v18 = vadd.f32 1e-06, %v10124_v39 }
 0x54b   : > { %3868 = vperm.xlu0 %6364, %v6379_v19   ;;  %v6389_v35 = vpop.eup %6388  ;;  %6408 = vrcp.f32 %v3771_v32  ;;  %v3778_v19 = vadd.f32 1e-06, %v10126_v54 }
 0x54c   : > { %v6391_v43 = vpop.eup %6390  ;;  %6410 = vrcp.f32 %v3770_v15 }
 0x54d   : > { %v6393_v2 = vpop.eup %6392  ;;  %6412 = vrcp.f32 %v3773_v30 }
 0x54e   : > { %3883 = vperm.xlu1 %6365, %v6381_v13   ;;  %v6395_v50 = vpop.eup %6394  ;;  %6414 = vrcp.f32 %v3772_v41  ;;  %v10132_v13 = vld [vmem:[#allocation2 + $0xf0] sm:$0xff] }
 0x54f   : > { %3878 = vperm.xlu0 %6364, %v6383_v59   ;;  %v6397_v49 = vpop.eup %6396  ;;  %6416 = vrcp.f32 %v3775_v40  ;;  %12184 = vst [vmem:[#allocation38_spill] sm:$0xff] %v10132_v13  ;;  %v3780_v1 = vadd.f32 1e-06, %v10132_v13 }
 0x550   : > { %v6399_v48 = vpop.eup %6398  ;;  %6418 = vrcp.f32 %v3774_v45 }
 0x551   : > { %v6401_v23 = vpop.eup %6400  ;;  %6420 = vrcp.f32 %v3777_v17 }
 0x552   : > { %3893 = vperm.xlu1 %6365, %v6385_v60   ;;  %v6403_v22 = vpop.eup %6402  ;;  %6422 = vrcp.f32 %v3776_v16 }
 0x553   : > { %3888 = vperm.xlu0 %6364, %v6387_v7   ;;  %v6405_v55 = vpop.eup %6404  ;;  %6424 = vrcp.f32 %v3779_v18 }
 0x554   : > { %v6407_v51 = vpop.eup %6406  ;;  %6426 = vrcp.f32 %v3778_v19 }
 0x555   : > { %v6409_v11 = vpop.eup %6408  ;;  %6428 = vrcp.f32 %v3781_v28 }
 0x556   : > { %3903 = vperm.xlu1 %6365, %v6389_v35   ;;  %v6411_v57 = vpop.eup %6410  ;;  %6430 = vrcp.f32 %v3780_v1 }
 0x557   : > { %3898 = vperm.xlu0 %6364, %v6391_v43   ;;  %v6413_v58 = vpop.eup %6412 }
 0x558   : > { %v6415_v59 = vpop.eup %6414 }
 0x559   : > { %v6417_v60 = vpop.eup %6416 }
 0x55a   : > { %3913 = vperm.xlu1 %6365, %v6393_v2   ;;  %v6419_v7 = vpop.eup %6418 }
 0x55b   : > { %3908 = vperm.xlu0 %6364, %v6395_v50   ;;  %v6421_v8 = vpop.eup %6420 }
 0x55c   : > { %v6423_v56 = vpop.eup %6422 }
 0x55d   : > { %v6425_v35 = vpop.eup %6424 }
 0x55e   : > { %3923 = vperm.xlu1 %6365, %v6397_v49   ;;  %v6427_v43 = vpop.eup %6426 }
 0x55f   : > { %3918 = vperm.xlu0 %6364, %v6399_v48   ;;  %v6429_v24 = vpop.eup %6428 }
 0x560   : > { %v6431_v44 = vpop.eup %6430 }
 0x562   : > { %3933 = vperm.xlu1 %6365, %v6401_v23  }
 0x563   : > { %3928 = vperm.xlu0 %6364, %v6403_v22  }
 0x566   : > { %3943 = vperm.xlu1 %6365, %v6405_v55  }
 0x567   : > { %3938 = vperm.xlu0 %6364, %v6407_v51  }
 0x56a   : > { %3953 = vperm.xlu1 %6365, %v6409_v11  }
 0x56b   : > { %3948 = vperm.xlu0 %6364, %v6411_v57  }
 0x56e   : > { %3963 = vperm.xlu1 %6365, %v6413_v58  }
 0x56f   : > { %3958 = vperm.xlu0 %6364, %v6415_v59  }
 0x572   : > { %3973 = vperm.xlu1 %6365, %v6417_v60  }
 0x573   : > { %3968 = vperm.xlu0 %6364, %v6419_v7  }
 0x576   : > { %3983 = vperm.xlu1 %6365, %v6421_v8  }
 0x577   : > { %3978 = vperm.xlu0 %6364, %v6423_v56  }
 0x57a   : > { %3993 = vperm.xlu1 %6365, %v6425_v35  }
 0x57b   : > { %3988 = vperm.xlu0 %6364, %v6427_v43  }
 0x57e   : > { %4003 = vperm.xlu1 %6365, %v6429_v24  }
 0x57f   : > { %3998 = vperm.xlu0 %6364, %v6431_v44  }
 0x582   : > { %4077 = vperm.xlu1 %6365, %v10049_v38  }
 0x583   : > { %4072 = vperm.xlu0 %6364, %v10042_v20  }
 0x586   : > { %4087 = vperm.xlu1 %6365, %v10044_v37  }
 0x587   : > { %4082 = vperm.xlu0 %6364, %v10040_v3  }
 0x58a   : > { %4097 = vperm.xlu1 %6365, %v10051_v26  }
 0x58b   : > { %4092 = vperm.xlu0 %6364, %v10054_v12  }
 0x58e   : > { %4107 = vperm.xlu1 %6365, %v10058_v29  }
 0x58f   : > { %4102 = vperm.xlu0 %6364, %v10060_v34  }
 0x592   : > { %4117 = vperm.xlu1 %6365, %v10064_v27  }
 0x593   : > { %4112 = vperm.xlu0 %6364, %v10066_v52  }
 0x596   : > { %4127 = vperm.xlu1 %6365, %v10070_v5  }
 0x597   : > { %4122 = vperm.xlu0 %6364, %v10072_v31  }
 0x59a   : > { %4137 = vperm.xlu1 %6365, %v10076_v14  }
 0x59b   : > { %4132 = vperm.xlu0 %6364, %v10078_v0  }
 0x59e   : > { %4147 = vperm.xlu1 %6365, %v10082_v62  }
 0x59f   : > { %4142 = vperm.xlu0 %6364, %v10084_v25  }
 0x5a2   : > { %4157 = vperm.xlu1 %6365, %v10088_v21  }
 0x5a3   : > { %4152 = vperm.xlu0 %6364, %v10090_v61  }
 0x5a6   : > { %4167 = vperm.xlu1 %6365, %v10094_v63  }
 0x5a7   : > { %4162 = vperm.xlu0 %6364, %v10096_v46  }
 0x5aa   : > { %4177 = vperm.xlu1 %6365, %v10100_v53  }
 0x5ab   : > { %4172 = vperm.xlu0 %6364, %v10102_v10  }
 0x5ae   : > { %4187 = vperm.xlu1 %6365, %v10106_v42  }
 0x5af   : > { %4182 = vperm.xlu0 %6364, %v10108_v33  }
 0x5b2   : > { %4197 = vperm.xlu1 %6365, %v10112_v4  }
 0x5b3   : > { %4192 = vperm.xlu0 %6364, %v10114_v36  }
 0x5b6   : > { %4207 = vperm.xlu1 %6365, %v10118_v47  }
 0x5b7   : > { %4202 = vperm.xlu0 %6364, %v10120_v6   ;;  %v4038_v6 = vmul.f32 2.0, %v10042_v20 }
 0x5ba   : > { %4217 = vperm.xlu1 %6365, %v10124_v39  }
 0x5bb   : > { %4212 = vperm.xlu0 %6364, %v10126_v54  }
 0x5be   : > { %4227 = vperm.xlu1 %6365, %v10130_v9   ;;  %v4039_v9 = vmul.f32 2.0, %v10049_v38 }
 0x5bf   : > { %4222 = vperm.xlu0 %6364, %v10132_v13  }
 0x5c1   : > { %v3859_v2 = vpop.permute.xlu1 %3858 }
 0x5c2   : > { %v3849_v50 = vpop.permute.xlu0 %3848 }
 0x5c3   : > { %v10223_v54 = vmul.f32 %v3849_v50, %v10042_v20  ;;  %v10238_v50 = vmul.f32 %v3859_v2, %v10040_v3 }
 0x5c5   : > { %v3864_v32 = vpop.permute.xlu1 %3863 }
 0x5c6   : > { %v3854_v15 = vpop.permute.xlu0 %3853 }
 0x5c7   : > { %v10219_v13 = vmul.f32 %v3854_v15, %v10049_v38  ;;  %v4041_v38 = vmul.f32 2.0, %v10044_v37 }
 0x5c9   : > { %v3874_v49 = vpop.permute.xlu1 %3873 }
 0x5ca   : > { %v3869_v48 = vpop.permute.xlu0 %3868 }
 0x5cd   : > { %v3884_v30 = vpop.permute.xlu1 %3883 }
 0x5ce   : > { %v10168_v41 = vpop.permute.xlu0 %3878 }
 0x5d1   : > { %v10170_v23 = vpop.permute.xlu1 %3893 }
 0x5d2   : > { %v10172_v22 = vpop.permute.xlu0 %3888 }
 0x5d5   : > { %v10174_v40 = vpop.permute.xlu1 %3903 }
 0x5d6   : > { %v10176_v45 = vpop.permute.xlu0 %3898 }
 0x5d9   : > { %v10178_v55 = vpop.permute.xlu1 %3913 }
 0x5da   : > { %v10180_v51 = vpop.permute.xlu0 %3908 }
 0x5dd   : > { %v10182_v17 = vpop.permute.xlu1 %3923 }
 0x5de   : > { %v10184_v16 = vpop.permute.xlu0 %3918 }
 0x5e1   : > { %v10186_v11 = vpop.permute.xlu1 %3933 }
 0x5e2   : > { %v10188_v57 = vpop.permute.xlu0 %3928 }
 0x5e5   : > { %v10190_v18 = vpop.permute.xlu1 %3943 }
 0x5e6   : > { %v10192_v19 = vpop.permute.xlu0 %3938 }
 0x5e9   : > { %v10194_v58 = vpop.permute.xlu1 %3953 }
 0x5ea   : > { %v10196_v59 = vpop.permute.xlu0 %3948 }
 0x5ed   : > { %v10198_v28 = vpop.permute.xlu1 %3963 }
 0x5ee   : > { %v10200_v1 = vpop.permute.xlu0 %3958 }
 0x5f1   : > { %v10202_v60 = vpop.permute.xlu1 %3973 }
 0x5f2   : > { %v10204_v7 = vpop.permute.xlu0 %3968 }
 0x5f5   : > { %v10206_v8 = vpop.permute.xlu1 %3983 }
 0x5f6   : > { %12185 = vst [vmem:[#allocation39_spill] sm:$0xff] %v10206_v8  ;;  %v10208_v56 = vpop.permute.xlu0 %3978 }
 0x5f7   : > { %12186 = vst [vmem:[#allocation40_spill] sm:$0xff] %v10208_v56 }
 0x5f9   : > { %v10210_v35 = vpop.permute.xlu1 %3993 }
 0x5fa   : > { %12187 = vst [vmem:[#allocation41_spill] sm:$0xff] %v10210_v35  ;;  %v10212_v43 = vpop.permute.xlu0 %3988 }
 0x5fb   : > { %12188 = vst [vmem:[#allocation42_spill] sm:$0xff] %v10212_v43 }
 0x5fd   : > { %v10214_v24 = vpop.permute.xlu1 %4003 }
 0x5fe   : > { %12189 = vst [vmem:[#allocation43_spill] sm:$0xff] %v10214_v24  ;;  %v10216_v44 = vpop.permute.xlu0 %3998 }
 0x5ff   : > { %12190 = vst [vmem:[#allocation44_spill] sm:$0xff] %v10216_v44  ;;  %v10233_v44 = vmul.f32 %v3864_v32, %v10044_v37 }
 0x601   : > { %v4078_v39 = vpop.permute.xlu1 %4077 }
 0x602   : > { %v10227_v56 = vmul.f32 %v4078_v39, %v10219_v13  ;;  %v4073_v35 = vpop.permute.xlu0 %4072  ;;  %v4040_v39 = vmul.f32 2.0, %v10040_v3 }
 0x603   : > { %v10230_v43 = vmul.f32 %v4073_v35, %v10223_v54 }
 0x604   : > { %12191 = vst [vmem:[#allocation45_spill] sm:$0xff] %v10227_v56  ;;  %v4263_v15 = vsub.f32 %v4039_v9, %v10227_v56  ;;  %v10251_v56 = vmul.f32 %v3874_v49, %v10051_v26 }
 0x605   : > { %12192 = vst [vmem:[#allocation46_spill] sm:$0xff] %v10230_v43  ;;  %v4262_v24 = vsub.f32 %v4038_v6, %v10230_v43  ;;  %v4088_v20 = vpop.permute.xlu1 %4087  ;;  %v4043_v6 = vmul.f32 2.0, %v10051_v26 }
 0x606   : > { %v10243_v8 = vmul.f32 %v4088_v20, %v10233_v44  ;;  %v4083_v35 = vpop.permute.xlu0 %4082  ;;  %v4295_v47 = vmul.f32 %v4263_v15, %v10219_v13  ;;  %v10257_v20 = vmul.f32 %v3869_v48, %v10054_v12  ;;  %v10271_v48 = vmul.f32 %v3884_v30, %v10058_v29 }
 0x607   : > { %v10247_v32 = vmul.f32 %v4083_v35, %v10238_v50  ;;  %v4294_v9 = vmul.f32 %v4262_v24, %v10223_v54  ;;  %v4042_v24 = vmul.f32 2.0, %v10054_v12 }
 0x608   : > { %12193 = vst [vmem:[#allocation47_spill] sm:$0xff] %v10243_v8  ;;  %v4265_v2 = vsub.f32 %v4041_v38, %v10243_v8  ;;  %4360 = vrot.lane.b32.xlu1 %v4295_v47, %s6762_s29  ;;  %12197 = vst [vmem:[#allocation51_spill] sm:$0xff] %v10271_v48 }
 0x609   : > { %12194 = vst [vmem:[#allocation48_spill] sm:$0xff] %v10247_v32  ;;  %v4264_v15 = vsub.f32 %v4040_v39, %v10247_v32  ;;  %4358 = vrot.lane.b32.xlu0 %v4294_v9, %s6762_s29  ;;  %v4098_v35 = vpop.permute.xlu1 %4097  ;;  %v4045_v9 = vmul.f32 2.0, %v10058_v29 }
 0x60a   : > { %v10263_v49 = vmul.f32 %v4098_v35, %v10251_v56  ;;  %v4093_v43 = vpop.permute.xlu0 %4092  ;;  %v4297_v38 = vmul.f32 %v4265_v2, %v10233_v44  ;;  %v10278_v35 = vmul.f32 %v10168_v41, %v10060_v34  ;;  %v10293_v41 = vmul.f32 %v10170_v23, %v10064_v27 }
 0x60b   : > { %v10267_v47 = vmul.f32 %v4093_v43, %v10257_v20  ;;  %v4296_v8 = vmul.f32 %v4264_v15, %v10238_v50  ;;  %v4044_v15 = vmul.f32 2.0, %v10060_v34 }
 0x60c   : > { %12195 = vst [vmem:[#allocation49_spill] sm:$0xff] %v10263_v49  ;;  %v4267_v39 = vsub.f32 %v4043_v6, %v10263_v49  ;;  %4364 = vrot.lane.b32.xlu1 %v4297_v38, %s6762_s29  ;;  %12200 = vst [vmem:[#allocation54_spill] sm:$0xff] %v10293_v41 }
 0x60d   : > { %12196 = vst [vmem:[#allocation50_spill] sm:$0xff] %v10267_v47  ;;  %v4266_v2 = vsub.f32 %v4042_v24, %v10267_v47  ;;  %4362 = vrot.lane.b32.xlu0 %v4296_v8, %s6762_s29  ;;  %v4108_v43 = vpop.permute.xlu1 %4107  ;;  %v4047_v24 = vmul.f32 2.0, %v10064_v27 }
 0x60e   : > { %v10284_v30 = vmul.f32 %v4108_v43, %v10271_v48  ;;  %v4103_v32 = vpop.permute.xlu0 %4102  ;;  %v4299_v6 = vmul.f32 %v4267_v39, %v10251_v56  ;;  %v10300_v43 = vmul.f32 %v10172_v22, %v10066_v52  ;;  %v10315_v22 = vmul.f32 %v10174_v40, %v10070_v5 }
 0x60f   : > { %v10288_v38 = vmul.f32 %v4103_v32, %v10278_v35  ;;  %v4298_v49 = vmul.f32 %v4266_v2, %v10257_v20  ;;  %v4046_v2 = vmul.f32 2.0, %v10066_v52 }
 0x610   : > { %12198 = vst [vmem:[#allocation52_spill] sm:$0xff] %v10284_v30  ;;  %v4269_v8 = vsub.f32 %v4045_v9, %v10284_v30  ;;  %4368 = vrot.lane.b32.xlu1 %v4299_v6, %s6762_s29  ;;  %12201 = vst [vmem:[#allocation55_spill] sm:$0xff] %v10300_v43 }
 0x611   : > { %12199 = vst [vmem:[#allocation53_spill] sm:$0xff] %v10288_v38  ;;  %v4268_v39 = vsub.f32 %v4044_v15, %v10288_v38  ;;  %4366 = vrot.lane.b32.xlu0 %v4298_v49, %s6762_s29  ;;  %v4118_v32 = vpop.permute.xlu1 %4117  ;;  %12204 = vst [vmem:[#allocation58_spill] sm:$0xff] %v10315_v22  ;;  %v4049_v15 = vmul.f32 2.0, %v10070_v5 }
 0x612   : > { %v10306_v23 = vmul.f32 %v4118_v32, %v10293_v41  ;;  %v4113_v47 = vpop.permute.xlu0 %4112  ;;  %v4301_v9 = vmul.f32 %v4269_v8, %v10271_v48  ;;  %v10322_v32 = vmul.f32 %v10176_v45, %v10072_v31  ;;  %v10337_v45 = vmul.f32 %v10178_v55, %v10076_v14 }
 0x613   : > { %v10310_v6 = vmul.f32 %v4113_v47, %v10300_v43  ;;  %v4300_v30 = vmul.f32 %v4268_v39, %v10278_v35  ;;  %v4048_v39 = vmul.f32 2.0, %v10072_v31 }
 0x614   : > { %12202 = vst [vmem:[#allocation56_spill] sm:$0xff] %v10306_v23  ;;  %v4271_v49 = vsub.f32 %v4047_v24, %v10306_v23  ;;  %4372 = vrot.lane.b32.xlu1 %v4301_v9, %s6762_s29  ;;  %12205 = vst [vmem:[#allocation59_spill] sm:$0xff] %v10322_v32 }
 0x615   : > { %12203 = vst [vmem:[#allocation57_spill] sm:$0xff] %v10310_v6  ;;  %v4270_v8 = vsub.f32 %v4046_v2, %v10310_v6  ;;  %4370 = vrot.lane.b32.xlu0 %v4300_v30, %s6762_s29  ;;  %v4128_v47 = vpop.permute.xlu1 %4127  ;;  %12208 = vst [vmem:[#allocation62_spill] sm:$0xff] %v10337_v45  ;;  %v4051_v2 = vmul.f32 2.0, %v10076_v14 }
 0x616   : > { %v10328_v40 = vmul.f32 %v4128_v47, %v10315_v22  ;;  %v4123_v38 = vpop.permute.xlu0 %4122  ;;  %v4303_v24 = vmul.f32 %v4271_v49, %v10293_v41  ;;  %v10344_v47 = vmul.f32 %v10180_v51, %v10078_v0  ;;  %v10359_v51 = vmul.f32 %v10182_v17, %v10082_v62  ;;  %v11008_v41 = vld [vmem:[%s7107_s6 + $0xe8] sm:$0xff] }
 0x617   : > { %v10332_v9 = vmul.f32 %v4123_v38, %v10322_v32  ;;  %v4302_v23 = vmul.f32 %v4270_v8, %v10300_v43  ;;  %v4050_v8 = vmul.f32 2.0, %v10078_v0 }
 0x618   : > { %12206 = vst [vmem:[#allocation60_spill] sm:$0xff] %v10328_v40  ;;  %v4273_v30 = vsub.f32 %v4049_v15, %v10328_v40  ;;  %4376 = vrot.lane.b32.xlu1 %v4303_v24, %s6762_s29  ;;  %12209 = vst [vmem:[#allocation63_spill] sm:$0xff] %v10344_v47 }
 0x619   : > { %12207 = vst [vmem:[#allocation61_spill] sm:$0xff] %v10332_v9  ;;  %v4272_v49 = vsub.f32 %v4048_v39, %v10332_v9  ;;  %4374 = vrot.lane.b32.xlu0 %v4302_v23, %s6762_s29  ;;  %v4138_v38 = vpop.permute.xlu1 %4137  ;;  %12212 = vst [vmem:[#allocation66_spill] sm:$0xff] %v10359_v51  ;;  %v4053_v39 = vmul.f32 2.0, %v10082_v62 }
 0x61a   : > { %v10350_v55 = vmul.f32 %v4138_v38, %v10337_v45  ;;  %v4133_v6 = vpop.permute.xlu0 %4132  ;;  %v4305_v15 = vmul.f32 %v4273_v30, %v10315_v22  ;;  %v10366_v38 = vmul.f32 %v10184_v16, %v10084_v25  ;;  %v10381_v16 = vmul.f32 %v10186_v11, %v10088_v21 }
 0x61b   : > { %v10354_v24 = vmul.f32 %v4133_v6, %v10344_v47  ;;  %v4304_v40 = vmul.f32 %v4272_v49, %v10322_v32  ;;  %v4052_v49 = vmul.f32 2.0, %v10084_v25 }
 0x61c   : > { %12210 = vst [vmem:[#allocation64_spill] sm:$0xff] %v10350_v55  ;;  %v4275_v23 = vsub.f32 %v4051_v2, %v10350_v55  ;;  %4380 = vrot.lane.b32.xlu1 %v4305_v15, %s6762_s29  ;;  %12213 = vst [vmem:[#allocation67_spill] sm:$0xff] %v10366_v38 }
 0x61d   : > { %12211 = vst [vmem:[#allocation65_spill] sm:$0xff] %v10354_v24  ;;  %v4274_v30 = vsub.f32 %v4050_v8, %v10354_v24  ;;  %4378 = vrot.lane.b32.xlu0 %v4304_v40, %s6762_s29  ;;  %v4148_v6 = vpop.permute.xlu1 %4147  ;;  %12216 = vst [vmem:[#allocation70_spill] sm:$0xff] %v10381_v16  ;;  %v4055_v8 = vmul.f32 2.0, %v10088_v21 }
 0x61e   : > { %v10372_v17 = vmul.f32 %v4148_v6, %v10359_v51  ;;  %v4143_v9 = vpop.permute.xlu0 %4142  ;;  %v4307_v2 = vmul.f32 %v4275_v23, %v10337_v45  ;;  %v10388_v6 = vmul.f32 %v10188_v57, %v10090_v61  ;;  %v10403_v57 = vmul.f32 %v10190_v18, %v10094_v63 }
 0x61f   : > { %v10376_v15 = vmul.f32 %v4143_v9, %v10366_v38  ;;  %v4306_v55 = vmul.f32 %v4274_v30, %v10344_v47  ;;  %v4054_v30 = vmul.f32 2.0, %v10090_v61 }
 0x620   : > { %12214 = vst [vmem:[#allocation68_spill] sm:$0xff] %v10372_v17  ;;  %v4277_v40 = vsub.f32 %v4053_v39, %v10372_v17  ;;  %4384 = vrot.lane.b32.xlu1 %v4307_v2, %s6762_s29  ;;  %12217 = vst [vmem:[#allocation71_spill] sm:$0xff] %v10388_v6 }
 0x621   : > { %12215 = vst [vmem:[#allocation69_spill] sm:$0xff] %v10376_v15  ;;  %v4276_v23 = vsub.f32 %v4052_v49, %v10376_v15  ;;  %4382 = vrot.lane.b32.xlu0 %v4306_v55, %s6762_s29  ;;  %v4158_v9 = vpop.permute.xlu1 %4157  ;;  %12220 = vst [vmem:[#allocation74_spill] sm:$0xff] %v10403_v57  ;;  %v4057_v49 = vmul.f32 2.0, %v10094_v63 }
 0x622   : > { %v10394_v11 = vmul.f32 %v4158_v9, %v10381_v16  ;;  %v4153_v24 = vpop.permute.xlu0 %4152  ;;  %v4309_v39 = vmul.f32 %v4277_v40, %v10359_v51  ;;  %v10410_v9 = vmul.f32 %v10192_v19, %v10096_v46  ;;  %v10425_v19 = vmul.f32 %v10194_v58, %v10100_v53 }
 0x623   : > { %v10398_v2 = vmul.f32 %v4153_v24, %v10388_v6  ;;  %v4308_v17 = vmul.f32 %v4276_v23, %v10366_v38  ;;  %v4056_v23 = vmul.f32 2.0, %v10096_v46 }
 0x624   : > { %12218 = vst [vmem:[#allocation72_spill] sm:$0xff] %v10394_v11  ;;  %v4279_v55 = vsub.f32 %v4055_v8, %v10394_v11  ;;  %4388 = vrot.lane.b32.xlu1 %v4309_v39, %s6762_s29  ;;  %12221 = vst [vmem:[#allocation75_spill] sm:$0xff] %v10410_v9 }
 0x625   : > { %12219 = vst [vmem:[#allocation73_spill] sm:$0xff] %v10398_v2  ;;  %v4278_v40 = vsub.f32 %v4054_v30, %v10398_v2  ;;  %4386 = vrot.lane.b32.xlu0 %v4308_v17, %s6762_s29  ;;  %v4168_v24 = vpop.permute.xlu1 %4167  ;;  %12224 = vst [vmem:[#allocation78_spill] sm:$0xff] %v10425_v19  ;;  %v4059_v30 = vmul.f32 2.0, %v10100_v53 }
 0x626   : > { %v10416_v18 = vmul.f32 %v4168_v24, %v10403_v57  ;;  %v4163_v15 = vpop.permute.xlu0 %4162  ;;  %v4311_v8 = vmul.f32 %v4279_v55, %v10381_v16  ;;  %v10432_v24 = vmul.f32 %v10196_v59, %v10102_v10  ;;  %v10447_v59 = vmul.f32 %v10198_v28, %v10106_v42 }
 0x627   : > { %v10420_v39 = vmul.f32 %v4163_v15, %v10410_v9  ;;  %v4310_v11 = vmul.f32 %v4278_v40, %v10388_v6  ;;  %v4058_v40 = vmul.f32 2.0, %v10102_v10 }
 0x628   : > { %12222 = vst [vmem:[#allocation76_spill] sm:$0xff] %v10416_v18  ;;  %v4281_v17 = vsub.f32 %v4057_v49, %v10416_v18  ;;  %4392 = vrot.lane.b32.xlu1 %v4311_v8, %s6762_s29  ;;  %12225 = vst [vmem:[#allocation79_spill] sm:$0xff] %v10432_v24 }
 0x629   : > { %12223 = vst [vmem:[#allocation77_spill] sm:$0xff] %v10420_v39  ;;  %v4280_v55 = vsub.f32 %v4056_v23, %v10420_v39  ;;  %4390 = vrot.lane.b32.xlu0 %v4310_v11, %s6762_s29  ;;  %v4178_v15 = vpop.permute.xlu1 %4177  ;;  %12228 = vst [vmem:[#allocation82_spill] sm:$0xff] %v10447_v59  ;;  %v4061_v23 = vmul.f32 2.0, %v10106_v42 }
 0x62a   : > { %v10438_v58 = vmul.f32 %v4178_v15, %v10425_v19  ;;  %v4173_v2 = vpop.permute.xlu0 %4172  ;;  %v4313_v49 = vmul.f32 %v4281_v17, %v10403_v57  ;;  %v10454_v15 = vmul.f32 %v10200_v1, %v10108_v33  ;;  %v10469_v1 = vmul.f32 %v10202_v60, %v10112_v4 }
 0x62b   : > { %v10442_v8 = vmul.f32 %v4173_v2, %v10432_v24  ;;  %v4312_v18 = vmul.f32 %v4280_v55, %v10410_v9  ;;  %v4060_v55 = vmul.f32 2.0, %v10108_v33 }
 0x62c   : > { %12226 = vst [vmem:[#allocation80_spill] sm:$0xff] %v10438_v58  ;;  %v4283_v11 = vsub.f32 %v4059_v30, %v10438_v58  ;;  %4396 = vrot.lane.b32.xlu1 %v4313_v49, %s6762_s29  ;;  %12229 = vst [vmem:[#allocation83_spill] sm:$0xff] %v10454_v15 }
 0x62d   : > { %12227 = vst [vmem:[#allocation81_spill] sm:$0xff] %v10442_v8  ;;  %v4282_v17 = vsub.f32 %v4058_v40, %v10442_v8  ;;  %4394 = vrot.lane.b32.xlu0 %v4312_v18, %s6762_s29  ;;  %v4188_v2 = vpop.permute.xlu1 %4187  ;;  %12232 = vst [vmem:[#allocation86_spill] sm:$0xff] %v10469_v1  ;;  %v4063_v40 = vmul.f32 2.0, %v10112_v4 }
 0x62e   : > { %v10460_v28 = vmul.f32 %v4188_v2, %v10447_v59  ;;  %v4183_v39 = vpop.permute.xlu0 %4182  ;;  %v4315_v30 = vmul.f32 %v4283_v11, %v10425_v19  ;;  %v10476_v2 = vmul.f32 %v10204_v7, %v10114_v36  ;;  %v12236_v7 = vld [vmem:[#allocation33_spill] sm:$0xff]  ;;  %v12237_v19 = vld [vmem:[#allocation39_spill] sm:$0xff] }
 0x62f   : > { %v10464_v49 = vmul.f32 %v4183_v39, %v10454_v15  ;;  %v4314_v58 = vmul.f32 %v4282_v17, %v10432_v24  ;;  %v4062_v17 = vmul.f32 2.0, %v10114_v36  ;;  %v10491_v24 = vmul.f32 %v12237_v19, %v12236_v7 }
 0x630   : > { %12230 = vst [vmem:[#allocation84_spill] sm:$0xff] %v10460_v28  ;;  %v4285_v18 = vsub.f32 %v4061_v23, %v10460_v28  ;;  %4400 = vrot.lane.b32.xlu1 %v4315_v30, %s6762_s29  ;;  %12233 = vst [vmem:[#allocation87_spill] sm:$0xff] %v10476_v2 }
 0x631   : > { %12231 = vst [vmem:[#allocation85_spill] sm:$0xff] %v10464_v49  ;;  %v4284_v11 = vsub.f32 %v4060_v55, %v10464_v49  ;;  %4398 = vrot.lane.b32.xlu0 %v4314_v58, %s6762_s29  ;;  %v4198_v39 = vpop.permute.xlu1 %4197  ;;  %12238 = vst [vmem:[#allocation33_spill] sm:$0xff] %v10491_v24  ;;  %v4065_v55 = vmul.f32 2.0, %v12236_v7  ;;  %v12240_v49 = vld [vmem:[#allocation40_spill] sm:$0xff] }
 0x632   : > { %v10482_v60 = vmul.f32 %v4198_v39, %v10469_v1  ;;  %v4193_v8 = vpop.permute.xlu0 %4192  ;;  %v4317_v23 = vmul.f32 %v4285_v18, %v10447_v59  ;;  %v12239_v39 = vld [vmem:[#allocation34_spill] sm:$0xff] }
 0x633   : > { %v10486_v30 = vmul.f32 %v4193_v8, %v10476_v2  ;;  %v4316_v28 = vmul.f32 %v4284_v11, %v10454_v15  ;;  %v10498_v57 = vmul.f32 %v12240_v49, %v12239_v39  ;;  %v4064_v11 = vmul.f32 2.0, %v12239_v39  ;;  %v12244_v49 = vld [vmem:[#allocation35_spill] sm:$0xff]  ;;  %v12245_v15 = vld [vmem:[#allocation41_spill] sm:$0xff] }
 0x634   : > { %12234 = vst [vmem:[#allocation88_spill] sm:$0xff] %v10482_v60  ;;  %v4287_v58 = vsub.f32 %v4063_v40, %v10482_v60  ;;  %4404 = vrot.lane.b32.xlu1 %v4317_v23, %s6762_s29  ;;  %v10513_v9 = vmul.f32 %v12245_v15, %v12244_v49 }
 0x635   : > { %12235 = vst [vmem:[#allocation89_spill] sm:$0xff] %v10486_v30  ;;  %12241 = vst [vmem:[#allocation39_spill] sm:$0xff] %v10498_v57  ;;  %v4286_v18 = vsub.f32 %v4062_v17, %v10486_v30  ;;  %4402 = vrot.lane.b32.xlu0 %v4316_v28, %s6762_s29  ;;  %v4208_v8 = vpop.permute.xlu1 %4207  ;;  %v4067_v17 = vmul.f32 2.0, %v12244_v49  ;;  %v12248_v30 = vld [vmem:[#allocation42_spill] sm:$0xff] }
 0x636   : > { %v10504_v19 = vmul.f32 %v4208_v8, %v10491_v24  ;;  %v4203_v59 = vpop.permute.xlu0 %4202  ;;  %v4319_v40 = vmul.f32 %v4287_v58, %v10469_v1  ;;  %12246 = vst [vmem:[#allocation35_spill] sm:$0xff] %v10513_v9  ;;  %v12247_v8 = vld [vmem:[#allocation36_spill] sm:$0xff] }
 0x637   : > { %v10508_v23 = vmul.f32 %v4203_v59, %v10498_v57  ;;  %v4318_v60 = vmul.f32 %v4286_v18, %v10476_v2  ;;  %v10520_v16 = vmul.f32 %v12248_v30, %v12247_v8  ;;  %v4066_v18 = vmul.f32 2.0, %v12247_v8  ;;  %v12252_v30 = vld [vmem:[#allocation37_spill] sm:$0xff]  ;;  %v12253_v2 = vld [vmem:[#allocation43_spill] sm:$0xff] }
 0x638   : > { %12242 = vst [vmem:[#allocation34_spill] sm:$0xff] %v10504_v19  ;;  %v4289_v28 = vsub.f32 %v4065_v55, %v10504_v19  ;;  %4408 = vrot.lane.b32.xlu1 %v4319_v40, %s6762_s29  ;;  %v10535_v6 = vmul.f32 %v12253_v2, %v12252_v30 }
 0x639   : > { %12243 = vst [vmem:[#allocation40_spill] sm:$0xff] %v10508_v23  ;;  %12249 = vst [vmem:[#allocation41_spill] sm:$0xff] %v10520_v16  ;;  %v4288_v58 = vsub.f32 %v4064_v11, %v10508_v23  ;;  %4406 = vrot.lane.b32.xlu0 %v4318_v60, %s6762_s29  ;;  %v4218_v59 = vpop.permute.xlu1 %4217  ;;  %v4069_v11 = vmul.f32 2.0, %v12252_v30  ;;  %v12256_v23 = vld [vmem:[#allocation44_spill] sm:$0xff] }
 0x63a   : > { %v10526_v15 = vmul.f32 %v4218_v59, %v10513_v9  ;;  %v4213_v1 = vpop.permute.xlu0 %4212  ;;  %v4321_v55 = vmul.f32 %v4289_v28, %v10491_v24  ;;  %12254 = vst [vmem:[#allocation37_spill] sm:$0xff] %v10535_v6  ;;  %v12255_v59 = vld [vmem:[#allocation38_spill] sm:$0xff] }
 0x63b   : > { %v10530_v40 = vmul.f32 %v4213_v1, %v10520_v16  ;;  %v4320_v19 = vmul.f32 %v4288_v58, %v10498_v57  ;;  %v10542_v51 = vmul.f32 %v12256_v23, %v12255_v59  ;;  %v4068_v58 = vmul.f32 2.0, %v12255_v59 }
 0x63c   : > { %12250 = vst [vmem:[#allocation36_spill] sm:$0xff] %v10526_v15  ;;  %v4291_v60 = vsub.f32 %v4067_v17, %v10526_v15  ;;  %4412 = vrot.lane.b32.xlu1 %v4321_v55, %s6762_s29 }
 0x63d   : > { %12251 = vst [vmem:[#allocation42_spill] sm:$0xff] %v10530_v40  ;;  %12257 = vst [vmem:[#allocation43_spill] sm:$0xff] %v10542_v51  ;;  %v4290_v28 = vsub.f32 %v4066_v18, %v10530_v40  ;;  %4410 = vrot.lane.b32.xlu0 %v4320_v19, %s6762_s29  ;;  %v4228_v1 = vpop.permute.xlu1 %4227 }
 0x63e   : > { %v10548_v2 = vmul.f32 %v4228_v1, %v10535_v6  ;;  %v4223_v24 = vpop.permute.xlu0 %4222  ;;  %v4323_v17 = vmul.f32 %v4291_v60, %v10513_v9  ;;  %v12261_v60 = vld [vmem:[#allocation31_spill] sm:$0xff] }
 0x63f   : > { %v10552_v55 = vmul.f32 %v4223_v24, %v10542_v51  ;;  %v4322_v15 = vmul.f32 %v4290_v28, %v10520_v16  ;;  %v12260_v24 = vld [vmem:[#allocation32_spill] sm:$0xff] }
 0x640   : > { %12258 = vst [vmem:[#allocation38_spill] sm:$0xff] %v10548_v2  ;;  %v4293_v23 = vsub.f32 %v4069_v11, %v10548_v2  ;;  %4416 = vrot.lane.b32.xlu1 %v4323_v17, %s6762_s29  ;;  %v6764_v11 = vmov 0  }
 0x641   : > { %12259 = vst [vmem:[#allocation44_spill] sm:$0xff] %v10552_v55  ;;  %v4292_v19 = vsub.f32 %v4068_v58, %v10552_v55  ;;  %4414 = vrot.lane.b32.xlu0 %v4322_v15, %s6762_s29  ;;  %6367 = vset.pattern.permute.xlu1 %v6764_v11 }
 0x642   : > { %v4325_v18 = vmul.f32 %v4293_v23, %v10535_v6  ;;  %6366 = vset.pattern.permute.xlu0 %v6764_v11 }
 0x643   : > { %v4324_v1 = vmul.f32 %v4292_v19, %v10542_v51 }
 0x644   : > { %4420 = vrot.lane.b32.xlu1 %v4325_v18, %s6762_s29 }
 0x645   : > { %4418 = vrot.lane.b32.xlu0 %v4324_v1, %s6762_s29 }
 0x648   : > { %4520 = vrot.lane.b32.xlu1 %v12260_v24, %s6763_s19 }
 0x649   : > { %4518 = vrot.lane.b32.xlu0 %v12261_v60, %s6763_s19 }
 0x64c   : > { %4524 = vrot.lane.b32.xlu1 %v10044_v37, %s6763_s19 }
 0x64d   : > { %4522 = vrot.lane.b32.xlu0 %v10040_v3, %s6763_s19 }
 0x650   : > { %4528 = vrot.lane.b32.xlu1 %v10051_v26, %s6763_s19 }
 0x651   : > { %4526 = vrot.lane.b32.xlu0 %v10054_v12, %s6763_s19 }
 0x654   : > { %4532 = vrot.lane.b32.xlu1 %v10058_v29, %s6763_s19 }
 0x655   : > { %4530 = vrot.lane.b32.xlu0 %v10060_v34, %s6763_s19 }
 0x658   : > { %4536 = vrot.lane.b32.xlu1 %v10064_v27, %s6763_s19 }
 0x659   : > { %4534 = vrot.lane.b32.xlu0 %v10066_v52, %s6763_s19 }
 0x65c   : > { %4540 = vrot.lane.b32.xlu1 %v10070_v5, %s6763_s19 }
 0x65d   : > { %4538 = vrot.lane.b32.xlu0 %v10072_v31, %s6763_s19 }
 0x660   : > { %4544 = vrot.lane.b32.xlu1 %v10076_v14, %s6763_s19 }
 0x661   : > { %4542 = vrot.lane.b32.xlu0 %v10078_v0, %s6763_s19 }
 0x664   : > { %4548 = vrot.lane.b32.xlu1 %v10082_v62, %s6763_s19 }
 0x665   : > { %4546 = vrot.lane.b32.xlu0 %v10084_v25, %s6763_s19 }
 0x668   : > { %4552 = vrot.lane.b32.xlu1 %v10088_v21, %s6763_s19 }
 0x669   : > { %4550 = vrot.lane.b32.xlu0 %v10090_v61, %s6763_s19 }
 0x66c   : > { %4556 = vrot.lane.b32.xlu1 %v10094_v63, %s6763_s19 }
 0x66d   : > { %4554 = vrot.lane.b32.xlu0 %v10096_v46, %s6763_s19 }
 0x670   : > { %4560 = vrot.lane.b32.xlu1 %v10100_v53, %s6763_s19 }
 0x671   : > { %4558 = vrot.lane.b32.xlu0 %v10102_v10, %s6763_s19 }
 0x674   : > { %4564 = vrot.lane.b32.xlu1 %v10106_v42, %s6763_s19 }
 0x675   : > { %4562 = vrot.lane.b32.xlu0 %v10108_v33, %s6763_s19 }
 0x678   : > { %4568 = vrot.lane.b32.xlu1 %v10112_v4, %s6763_s19 }
 0x679   : > { %4566 = vrot.lane.b32.xlu0 %v10114_v36, %s6763_s19 }
 0x67a   : > { %v4361_v15 = vpop.permute.xlu1 %4360 }
 0x67b   : > { %v4359_v28 = vpop.permute.xlu0 %4358  ;;  %v4455_v23 = vsub.f32 %v12260_v24, %v4361_v15 }
 0x67c   : > { %4572 = vrot.lane.b32.xlu1 %v12236_v7, %s6763_s19  ;;  %v4454_v18 = vsub.f32 %v12261_v60, %v4359_v28 }
 0x67d   : > { %4570 = vrot.lane.b32.xlu0 %v12239_v39, %s6763_s19  ;;  %v4487_v11 = vmax.f32 %v4455_v23, 0.0 }
 0x67e   : > { %v4365_v58 = vpop.permute.xlu1 %4364  ;;  %v4486_v40 = vmax.f32 %v4454_v18, 0.0 }
 0x67f   : > { %v4363_v17 = vpop.permute.xlu0 %4362  ;;  %v4457_v2 = vsub.f32 %v10044_v37, %v4365_v58 }
 0x680   : > { %4576 = vrot.lane.b32.xlu1 %v12244_v49, %s6763_s19  ;;  %v4456_v6 = vsub.f32 %v10040_v3, %v4363_v17 }
 0x681   : > { %4574 = vrot.lane.b32.xlu0 %v12247_v8, %s6763_s19  ;;  %v4489_v24 = vmax.f32 %v4457_v2, 0.0 }
 0x682   : > { %v4369_v19 = vpop.permute.xlu1 %4368  ;;  %v4488_v28 = vmax.f32 %v4456_v6, 0.0 }
 0x683   : > { %v4367_v1 = vpop.permute.xlu0 %4366  ;;  %v4459_v60 = vsub.f32 %v10051_v26, %v4369_v19 }
 0x684   : > { %4580 = vrot.lane.b32.xlu1 %v12252_v30, %s6763_s19  ;;  %v4458_v9 = vsub.f32 %v10054_v12, %v4367_v1 }
 0x685   : > { %4578 = vrot.lane.b32.xlu0 %v12255_v59, %s6763_s19  ;;  %v4491_v37 = vmax.f32 %v4459_v60, 0.0 }
 0x686   : > { %v4373_v55 = vpop.permute.xlu1 %4372  ;;  %v4490_v17 = vmax.f32 %v4458_v9, 0.0 }
 0x687   : > { %v4371_v51 = vpop.permute.xlu0 %4370  ;;  %v4461_v3 = vsub.f32 %v10058_v29, %v4373_v55 }
 0x688   : > { %4872 = vrot.lane.b32.xlu1 %v4487_v11, %s6765_s13  ;;  %v4460_v18 = vsub.f32 %v10060_v34, %v4371_v51 }
 0x689   : > { %4870 = vrot.lane.b32.xlu0 %v4486_v40, %s6765_s13  ;;  %v4493_v26 = vmax.f32 %v4461_v3, 0.0 }
 0x68a   : > { %v4377_v15 = vpop.permute.xlu1 %4376  ;;  %v4492_v2 = vmax.f32 %v4460_v18, 0.0 }
 0x68b   : > { %v4375_v23 = vpop.permute.xlu0 %4374  ;;  %v4463_v12 = vsub.f32 %v10064_v27, %v4377_v15 }
 0x68c   : > { %4876 = vrot.lane.b32.xlu1 %v4489_v24, %s6765_s13  ;;  %v4462_v19 = vsub.f32 %v10066_v52, %v4375_v23 }
 0x68d   : > { %4874 = vrot.lane.b32.xlu0 %v4488_v28, %s6765_s13  ;;  %v4495_v29 = vmax.f32 %v4463_v12, 0.0 }
 0x68e   : > { %v4381_v58 = vpop.permute.xlu1 %4380  ;;  %v4494_v9 = vmax.f32 %v4462_v19, 0.0 }
 0x68f   : > { %v4379_v40 = vpop.permute.xlu0 %4378  ;;  %v4465_v34 = vsub.f32 %v10070_v5, %v4381_v58 }
 0x690   : > { %4880 = vrot.lane.b32.xlu1 %v4491_v37, %s6765_s13  ;;  %v4464_v55 = vsub.f32 %v10072_v31, %v4379_v40 }
 0x691   : > { %4878 = vrot.lane.b32.xlu0 %v4490_v17, %s6765_s13  ;;  %v4497_v27 = vmax.f32 %v4465_v34, 0.0 }
 0x692   : > { %v4385_v6 = vpop.permute.xlu1 %4384  ;;  %v4496_v60 = vmax.f32 %v4464_v55, 0.0 }
 0x693   : > { %v4383_v1 = vpop.permute.xlu0 %4382  ;;  %v4467_v52 = vsub.f32 %v10076_v14, %v4385_v6 }
 0x694   : > { %4884 = vrot.lane.b32.xlu1 %v4493_v26, %s6765_s13  ;;  %v4466_v15 = vsub.f32 %v10078_v0, %v4383_v1 }
 0x695   : > { %4882 = vrot.lane.b32.xlu0 %v4492_v2, %s6765_s13  ;;  %v4499_v5 = vmax.f32 %v4467_v52, 0.0 }
 0x696   : > { %v4389_v51 = vpop.permute.xlu1 %4388  ;;  %v4498_v37 = vmax.f32 %v4466_v15, 0.0 }
 0x697   : > { %v4387_v11 = vpop.permute.xlu0 %4386  ;;  %v4469_v31 = vsub.f32 %v10082_v62, %v4389_v51 }
 0x698   : > { %4888 = vrot.lane.b32.xlu1 %v4495_v29, %s6765_s13  ;;  %v4468_v3 = vsub.f32 %v10084_v25, %v4387_v11 }
 0x699   : > { %4886 = vrot.lane.b32.xlu0 %v4494_v9, %s6765_s13  ;;  %v4501_v14 = vmax.f32 %v4469_v31, 0.0 }
 0x69a   : > { %v4393_v24 = vpop.permute.xlu1 %4392  ;;  %v4500_v18 = vmax.f32 %v4468_v3, 0.0 }
 0x69b   : > { %v4391_v28 = vpop.permute.xlu0 %4390  ;;  %v4471_v0 = vsub.f32 %v10088_v21, %v4393_v24 }
 0x69c   : > { %4892 = vrot.lane.b32.xlu1 %v4497_v27, %s6765_s13  ;;  %v4470_v40 = vsub.f32 %v10090_v61, %v4391_v28 }
 0x69d   : > { %4890 = vrot.lane.b32.xlu0 %v4496_v60, %s6765_s13  ;;  %v4503_v62 = vmax.f32 %v4471_v0, 0.0 }
 0x69e   : > { %v4397_v23 = vpop.permute.xlu1 %4396  ;;  %v4502_v6 = vmax.f32 %v4470_v40, 0.0 }
 0x69f   : > { %v4395_v58 = vpop.permute.xlu0 %4394  ;;  %v4473_v25 = vsub.f32 %v10094_v63, %v4397_v23 }
 0x6a0   : > { %4896 = vrot.lane.b32.xlu1 %v4499_v5, %s6765_s13  ;;  %v4472_v2 = vsub.f32 %v10096_v46, %v4395_v58 }
 0x6a1   : > { %4894 = vrot.lane.b32.xlu0 %v4498_v37, %s6765_s13  ;;  %v4505_v21 = vmax.f32 %v4473_v25, 0.0 }
 0x6a2   : > { %v4401_v17 = vpop.permute.xlu1 %4400  ;;  %v4504_v29 = vmax.f32 %v4472_v2, 0.0 }
 0x6a3   : > { %v4399_v26 = vpop.permute.xlu0 %4398  ;;  %v4475_v61 = vsub.f32 %v10100_v53, %v4401_v17 }
 0x6a4   : > { %4900 = vrot.lane.b32.xlu1 %v4501_v14, %s6765_s13  ;;  %v4474_v34 = vsub.f32 %v10102_v10, %v4399_v26 }
 0x6a5   : > { %4898 = vrot.lane.b32.xlu0 %v4500_v18, %s6765_s13  ;;  %v4507_v63 = vmax.f32 %v4475_v61, 0.0  ;;  %v10693_v18 = vld [vmem:[%s7107_s6 + $0x18] sm:$0xff]  ;;  %v10709_v61 = vld [vmem:[%s7107_s6 + $0x28] sm:$0xff] }
 0x6a6   : > { %v4405_v12 = vpop.permute.xlu1 %4404  ;;  %v4506_v55 = vmax.f32 %v4474_v34, 0.0 }
 0x6a7   : > { %v4403_v19 = vpop.permute.xlu0 %4402  ;;  %v4477_v46 = vsub.f32 %v10106_v42, %v4405_v12 }
 0x6a8   : > { %4904 = vrot.lane.b32.xlu1 %v4503_v62, %s6765_s13  ;;  %v4476_v11 = vsub.f32 %v10108_v33, %v4403_v19 }
 0x6a9   : > { %4902 = vrot.lane.b32.xlu0 %v4502_v6, %s6765_s13  ;;  %v4509_v53 = vmax.f32 %v4477_v46, 0.0 }
 0x6aa   : > { %v4409_v1 = vpop.permute.xlu1 %4408  ;;  %v4508_v24 = vmax.f32 %v4476_v11, 0.0 }
 0x6ab   : > { %v4407_v51 = vpop.permute.xlu0 %4406  ;;  %v4479_v10 = vsub.f32 %v10112_v4, %v4409_v1  ;;  %v10681_v4 = vld [vmem:[%s7107_s6 + $0x8] sm:$0xff]  ;;  %v10715_v1 = vld [vmem:[%s7107_s6 + $0x20] sm:$0xff] }
 0x6ac   : > { %4908 = vrot.lane.b32.xlu1 %v4505_v21, %s6765_s13  ;;  %v4478_v60 = vsub.f32 %v10114_v36, %v4407_v51  ;;  %v10685_v36 = vld [vmem:[%s7107_s6] sm:$0xff] }
 0x6ad   : > { %4906 = vrot.lane.b32.xlu0 %v4504_v29, %s6765_s13  ;;  %v4511_v42 = vmax.f32 %v4479_v10, 0.0 }
 0x6ae   : > { %v4413_v9 = vpop.permute.xlu1 %4412  ;;  %v4510_v5 = vmax.f32 %v4478_v60, 0.0 }
 0x6af   : > { %v4411_v27 = vpop.permute.xlu0 %4410  ;;  %v4481_v33 = vsub.f32 %v12236_v7, %v4413_v9 }
 0x6b0   : > { %4912 = vrot.lane.b32.xlu1 %v4507_v63, %s6765_s13  ;;  %v4480_v31 = vsub.f32 %v12239_v39, %v4411_v27  ;;  %v10729_v27 = vld [vmem:[%s7107_s6 + $0x30] sm:$0xff] }
 0x6b1   : > { %4910 = vrot.lane.b32.xlu0 %v4506_v55, %s6765_s13  ;;  %v4513_v37 = vmax.f32 %v4481_v33, 0.0  ;;  %v10723_v55 = vld [vmem:[%s7107_s6 + $0x38] sm:$0xff] }
 0x6b2   : > { %v4417_v52 = vpop.permute.xlu1 %4416  ;;  %v4512_v58 = vmax.f32 %v4480_v31, 0.0  ;;  %v10748_v31 = vld [vmem:[%s7107_s6 + $0x40] sm:$0xff] }
 0x6b3   : > { %v4415_v15 = vpop.permute.xlu0 %4414  ;;  %v4483_v3 = vsub.f32 %v12244_v49, %v4417_v52  ;;  %v10699_v49 = vld [vmem:[%s7107_s6 + $0x10] sm:$0xff] }
 0x6b4   : > { %4916 = vrot.lane.b32.xlu1 %v4509_v53, %s6765_s13  ;;  %v4482_v39 = vsub.f32 %v12247_v8, %v4415_v15 }
 0x6b5   : > { %4914 = vrot.lane.b32.xlu0 %v4508_v24, %s6765_s13  ;;  %v4515_v26 = vmax.f32 %v4483_v3, 0.0 }
 0x6b6   : > { %v4421_v28 = vpop.permute.xlu1 %4420  ;;  %v4514_v12 = vmax.f32 %v4482_v39, 0.0 }
 0x6b7   : > { %v4419_v23 = vpop.permute.xlu0 %4418  ;;  %v4485_v8 = vsub.f32 %v12252_v30, %v4421_v28 }
 0x6b8   : > { %4920 = vrot.lane.b32.xlu1 %v4511_v42, %s6765_s13  ;;  %v4484_v6 = vsub.f32 %v12255_v59, %v4419_v23  ;;  %v10740_v42 = vld [vmem:[%s7107_s6 + $0x48] sm:$0xff] }
 0x6b9   : > { %4918 = vrot.lane.b32.xlu0 %v4510_v5, %s6765_s13  ;;  %v4517_v59 = vmax.f32 %v4485_v8, 0.0 }
 0x6ba   : > { %v4521_v7 = vpop.permute.xlu1 %4520  ;;  %v4516_v51 = vmax.f32 %v4484_v6, 0.0 }
 0x6bb   : > { %v4615_v14 = vadd.f32 %v4521_v7, %v10681_v4  ;;  %v4519_v0 = vpop.permute.xlu0 %4518  ;;  %v4743_v60 = vmul.f32 %v4521_v7, %v10681_v4 }
 0x6bc   : > { %v4614_v17 = vadd.f32 %v4519_v0, %v10685_v36  ;;  %4924 = vrot.lane.b32.xlu1 %v4513_v37, %s6765_s13  ;;  %v4742_v28 = vmul.f32 %v4519_v0, %v10685_v36 }
 0x6bd   : > { %v4647_v40 = vadd.f32 1e-06, %v4615_v14  ;;  %5737 = vst.msk [vmem:[%s7112_s30 + $0x8] sm:$0xff] %vm5735_vm13, %v4615_v14  ;;  %4922 = vrot.lane.b32.xlu0 %v4512_v58, %s6765_s13 }
 0x6be   : > { %v4646_v62 = vadd.f32 1e-06, %v4614_v17  ;;  %5736 = vst.msk [vmem:[%s7112_s30] sm:$0xff] %vm5735_vm13, %v4614_v17  ;;  %v4525_v25 = vpop.permute.xlu1 %4524 }
 0x6bf   : > { %6432 = vrcp.f32 %v4647_v40  ;;  %v4617_v2 = vadd.f32 %v4525_v25, %v10693_v18  ;;  %v4523_v19 = vpop.permute.xlu0 %4522  ;;  %v4745_v0 = vmul.f32 %v4525_v25, %v10693_v18  ;;  %v10766_v40 = vld [vmem:[%s7107_s6 + $0x58] sm:$0xff] }
 0x6c0   : > { %6434 = vrcp.f32 %v4646_v62  ;;  %v4616_v21 = vadd.f32 %v4523_v19, %v10699_v49  ;;  %4928 = vrot.lane.b32.xlu1 %v4515_v26, %s6765_s13  ;;  %v4744_v8 = vmul.f32 %v4523_v19, %v10699_v49 }
 0x6c1   : > { %v4649_v30 = vadd.f32 1e-06, %v4617_v2  ;;  %5739 = vst.msk [vmem:[%s7112_s30 + $0x18] sm:$0xff] %vm5735_vm13, %v4617_v2  ;;  %4926 = vrot.lane.b32.xlu0 %v4514_v12, %s6765_s13  ;;  %v10774_v12 = vld [vmem:[%s7107_s6 + $0x50] sm:$0xff] }
 0x6c2   : > { %v4648_v29 = vadd.f32 1e-06, %v4616_v21  ;;  %5738 = vst.msk [vmem:[%s7112_s30 + $0x10] sm:$0xff] %vm5735_vm13, %v4616_v21  ;;  %v4529_v34 = vpop.permute.xlu1 %4528 }
 0x6c3   : > { %6436 = vrcp.f32 %v4649_v30  ;;  %v4619_v63 = vadd.f32 %v4529_v34, %v10709_v61  ;;  %v4527_v46 = vpop.permute.xlu0 %4526 }
 0x6c4   : > { %6438 = vrcp.f32 %v4648_v29  ;;  %v4618_v9 = vadd.f32 %v4527_v46, %v10715_v1  ;;  %4932 = vrot.lane.b32.xlu1 %v4517_v59, %s6765_s13  ;;  %v4747_v29 = vmul.f32 %v4529_v34, %v10709_v61 }
 0x6c5   : > { %v4651_v11 = vadd.f32 1e-06, %v4619_v63  ;;  %5741 = vst.msk [vmem:[%s7112_s30 + $0x28] sm:$0xff] %vm5735_vm13, %v4619_v63  ;;  %4930 = vrot.lane.b32.xlu0 %v4516_v51, %s6765_s13  ;;  %v10792_v63 = vld [vmem:[%s7107_s6 + $0x68] sm:$0xff] }
 0x6c6   : > { %v4650_v53 = vadd.f32 1e-06, %v4618_v9  ;;  %5740 = vst.msk [vmem:[%s7112_s30 + $0x20] sm:$0xff] %vm5735_vm13, %v4618_v9  ;;  %v4533_v10 = vpop.permute.xlu1 %4532 }
 0x6c7   : > { %6440 = vrcp.f32 %v4651_v11  ;;  %v4621_v52 = vadd.f32 %v4533_v10, %v10723_v55  ;;  %v10734_v24 = vpop.permute.xlu0 %4530  ;;  %v4746_v11 = vmul.f32 %v4527_v46, %v10715_v1 }
 0x6c8   : > { %6442 = vrcp.f32 %v4650_v53  ;;  %v4620_v15 = vadd.f32 %v10734_v24, %v10729_v27 }
 0x6c9   : > { %v10742_v33 = vpop.eup %6432  ;;  %v4653_v5 = vadd.f32 1e-06, %v4621_v52  ;;  %5743 = vst.msk [vmem:[%s7112_s30 + $0x38] sm:$0xff] %vm5735_vm13, %v4621_v52  ;;  %v10800_v52 = vld [vmem:[%s7107_s6 + $0x60] sm:$0xff] }
 0x6ca   : > { %v10750_v23 = vpop.eup %6434  ;;  %v4775_v37 = vmul.f32 %v10742_v33, %v4743_v60  ;;  %v4652_v3 = vadd.f32 1e-06, %v4620_v15  ;;  %5742 = vst.msk [vmem:[%s7112_s30 + $0x30] sm:$0xff] %vm5735_vm13, %v4620_v15  ;;  %v10755_v7 = vpop.permute.xlu1 %4536 }
 0x6cb   : > { %v4774_v58 = vmul.f32 %v10750_v23, %v4742_v28  ;;  %6444 = vrcp.f32 %v4653_v5  ;;  %v4623_v39 = vadd.f32 %v10755_v7, %v10740_v42  ;;  %v10760_v14 = vpop.permute.xlu0 %4534 }
 0x6cc   : > { %6446 = vrcp.f32 %v4652_v3  ;;  %v4622_v17 = vadd.f32 %v10760_v14, %v10748_v31  ;;  %5037 = vperm.xlu1 %6367, %v4775_v37   ;;  %v4749_v3 = vmul.f32 %v4533_v10, %v10723_v55 }
 0x6cd   : > { %v10768_v26 = vpop.eup %6436  ;;  %v4655_v62 = vadd.f32 1e-06, %v4623_v39  ;;  %5745 = vst.msk [vmem:[%s7112_s30 + $0x48] sm:$0xff] %vm5735_vm13, %v4623_v39  ;;  %5032 = vperm.xlu0 %6366, %v4774_v58   ;;  %v10818_v39 = vld [vmem:[%s7107_s6 + $0x78] sm:$0xff] }
 0x6ce   : > { %v10776_v6 = vpop.eup %6438  ;;  %v4777_v25 = vmul.f32 %v10768_v26, %v4745_v0  ;;  %v4654_v2 = vadd.f32 1e-06, %v4622_v17  ;;  %5744 = vst.msk [vmem:[%s7112_s30 + $0x40] sm:$0xff] %vm5735_vm13, %v4622_v17  ;;  %v10781_v21 = vpop.permute.xlu1 %4540  ;;  %v4748_v17 = vmul.f32 %v10734_v24, %v10729_v27 }
 0x6cf   : > { %v4776_v19 = vmul.f32 %v10776_v6, %v4744_v8  ;;  %6448 = vrcp.f32 %v4655_v62  ;;  %v4625_v30 = vadd.f32 %v10781_v21, %v10766_v40  ;;  %v10786_v59 = vpop.permute.xlu0 %4538  ;;  %v10827_v62 = vld [vmem:[%s7107_s6 + $0x70] sm:$0xff] }
 0x6d0   : > { %6450 = vrcp.f32 %v4654_v2  ;;  %v4624_v51 = vadd.f32 %v10786_v59, %v10774_v12 }
 0x6d1   : > { %v10794_v9 = vpop.eup %6440  ;;  %v4657_v53 = vadd.f32 1e-06, %v4625_v30  ;;  %5747 = vst.msk [vmem:[%s7112_s30 + $0x58] sm:$0xff] %vm5735_vm13, %v4625_v30  ;;  %5047 = vperm.xlu0 %6366, %v4777_v25   ;;  %5042 = vperm.xlu1 %6367, %v4776_v19  }
 0x6d2   : > { %12262 = vst [vmem:[#allocation32_spill] sm:$0xff] %v10794_v9  ;;  %v10802_v60 = vpop.eup %6442  ;;  %v4779_v34 = vmul.f32 %v10794_v9, %v4747_v29  ;;  %v4656_v15 = vadd.f32 1e-06, %v4624_v51  ;;  %5746 = vst.msk [vmem:[%s7112_s30 + $0x50] sm:$0xff] %vm5735_vm13, %v4624_v51  ;;  %v10807_v28 = vpop.permute.xlu1 %4544  ;;  %v4751_v51 = vmul.f32 %v10755_v7, %v10740_v42  ;;  %v11030_v9 = vld [vmem:[%s7107_s6 + $0xf8] sm:$0xff] }
 0x6d3   : > { %12263 = vst [vmem:[#allocation31_spill] sm:$0xff] %v10802_v60  ;;  %v4778_v46 = vmul.f32 %v10802_v60, %v4746_v11  ;;  %6452 = vrcp.f32 %v4657_v53  ;;  %v4627_v5 = vadd.f32 %v10807_v28, %v10792_v63  ;;  %v10812_v37 = vpop.permute.xlu0 %4542  ;;  %v10846_v53 = vld [vmem:[%s7107_s6 + $0x88] sm:$0xff] }
 0x6d4   : > { %6454 = vrcp.f32 %v4656_v15  ;;  %v4626_v58 = vadd.f32 %v10812_v37, %v10800_v52  ;;  %v4750_v15 = vmul.f32 %v10760_v14, %v10748_v31 }
 0x6d5   : > { %v10820_v0 = vpop.eup %6444  ;;  %v4659_v8 = vadd.f32 1e-06, %v4627_v5  ;;  %5749 = vst.msk [vmem:[%s7112_s30 + $0x68] sm:$0xff] %vm5735_vm13, %v4627_v5  ;;  %5057 = vperm.xlu0 %6366, %v4779_v34   ;;  %5052 = vperm.xlu1 %6367, %v4778_v46   ;;  %v10855_v5 = vld [vmem:[%s7107_s6 + $0x80] sm:$0xff] }
 0x6d6   : > { %12264 = vst [vmem:[#allocation90_spill] sm:$0xff] %v10820_v0  ;;  %v10829_v10 = vpop.eup %6446  ;;  %v4781_v25 = vmul.f32 %v10820_v0, %v4749_v3  ;;  %v4658_v2 = vadd.f32 1e-06, %v4626_v58  ;;  %5748 = vst.msk [vmem:[%s7112_s30 + $0x60] sm:$0xff] %vm5735_vm13, %v4626_v58  ;;  %v10834_v19 = vpop.permute.xlu1 %4548 }
 0x6d7   : > { %12265 = vst [vmem:[#allocation91_spill] sm:$0xff] %v10829_v10  ;;  %v4780_v24 = vmul.f32 %v10829_v10, %v4748_v17  ;;  %6456 = vrcp.f32 %v4659_v8  ;;  %v4629_v30 = vadd.f32 %v10834_v19, %v10818_v39  ;;  %v10839_v29 = vpop.permute.xlu0 %4546 }
 0x6d8   : > { %6458 = vrcp.f32 %v4658_v2  ;;  %v4628_v11 = vadd.f32 %v10839_v29, %v10827_v62  ;;  %v4753_v2 = vmul.f32 %v10781_v21, %v10766_v40 }
 0x6d9   : > { %v10848_v34 = vpop.eup %6448  ;;  %v4661_v46 = vadd.f32 1e-06, %v4629_v30  ;;  %5751 = vst.msk [vmem:[%s7112_s30 + $0x78] sm:$0xff] %vm5735_vm13, %v4629_v30  ;;  %5067 = vperm.xlu0 %6366, %v4781_v25   ;;  %5062 = vperm.xlu1 %6367, %v4780_v24   ;;  %v10874_v30 = vld [vmem:[%s7107_s6 + $0x98] sm:$0xff] }
 0x6da   : > { %12266 = vst [vmem:[#allocation92_spill] sm:$0xff] %v10848_v34  ;;  %v10857_v7 = vpop.eup %6450  ;;  %v4783_v3 = vmul.f32 %v10848_v34, %v4751_v51  ;;  %v4660_v58 = vadd.f32 1e-06, %v4628_v11  ;;  %5750 = vst.msk [vmem:[%s7112_s30 + $0x70] sm:$0xff] %vm5735_vm13, %v4628_v11  ;;  %v10862_v17 = vpop.permute.xlu1 %4552  ;;  %v4752_v11 = vmul.f32 %v10786_v59, %v10774_v12 }
 0x6db   : > { %12267 = vst [vmem:[#allocation93_spill] sm:$0xff] %v10857_v7  ;;  %v4782_v14 = vmul.f32 %v10857_v7, %v4750_v15  ;;  %6460 = vrcp.f32 %v4661_v46  ;;  %v4631_v8 = vadd.f32 %v10862_v17, %v10846_v53  ;;  %v10867_v25 = vpop.permute.xlu0 %4550  ;;  %v10883_v46 = vld [vmem:[%s7107_s6 + $0x90] sm:$0xff] }
 0x6dc   : > { %6462 = vrcp.f32 %v4660_v58  ;;  %v4630_v24 = vadd.f32 %v10867_v25, %v10855_v5 }
 0x6dd   : > { %v10876_v51 = vpop.eup %6452  ;;  %v4663_v15 = vadd.f32 1e-06, %v4631_v8  ;;  %5753 = vst.msk [vmem:[%s7112_s30 + $0x88] sm:$0xff] %vm5735_vm13, %v4631_v8  ;;  %5077 = vperm.xlu0 %6366, %v4783_v3   ;;  %5072 = vperm.xlu1 %6367, %v4782_v14   ;;  %v4755_v8 = vmul.f32 %v10807_v28, %v10792_v63 }
 0x6de   : > { %12268 = vst [vmem:[#allocation94_spill] sm:$0xff] %v10876_v51  ;;  %v10885_v21 = vpop.eup %6454  ;;  %v4785_v58 = vmul.f32 %v10876_v51, %v4753_v2  ;;  %v4662_v16 = vadd.f32 1e-06, %v4630_v24  ;;  %5752 = vst.msk [vmem:[%s7112_s30 + $0x80] sm:$0xff] %vm5735_vm13, %v4630_v24  ;;  %v10890_v57 = vpop.permute.xlu1 %4556  ;;  %v10902_v24 = vld [vmem:[%s7107_s6 + $0xa8] sm:$0xff]  ;;  %v10911_v51 = vld [vmem:[%s7107_s6 + $0xa0] sm:$0xff] }
 0x6df   : > { %12269 = vst [vmem:[#allocation95_spill] sm:$0xff] %v10885_v21  ;;  %v4784_v59 = vmul.f32 %v10885_v21, %v4752_v11  ;;  %6464 = vrcp.f32 %v4663_v15  ;;  %v4633_v3 = vadd.f32 %v10890_v57, %v10874_v30  ;;  %v10895_v14 = vpop.permute.xlu0 %4554  ;;  %v4754_v11 = vmul.f32 %v10812_v37, %v10800_v52 }
 0x6e0   : > { %6466 = vrcp.f32 %v4662_v16  ;;  %v4632_v2 = vadd.f32 %v10895_v14, %v10883_v46 }
 0x6e1   : > { %v10904_v38 = vpop.eup %6456  ;;  %v4665_v15 = vadd.f32 1e-06, %v4633_v3  ;;  %5755 = vst.msk [vmem:[%s7112_s30 + $0x98] sm:$0xff] %vm5735_vm13, %v4633_v3  ;;  %5087 = vperm.xlu0 %6366, %v4785_v58   ;;  %5082 = vperm.xlu1 %6367, %v4784_v59   ;;  %v4757_v3 = vmul.f32 %v10834_v19, %v10818_v39 }
 0x6e2   : > { %12270 = vst [vmem:[#allocation96_spill] sm:$0xff] %v10904_v38  ;;  %v10913_v28 = vpop.eup %6458  ;;  %v4787_v16 = vmul.f32 %v10904_v38, %v4755_v8  ;;  %v4664_v21 = vadd.f32 1e-06, %v4632_v2  ;;  %5754 = vst.msk [vmem:[%s7112_s30 + $0x90] sm:$0xff] %vm5735_vm13, %v4632_v2  ;;  %v10918_v45 = vpop.permute.xlu1 %4560  ;;  %v10930_v2 = vld [vmem:[%s7107_s6 + $0xb8] sm:$0xff] }
 0x6e3   : > { %12271 = vst [vmem:[#allocation97_spill] sm:$0xff] %v10913_v28  ;;  %v4786_v37 = vmul.f32 %v10913_v28, %v4754_v11  ;;  %6468 = vrcp.f32 %v4665_v15  ;;  %v4635_v58 = vadd.f32 %v10918_v45, %v10902_v24  ;;  %v10923_v59 = vpop.permute.xlu0 %4558  ;;  %v4756_v11 = vmul.f32 %v10839_v29, %v10827_v62  ;;  %v10939_v28 = vld [vmem:[%s7107_s6 + $0xb0] sm:$0xff] }
 0x6e4   : > { %6470 = vrcp.f32 %v4664_v21  ;;  %v4634_v8 = vadd.f32 %v10923_v59, %v10911_v51 }
 0x6e5   : > { %v10932_v38 = vpop.eup %6460  ;;  %v4667_v15 = vadd.f32 1e-06, %v4635_v58  ;;  %5757 = vst.msk [vmem:[%s7112_s30 + $0xa8] sm:$0xff] %vm5735_vm13, %v4635_v58  ;;  %5097 = vperm.xlu0 %6366, %v4787_v16   ;;  %5092 = vperm.xlu1 %6367, %v4786_v37   ;;  %v4759_v58 = vmul.f32 %v10862_v17, %v10846_v53 }
 0x6e6   : > { %12272 = vst [vmem:[#allocation98_spill] sm:$0xff] %v10932_v38  ;;  %v10941_v19 = vpop.eup %6462  ;;  %v4789_v21 = vmul.f32 %v10932_v38, %v4757_v3  ;;  %v4666_v47 = vadd.f32 1e-06, %v4634_v8  ;;  %5756 = vst.msk [vmem:[%s7112_s30 + $0xa0] sm:$0xff] %vm5735_vm13, %v4634_v8  ;;  %v10946_v34 = vpop.permute.xlu1 %4564  ;;  %v10958_v8 = vld [vmem:[%s7107_s6 + $0xc8] sm:$0xff] }
 0x6e7   : > { %12273 = vst [vmem:[#allocation99_spill] sm:$0xff] %v10941_v19  ;;  %v4788_v29 = vmul.f32 %v10941_v19, %v4756_v11  ;;  %6472 = vrcp.f32 %v4667_v15  ;;  %v4637_v16 = vadd.f32 %v10946_v34, %v10930_v2  ;;  %v10951_v37 = vpop.permute.xlu0 %4562  ;;  %v4758_v11 = vmul.f32 %v10867_v25, %v10855_v5  ;;  %v10967_v19 = vld [vmem:[%s7107_s6 + $0xc0] sm:$0xff] }
 0x6e8   : > { %6474 = vrcp.f32 %v4666_v47  ;;  %v4636_v3 = vadd.f32 %v10951_v37, %v10939_v28 }
 0x6e9   : > { %v10960_v38 = vpop.eup %6464  ;;  %v4669_v15 = vadd.f32 1e-06, %v4637_v16  ;;  %5759 = vst.msk [vmem:[%s7112_s30 + $0xb8] sm:$0xff] %vm5735_vm13, %v4637_v16  ;;  %5107 = vperm.xlu0 %6366, %v4789_v21   ;;  %5102 = vperm.xlu1 %6367, %v4788_v29   ;;  %v4761_v16 = vmul.f32 %v10890_v57, %v10874_v30 }
 0x6ea   : > { %12274 = vst [vmem:[#allocation100_spill] sm:$0xff] %v10960_v38  ;;  %v10969_v17 = vpop.eup %6466  ;;  %v4791_v47 = vmul.f32 %v10960_v38, %v4759_v58  ;;  %v4668_v7 = vadd.f32 1e-06, %v4636_v3  ;;  %5758 = vst.msk [vmem:[%s7112_s30 + $0xb0] sm:$0xff] %vm5735_vm13, %v4636_v3  ;;  %v10974_v22 = vpop.permute.xlu1 %4568  ;;  %v10986_v3 = vld [vmem:[%s7107_s6 + $0xd8] sm:$0xff] }
 0x6eb   : > { %12275 = vst [vmem:[#allocation101_spill] sm:$0xff] %v10969_v17  ;;  %v4790_v25 = vmul.f32 %v10969_v17, %v4758_v11  ;;  %6476 = vrcp.f32 %v4669_v15  ;;  %v4639_v21 = vadd.f32 %v10974_v22, %v10958_v8  ;;  %v10979_v29 = vpop.permute.xlu0 %4566  ;;  %v4760_v11 = vmul.f32 %v10895_v14, %v10883_v46  ;;  %v10995_v17 = vld [vmem:[%s7107_s6 + $0xd0] sm:$0xff] }
 0x6ec   : > { %6478 = vrcp.f32 %v4668_v7  ;;  %v4638_v58 = vadd.f32 %v10979_v29, %v10967_v19 }
 0x6ed   : > { %v10988_v38 = vpop.eup %6468  ;;  %v4671_v15 = vadd.f32 1e-06, %v4639_v21  ;;  %5761 = vst.msk [vmem:[%s7112_s30 + $0xc8] sm:$0xff] %vm5735_vm13, %v4639_v21  ;;  %5117 = vperm.xlu0 %6366, %v4791_v47   ;;  %5112 = vperm.xlu1 %6367, %v4790_v25   ;;  %v4763_v25 = vmul.f32 %v10918_v45, %v10902_v24 }
 0x6ee   : > { %12276 = vst [vmem:[#allocation102_spill] sm:$0xff] %v10988_v38  ;;  %v10997_v57 = vpop.eup %6470  ;;  %v4793_v7 = vmul.f32 %v10988_v38, %v4761_v16  ;;  %v4670_v32 = vadd.f32 1e-06, %v4638_v58  ;;  %5760 = vst.msk [vmem:[%s7112_s30 + $0xc0] sm:$0xff] %vm5735_vm13, %v4638_v58  ;;  %v4573_v0 = vpop.permute.xlu1 %4572  ;;  %v4762_v58 = vmul.f32 %v10923_v59, %v10911_v51 }
 0x6ef   : > { %12277 = vst [vmem:[#allocation103_spill] sm:$0xff] %v10997_v57  ;;  %v4792_v14 = vmul.f32 %v10997_v57, %v4760_v11  ;;  %6480 = vrcp.f32 %v4671_v15  ;;  %v4641_v21 = vadd.f32 %v4573_v0, %v10986_v3  ;;  %v4571_v47 = vpop.permute.xlu0 %4570  ;;  %v11017_v11 = vld [vmem:[%s7107_s6 + $0xe0] sm:$0xff] }
 0x6f0   : > { %6482 = vrcp.f32 %v4670_v32  ;;  %v4640_v10 = vadd.f32 %v4571_v47, %v10995_v17 }
 0x6f1   : > { %v11010_v16 = vpop.eup %6472  ;;  %v4673_v38 = vadd.f32 1e-06, %v4641_v21  ;;  %5763 = vst.msk [vmem:[%s7112_s30 + $0xd8] sm:$0xff] %vm5735_vm13, %v4641_v21  ;;  %5127 = vperm.xlu0 %6366, %v4793_v7   ;;  %5122 = vperm.xlu1 %6367, %v4792_v14   ;;  %v4765_v14 = vmul.f32 %v10946_v34, %v10930_v2 }
 0x6f2   : > { %12278 = vst [vmem:[#allocation104_spill] sm:$0xff] %v11010_v16  ;;  %v11019_v15 = vpop.eup %6474  ;;  %v4795_v32 = vmul.f32 %v11010_v16, %v4763_v25  ;;  %v4672_v45 = vadd.f32 1e-06, %v4640_v10  ;;  %5762 = vst.msk [vmem:[%s7112_s30 + $0xd0] sm:$0xff] %vm5735_vm13, %v4640_v10  ;;  %v4577_v57 = vpop.permute.xlu1 %4576  ;;  %v4764_v10 = vmul.f32 %v10951_v37, %v10939_v28 }
 0x6f3   : > { %12279 = vst [vmem:[#allocation105_spill] sm:$0xff] %v11019_v15  ;;  %v4794_v59 = vmul.f32 %v11019_v15, %v4762_v58  ;;  %6484 = vrcp.f32 %v4673_v38  ;;  %v4643_v21 = vadd.f32 %v4577_v57, %v11008_v41  ;;  %v4575_v7 = vpop.permute.xlu0 %4574  ;;  %v11039_v38 = vld [vmem:[%s7107_s6 + $0xf0] sm:$0xff] }
 0x6f4   : > { %6486 = vrcp.f32 %v4672_v45  ;;  %v4642_v43 = vadd.f32 %v4575_v7, %v11017_v11 }
 0x6f5   : > { %v11032_v25 = vpop.eup %6476  ;;  %v4675_v16 = vadd.f32 1e-06, %v4643_v21  ;;  %5765 = vst.msk [vmem:[%s7112_s30 + $0xe8] sm:$0xff] %vm5735_vm13, %v4643_v21  ;;  %5137 = vperm.xlu0 %6366, %v4795_v32   ;;  %5132 = vperm.xlu1 %6367, %v4794_v59   ;;  %v4767_v32 = vmul.f32 %v10974_v22, %v10958_v8 }
 0x6f6   : > { %12280 = vst [vmem:[#allocation106_spill] sm:$0xff] %v11032_v25  ;;  %v11041_v58 = vpop.eup %6478  ;;  %v4797_v34 = vmul.f32 %v11032_v25, %v4765_v14  ;;  %v4674_v45 = vadd.f32 1e-06, %v4642_v43  ;;  %5764 = vst.msk [vmem:[%s7112_s30 + $0xe0] sm:$0xff] %vm5735_vm13, %v4642_v43  ;;  %v4581_v15 = vpop.permute.xlu1 %4580  ;;  %v4766_v14 = vmul.f32 %v10979_v29, %v10967_v19  ;;  %v4769_v29 = vmul.f32 %v4573_v0, %v10986_v3 }
 0x6f7   : > { %12281 = vst [vmem:[#allocation107_spill] sm:$0xff] %v11041_v58  ;;  %v4796_v60 = vmul.f32 %v11041_v58, %v4764_v10  ;;  %6488 = vrcp.f32 %v4675_v16  ;;  %v4645_v37 = vadd.f32 %v4581_v15, %v11030_v9  ;;  %v4579_v21 = vpop.permute.xlu0 %4578 }
 0x6f8   : > { %6490 = vrcp.f32 %v4674_v45  ;;  %v4644_v59 = vadd.f32 %v4579_v21, %v11039_v38 }
 0x6f9   : > { %v11051_v48 = vpop.eup %6480  ;;  %v4677_v43 = vadd.f32 1e-06, %v4645_v37  ;;  %5767 = vst.msk [vmem:[%s7112_s30 + $0xf8] sm:$0xff] %vm5735_vm13, %v4645_v37  ;;  %5147 = vperm.xlu0 %6366, %v4797_v34   ;;  %5142 = vperm.xlu1 %6367, %v4796_v60   ;;  %v4768_v60 = vmul.f32 %v4571_v47, %v10995_v17 }
 0x6fa   : > { %12282 = vst [vmem:[#allocation108_spill] sm:$0xff] %v11051_v48  ;;  %v11057_v16 = vpop.eup %6482  ;;  %v4799_v10 = vmul.f32 %v11051_v48, %v4767_v32  ;;  %v4676_v25 = vadd.f32 1e-06, %v4644_v59  ;;  %5766 = vst.msk [vmem:[%s7112_s30 + $0xf0] sm:$0xff] %vm5735_vm13, %v4644_v59  ;;  %v11062_v22 = vpop.permute.xlu1 %4872  ;;  %v4771_v48 = vmul.f32 %v4577_v57, %v11008_v41  ;;  %v4772_v57 = vmul.f32 %v4579_v21, %v11039_v38 }
 0x6fb   : > { %v4798_v45 = vmul.f32 %v11057_v16, %v4766_v14  ;;  %6492 = vrcp.f32 %v4677_v43  ;;  %v11065_v58 = vpop.permute.xlu0 %4870 }
 0x6fc   : > { %6494 = vrcp.f32 %v4676_v25  ;;  %v4770_v25 = vmul.f32 %v4575_v7, %v11017_v11 }
 0x6fd   : > { %v11068_v37 = vpop.eup %6484  ;;  %5157 = vperm.xlu0 %6366, %v4799_v10   ;;  %5152 = vperm.xlu1 %6367, %v4798_v45  }
 0x6fe   : > { %12283 = vst [vmem:[#allocation109_spill] sm:$0xff] %v11068_v37  ;;  %v11071_v34 = vpop.eup %6486  ;;  %v4801_v32 = vmul.f32 %v11068_v37, %v4769_v29  ;;  %v11074_v59 = vpop.permute.xlu1 %4876 }
 0x6ff   : > { %12284 = vst [vmem:[#allocation110_spill] sm:$0xff] %v11071_v34  ;;  %v4800_v14 = vmul.f32 %v11071_v34, %v4768_v60  ;;  %v11077_v43 = vpop.permute.xlu0 %4874  ;;  %v4773_v60 = vmul.f32 %v4581_v15, %v11030_v9 }
 0x701   : > { %v11080_v0 = vpop.eup %6488  ;;  %5167 = vperm.xlu0 %6366, %v4801_v32   ;;  %5162 = vperm.xlu1 %6367, %v4800_v14  }
 0x702   : > { %12285 = vst [vmem:[#allocation111_spill] sm:$0xff] %v11080_v0  ;;  %v11083_v47 = vpop.eup %6490  ;;  %v4803_v10 = vmul.f32 %v11080_v0, %v4771_v48  ;;  %v11086_v45 = vpop.permute.xlu1 %4880 }
 0x703   : > { %v4802_v29 = vmul.f32 %v11083_v47, %v4770_v25  ;;  %v11089_v37 = vpop.permute.xlu0 %4878 }
 0x705   : > { %v11092_v34 = vpop.eup %6492  ;;  %5177 = vperm.xlu0 %6366, %v4803_v10   ;;  %5172 = vperm.xlu1 %6367, %v4802_v29  }
 0x706   : > { %v11095_v7 = vpop.eup %6494  ;;  %v4805_v32 = vmul.f32 %v11092_v34, %v4773_v60  ;;  %v11098_v14 = vpop.permute.xlu1 %4884 }
 0x707   : > { %v4804_v48 = vmul.f32 %v11095_v7, %v4772_v57  ;;  %v11101_v0 = vpop.permute.xlu0 %4882 }
 0x709   : > { %5187 = vperm.xlu0 %6366, %v4805_v32   ;;  %5182 = vperm.xlu1 %6367, %v4804_v48  }
 0x70a   : > { %v11103_v25 = vpop.permute.xlu1 %4888 }
 0x70b   : > { %v11105_v15 = vpop.permute.xlu0 %4886 }
 0x70d   : > { %5294 = vperm.xlu0 %6366, %v10681_v4   ;;  %5289 = vperm.xlu1 %6367, %v10685_v36  }
 0x70e   : > { %v11109_v21 = vpop.permute.xlu1 %4892 }
 0x70f   : > { %v11111_v10 = vpop.permute.xlu0 %4890 }
 0x711   : > { %5304 = vperm.xlu0 %6366, %v10693_v18   ;;  %5299 = vperm.xlu1 %6367, %v10699_v49  }
 0x712   : > { %v11115_v29 = vpop.permute.xlu1 %4896 }
 0x713   : > { %v11117_v60 = vpop.permute.xlu0 %4894 }
 0x715   : > { %5314 = vperm.xlu0 %6366, %v10709_v61   ;;  %5309 = vperm.xlu1 %6367, %v10715_v1  }
 0x716   : > { %v11121_v57 = vpop.permute.xlu1 %4900 }
 0x717   : > { %v11123_v4 = vpop.permute.xlu0 %4898 }
 0x719   : > { %5324 = vperm.xlu0 %6366, %v10723_v55   ;;  %5319 = vperm.xlu1 %6367, %v10729_v27  }
 0x71a   : > { %v11127_v36 = vpop.permute.xlu1 %4904 }
 0x71b   : > { %v11131_v18 = vpop.permute.xlu0 %4902 }
 0x71d   : > { %5334 = vperm.xlu0 %6366, %v10740_v42   ;;  %5329 = vperm.xlu1 %6367, %v10748_v31  }
 0x71e   : > { %v11135_v49 = vpop.permute.xlu1 %4908 }
 0x71f   : > { %v11137_v61 = vpop.permute.xlu0 %4906 }
 0x721   : > { %5344 = vperm.xlu0 %6366, %v10766_v40   ;;  %5339 = vperm.xlu1 %6367, %v10774_v12  }
 0x722   : > { %v11141_v1 = vpop.permute.xlu1 %4912 }
 0x723   : > { %v11145_v55 = vpop.permute.xlu0 %4910 }
 0x725   : > { %5354 = vperm.xlu0 %6366, %v10792_v63   ;;  %5349 = vperm.xlu1 %6367, %v10800_v52  }
 0x726   : > { %v11149_v27 = vpop.permute.xlu1 %4916 }
 0x727   : > { %v11151_v42 = vpop.permute.xlu0 %4914 }
 0x729   : > { %5364 = vperm.xlu0 %6366, %v10818_v39   ;;  %5359 = vperm.xlu1 %6367, %v10827_v62   ;;  %v11176_v62 = vld [vmem:[%s7102_s21 + $0x8] sm:$0xff] }
 0x72a   : > { %v11155_v31 = vpop.permute.xlu1 %4920  ;;  %12286 = vst [vmem:[#allocation112_spill] sm:$0xff] %v11176_v62 }
 0x72b   : > { %v11159_v40 = vpop.permute.xlu0 %4918 }
 0x72d   : > { %5374 = vperm.xlu0 %6366, %v10846_v53   ;;  %5369 = vperm.xlu1 %6367, %v10855_v5   ;;  %v11179_v53 = vld [vmem:[%s7102_s21] sm:$0xff]  ;;  %v4807_v5 = vsub.f32 %v10219_v13, %v11176_v62 }
 0x72e   : > { %v11163_v12 = vpop.permute.xlu1 %4924 }
 0x72f   : > { %v11165_v63 = vpop.permute.xlu0 %4922  ;;  %v4999_v13 = vmul.f32 %v4807_v5, %v4807_v5  ;;  %v3689_v5 = vld [vmem:[%s7092_s22 + $0x18] sm:$0xff] }
 0x731   : > { %5384 = vperm.xlu0 %6366, %v10874_v30   ;;  %5379 = vperm.xlu1 %6367, %v10883_v46  }
 0x732   : > { %v11169_v52 = vpop.permute.xlu1 %4928 }
 0x733   : > { %v11173_v39 = vpop.permute.xlu0 %4926 }
 0x735   : > { %5394 = vperm.xlu0 %6366, %v10902_v24   ;;  %5389 = vperm.xlu1 %6367, %v10911_v51   ;;  %v4806_v51 = vsub.f32 %v10223_v54, %v11179_v53  ;;  %v11192_v24 = vld [vmem:[%s7102_s21 + $0x10] sm:$0xff] }
 0x736   : > { %v11185_v30 = vpop.permute.xlu1 %4932  ;;  %v4808_v54 = vsub.f32 %v10238_v50, %v11192_v24  ;;  %v3688_v50 = vld [vmem:[%s7092_s22 + $0x10] sm:$0xff] }
 0x737   : > { %v11189_v46 = vpop.permute.xlu0 %4930 }
 0x739   : > { %5404 = vperm.xlu0 %6366, %v10930_v2   ;;  %5399 = vperm.xlu1 %6367, %v10939_v28   ;;  %v11195_v28 = vld [vmem:[%s7102_s21 + $0x18] sm:$0xff]  ;;  %v3687_v2 = vld [vmem:[%s7092_s22 + $0x8] sm:$0xff] }
 0x73a   : > { %v4967_v32 = vadd.f32 %v11062_v22, %v3687_v2  ;;  %v5000_v2 = vmul.f32 %v4808_v54, %v4808_v54  ;;  %v3690_v54 = vld [vmem:[%s7092_s22 + $0x20] sm:$0xff] }
 0x73d   : > { %5414 = vperm.xlu0 %6366, %v10958_v8   ;;  %5409 = vperm.xlu1 %6367, %v10967_v19   ;;  %v11202_v19 = vld [vmem:[%s7102_s21 + $0x28] sm:$0xff] }
 0x741   : > { %5424 = vperm.xlu0 %6366, %v10986_v3   ;;  %5419 = vperm.xlu1 %6367, %v10995_v17   ;;  %v4998_v17 = vmul.f32 %v4806_v51, %v4806_v51  ;;  %v4809_v3 = vsub.f32 %v10233_v44, %v11195_v28  ;;  %v4811_v44 = vsub.f32 %v10251_v56, %v11202_v19  ;;  %v11225_v56 = vld [vmem:[%s7102_s21 + $0x30] sm:$0xff] }
 0x745   : > { %5434 = vperm.xlu0 %6366, %v11008_v41   ;;  %5429 = vperm.xlu1 %6367, %v11017_v11   ;;  %v3686_v41 = vld [vmem:[%s7092_s22] sm:$0xff] }
 0x746   : > { %v11209_v11 = vld [vmem:[%s7102_s21 + $0x20] sm:$0xff] }
 0x749   : > { %5444 = vperm.xlu0 %6366, %v11030_v9   ;;  %5439 = vperm.xlu1 %6367, %v11039_v38   ;;  %v4966_v38 = vadd.f32 %v11065_v58, %v3686_v41  ;;  %v4810_v58 = vsub.f32 %v10257_v20, %v11209_v11  ;;  %v5001_v41 = vmul.f32 %v4809_v3, %v4809_v3  ;;  %v12120_v20 = vmov 0.0  }
 0x74a   : > { %v5003_v3 = vmul.f32 %v4811_v44, %v4811_v44  ;;  %v4970_v44 = vadd.f32 %v11089_v37, %v3690_v54  ;;  %v12290_v37 = vld [vmem:[#allocation55_spill] sm:$0xff] }
 0x74b   : > { %v5038_v8 = vpop.permute.xlu1 %5037 }
 0x74c   : > { %v5191_v9 = vmul.f32 %v5038_v8, %v4999_v13  ;;  %v5033_v48 = vpop.permute.xlu0 %5032  ;;  %v11228_v8 = vld [vmem:[%s7102_s21 + $0x38] sm:$0xff] }
 0x74d   : > { %v5190_v62 = vmul.f32 %v5033_v48, %v4998_v17  ;;  %5513 = vperm.xlu1 %6367, %v10750_v23   ;;  %5518 = vperm.xlu0 %6366, %v10742_v33   ;;  %v4969_v23 = vadd.f32 %v11074_v59, %v3689_v5  ;;  %v4968_v17 = vadd.f32 %v11077_v43, %v3688_v50  ;;  %v12287_v5 = vld [vmem:[#allocation51_spill] sm:$0xff]  ;;  %v11251_v50 = vld [vmem:[%s7102_s21 + $0x48] sm:$0xff] }
 0x74e   : > { %v5223_v22 = vadd.f32 %v5191_v9, %v4967_v32  ;;  %v3691_v32 = vld [vmem:[%s7092_s22 + $0x28] sm:$0xff]  ;;  %v5002_v43 = vmul.f32 %v4810_v58, %v4810_v58 }
 0x74f   : > { %v5222_v51 = vadd.f32 %v5190_v62, %v4966_v38  ;;  %v4812_v38 = vsub.f32 %v10278_v35, %v11225_v56 }
 0x750   : > { %5256 = vst.msk [vmem:[%s7116_s10 + $0x8] sm:$0xff] %vm5254_vm14, %v5223_v22  ;;  %v5043_v33 = vpop.permute.xlu1 %5042  ;;  %v5048_v13 = vpop.permute.xlu0 %5047  ;;  %v4971_v22 = vadd.f32 %v11086_v45, %v3691_v32 }
 0x751   : > { %5802 = vst.msk [vmem:[%s7116_s10 + $0x8] sm:$0xff] %vm5768_vm15, %v12120_v20  ;;  %v5192_v59 = vmul.f32 %v5043_v33, %v5000_v2  ;;  %v5193_v62 = vmul.f32 %v5048_v13, %v5001_v41  ;;  %5523 = vperm.xlu1 %6367, %v10776_v6   ;;  %5528 = vperm.xlu0 %6366, %v10768_v26   ;;  %v11248_v26 = vld [vmem:[%s7102_s21 + $0x40] sm:$0xff]  ;;  %v3693_v2 = vld [vmem:[%s7092_s22 + $0x38] sm:$0xff]  ;;  %v12289_v33 = vld [vmem:[#allocation32_spill] sm:$0xff] }
 0x752   : > { %5255 = vst.msk [vmem:[%s7116_s10] sm:$0xff] %vm5254_vm14, %v5222_v51  ;;  %v4813_v6 = vsub.f32 %v12287_v5, %v11228_v8  ;;  %v3692_v13 = vld [vmem:[%s7092_s22 + $0x30] sm:$0xff]  ;;  %v4814_v45 = vsub.f32 %v12290_v37, %v11248_v26  ;;  %v5004_v54 = vmul.f32 %v4812_v38, %v4812_v38  ;;  %v12295_v37 = vld [vmem:[#allocation58_spill] sm:$0xff] }
 0x753   : > { %5801 = vst.msk [vmem:[%s7116_s10] sm:$0xff] %vm5768_vm15, %v12120_v20  ;;  %v5224_v9 = vadd.f32 %v5192_v59, %v4968_v17  ;;  %v5225_v48 = vadd.f32 %v5193_v62, %v4969_v23  ;;  %v12288_v23 = vld [vmem:[#allocation31_spill] sm:$0xff]  ;;  %v12291_v17 = vld [vmem:[#allocation54_spill] sm:$0xff]  ;;  %v11275_v5 = vld [vmem:[%s7102_s21 + $0x50] sm:$0xff] }
 0x754   : > { %v5053_v51 = vpop.permute.xlu1 %5052  ;;  %v5058_v58 = vpop.permute.xlu0 %5057  ;;  %v4815_v32 = vsub.f32 %v12291_v17, %v11251_v50 }
 0x755   : > { %5257 = vst.msk [vmem:[%s7116_s10 + $0x10] sm:$0xff] %vm5254_vm14, %v5224_v9  ;;  %5258 = vst.msk [vmem:[%s7116_s10 + $0x18] sm:$0xff] %vm5254_vm14, %v5225_v48  ;;  %v5194_v35 = vmul.f32 %v5053_v51, %v5002_v43  ;;  %v5195_v41 = vmul.f32 %v5058_v58, %v5003_v3  ;;  %5533 = vperm.xlu1 %6367, %v12288_v23   ;;  %5538 = vperm.xlu0 %6366, %v12289_v33   ;;  %v11278_v51 = vld [vmem:[%s7102_s21 + $0x58] sm:$0xff]  ;;  %v3695_v23 = vld [vmem:[%s7092_s22 + $0x48] sm:$0xff] }
 0x756   : > { %5803 = vst.msk [vmem:[%s7116_s10 + $0x10] sm:$0xff] %vm5768_vm15, %v12120_v20  ;;  %5804 = vst.msk [vmem:[%s7116_s10 + $0x18] sm:$0xff] %vm5768_vm15, %v12120_v20  ;;  %v5005_v43 = vmul.f32 %v4813_v6, %v4813_v6  ;;  %v4973_v3 = vadd.f32 %v11098_v14, %v3693_v2  ;;  %v4972_v58 = vadd.f32 %v11101_v0, %v3692_v13  ;;  %v12293_v14 = vld [vmem:[#allocation90_spill] sm:$0xff]  ;;  %v12294_v33 = vld [vmem:[#allocation59_spill] sm:$0xff] }
 0x757   : > { %v5226_v59 = vadd.f32 %v5194_v35, %v4970_v44  ;;  %v5227_v62 = vadd.f32 %v5195_v41, %v4971_v22  ;;  %v12292_v22 = vld [vmem:[#allocation91_spill] sm:$0xff]  ;;  %v5006_v0 = vmul.f32 %v4814_v45, %v4814_v45  ;;  %v5007_v2 = vmul.f32 %v4815_v32, %v4815_v32 }
 0x758   : > { %v5063_v9 = vpop.permute.xlu1 %5062  ;;  %v5068_v48 = vpop.permute.xlu0 %5067  ;;  %v3694_v44 = vld [vmem:[%s7092_s22 + $0x40] sm:$0xff]  ;;  %v4816_v13 = vsub.f32 %v12294_v33, %v11275_v5  ;;  %v4817_v17 = vsub.f32 %v12295_v37, %v11278_v51  ;;  %v11327_v37 = vld [vmem:[%s7102_s21 + $0x70] sm:$0xff] }
 0x759   : > { %5259 = vst.msk [vmem:[%s7116_s10 + $0x20] sm:$0xff] %vm5254_vm14, %v5226_v59  ;;  %5260 = vst.msk [vmem:[%s7116_s10 + $0x28] sm:$0xff] %vm5254_vm14, %v5227_v62  ;;  %v5196_v38 = vmul.f32 %v5063_v9, %v5004_v54  ;;  %v5197_v6 = vmul.f32 %v5068_v48, %v5005_v43  ;;  %5543 = vperm.xlu1 %6367, %v12292_v22   ;;  %5548 = vperm.xlu0 %6366, %v12293_v14   ;;  %v11300_v59 = vld [vmem:[%s7102_s21 + $0x60] sm:$0xff]  ;;  %v11303_v62 = vld [vmem:[%s7102_s21 + $0x68] sm:$0xff] }
 0x75a   : > { %5805 = vst.msk [vmem:[%s7116_s10 + $0x20] sm:$0xff] %vm5768_vm15, %v12120_v20  ;;  %5806 = vst.msk [vmem:[%s7116_s10 + $0x28] sm:$0xff] %vm5768_vm15, %v12120_v20  ;;  %v4975_v54 = vadd.f32 %v11103_v25, %v3695_v23  ;;  %v4974_v32 = vadd.f32 %v11105_v15, %v3694_v44  ;;  %v12298_v25 = vld [vmem:[#allocation63_spill] sm:$0xff]  ;;  %v12299_v23 = vld [vmem:[#allocation62_spill] sm:$0xff] }
 0x75b   : > { %v5228_v35 = vadd.f32 %v5196_v38, %v4972_v58  ;;  %v5229_v41 = vadd.f32 %v5197_v6, %v4973_v3  ;;  %v3697_v3 = vld [vmem:[%s7092_s22 + $0x58] sm:$0xff]  ;;  %v12296_v58 = vld [vmem:[#allocation93_spill] sm:$0xff]  ;;  %v12297_v38 = vld [vmem:[#allocation92_spill] sm:$0xff]  ;;  %v4818_v15 = vsub.f32 %v12298_v25, %v11300_v59  ;;  %v4819_v22 = vsub.f32 %v12299_v23, %v11303_v62 }
 0x75c   : > { %v5073_v43 = vpop.permute.xlu1 %5072  ;;  %v5078_v45 = vpop.permute.xlu0 %5077  ;;  %v3696_v6 = vld [vmem:[%s7092_s22 + $0x50] sm:$0xff]  ;;  %v12303_v25 = vld [vmem:[#allocation66_spill] sm:$0xff] }
 0x75d   : > { %5261 = vst.msk [vmem:[%s7116_s10 + $0x30] sm:$0xff] %vm5254_vm14, %v5228_v35  ;;  %5262 = vst.msk [vmem:[%s7116_s10 + $0x38] sm:$0xff] %vm5254_vm14, %v5229_v41  ;;  %v5198_v9 = vmul.f32 %v5073_v43, %v5006_v0  ;;  %v5199_v48 = vmul.f32 %v5078_v45, %v5007_v2  ;;  %5553 = vperm.xlu1 %6367, %v12296_v58   ;;  %5558 = vperm.xlu0 %6366, %v12297_v38   ;;  %v11330_v43 = vld [vmem:[%s7102_s21 + $0x78] sm:$0xff]  ;;  %v3699_v58 = vld [vmem:[%s7092_s22 + $0x68] sm:$0xff] }
 0x75e   : > { %5807 = vst.msk [vmem:[%s7116_s10 + $0x30] sm:$0xff] %vm5768_vm15, %v12120_v20  ;;  %5808 = vst.msk [vmem:[%s7116_s10 + $0x38] sm:$0xff] %vm5768_vm15, %v12120_v20  ;;  %v5008_v0 = vmul.f32 %v4816_v13, %v4816_v13  ;;  %v5009_v2 = vmul.f32 %v4817_v17, %v4817_v17  ;;  %v4977_v35 = vadd.f32 %v11109_v21, %v3697_v3  ;;  %v12301_v21 = vld [vmem:[#allocation94_spill] sm:$0xff]  ;;  %v12302_v38 = vld [vmem:[#allocation67_spill] sm:$0xff] }
 0x75f   : > { %v5230_v14 = vadd.f32 %v5198_v9, %v4974_v32  ;;  %v5231_v44 = vadd.f32 %v5199_v48, %v4975_v54  ;;  %v4976_v45 = vadd.f32 %v11111_v10, %v3696_v6  ;;  %v12300_v54 = vld [vmem:[#allocation95_spill] sm:$0xff]  ;;  %v5010_v10 = vmul.f32 %v4818_v15, %v4818_v15 }
 0x760   : > { %v5083_v41 = vpop.permute.xlu1 %5082  ;;  %v5088_v33 = vpop.permute.xlu0 %5087  ;;  %v3698_v32 = vld [vmem:[%s7092_s22 + $0x60] sm:$0xff]  ;;  %v5011_v3 = vmul.f32 %v4819_v22, %v4819_v22  ;;  %v4820_v6 = vsub.f32 %v12302_v38, %v11327_v37  ;;  %v4821_v23 = vsub.f32 %v12303_v25, %v11330_v43  ;;  %v11379_v25 = vld [vmem:[%s7102_s21 + $0x90] sm:$0xff] }
 0x761   : > { %5263 = vst.msk [vmem:[%s7116_s10 + $0x40] sm:$0xff] %vm5254_vm14, %v5230_v14  ;;  %5264 = vst.msk [vmem:[%s7116_s10 + $0x48] sm:$0xff] %vm5254_vm14, %v5231_v44  ;;  %v5200_v13 = vmul.f32 %v5083_v41, %v5008_v0  ;;  %v5201_v17 = vmul.f32 %v5088_v33, %v5009_v2  ;;  %5563 = vperm.xlu1 %6367, %v12300_v54   ;;  %5568 = vperm.xlu0 %6366, %v12301_v21   ;;  %v11352_v14 = vld [vmem:[%s7102_s21 + $0x80] sm:$0xff]  ;;  %v11355_v44 = vld [vmem:[%s7102_s21 + $0x88] sm:$0xff] }
 0x762   : > { %5809 = vst.msk [vmem:[%s7116_s10 + $0x40] sm:$0xff] %vm5768_vm15, %v12120_v20  ;;  %5810 = vst.msk [vmem:[%s7116_s10 + $0x48] sm:$0xff] %vm5768_vm15, %v12120_v20  ;;  %v4979_v0 = vadd.f32 %v11115_v29, %v3699_v58  ;;  %v4978_v22 = vadd.f32 %v11117_v60, %v3698_v32  ;;  %v12306_v29 = vld [vmem:[#allocation71_spill] sm:$0xff]  ;;  %v12307_v58 = vld [vmem:[#allocation70_spill] sm:$0xff] }
 0x763   : > { %v5232_v9 = vadd.f32 %v5200_v13, %v4976_v45  ;;  %v5233_v48 = vadd.f32 %v5201_v17, %v4977_v35  ;;  %v3701_v35 = vld [vmem:[%s7092_s22 + $0x78] sm:$0xff]  ;;  %v12304_v45 = vld [vmem:[#allocation97_spill] sm:$0xff]  ;;  %v12305_v13 = vld [vmem:[#allocation96_spill] sm:$0xff]  ;;  %v4822_v60 = vsub.f32 %v12306_v29, %v11352_v14  ;;  %v4823_v54 = vsub.f32 %v12307_v58, %v11355_v44 }
 0x764   : > { %v5093_v2 = vpop.permute.xlu1 %5092  ;;  %v5098_v15 = vpop.permute.xlu0 %5097  ;;  %v3700_v17 = vld [vmem:[%s7092_s22 + $0x70] sm:$0xff]  ;;  %v12311_v29 = vld [vmem:[#allocation74_spill] sm:$0xff] }
 0x765   : > { %5265 = vst.msk [vmem:[%s7116_s10 + $0x50] sm:$0xff] %vm5254_vm14, %v5232_v9  ;;  %5266 = vst.msk [vmem:[%s7116_s10 + $0x58] sm:$0xff] %vm5254_vm14, %v5233_v48  ;;  %v5202_v41 = vmul.f32 %v5093_v2, %v5010_v10  ;;  %v5203_v33 = vmul.f32 %v5098_v15, %v5011_v3  ;;  %5573 = vperm.xlu1 %6367, %v12304_v45   ;;  %5578 = vperm.xlu0 %6366, %v12305_v13   ;;  %v11382_v2 = vld [vmem:[%s7102_s21 + $0x98] sm:$0xff]  ;;  %v3703_v45 = vld [vmem:[%s7092_s22 + $0x88] sm:$0xff] }
 0x766   : > { %5811 = vst.msk [vmem:[%s7116_s10 + $0x50] sm:$0xff] %vm5768_vm15, %v12120_v20  ;;  %5812 = vst.msk [vmem:[%s7116_s10 + $0x58] sm:$0xff] %vm5768_vm15, %v12120_v20  ;;  %v5012_v10 = vmul.f32 %v4820_v6, %v4820_v6  ;;  %v5013_v3 = vmul.f32 %v4821_v23, %v4821_v23  ;;  %v4981_v9 = vadd.f32 %v11121_v57, %v3701_v35  ;;  %v12309_v57 = vld [vmem:[#allocation98_spill] sm:$0xff]  ;;  %v12310_v13 = vld [vmem:[#allocation75_spill] sm:$0xff] }
 0x767   : > { %v5234_v21 = vadd.f32 %v5202_v41, %v4978_v22  ;;  %v5235_v32 = vadd.f32 %v5203_v33, %v4979_v0  ;;  %v4980_v15 = vadd.f32 %v11123_v4, %v3700_v17  ;;  %v12308_v0 = vld [vmem:[#allocation99_spill] sm:$0xff]  ;;  %v5014_v4 = vmul.f32 %v4822_v60, %v4822_v60 }
 0x768   : > { %v5103_v48 = vpop.permute.xlu1 %5102  ;;  %v5108_v38 = vpop.permute.xlu0 %5107  ;;  %v3702_v22 = vld [vmem:[%s7092_s22 + $0x80] sm:$0xff]  ;;  %v5015_v35 = vmul.f32 %v4823_v54, %v4823_v54  ;;  %v4824_v17 = vsub.f32 %v12310_v13, %v11379_v25  ;;  %v4825_v58 = vsub.f32 %v12311_v29, %v11382_v2  ;;  %v11431_v29 = vld [vmem:[%s7102_s21 + $0xb0] sm:$0xff] }
 0x769   : > { %5267 = vst.msk [vmem:[%s7116_s10 + $0x60] sm:$0xff] %vm5254_vm14, %v5234_v21  ;;  %5268 = vst.msk [vmem:[%s7116_s10 + $0x68] sm:$0xff] %vm5254_vm14, %v5235_v32  ;;  %v5204_v6 = vmul.f32 %v5103_v48, %v5012_v10  ;;  %v5205_v23 = vmul.f32 %v5108_v38, %v5013_v3  ;;  %5583 = vperm.xlu1 %6367, %v12308_v0   ;;  %5588 = vperm.xlu0 %6366, %v12309_v57   ;;  %v11404_v21 = vld [vmem:[%s7102_s21 + $0xa0] sm:$0xff]  ;;  %v11407_v32 = vld [vmem:[%s7102_s21 + $0xa8] sm:$0xff] }
 0x76a   : > { %5813 = vst.msk [vmem:[%s7116_s10 + $0x60] sm:$0xff] %vm5768_vm15, %v12120_v20  ;;  %5814 = vst.msk [vmem:[%s7116_s10 + $0x68] sm:$0xff] %vm5768_vm15, %v12120_v20  ;;  %v4983_v10 = vadd.f32 %v11127_v36, %v3703_v45  ;;  %v4982_v54 = vadd.f32 %v11131_v18, %v3702_v22  ;;  %v12314_v36 = vld [vmem:[#allocation79_spill] sm:$0xff]  ;;  %v12315_v45 = vld [vmem:[#allocation78_spill] sm:$0xff] }
 0x76b   : > { %v5236_v41 = vadd.f32 %v5204_v6, %v4980_v15  ;;  %v5237_v33 = vadd.f32 %v5205_v23, %v4981_v9  ;;  %v3705_v9 = vld [vmem:[%s7092_s22 + $0x98] sm:$0xff]  ;;  %v12312_v15 = vld [vmem:[#allocation101_spill] sm:$0xff]  ;;  %v12313_v6 = vld [vmem:[#allocation100_spill] sm:$0xff]  ;;  %v4826_v18 = vsub.f32 %v12314_v36, %v11404_v21  ;;  %v4827_v0 = vsub.f32 %v12315_v45, %v11407_v32 }
 0x76c   : > { %v5113_v3 = vpop.permute.xlu1 %5112  ;;  %v5118_v60 = vpop.permute.xlu0 %5117  ;;  %v3704_v23 = vld [vmem:[%s7092_s22 + $0x90] sm:$0xff]  ;;  %v12319_v36 = vld [vmem:[#allocation82_spill] sm:$0xff] }
 0x76d   : > { %5269 = vst.msk [vmem:[%s7116_s10 + $0x70] sm:$0xff] %vm5254_vm14, %v5236_v41  ;;  %5270 = vst.msk [vmem:[%s7116_s10 + $0x78] sm:$0xff] %vm5254_vm14, %v5237_v33  ;;  %v5206_v48 = vmul.f32 %v5113_v3, %v5014_v4  ;;  %v5207_v38 = vmul.f32 %v5118_v60, %v5015_v35  ;;  %5593 = vperm.xlu1 %6367, %v12312_v15   ;;  %5598 = vperm.xlu0 %6366, %v12313_v6   ;;  %v11434_v3 = vld [vmem:[%s7102_s21 + $0xb8] sm:$0xff]  ;;  %v3707_v15 = vld [vmem:[%s7092_s22 + $0xa8] sm:$0xff] }
 0x76e   : > { %5815 = vst.msk [vmem:[%s7116_s10 + $0x70] sm:$0xff] %vm5768_vm15, %v12120_v20  ;;  %5816 = vst.msk [vmem:[%s7116_s10 + $0x78] sm:$0xff] %vm5768_vm15, %v12120_v20  ;;  %v5016_v4 = vmul.f32 %v4824_v17, %v4824_v17  ;;  %v5017_v35 = vmul.f32 %v4825_v58, %v4825_v58  ;;  %v4985_v41 = vadd.f32 %v11135_v49, %v3705_v9  ;;  %v12317_v49 = vld [vmem:[#allocation102_spill] sm:$0xff]  ;;  %v12318_v6 = vld [vmem:[#allocation83_spill] sm:$0xff] }
 0x76f   : > { %v5238_v57 = vadd.f32 %v5206_v48, %v4982_v54  ;;  %v5239_v22 = vadd.f32 %v5207_v38, %v4983_v10  ;;  %v4984_v60 = vadd.f32 %v11137_v61, %v3704_v23  ;;  %v12316_v10 = vld [vmem:[#allocation103_spill] sm:$0xff]  ;;  %v5018_v61 = vmul.f32 %v4826_v18, %v4826_v18 }
 0x770   : > { %v5123_v33 = vpop.permute.xlu1 %5122  ;;  %v5128_v13 = vpop.permute.xlu0 %5127  ;;  %v3706_v54 = vld [vmem:[%s7092_s22 + $0xa0] sm:$0xff]  ;;  %v5019_v9 = vmul.f32 %v4827_v0, %v4827_v0  ;;  %v4828_v23 = vsub.f32 %v12318_v6, %v11431_v29  ;;  %v4829_v45 = vsub.f32 %v12319_v36, %v11434_v3  ;;  %v11483_v36 = vld [vmem:[%s7102_s21 + $0xd0] sm:$0xff] }
 0x771   : > { %5271 = vst.msk [vmem:[%s7116_s10 + $0x80] sm:$0xff] %vm5254_vm14, %v5238_v57  ;;  %5272 = vst.msk [vmem:[%s7116_s10 + $0x88] sm:$0xff] %vm5254_vm14, %v5239_v22  ;;  %v5208_v17 = vmul.f32 %v5123_v33, %v5016_v4  ;;  %v5209_v58 = vmul.f32 %v5128_v13, %v5017_v35  ;;  %5603 = vperm.xlu1 %6367, %v12316_v10   ;;  %5608 = vperm.xlu0 %6366, %v12317_v49   ;;  %v11456_v57 = vld [vmem:[%s7102_s21 + $0xc0] sm:$0xff]  ;;  %v11459_v22 = vld [vmem:[%s7102_s21 + $0xc8] sm:$0xff] }
 0x772   : > { %5817 = vst.msk [vmem:[%s7116_s10 + $0x80] sm:$0xff] %vm5768_vm15, %v12120_v20  ;;  %5818 = vst.msk [vmem:[%s7116_s10 + $0x88] sm:$0xff] %vm5768_vm15, %v12120_v20  ;;  %v4987_v4 = vadd.f32 %v11141_v1, %v3707_v15  ;;  %v4986_v0 = vadd.f32 %v11145_v55, %v3706_v54  ;;  %v12322_v1 = vld [vmem:[#allocation87_spill] sm:$0xff]  ;;  %v12323_v15 = vld [vmem:[#allocation86_spill] sm:$0xff] }
 0x773   : > { %v5240_v48 = vadd.f32 %v5208_v17, %v4984_v60  ;;  %v5241_v38 = vadd.f32 %v5209_v58, %v4985_v41  ;;  %v3709_v41 = vld [vmem:[%s7092_s22 + $0xb8] sm:$0xff]  ;;  %v12320_v60 = vld [vmem:[#allocation105_spill] sm:$0xff]  ;;  %v12321_v17 = vld [vmem:[#allocation104_spill] sm:$0xff]  ;;  %v4830_v55 = vsub.f32 %v12322_v1, %v11456_v57  ;;  %v4831_v10 = vsub.f32 %v12323_v15, %v11459_v22  ;;  %12324 = vst [vmem:[#allocation51_spill] sm:$0xff] %v11483_v36 }
 0x774   : > { %v5133_v35 = vpop.permute.xlu1 %5132  ;;  %v5138_v18 = vpop.permute.xlu0 %5137  ;;  %v3708_v58 = vld [vmem:[%s7092_s22 + $0xb0] sm:$0xff] }
 0x775   : > { %5273 = vst.msk [vmem:[%s7116_s10 + $0x90] sm:$0xff] %vm5254_vm14, %v5240_v48  ;;  %5274 = vst.msk [vmem:[%s7116_s10 + $0x98] sm:$0xff] %vm5254_vm14, %v5241_v38  ;;  %v5210_v33 = vmul.f32 %v5133_v35, %v5018_v61  ;;  %v5211_v13 = vmul.f32 %v5138_v18, %v5019_v9  ;;  %5613 = vperm.xlu1 %6367, %v12320_v60   ;;  %5618 = vperm.xlu0 %6366, %v12321_v17   ;;  %v11486_v35 = vld [vmem:[%s7102_s21 + $0xd8] sm:$0xff]  ;;  %v3711_v60 = vld [vmem:[%s7092_s22 + $0xc8] sm:$0xff] }
 0x776   : > { %5819 = vst.msk [vmem:[%s7116_s10 + $0x90] sm:$0xff] %vm5768_vm15, %v12120_v20  ;;  %5820 = vst.msk [vmem:[%s7116_s10 + $0x98] sm:$0xff] %vm5768_vm15, %v12120_v20  ;;  %v5020_v61 = vmul.f32 %v4828_v23, %v4828_v23  ;;  %v5021_v9 = vmul.f32 %v4829_v45, %v4829_v45  ;;  %v4989_v48 = vadd.f32 %v11149_v27, %v3709_v41  ;;  %v12327_v27 = vld [vmem:[#allocation106_spill] sm:$0xff]  ;;  %v12328_v17 = vld [vmem:[#allocation39_spill] sm:$0xff] }
 0x777   : > { %v5242_v49 = vadd.f32 %v5210_v33, %v4986_v0  ;;  %v5243_v54 = vadd.f32 %v5211_v13, %v4987_v4  ;;  %12325 = vst [vmem:[#allocation31_spill] sm:$0xff] %v11486_v35  ;;  %v4988_v18 = vadd.f32 %v11151_v42, %v3708_v58  ;;  %v12326_v4 = vld [vmem:[#allocation107_spill] sm:$0xff]  ;;  %v5022_v42 = vmul.f32 %v4830_v55, %v4830_v55  ;;  %v12329_v1 = vld [vmem:[#allocation33_spill] sm:$0xff] }
 0x778   : > { %v5143_v38 = vpop.permute.xlu1 %5142  ;;  %v5148_v6 = vpop.permute.xlu0 %5147  ;;  %v3710_v0 = vld [vmem:[%s7092_s22 + $0xc0] sm:$0xff]  ;;  %v5023_v41 = vmul.f32 %v4831_v10, %v4831_v10  ;;  %v4832_v58 = vsub.f32 %v12328_v17, %v11483_v36  ;;  %v4833_v15 = vsub.f32 %v12329_v1, %v11486_v35  ;;  %v11538_v17 = vld [vmem:[%s7102_s21 + $0xf8] sm:$0xff]  ;;  %v12349_v35 = vld [vmem:[#allocation45_spill] sm:$0xff] }
 0x779   : > { %5275 = vst.msk [vmem:[%s7116_s10 + $0xa0] sm:$0xff] %vm5254_vm14, %v5242_v49  ;;  %5276 = vst.msk [vmem:[%s7116_s10 + $0xa8] sm:$0xff] %vm5254_vm14, %v5243_v54  ;;  %v5212_v23 = vmul.f32 %v5143_v38, %v5020_v61  ;;  %v5213_v45 = vmul.f32 %v5148_v6, %v5021_v9  ;;  %5623 = vperm.xlu1 %6367, %v12326_v4   ;;  %5628 = vperm.xlu0 %6366, %v12327_v27   ;;  %v11508_v49 = vld [vmem:[%s7102_s21 + $0xe0] sm:$0xff]  ;;  %v11511_v54 = vld [vmem:[%s7102_s21 + $0xe8] sm:$0xff] }
 0x77a   : > { %5821 = vst.msk [vmem:[%s7116_s10 + $0xa0] sm:$0xff] %vm5768_vm15, %v12120_v20  ;;  %5822 = vst.msk [vmem:[%s7116_s10 + $0xa8] sm:$0xff] %vm5768_vm15, %v12120_v20  ;;  %v4991_v61 = vadd.f32 %v11155_v31, %v3711_v60  ;;  %v4990_v10 = vadd.f32 %v11159_v40, %v3710_v0  ;;  %v12333_v31 = vld [vmem:[#allocation41_spill] sm:$0xff]  ;;  %v12334_v60 = vld [vmem:[#allocation35_spill] sm:$0xff]  ;;  %v5024_v27 = vmul.f32 %v4832_v58, %v4832_v58 }
 0x77b   : > { %v5244_v33 = vadd.f32 %v5212_v23, %v4988_v18  ;;  %v5245_v13 = vadd.f32 %v5213_v45, %v4989_v48  ;;  %12330 = vst [vmem:[#allocation32_spill] sm:$0xff] %v11508_v49  ;;  %12331 = vst [vmem:[#allocation55_spill] sm:$0xff] %v11511_v54  ;;  %v3713_v48 = vld [vmem:[%s7092_s22 + $0xd8] sm:$0xff]  ;;  %v12332_v18 = vld [vmem:[#allocation108_spill] sm:$0xff]  ;;  %v4834_v40 = vsub.f32 %v12333_v31, %v11508_v49 }
 0x77c   : > { %v5153_v9 = vpop.permute.xlu1 %5152  ;;  %v5158_v55 = vpop.permute.xlu0 %5157  ;;  %v3712_v23 = vld [vmem:[%s7092_s22 + $0xd0] sm:$0xff]  ;;  %v4835_v45 = vsub.f32 %v12334_v60, %v11511_v54  ;;  %v5025_v0 = vmul.f32 %v4833_v15, %v4833_v15  ;;  %12336 = vst [vmem:[#allocation91_spill] sm:$0xff] %v11538_v17 }
 0x77d   : > { %5277 = vst.msk [vmem:[%s7116_s10 + $0xb0] sm:$0xff] %vm5254_vm14, %v5244_v33  ;;  %5278 = vst.msk [vmem:[%s7116_s10 + $0xb8] sm:$0xff] %vm5254_vm14, %v5245_v13  ;;  %v5214_v38 = vmul.f32 %v5153_v9, %v5022_v42  ;;  %v5215_v6 = vmul.f32 %v5158_v55, %v5023_v41  ;;  %5633 = vperm.xlu1 %6367, %v11057_v16   ;;  %5638 = vperm.xlu0 %6366, %v12332_v18   ;;  %v11535_v13 = vld [vmem:[%s7102_s21 + $0xf0] sm:$0xff]  ;;  %v3715_v9 = vld [vmem:[%s7092_s22 + $0xe8] sm:$0xff] }
 0x77e   : > { %5823 = vst.msk [vmem:[%s7116_s10 + $0xb0] sm:$0xff] %vm5768_vm15, %v12120_v20  ;;  %5824 = vst.msk [vmem:[%s7116_s10 + $0xb8] sm:$0xff] %vm5768_vm15, %v12120_v20  ;;  %v4993_v42 = vadd.f32 %v11163_v12, %v3713_v48  ;;  %v4992_v1 = vadd.f32 %v11165_v63, %v3712_v23  ;;  %v12337_v55 = vld [vmem:[#allocation110_spill] sm:$0xff]  ;;  %v12338_v15 = vld [vmem:[#allocation109_spill] sm:$0xff]  ;;  %v5026_v63 = vmul.f32 %v4834_v40, %v4834_v40 }
 0x77f   : > { %v5246_v4 = vadd.f32 %v5214_v38, %v4990_v10  ;;  %v5247_v16 = vadd.f32 %v5215_v6, %v4991_v61  ;;  %12335 = vst [vmem:[#allocation54_spill] sm:$0xff] %v11535_v13  ;;  %v3714_v12 = vld [vmem:[%s7092_s22 + $0xe0] sm:$0xff]  ;;  %v5027_v10 = vmul.f32 %v4835_v45, %v4835_v45  ;;  %v12340_v23 = vld [vmem:[#allocation37_spill] sm:$0xff]  ;;  %v4995_v60 = vadd.f32 %v11169_v52, %v3715_v9 }
 0x780   : > { %v5163_v41 = vpop.permute.xlu1 %5162  ;;  %v5168_v33 = vpop.permute.xlu0 %5167  ;;  %v12339_v6 = vld [vmem:[#allocation43_spill] sm:$0xff]  ;;  %v4837_v31 = vsub.f32 %v12340_v23, %v11538_v17 }
 0x781   : > { %5279 = vst.msk [vmem:[%s7116_s10 + $0xc0] sm:$0xff] %vm5254_vm14, %v5246_v4  ;;  %5280 = vst.msk [vmem:[%s7116_s10 + $0xc8] sm:$0xff] %vm5254_vm14, %v5247_v16  ;;  %v5216_v61 = vmul.f32 %v5163_v41, %v5024_v27  ;;  %v5217_v58 = vmul.f32 %v5168_v33, %v5025_v0  ;;  %5643 = vperm.xlu1 %6367, %v12337_v55   ;;  %5648 = vperm.xlu0 %6366, %v12338_v15   ;;  %v3717_v0 = vld [vmem:[%s7092_s22 + $0xf8] sm:$0xff]  ;;  %v3716_v41 = vld [vmem:[%s7092_s22 + $0xf0] sm:$0xff] }
 0x782   : > { %5825 = vst.msk [vmem:[%s7116_s10 + $0xc0] sm:$0xff] %vm5768_vm15, %v12120_v20  ;;  %5826 = vst.msk [vmem:[%s7116_s10 + $0xc8] sm:$0xff] %vm5768_vm15, %v12120_v20  ;;  %v4836_v18 = vsub.f32 %v12339_v6, %v11535_v13  ;;  %v4994_v27 = vadd.f32 %v11173_v39, %v3714_v12  ;;  %v4997_v9 = vadd.f32 %v11185_v30, %v3717_v0 }
 0x783   : > { %v5248_v48 = vadd.f32 %v5216_v61, %v4992_v1  ;;  %v5249_v38 = vadd.f32 %v5217_v58, %v4993_v42  ;;  %v12341_v42 = vld [vmem:[#allocation111_spill] sm:$0xff]  ;;  %v5029_v1 = vmul.f32 %v4837_v31, %v4837_v31  ;;  %v4996_v58 = vadd.f32 %v11189_v46, %v3716_v41 }
 0x784   : > { %v5173_v4 = vpop.permute.xlu1 %5172  ;;  %v5178_v16 = vpop.permute.xlu0 %5177  ;;  %v5028_v33 = vmul.f32 %v4836_v18, %v4836_v18 }
 0x785   : > { %5281 = vst.msk [vmem:[%s7116_s10 + $0xd0] sm:$0xff] %vm5254_vm14, %v5248_v48  ;;  %5282 = vst.msk [vmem:[%s7116_s10 + $0xd8] sm:$0xff] %vm5254_vm14, %v5249_v38  ;;  %v5218_v40 = vmul.f32 %v5173_v4, %v5026_v63  ;;  %v5219_v45 = vmul.f32 %v5178_v16, %v5027_v10  ;;  %5653 = vperm.xlu1 %6367, %v11083_v47   ;;  %5658 = vperm.xlu0 %6366, %v12341_v42  }
 0x786   : > { %5827 = vst.msk [vmem:[%s7116_s10 + $0xd0] sm:$0xff] %vm5768_vm15, %v12120_v20  ;;  %5828 = vst.msk [vmem:[%s7116_s10 + $0xd8] sm:$0xff] %vm5768_vm15, %v12120_v20 }
 0x787   : > { %v5250_v52 = vadd.f32 %v5218_v40, %v4994_v27  ;;  %v5251_v39 = vadd.f32 %v5219_v45, %v4995_v60 }
 0x788   : > { %v5183_v61 = vpop.permute.xlu1 %5182  ;;  %v5188_v47 = vpop.permute.xlu0 %5187 }
 0x789   : > { %5283 = vst.msk [vmem:[%s7116_s10 + $0xe0] sm:$0xff] %vm5254_vm14, %v5250_v52  ;;  %5284 = vst.msk [vmem:[%s7116_s10 + $0xe8] sm:$0xff] %vm5254_vm14, %v5251_v39  ;;  %v5220_v55 = vmul.f32 %v5183_v61, %v5028_v33  ;;  %v5221_v15 = vmul.f32 %v5188_v47, %v5029_v1  ;;  %5663 = vperm.xlu1 %6367, %v11095_v7   ;;  %5668 = vperm.xlu0 %6366, %v11092_v34  }
 0x78a   : > { %5829 = vst.msk [vmem:[%s7116_s10 + $0xe0] sm:$0xff] %vm5768_vm15, %v12120_v20  ;;  %5830 = vst.msk [vmem:[%s7116_s10 + $0xe8] sm:$0xff] %vm5768_vm15, %v12120_v20 }
 0x78b   : > { %v5252_v30 = vadd.f32 %v5220_v55, %v4996_v58  ;;  %v5253_v12 = vadd.f32 %v5221_v15, %v4997_v9 }
 0x78c   : > { %v5290_v46 = vpop.permute.xlu1 %5289  ;;  %v5295_v63 = vpop.permute.xlu0 %5294 }
 0x78d   : > { %5285 = vst.msk [vmem:[%s7116_s10 + $0xf0] sm:$0xff] %vm5254_vm14, %v5252_v30  ;;  %5286 = vst.msk [vmem:[%s7116_s10 + $0xf8] sm:$0xff] %vm5254_vm14, %v5253_v12  ;;  %v5447_v30 = vmul.f32 %v5290_v46, %v11179_v53  ;;  %v12347_v12 = vld [vmem:[#allocation112_spill] sm:$0xff] }
 0x78e   : > { %5831 = vst.msk [vmem:[%s7116_s10 + $0xf0] sm:$0xff] %vm5768_vm15, %v12120_v20  ;;  %5832 = vst.msk [vmem:[%s7116_s10 + $0xf8] sm:$0xff] %vm5768_vm15, %v12120_v20  ;;  %v5448_v20 = vmul.f32 %v5295_v63, %v12347_v12  ;;  %v12356_v12 = vld [vmem:[#allocation52_spill] sm:$0xff] }
 0x790   : > { %v5300_v34 = vpop.permute.xlu1 %5299  ;;  %v5305_v7 = vpop.permute.xlu0 %5304 }
 0x791   : > { %v5449_v54 = vmul.f32 %v5300_v34, %v11192_v24  ;;  %v5450_v49 = vmul.f32 %v5305_v7, %v11195_v28  ;;  %v12350_v24 = vld [vmem:[#allocation48_spill] sm:$0xff]  ;;  %v12351_v34 = vld [vmem:[#allocation47_spill] sm:$0xff] }
 0x793   : > { %v5481_v28 = vadd.f32 %v5449_v54, %v12350_v24  ;;  %v12357_v24 = vld [vmem:[#allocation57_spill] sm:$0xff] }
 0x794   : > { %v5310_v10 = vpop.permute.xlu1 %5309  ;;  %v5315_v48 = vpop.permute.xlu0 %5314 }
 0x795   : > { %v5451_v46 = vmul.f32 %v5310_v10, %v11209_v11  ;;  %v5452_v63 = vmul.f32 %v5315_v48, %v11202_v19 }
 0x798   : > { %v5320_v38 = vpop.permute.xlu1 %5319  ;;  %v5325_v6 = vpop.permute.xlu0 %5324 }
 0x799   : > { %v5453_v10 = vmul.f32 %v5320_v38, %v11225_v56  ;;  %v5454_v48 = vmul.f32 %v5325_v6, %v11228_v8 }
 0x79c   : > { %v5330_v18 = vpop.permute.xlu1 %5329  ;;  %v5335_v23 = vpop.permute.xlu0 %5334 }
 0x79d   : > { %v5455_v6 = vmul.f32 %v5330_v18, %v11248_v26 }
 0x7a0   : > { %v11599_v31 = vpop.permute.xlu1 %5339  ;;  %v11601_v60 = vpop.permute.xlu0 %5344 }
 0x7a4   : > { %v11603_v4 = vpop.permute.xlu1 %5349  ;;  %v11605_v16 = vpop.permute.xlu0 %5354 }
 0x7a8   : > { %v11607_v27 = vpop.permute.xlu1 %5359  ;;  %v11609_v0 = vpop.permute.xlu0 %5364 }
 0x7ac   : > { %v11611_v40 = vpop.permute.xlu1 %5369  ;;  %v11613_v45 = vpop.permute.xlu0 %5374 }
 0x7b0   : > { %v11615_v42 = vpop.permute.xlu1 %5379  ;;  %v11617_v41 = vpop.permute.xlu0 %5384 }
 0x7b4   : > { %v11619_v52 = vpop.permute.xlu1 %5389  ;;  %v11621_v39 = vpop.permute.xlu0 %5394 }
 0x7b8   : > { %v11623_v33 = vpop.permute.xlu1 %5399  ;;  %v11625_v1 = vpop.permute.xlu0 %5404 }
 0x7bc   : > { %v11627_v9 = vpop.permute.xlu1 %5409  ;;  %v11629_v61 = vpop.permute.xlu0 %5414 }
 0x7bd   : > { %12342 = vst [vmem:[#allocation90_spill] sm:$0xff] %v11629_v61 }
 0x7c0   : > { %v11631_v47 = vpop.permute.xlu1 %5419  ;;  %v11633_v58 = vpop.permute.xlu0 %5424 }
 0x7c1   : > { %12343 = vst [vmem:[#allocation59_spill] sm:$0xff] %v11631_v47  ;;  %12344 = vst [vmem:[#allocation58_spill] sm:$0xff] %v11633_v58  ;;  %v12348_v58 = vld [vmem:[#allocation46_spill] sm:$0xff]  ;;  %v5480_v47 = vadd.f32 %v5448_v20, %v12349_v35  ;;  %v5482_v20 = vadd.f32 %v5450_v49, %v12351_v34  ;;  %v12352_v35 = vmov 0.0   ;;  %v12358_v34 = vld [vmem:[#allocation56_spill] sm:$0xff] }
 0x7c2   : > { %v12353_v49 = vld [vmem:[#allocation50_spill] sm:$0xff] }
 0x7c3   : > { %v5483_v54 = vadd.f32 %v5451_v46, %v12353_v49 }
 0x7c4   : > { %v11635_v55 = vpop.permute.xlu1 %5429  ;;  %v11637_v15 = vpop.permute.xlu0 %5434 }
 0x7c5   : > { %12345 = vst [vmem:[#allocation93_spill] sm:$0xff] %v11635_v55  ;;  %12346 = vst [vmem:[#allocation92_spill] sm:$0xff] %v11637_v15  ;;  %v5479_v55 = vadd.f32 %v5447_v30, %v12348_v58 }
 0x7c8   : > { %v11641_v17 = vpop.permute.xlu1 %5439  ;;  %v11643_v13 = vpop.permute.xlu0 %5444 }
 0x7cc   : > { %v5514_v15 = vpop.permute.xlu1 %5513  ;;  %v5519_v36 = vpop.permute.xlu0 %5518 }
 0x7cd   : > { %v5671_v61 = vmul.f32 %v5514_v15, %v5479_v55  ;;  %v5672_v53 = vmul.f32 %v5519_v36, %v5480_v47  ;;  %v5456_v55 = vmul.f32 %v5335_v23, %v11251_v50  ;;  %v12355_v15 = vld [vmem:[#allocation53_spill] sm:$0xff]  ;;  %v5457_v23 = vmul.f32 %v11599_v31, %v11275_v5 }
 0x7ce   : > { %v5485_v30 = vadd.f32 %v5453_v10, %v12355_v15  ;;  %v12360_v10 = vld [vmem:[#allocation60_spill] sm:$0xff] }
 0x7cf   : > { %5703 = vst.msk [vmem:[%s7114_s0] sm:$0xff] %vm5254_vm14, %v5671_v61  ;;  %5704 = vst.msk [vmem:[%s7114_s0 + $0x8] sm:$0xff] %vm5254_vm14, %v5672_v53  ;;  %v12354_v61 = vld [vmem:[#allocation49_spill] sm:$0xff]  ;;  %v5486_v53 = vadd.f32 %v5454_v48, %v12356_v12  ;;  %v12364_v15 = vld [vmem:[#allocation68_spill] sm:$0xff] }
 0x7d0   : > { %5769 = vst.msk [vmem:[%s7114_s0] sm:$0xff] %vm5768_vm15, %v12352_v35  ;;  %5770 = vst.msk [vmem:[%s7114_s0 + $0x8] sm:$0xff] %vm5768_vm15, %v12352_v35  ;;  %v5524_v36 = vpop.permute.xlu1 %5523  ;;  %v5529_v11 = vpop.permute.xlu0 %5528  ;;  %v5484_v47 = vadd.f32 %v5452_v63, %v12354_v61  ;;  %v5458_v63 = vmul.f32 %v11601_v60, %v11278_v51  ;;  %v5459_v60 = vmul.f32 %v11603_v4, %v11300_v59  ;;  %v12361_v61 = vld [vmem:[#allocation65_spill] sm:$0xff] }
 0x7d1   : > { %v5673_v7 = vmul.f32 %v5524_v36, %v5481_v28  ;;  %v5674_v19 = vmul.f32 %v5529_v11, %v5482_v20  ;;  %v5487_v28 = vadd.f32 %v5455_v6, %v12357_v24  ;;  %v5488_v20 = vadd.f32 %v5456_v55, %v12358_v34  ;;  %v12363_v6 = vld [vmem:[#allocation69_spill] sm:$0xff]  ;;  %v12368_v34 = vld [vmem:[#allocation76_spill] sm:$0xff] }
 0x7d2   : > { %v5460_v11 = vmul.f32 %v11605_v16, %v11303_v62  ;;  %v5490_v48 = vadd.f32 %v5458_v63, %v12360_v10  ;;  %v5461_v16 = vmul.f32 %v11607_v27, %v11327_v37  ;;  %v5468_v63 = vmul.f32 %v11621_v39, %v11407_v32  ;;  %v12367_v24 = vld [vmem:[#allocation77_spill] sm:$0xff] }
 0x7d3   : > { %5705 = vst.msk [vmem:[%s7114_s0 + $0x10] sm:$0xff] %vm5254_vm14, %v5673_v7  ;;  %5706 = vst.msk [vmem:[%s7114_s0 + $0x18] sm:$0xff] %vm5254_vm14, %v5674_v19  ;;  %v12359_v7 = vld [vmem:[#allocation61_spill] sm:$0xff]  ;;  %v5469_v39 = vmul.f32 %v11623_v33, %v11431_v29 }
 0x7d4   : > { %5771 = vst.msk [vmem:[%s7114_s0 + $0x10] sm:$0xff] %vm5768_vm15, %v12352_v35  ;;  %5772 = vst.msk [vmem:[%s7114_s0 + $0x18] sm:$0xff] %vm5768_vm15, %v12352_v35  ;;  %v5534_v58 = vpop.permute.xlu1 %5533  ;;  %v5539_v56 = vpop.permute.xlu0 %5538  ;;  %v5489_v19 = vadd.f32 %v5457_v23, %v12359_v7  ;;  %v5493_v55 = vadd.f32 %v5461_v16, %v12363_v6  ;;  %v12374_v16 = vld [vmem:[#allocation51_spill] sm:$0xff] }
 0x7d5   : > { %v5675_v38 = vmul.f32 %v5534_v58, %v5483_v54  ;;  %v5676_v8 = vmul.f32 %v5539_v56, %v5484_v47  ;;  %v5462_v54 = vmul.f32 %v11609_v0, %v11330_v43  ;;  %v5491_v47 = vadd.f32 %v5459_v60, %v12361_v61  ;;  %v12362_v58 = vld [vmem:[#allocation64_spill] sm:$0xff] }
 0x7d6   : > { %v5492_v56 = vadd.f32 %v5460_v11, %v12362_v58  ;;  %v5463_v0 = vmul.f32 %v11611_v40, %v11352_v14  ;;  %v12370_v60 = vld [vmem:[#allocation80_spill] sm:$0xff]  ;;  %v12377_v58 = vld [vmem:[#allocation58_spill] sm:$0xff] }
 0x7d7   : > { %5707 = vst.msk [vmem:[%s7114_s0 + $0x20] sm:$0xff] %vm5254_vm14, %v5675_v38  ;;  %5708 = vst.msk [vmem:[%s7114_s0 + $0x28] sm:$0xff] %vm5254_vm14, %v5676_v8  ;;  %v5464_v8 = vmul.f32 %v11613_v45, %v11355_v44  ;;  %v5465_v45 = vmul.f32 %v11615_v42, %v11379_v25  ;;  %v5500_v11 = vadd.f32 %v5468_v63, %v12370_v60 }
 0x7d8   : > { %5773 = vst.msk [vmem:[%s7114_s0 + $0x20] sm:$0xff] %vm5768_vm15, %v12352_v35  ;;  %5774 = vst.msk [vmem:[%s7114_s0 + $0x28] sm:$0xff] %vm5768_vm15, %v12352_v35  ;;  %v5544_v46 = vpop.permute.xlu1 %5543  ;;  %v5549_v26 = vpop.permute.xlu0 %5548 }
 0x7d9   : > { %v5677_v18 = vmul.f32 %v5544_v46, %v5485_v30  ;;  %v5678_v50 = vmul.f32 %v5549_v26, %v5486_v53  ;;  %v5494_v30 = vadd.f32 %v5462_v54, %v12364_v15  ;;  %v5466_v53 = vmul.f32 %v11617_v41, %v11382_v2  ;;  %v12365_v46 = vld [vmem:[#allocation73_spill] sm:$0xff]  ;;  %v12375_v54 = vld [vmem:[#allocation59_spill] sm:$0xff]  ;;  %v12380_v15 = vld [vmem:[#allocation32_spill] sm:$0xff] }
 0x7da   : > { %v5495_v26 = vadd.f32 %v5463_v0, %v12365_v46  ;;  %v5467_v41 = vmul.f32 %v11619_v52, %v11404_v21  ;;  %v5473_v61 = vmul.f32 %v12375_v54, %v12374_v16  ;;  %v12385_v46 = vld [vmem:[#allocation34_spill] sm:$0xff] }
 0x7db   : > { %5709 = vst.msk [vmem:[%s7114_s0 + $0x30] sm:$0xff] %vm5254_vm14, %v5677_v18  ;;  %5710 = vst.msk [vmem:[%s7114_s0 + $0x38] sm:$0xff] %vm5254_vm14, %v5678_v50  ;;  %v12366_v18 = vld [vmem:[#allocation72_spill] sm:$0xff] }
 0x7dc   : > { %5775 = vst.msk [vmem:[%s7114_s0 + $0x30] sm:$0xff] %vm5768_vm15, %v12352_v35  ;;  %5776 = vst.msk [vmem:[%s7114_s0 + $0x38] sm:$0xff] %vm5768_vm15, %v12352_v35  ;;  %v5554_v5 = vpop.permute.xlu1 %5553  ;;  %v5559_v31 = vpop.permute.xlu0 %5558  ;;  %v5496_v50 = vadd.f32 %v5464_v8, %v12366_v18 }
 0x7dd   : > { %v5679_v36 = vmul.f32 %v5554_v5, %v5487_v28  ;;  %v5680_v51 = vmul.f32 %v5559_v31, %v5488_v20  ;;  %v5497_v28 = vadd.f32 %v5465_v45, %v12367_v24  ;;  %v5498_v20 = vadd.f32 %v5466_v53, %v12368_v34  ;;  %v12384_v45 = vld [vmem:[#allocation40_spill] sm:$0xff]  ;;  %v12388_v24 = vld [vmem:[#allocation42_spill] sm:$0xff] }
 0x7de   : > { %v5470_v31 = vmul.f32 %v11625_v1, %v11434_v3  ;;  %v5471_v1 = vmul.f32 %v11627_v9, %v11456_v57  ;;  %v5505_v53 = vadd.f32 %v5473_v61, %v12384_v45  ;;  %v12389_v34 = vld [vmem:[#allocation36_spill] sm:$0xff] }
 0x7df   : > { %5711 = vst.msk [vmem:[%s7114_s0 + $0x40] sm:$0xff] %vm5254_vm14, %v5679_v36  ;;  %5712 = vst.msk [vmem:[%s7114_s0 + $0x48] sm:$0xff] %vm5254_vm14, %v5680_v51  ;;  %v12369_v36 = vld [vmem:[#allocation81_spill] sm:$0xff] }
 0x7e0   : > { %5777 = vst.msk [vmem:[%s7114_s0 + $0x40] sm:$0xff] %vm5768_vm15, %v12352_v35  ;;  %5778 = vst.msk [vmem:[%s7114_s0 + $0x48] sm:$0xff] %vm5768_vm15, %v12352_v35  ;;  %v5564_v59 = vpop.permute.xlu1 %5563  ;;  %v5569_v4 = vpop.permute.xlu0 %5568  ;;  %v5499_v51 = vadd.f32 %v5467_v41, %v12369_v36  ;;  %v12387_v41 = vld [vmem:[#allocation91_spill] sm:$0xff] }
 0x7e1   : > { %v5681_v49 = vmul.f32 %v5564_v59, %v5489_v19  ;;  %v5682_v62 = vmul.f32 %v5569_v4, %v5490_v48  ;;  %v12371_v19 = vld [vmem:[#allocation90_spill] sm:$0xff]  ;;  %v12372_v48 = vld [vmem:[#allocation85_spill] sm:$0xff]  ;;  %v12373_v4 = vld [vmem:[#allocation84_spill] sm:$0xff]  ;;  %v5478_v63 = vmul.f32 %v11643_v13, %v12387_v41 }
 0x7e2   : > { %v5472_v10 = vmul.f32 %v12371_v19, %v11459_v22  ;;  %v5501_v59 = vadd.f32 %v5469_v39, %v12372_v48  ;;  %v12391_v39 = vld [vmem:[#allocation38_spill] sm:$0xff] }
 0x7e3   : > { %5713 = vst.msk [vmem:[%s7114_s0 + $0x50] sm:$0xff] %vm5254_vm14, %v5681_v49  ;;  %5714 = vst.msk [vmem:[%s7114_s0 + $0x58] sm:$0xff] %vm5254_vm14, %v5682_v62  ;;  %v5502_v49 = vadd.f32 %v5470_v31, %v12373_v4  ;;  %v5510_v31 = vadd.f32 %v5478_v63, %v12391_v39 }
 0x7e4   : > { %5779 = vst.msk [vmem:[%s7114_s0 + $0x50] sm:$0xff] %vm5768_vm15, %v12352_v35  ;;  %5780 = vst.msk [vmem:[%s7114_s0 + $0x58] sm:$0xff] %vm5768_vm15, %v12352_v35  ;;  %v5574_v37 = vpop.permute.xlu1 %5573  ;;  %v5579_v27 = vpop.permute.xlu0 %5578 }
 0x7e5   : > { %v5683_v38 = vmul.f32 %v5574_v37, %v5491_v47  ;;  %v5684_v43 = vmul.f32 %v5579_v27, %v5492_v56  ;;  %v12376_v47 = vld [vmem:[#allocation31_spill] sm:$0xff]  ;;  %v12378_v37 = vld [vmem:[#allocation89_spill] sm:$0xff] }
 0x7e6   : > { %v5474_v56 = vmul.f32 %v12377_v58, %v12376_v47  ;;  %v5503_v27 = vadd.f32 %v5471_v1, %v12378_v37 }
 0x7e7   : > { %5715 = vst.msk [vmem:[%s7114_s0 + $0x60] sm:$0xff] %vm5254_vm14, %v5683_v38  ;;  %5716 = vst.msk [vmem:[%s7114_s0 + $0x68] sm:$0xff] %vm5254_vm14, %v5684_v43  ;;  %v12379_v38 = vld [vmem:[#allocation88_spill] sm:$0xff] }
 0x7e8   : > { %5781 = vst.msk [vmem:[%s7114_s0 + $0x60] sm:$0xff] %vm5768_vm15, %v12352_v35  ;;  %5782 = vst.msk [vmem:[%s7114_s0 + $0x68] sm:$0xff] %vm5768_vm15, %v12352_v35  ;;  %v5584_v14 = vpop.permute.xlu1 %5583  ;;  %v5589_v40 = vpop.permute.xlu0 %5588  ;;  %v5504_v43 = vadd.f32 %v5472_v10, %v12379_v38 }
 0x7e9   : > { %v5685_v12 = vmul.f32 %v5584_v14, %v5493_v55  ;;  %v5686_v44 = vmul.f32 %v5589_v40, %v5494_v30  ;;  %v12381_v30 = vld [vmem:[#allocation93_spill] sm:$0xff]  ;;  %v12382_v40 = vld [vmem:[#allocation55_spill] sm:$0xff] }
 0x7ea   : > { %v5475_v14 = vmul.f32 %v12381_v30, %v12380_v15 }
 0x7eb   : > { %5717 = vst.msk [vmem:[%s7114_s0 + $0x70] sm:$0xff] %vm5254_vm14, %v5685_v12  ;;  %5718 = vst.msk [vmem:[%s7114_s0 + $0x78] sm:$0xff] %vm5254_vm14, %v5686_v44  ;;  %v12383_v12 = vld [vmem:[#allocation92_spill] sm:$0xff] }
 0x7ec   : > { %5783 = vst.msk [vmem:[%s7114_s0 + $0x70] sm:$0xff] %vm5768_vm15, %v12352_v35  ;;  %5784 = vst.msk [vmem:[%s7114_s0 + $0x78] sm:$0xff] %vm5768_vm15, %v12352_v35  ;;  %v5594_v25 = vpop.permute.xlu1 %5593  ;;  %v5599_v42 = vpop.permute.xlu0 %5598  ;;  %v5476_v44 = vmul.f32 %v12383_v12, %v12382_v40 }
 0x7ed   : > { %v5687_v23 = vmul.f32 %v5594_v25, %v5495_v26  ;;  %v5688_v2 = vmul.f32 %v5599_v42, %v5496_v50  ;;  %v5506_v26 = vadd.f32 %v5474_v56, %v12385_v46 }
 0x7ef   : > { %5719 = vst.msk [vmem:[%s7114_s0 + $0x80] sm:$0xff] %vm5254_vm14, %v5687_v23  ;;  %5720 = vst.msk [vmem:[%s7114_s0 + $0x88] sm:$0xff] %vm5254_vm14, %v5688_v2  ;;  %v12386_v23 = vld [vmem:[#allocation54_spill] sm:$0xff] }
 0x7f0   : > { %5785 = vst.msk [vmem:[%s7114_s0 + $0x80] sm:$0xff] %vm5768_vm15, %v12352_v35  ;;  %5786 = vst.msk [vmem:[%s7114_s0 + $0x88] sm:$0xff] %vm5768_vm15, %v12352_v35  ;;  %v5604_v21 = vpop.permute.xlu1 %5603  ;;  %v5609_v52 = vpop.permute.xlu0 %5608  ;;  %v5477_v2 = vmul.f32 %v11641_v17, %v12386_v23 }
 0x7f1   : > { %v5689_v5 = vmul.f32 %v5604_v21, %v5497_v28  ;;  %v5690_v32 = vmul.f32 %v5609_v52, %v5498_v20  ;;  %v5507_v28 = vadd.f32 %v5475_v14, %v12388_v24  ;;  %v5508_v20 = vadd.f32 %v5476_v44, %v12389_v34 }
 0x7f3   : > { %5721 = vst.msk [vmem:[%s7114_s0 + $0x90] sm:$0xff] %vm5254_vm14, %v5689_v5  ;;  %5722 = vst.msk [vmem:[%s7114_s0 + $0x98] sm:$0xff] %vm5254_vm14, %v5690_v32  ;;  %v12390_v5 = vld [vmem:[#allocation44_spill] sm:$0xff] }
 0x7f4   : > { %5787 = vst.msk [vmem:[%s7114_s0 + $0x90] sm:$0xff] %vm5768_vm15, %v12352_v35  ;;  %5788 = vst.msk [vmem:[%s7114_s0 + $0x98] sm:$0xff] %vm5768_vm15, %v12352_v35  ;;  %v5614_v29 = vpop.permute.xlu1 %5613  ;;  %v5619_v33 = vpop.permute.xlu0 %5618  ;;  %v5509_v32 = vadd.f32 %v5477_v2, %v12390_v5 }
 0x7f5   : > { %v5691_v7 = vmul.f32 %v5614_v29, %v5499_v51  ;;  %v5692_v3 = vmul.f32 %v5619_v33, %v5500_v11 }
 0x7f7   : > { %5723 = vst.msk [vmem:[%s7114_s0 + $0xa0] sm:$0xff] %vm5254_vm14, %v5691_v7  ;;  %5724 = vst.msk [vmem:[%s7114_s0 + $0xa8] sm:$0xff] %vm5254_vm14, %v5692_v3 }
 0x7f8   : > { %5789 = vst.msk [vmem:[%s7114_s0 + $0xa0] sm:$0xff] %vm5768_vm15, %v12352_v35  ;;  %5790 = vst.msk [vmem:[%s7114_s0 + $0xa8] sm:$0xff] %vm5768_vm15, %v12352_v35  ;;  %v5624_v57 = vpop.permute.xlu1 %5623  ;;  %v5629_v9 = vpop.permute.xlu0 %5628 }
 0x7f9   : > { %v5693_v62 = vmul.f32 %v5624_v57, %v5501_v59  ;;  %v5694_v22 = vmul.f32 %v5629_v9, %v5502_v49 }
 0x7fb   : > { %5725 = vst.msk [vmem:[%s7114_s0 + $0xb0] sm:$0xff] %vm5254_vm14, %v5693_v62  ;;  %5726 = vst.msk [vmem:[%s7114_s0 + $0xb8] sm:$0xff] %vm5254_vm14, %v5694_v22 }
 0x7fc   : > { %5791 = vst.msk [vmem:[%s7114_s0 + $0xb0] sm:$0xff] %vm5768_vm15, %v12352_v35  ;;  %5792 = vst.msk [vmem:[%s7114_s0 + $0xb8] sm:$0xff] %vm5768_vm15, %v12352_v35  ;;  %v5634_v0 = vpop.permute.xlu1 %5633  ;;  %v5639_v8 = vpop.permute.xlu0 %5638 }
 0x7fd   : > { %v5695_v6 = vmul.f32 %v5634_v0, %v5503_v27  ;;  %v5696_v55 = vmul.f32 %v5639_v8, %v5504_v43 }
 0x7ff   : > { %5727 = vst.msk [vmem:[%s7114_s0 + $0xc0] sm:$0xff] %vm5254_vm14, %v5695_v6  ;;  %5728 = vst.msk [vmem:[%s7114_s0 + $0xc8] sm:$0xff] %vm5254_vm14, %v5696_v55 }
 0x800   : > { %5793 = vst.msk [vmem:[%s7114_s0 + $0xc0] sm:$0xff] %vm5768_vm15, %v12352_v35  ;;  %5794 = vst.msk [vmem:[%s7114_s0 + $0xc8] sm:$0xff] %vm5768_vm15, %v12352_v35  ;;  %v5644_v18 = vpop.permute.xlu1 %5643  ;;  %v5649_v50 = vpop.permute.xlu0 %5648 }
 0x801   : > { %v5697_v25 = vmul.f32 %v5644_v18, %v5505_v53  ;;  %v5698_v42 = vmul.f32 %v5649_v50, %v5506_v26 }
 0x803   : > { %5729 = vst.msk [vmem:[%s7114_s0 + $0xd0] sm:$0xff] %vm5254_vm14, %v5697_v25  ;;  %5730 = vst.msk [vmem:[%s7114_s0 + $0xd8] sm:$0xff] %vm5254_vm14, %v5698_v42 }
 0x804   : > { %5795 = vst.msk [vmem:[%s7114_s0 + $0xd0] sm:$0xff] %vm5768_vm15, %v12352_v35  ;;  %5796 = vst.msk [vmem:[%s7114_s0 + $0xd8] sm:$0xff] %vm5768_vm15, %v12352_v35  ;;  %v5654_v17 = vpop.permute.xlu1 %5653  ;;  %v5659_v13 = vpop.permute.xlu0 %5658 }
 0x805   : > { %v5699_v21 = vmul.f32 %v5654_v17, %v5507_v28  ;;  %v5700_v52 = vmul.f32 %v5659_v13, %v5508_v20 }
 0x807   : > { %5731 = vst.msk [vmem:[%s7114_s0 + $0xe0] sm:$0xff] %vm5254_vm14, %v5699_v21  ;;  %5732 = vst.msk [vmem:[%s7114_s0 + $0xe8] sm:$0xff] %vm5254_vm14, %v5700_v52 }
 0x808   : > { %5797 = vst.msk [vmem:[%s7114_s0 + $0xe0] sm:$0xff] %vm5768_vm15, %v12352_v35  ;;  %5798 = vst.msk [vmem:[%s7114_s0 + $0xe8] sm:$0xff] %vm5768_vm15, %v12352_v35  ;;  %v5664_v36 = vpop.permute.xlu1 %5663  ;;  %v5669_v51 = vpop.permute.xlu0 %5668 }
 0x809   : > { %v5701_v60 = vmul.f32 %v5664_v36, %v5509_v32  ;;  %v5702_v11 = vmul.f32 %v5669_v51, %v5510_v31 }
 0x80b   : > { %5733 = vst.msk [vmem:[%s7114_s0 + $0xf0] sm:$0xff] %vm5254_vm14, %v5701_v60  ;;  %5734 = vst.msk [vmem:[%s7114_s0 + $0xf8] sm:$0xff] %vm5254_vm14, %v5702_v11 }
 0x80c   : > { %5799 = vst.msk [vmem:[%s7114_s0 + $0xf0] sm:$0xff] %vm5768_vm15, %v12352_v35  ;;  %5800 = vst.msk [vmem:[%s7114_s0 + $0xf8] sm:$0xff] %vm5768_vm15, %v12352_v35 }
 0x80d PF: > { %s6131_s22 = sshll.u32 %s6736_s8, 12  ;;  %s12392_s21 = sld [smem:[#allocation116_spill]] }
 0x80e   : > { %s5857_s20 = sshll.u32 %s7114_s0, 4  ;;  %s5834_s6 = scalar_lea.sflag [#allocation5], %s7089_s16  ;;  %s11898_s20 = int_to_ptr.vmem [resolvable:$true] %s5857_s20 }
 0x80f   : > { %s6586_s30 = scalar_lea.vmem %s11898_s20, 4096  ;;  %p12393_p10 = scmp.ne.s32.totalorder %s12150_s14, 0 }
 0x810   : > { %p6587_p7 = scmp.ne.s32.totalorder %s11898_s20, %s6586_s30  ;;  %s6767_s12 = smov [#allocation9]  }
 0x811   : > { %s6590_s3 = sshll.u32 %s6767_s12, 4  ;;  %s6591_s3 = int_to_ptr.vmem [resolvable:$false] %s6590_s3 }
 0x812   : > { %p6588_p13 = pnand %p6587_p7, %p12393_p10  ;;  %s6592_s1 = scalar_lea.vmem %s6591_s3, 8192 }
 0x813   : > { %s11895_s23 = scalar_lea.hbm %s12392_s21, %s6131_s22  ;;  %p6593_p6 = scmp.lt.s32.totalorder %s11898_s20, %s6591_s3 }
 0x814   : > { %p6589_p12 = pneg %p6588_p13  ;;  %p6594_p8 = scmp.lt.s32.totalorder %s6592_s1, %s6586_s30 }
 0x816   : > { %p6595_p2 = por %p6594_p8, %p6593_p6 }
 0x818   : > { %p6596_p9 = pnand %p6595_p2, %p6589_p12 }
 0x81a   : > { %6599 = shalt.err (!%p6596_p9)
}
 0x81b   : > { %s6600_s0 = scalar_lea.hbm %s11895_s23, 4096  ;;  %s6604_s19 = scalar_lea.hbm %s12392_s21, 8192 }
 0x81c   : > { %p6601_p1 = scmp.ne.s32.totalorder %s11895_s23, %s6600_s0  ;;  %p6605_p5 = scmp.lt.u32.totalorder %s11895_s23, %s12392_s21 }
 0x81d   : > { %p6606_p3 = scmp.lt.u32.totalorder %s6604_s19, %s6600_s0  ;;  %p6608_p7 = scmp.lt.u32.totalorder %s6600_s0, %s11895_s23 }
 0x81e   : > { %p6602_p0 = pnand %p6601_p1, %p12393_p10 }
 0x81f   : > { %p6607_p4 = por %p6606_p3, %p6605_p5 }
 0x820   : > { %p6603_p11 = pneg %p6602_p0 }
 0x821   : > { %p6609_p13 = por %p6608_p7, %p6607_p4 }
 0x823   : > { %p6610_p12 = pnand %p6609_p13, %p6603_p11 }
 0x825   : > { %6613 = shalt.err (!%p6610_p12)
}
 0x826   : > { %s6768_s18 = smov 128   ;;  %s6769_s30 = smov 8  }
 0x827   : > { %6229 = dma.vmem_to_hbm [thread:$0]  (%p12393_p10), %s11898_s20, 4096, %s11895_s23, %s5834_s6, %s6768_s18, %s6768_s18, %s6769_s30  }
 0x828   : > { %s12394_s1 = sld [smem:[#allocation117_spill]]  ;;  %s5873_s15 = sshll.u32 %s7116_s10, 4  ;;  %s11935_s15 = int_to_ptr.vmem [resolvable:$true] %s5873_s15 }
 0x829   : > { %s5839_s29 = scalar_lea.sflag [#allocation11], %s7089_s16  ;;  %s6614_s19 = scalar_lea.vmem %s11935_s15, 4096 }
 0x82a   : > { %p6615_p6 = scmp.ne.s32.totalorder %s11935_s15, %s6614_s19  ;;  %s6770_s13 = smov [#allocation10]  }
 0x82b   : > { %s6618_s23 = sshll.u32 %s6770_s13, 4  ;;  %s6619_s23 = int_to_ptr.vmem [resolvable:$false] %s6618_s23 }
 0x82c   : > { %p6616_p8 = pnand %p6615_p6, %p12393_p10  ;;  %s6620_s8 = scalar_lea.vmem %s6619_s23, 8192 }
 0x82d   : > { %p6621_p9 = scmp.lt.s32.totalorder %s11935_s15, %s6619_s23  ;;  %p6622_p1 = scmp.lt.s32.totalorder %s6620_s8, %s6614_s19 }
 0x82e   : > { %s11932_s0 = scalar_lea.hbm %s12394_s1, %s6131_s22  ;;  %p6617_p2 = pneg %p6616_p8 }
 0x82f   : > { %p6623_p0 = por %p6622_p1, %p6621_p9 }
 0x831   : > { %p6624_p11 = pnand %p6623_p0, %p6617_p2 }
 0x833   : > { %6627 = shalt.err (!%p6624_p11)
}
 0x834   : > { %s6628_s10 = scalar_lea.hbm %s11932_s0, 4096  ;;  %s6632_s6 = scalar_lea.hbm %s12394_s1, 8192 }
 0x835   : > { %p6629_p5 = scmp.ne.s32.totalorder %s11932_s0, %s6628_s10  ;;  %p6633_p7 = scmp.lt.u32.totalorder %s11932_s0, %s12394_s1 }
 0x836   : > { %p6634_p13 = scmp.lt.u32.totalorder %s6632_s6, %s6628_s10  ;;  %p6636_p6 = scmp.lt.u32.totalorder %s6628_s10, %s11932_s0 }
 0x837   : > { %p6630_p3 = pnand %p6629_p5, %p12393_p10 }
 0x838   : > { %p6635_p12 = por %p6634_p13, %p6633_p7 }
 0x839   : > { %p6631_p4 = pneg %p6630_p3 }
 0x83a   : > { %p6637_p8 = por %p6636_p6, %p6635_p12 }
 0x83c   : > { %p6638_p2 = pnand %p6637_p8, %p6631_p4 }
 0x83e   : > { %6641 = shalt.err (!%p6638_p2)
}
 0x83f   : > { %6230 = dma.vmem_to_hbm [thread:$0]  (%p12393_p10), %s11935_s15, 4096, %s11932_s0, %s5839_s29, %s6768_s18, %s6768_s18, %s6769_s30  }
 0x840 PF: > { %p6251_p9 = scmp.ge.s32.totalorder %s6748_s11, 2  ;;  %s5892_s3 = sand.u32 1, %s6708_s24  }
 0x841   : > { %p12395_p1 = scmp.ne.s32.totalorder %s12151_s5, 0  ;;  %s5893_s19 = scalar_lea.sflag [#allocation5], %s5892_s3 }
 0x843   : > { %p6244_p0 = pnand %p6251_p9, %p12395_p1 }
 0x845   : > { %6699 = dma.done.wait (!%p6244_p0), %s5893_s19, 4096  }
 0x846   : > { %6701 = vsyncadd (!%p6244_p0), %s5893_s19, 4294963200  ;;  %s5902_s14 = scalar_lea.sflag [#allocation11], %s5892_s3 }
 0x847   : > { %6703 = dma.done.wait (!%p6244_p0), %s5902_s14, 4096  }
 0x848   : > { %6705 = vsyncadd (!%p6244_p0), %s5902_s14, 4294963200  ;;  %s30_s11 = sadd.s32 1, %s6748_s11   ;;  %s12396_s16 = sld [smem:[#allocation17_spill]] }
 0x849   : > { %p27_p11 = scmp.ge.s32.totalorder %s30_s11, 6   ;;  %s12397_s29 = sld [smem:[#allocation21_spill]] }
 0x84a   : > { %s12398_s8 = sld [smem:[#allocation19_spill]]  ;;  %s12399_s18 = sld [smem:[#allocation20_spill]] }
 0x84b   : > { %s12400_s10 = sld [smem:[#allocation22_spill]]  ;;  %s12401_s24 = smov %s6712_s25 }
 0x84c   : > { %s12402_s25 = smov %s6716_s26  ;;  %s12403_s26 = smov %s7025_s27 }
 0x84d   : > { %s12404_s27 = smov %s6724_s28  ;;  %s12406_s30 = smov %s6740_s9 }
 0x84e   : > { %s12405_s28 = smov %s12396_s16  ;;  %29 = sbr.rel (!%p27_p11) target bundleno = 19 (0x13), region = 156 }
 0x850   : > { %s12407_s9 = smov %s12399_s18 }
 0x855   :  { %5915 = vsyncpa [#allocation4], 1 }
 0x856   :  { %5917 = vsyncpa [#allocation4 + $0x1], 1 }
 0x857   :  { %5918 = vsyncpa [#allocation7], 1 }
 0x858   :  { %5920 = vsyncpa [#allocation7 + $0x1], 1 }
 0x859   :  { %5921 = vsyncpa [#allocation5], 1 }
 0x85a   :  { %5923 = vsyncpa [#allocation5 + $0x1], 1 }
 0x85b   :  { %5924 = vsyncpa [#allocation11], 1 }
 0x85c   :  { %5926 = vsyncpa [#allocation11 + $0x1], 1 }

</bundles_post_ra>
